<compile_context>
chip_gen: v7x
topology: tpu7x:2x2x1
jax: 0.10.0
libtpu: 0.0.40
codegen_flags: <defaults>
</compile_context>

<pallas_src>
import jax
import jax.numpy as jnp
from jax.experimental import pallas as pl
from jax.experimental.pallas import tpu as pltpu


# Tc: timesteps per grid step of the recurrent kernel (fully unrolled in-kernel).
# Tune per generation / per (B, H): larger amortizes the ~0.35us grid-step
# overhead; bounded by the VMEM budget below (expect ~16-32 on v5e/v6e,
# ~8-16 on v7x at production H~1024, B~128).
TIME_BLOCK = 8
# Explicit scoped-VMEM budget (default scoped limit is 16/32 MiB and would force
# tiny blocks at production sizes; 48 MiB fits under v7x's 64 MiB physical VMEM).
VMEM_LIMIT_BYTES = 48 * 1024 * 1024
DIRECTION_SEMANTICS = "parallel"   # TODO(synk): pltpu.CORE_PARALLEL on v7x


# ---------------------------------------------------------------------------
# Pallas kernels
# ---------------------------------------------------------------------------

def _bilstm_layer_kernel(x_ref, wih_ref, whh_ref, b_ref, len_ref,
                         y_ref, h_ref, c_ref):
    """One fused bidirectional LSTM layer, time-blocked.

    grid = (2, n_tc): axis 0 = direction (parallel), axis 1 = time block
    (arbitrary; h/c are resident accumulators across it).

    x_ref  : (P, Tc, B, Dp) f32  input block. P=1 (embedding) for layer 0,
             P=2 (fwd/bwd hidden of the previous layer) otherwise -> no
             inter-layer concat ever touches HBM.
    wih_ref: (1, P*Dp, 4H) bf16  input-projection weights for this direction
    whh_ref: (1, H, 4H)    bf16  recurrent weights for this direction
    b_ref  : (1, 1, 4H)    f32   combined bias (bias_ih + bias_hh)
    len_ref: (B, 1)        int32 sequence lengths (constant index_map -> 1 DMA)
    y_ref  : (1, Tc, B, H) f32   per-step hidden output (next layer's input)
    h_ref  : (1, B, H)     f32   final hidden (resident across time blocks)
    c_ref  : (1, B, H)     f32   final cell   (resident across time blocks)
    """
    d = pl.program_id(0)
    tc = pl.program_id(1)
    n_tc = pl.num_programs(1)
    P, Tc, B, Dp = x_ref.shape
    H = whh_ref.shape[1]

    @pl.when(tc == 0)
    def _():
        h_ref[...] = jnp.zeros_like(h_ref)
        c_ref[...] = jnp.zeros_like(c_ref)

    # --- fused input projection for the whole time block (bf16 MXU, f32 acc) ---
    # Replaces the materialized gates_x: the MXU is idle during the serial
    # recurrence, so this matmul hides under the per-step EUP/VPU work.
    wih = wih_ref[0]                                        # (P*Dp, 4H) bf16
    gx = b_ref[0].astype(jnp.float32)                       # (1, 4H), broadcast
    for p in range(P):
        xp = x_ref[p].reshape(Tc * B, Dp).astype(jnp.bfloat16)
        gx = gx + jnp.dot(xp, wih[p * Dp:(p + 1) * Dp, :],
                          preferred_element_type=jnp.float32)
    # gx: (Tc*B, 4H) f32, rows j*B:(j+1)*B belong to within-block step j.

    whh = whh_ref[0]                                        # (H, 4H) bf16
    lens = len_ref[...]                                     # (B, 1) int32

    def run_block(js, t_base):
        # Python loop => fully unrolled; every index below is Python-static.
        h = h_ref[0]
        c = c_ref[0]
        for j in js:
            gates = gx[j * B:(j + 1) * B, :] + jnp.dot(
                h.astype(jnp.bfloat16), whh,
                preferred_element_type=jnp.float32)         # (B, 4H) f32
            i_g = jax.nn.sigmoid(gates[:, 0 * H:1 * H])
            f_g = jax.nn.sigmoid(gates[:, 1 * H:2 * H])
            g_g = jnp.tanh(gates[:, 2 * H:3 * H])
            o_g = jax.nn.sigmoid(gates[:, 3 * H:4 * H])
            c_cand = f_g * c + i_g * g_g
            h_cand = o_g * jnp.tanh(c_cand)
            valid = (t_base + j) < lens                     # packed-seq mask
            c = jnp.where(valid, c_cand, c)
            h = jnp.where(valid, h_cand, h)
            y_ref[0, j] = h
        h_ref[0] = h
        c_ref[0] = c

    # Direction-specialized bodies: within-block step order is Python-static
    # (forward: 0..Tc-1, backward: Tc-1..0); block-level time reversal is
    # already handled by the index_maps.
    @pl.when(d == 0)
    def _():
        run_block(list(range(Tc)), tc * Tc)

    @pl.when(d == 1)
    def _():
        run_block(list(range(Tc - 1, -1, -1)), (n_tc - 1 - tc) * Tc)


def _linear_kernel(x_ref, w_ref, b_ref, o_ref):
    o_ref[...] = (jnp.dot(x_ref[...], w_ref[...],
                          preferred_element_type=jnp.float32) + b_ref[...])


# ---------------------------------------------------------------------------
# Wrappers
# ---------------------------------------------------------------------------

def lstm_layer(x, w_ih, w_hh, bias, lengths, Tc):
    """Fused bidirectional LSTM layer.

    x: (P, T_pad, B, Dp) f32 (P=1 embedding, P=2 previous layer's fwd/bwd y).
    Returns y (2, T_pad, B, H) and h_final (2, B, H).
    """
    P, T_pad, B, Dp = x.shape
    H = w_hh.shape[1]
    G = 4 * H
    n_tc = T_pad // Tc

    # Block index along original time: forward walks 0..n_tc-1, backward walks
    # n_tc-1..0 (time reversal lives entirely in the index_maps, no HBM copies).
    def x_map(d, t):
        return (0, (1 - d) * t + d * (n_tc - 1 - t), 0, 0)

    def y_map(d, t):
        return (d, (1 - d) * t + d * (n_tc - 1 - t), 0, 0)

    grid_spec = pltpu.PrefetchScalarGridSpec(
        num_scalar_prefetch=0,
        grid=(2, n_tc),
        in_specs=[
            pl.BlockSpec((P, Tc, B, Dp), x_map),
            # TODO(synk): pipeline_mode=pl.Buffered(1) on the three constant
            # blocks below (weights never change within a direction).
            pl.BlockSpec((1, P * Dp, G), lambda d, t: (d, 0, 0)),
            pl.BlockSpec((1, H, G), lambda d, t: (d, 0, 0)),
            pl.BlockSpec((1, 1, G), lambda d, t: (d, 0, 0)),
            pl.BlockSpec((B, 1), lambda d, t: (0, 0)),
        ],
        out_specs=[
            pl.BlockSpec((1, Tc, B, H), y_map),
            pl.BlockSpec((1, B, H), lambda d, t: (d, 0, 0)),
            pl.BlockSpec((1, B, H), lambda d, t: (d, 0, 0)),
        ],
    )
    y, h, _c = pl.pallas_call(
        _bilstm_layer_kernel,
        grid_spec=grid_spec,
        out_shape=[
            jax.ShapeDtypeStruct((2, T_pad, B, H), jnp.float32),
            jax.ShapeDtypeStruct((2, B, H), jnp.float32),
            jax.ShapeDtypeStruct((2, B, H), jnp.float32),
        ],
        compiler_params=pltpu.CompilerParams(
            dimension_semantics=(DIRECTION_SEMANTICS, "arbitrary"),
            vmem_limit_bytes=VMEM_LIMIT_BYTES),
    )(x, w_ih, w_hh, bias, lengths)
    return y, h


def linear(x, w, b):
    B = x.shape[0]
    O = w.shape[1]
    return pl.pallas_call(
        _linear_kernel,
        out_shape=jax.ShapeDtypeStruct((B, O), jnp.float32),
    )(x, w, b.reshape(1, -1))


def better_lstm_forward(params, text, text_lengths):
    """Eval-mode forward of Better_LSTM. text: (T, B) int32; text_lengths: (B,)."""
    Tc = TIME_BLOCK
    # embedding lookup + dropout (identity in eval) -- glue, plain JAX gather
    x = params["embedding"][text].astype(jnp.float32)       # (T, B, E)
    T, B, _ = x.shape
    n_tc = max(1, pl.cdiv(T, Tc))
    T_pad = n_tc * Tc
    if T_pad != T:
        # padded timesteps are always masked out (t >= every length)
        x = jnp.pad(x, ((0, T_pad - T), (0, 0), (0, 0)))
    x = x[None]                                              # (1, T_pad, B, E)
    lengths = text_lengths.astype(jnp.int32).reshape(B, 1)

    h_last = None
    for layer in params["lstm"]:
        # next-layer input is the (2, T_pad, B, H) y itself: the kernel consumes
        # the two directions as separate projection parts, so no HBM concat.
        x, h_last = lstm_layer(x, layer["w_ih"], layer["w_hh"], layer["b"],
                               lengths, Tc)

    # hidden[-2] = last-layer forward final h, hidden[-1] = backward final h
    hidden = jnp.concatenate([h_last[0], h_last[1]], axis=-1)  # (B, 2H) f32
    # dropout is identity in eval; final fc in Pallas
    return linear(hidden, params["fc_w"], params["fc_b"])


# ---------------------------------------------------------------------------
# Deterministic parameter init (shapes mirror the PyTorch module's __init__)
# ---------------------------------------------------------------------------

def init_params(key, vocab_size, embedding_dim, hidden_dim, output_dim, n_layers):
    k_emb, k_fc, k_lstm = jax.random.split(key, 3)
    params = {}

    # nn.Embedding(input_dim, embedding_dim): N(0, 1)
    params["embedding"] = jax.random.normal(
        k_emb, (vocab_size, embedding_dim), jnp.float32)

    # nn.Linear(hidden_dim * 2, output_dim)
    kfw, kfb = jax.random.split(k_fc)
    bound = 1.0 / float(2 * hidden_dim) ** 0.5
    params["fc_w"] = jax.random.uniform(
        kfw, (2 * hidden_dim, output_dim), jnp.float32, -bound, bound)
    params["fc_b"] = jax.random.uniform(
        kfb, (output_dim,), jnp.float32, -bound, bound)

    H = hidden_dim
    G = 4 * H
    layers = []
    lk = k_lstm
    for l in range(n_layers):
        d_in = embedding_dim if l == 0 else 2 * H
        w_ih_list, w_hh_list = [], []
        for _ in range(2):                          # forward, backward
            lk, k1, k2 = jax.random.split(lk, 3)
            # xavier uniform for weight_ih (torch shape (4H, d_in)), stored transposed
            bih = (6.0 / (d_in + G)) ** 0.5
            w_ih_list.append(jax.random.uniform(k1, (d_in, G), jnp.float32, -bih, bih))
            # orthogonal for weight_hh (torch shape (4H, H)), stored transposed
            a = jax.random.normal(k2, (G, H), jnp.float32)
            q, _ = jnp.linalg.qr(a)
            w_hh_list.append(q.T)                   # (H, 4H)
        # unit_forget_bias: bias_ih and bias_hh forget slices both set to 1 in the
        # PyTorch module => combined bias forget slice = 2.0
        bias = jnp.zeros((2, 1, G), jnp.float32).at[:, :, H:2 * H].set(2.0)
        layers.append({
            "w_ih": jnp.stack(w_ih_list).astype(jnp.bfloat16),   # (2, d_in, 4H)
            "w_hh": jnp.stack(w_hh_list).astype(jnp.bfloat16),   # (2, H, 4H)
            "b": bias,                                           # (2, 1, 4H) f32
        })
    params["lstm"] = layers
    return params


# ---------------------------------------------------------------------------
# Example run
# ---------------------------------------------------------------------------

if __name__ == "__main__":
    # H % 128 == 0 and B % 8 == 0 keep gate slices / y stores lane & sublane
    # aligned (the kernel is still correct, just slower, otherwise).
    VOCAB, EMB, HID, OUT, N_LAYERS = 50, 64, 128, 4, 2
    T, B = 10, 8

    key = jax.random.PRNGKey(0)
    k_param, k_text = jax.random.split(key)

    params = init_params(k_param, VOCAB, EMB, HID, OUT, N_LAYERS)
    text = jax.random.randint(k_text, (T, B), 0, VOCAB, dtype=jnp.int32)
    # pack_padded_sequence (enforce_sorted=True) requires descending lengths
    text_lengths = jnp.array([10, 9, 8, 7, 6, 5, 4, 3], dtype=jnp.int32)

    fwd = jax.jit(better_lstm_forward)
    out = fwd(params, text, text_lengths)
    jax.block_until_ready(out)
    assert out.shape == (B, OUT) and out.dtype == jnp.float32
    print("KERNEL_OK")
</pallas_src>

<mosaic_0001>
module attributes {stable_mosaic.version = 11 : i64} {
  func.func @_bilstm_layer_kernel(%arg0: i32, %arg1: i32, %arg2: memref<1x8x8x64xf32, #tpu.memory_space<vmem>>, %arg3: memref<1x64x512xbf16, #tpu.memory_space<vmem>>, %arg4: memref<1x128x512xbf16, #tpu.memory_space<vmem>>, %arg5: memref<1x1x512xf32, #tpu.memory_space<vmem>>, %arg6: memref<8x1xi32, #tpu.memory_space<vmem>>, %arg7: memref<1x8x8x128xf32, #tpu.memory_space<vmem>>, %arg8: memref<1x8x128xf32, #tpu.memory_space<vmem>>, %arg9: memref<1x8x128xf32, #tpu.memory_space<vmem>>) attributes {dimension_semantics = [#tpu.dimension_semantics<parallel>, #tpu.dimension_semantics<arbitrary>], iteration_bounds = array<i64: 2, 2>, scalar_prefetch = 0 : i64, scratch_operands = 0 : i64, tpu.core_type = #tpu.core_type<tc>, window_params = [{transform_indices = @transform_0, window_bounds = array<i64: 1, 8, 8, 64>}, {transform_indices = @transform_1, window_bounds = array<i64: 1, 64, 512>}, {transform_indices = @transform_2, window_bounds = array<i64: 1, 128, 512>}, {transform_indices = @transform_3, window_bounds = array<i64: 1, 1, 512>}, {pipeline_mode = #tpu.pipeline_mode<synchronous>, transform_indices = @transform_4, window_bounds = array<i64: 8, 1>}, {transform_indices = @transform_5, window_bounds = array<i64: 1, 8, 8, 128>}, {transform_indices = @transform_6, window_bounds = array<i64: 1, 8, 128>}, {transform_indices = @transform_7, window_bounds = array<i64: 1, 8, 128>}]} {
    %c0_i32 = arith.constant 0 : i32
    %0 = arith.cmpi eq, %arg1, %c0_i32 : i32
    %1 = arith.extui %0 : i1 to i32
    %c0_i32_0 = arith.constant 0 : i32
    %2 = arith.cmpi ne, %1, %c0_i32_0 : i32
    scf.if %2 {
      %cst_18 = arith.constant 0.000000e+00 : f32
      %23 = vector.broadcast %cst_18 : f32 to vector<1x8x128xf32>
      %c0_19 = arith.constant 0 : index
      %c0_20 = arith.constant 0 : index
      %c0_21 = arith.constant 0 : index
      %24 = vector.load %arg8[%c0_19, %c0_20, %c0_21] : memref<1x8x128xf32, #tpu.memory_space<vmem>>, vector<1x8x128xf32>
      tpu.vector_store %arg8[%c0_19, %c0_20, %c0_21], %23 {strides = array<i32>} : memref<1x8x128xf32, #tpu.memory_space<vmem>>, vector<1x8x128xf32>,
      %cst_22 = arith.constant 0.000000e+00 : f32
      %25 = vector.broadcast %cst_22 : f32 to vector<1x8x128xf32>
      %c0_23 = arith.constant 0 : index
      %c0_24 = arith.constant 0 : index
      %c0_25 = arith.constant 0 : index
      %26 = vector.load %arg9[%c0_23, %c0_24, %c0_25] : memref<1x8x128xf32, #tpu.memory_space<vmem>>, vector<1x8x128xf32>
      tpu.vector_store %arg9[%c0_23, %c0_24, %c0_25], %25 {strides = array<i32>} : memref<1x8x128xf32, #tpu.memory_space<vmem>>, vector<1x8x128xf32>,
    } else {
    }
    %c0 = arith.constant 0 : index
    %c0_1 = arith.constant 0 : index
    %c0_2 = arith.constant 0 : index
    %3 = vector.load %arg3[%c0, %c0_1, %c0_2] : memref<1x64x512xbf16, #tpu.memory_space<vmem>>, vector<1x64x512xbf16>
    %4 = vector.shape_cast %3 : vector<1x64x512xbf16> to vector<64x512xbf16>
    %c0_3 = arith.constant 0 : index
    %c0_4 = arith.constant 0 : index
    %c0_5 = arith.constant 0 : index
    %5 = vector.load %arg5[%c0_3, %c0_4, %c0_5] : memref<1x1x512xf32, #tpu.memory_space<vmem>>, vector<1x1x512xf32>
    %6 = vector.shape_cast %5 : vector<1x1x512xf32> to vector<1x512xf32>
    %c0_6 = arith.constant 0 : index
    %c0_7 = arith.constant 0 : index
    %c0_8 = arith.constant 0 : index
    %c0_9 = arith.constant 0 : index
    %7 = vector.load %arg2[%c0_6, %c0_7, %c0_8, %c0_9] : memref<1x8x8x64xf32, #tpu.memory_space<vmem>>, vector<1x8x8x64xf32>
    %8 = vector.shape_cast %7 : vector<1x8x8x64xf32> to vector<8x8x64xf32>
    %9 = vector.shape_cast %8 : vector<8x8x64xf32> to vector<64x64xf32>
    %10 = arith.truncf %9 : vector<64x64xf32> to vector<64x64xbf16>
    %cst = arith.constant dense<0.000000e+00> : vector<64x512xf32>
    %11 = tpu.matmul %10, %4, %cst {dimension_numbers = #tpu.dot_dimension_numbers<[1], [0], [0], [1], [0, 0, 1, 1], [], []>} : vector<64x64xbf16>, vector<64x512xbf16>, vector<64x512xf32> -> vector<64x512xf32>
    %12 = vector.broadcast %6 : vector<1x512xf32> to vector<64x512xf32>
    %13 = arith.addf %12, %11 : vector<64x512xf32>
    %c0_10 = arith.constant 0 : index
    %c0_11 = arith.constant 0 : index
    %c0_12 = arith.constant 0 : index
    %14 = vector.load %arg4[%c0_10, %c0_11, %c0_12] : memref<1x128x512xbf16, #tpu.memory_space<vmem>>, vector<1x128x512xbf16>
    %15 = vector.shape_cast %14 : vector<1x128x512xbf16> to vector<128x512xbf16>
    %c0_13 = arith.constant 0 : index
    %c0_14 = arith.constant 0 : index
    %16 = vector.load %arg6[%c0_13, %c0_14] : memref<8x1xi32, #tpu.memory_space<vmem>>, vector<8x1xi32>
    %c0_i32_15 = arith.constant 0 : i32
    %17 = arith.cmpi eq, %arg0, %c0_i32_15 : i32
    %18 = arith.extui %17 : i1 to i32
    %c0_i32_16 = arith.constant 0 : i32
    %19 = arith.cmpi ne, %18, %c0_i32_16 : i32
    scf.if %19 {
      %c8_i32 = arith.constant 8 : i32
      %23 = arith.muli %arg1, %c8_i32 : i32
      %c0_18 = arith.constant 0 : index
      %c0_19 = arith.constant 0 : index
      %c0_20 = arith.constant 0 : index
      %24 = vector.load %arg8[%c0_18, %c0_19, %c0_20] : memref<1x8x128xf32, #tpu.memory_space<vmem>>, vector<1x8x128xf32>
      %25 = vector.shape_cast %24 : vector<1x8x128xf32> to vector<8x128xf32>
      %c0_21 = arith.constant 0 : index
      %c0_22 = arith.constant 0 : index
      %c0_23 = arith.constant 0 : index
      %26 = vector.load %arg9[%c0_21, %c0_22, %c0_23] : memref<1x8x128xf32, #tpu.memory_space<vmem>>, vector<1x8x128xf32>
      %27 = vector.shape_cast %26 : vector<1x8x128xf32> to vector<8x128xf32>
      %28 = vector.extract_strided_slice %13 {offsets = [0, 0], sizes = [8, 512], strides = [1, 1]} : vector<64x512xf32> to vector<8x512xf32>
      %29 = arith.truncf %25 : vector<8x128xf32> to vector<8x128xbf16>
      %cst_24 = arith.constant dense<0.000000e+00> : vector<8x512xf32>
      %30 = tpu.matmul %29, %15, %cst_24 {dimension_numbers = #tpu.dot_dimension_numbers<[1], [0], [0], [1], [0, 0, 1, 1], [], []>} : vector<8x128xbf16>, vector<128x512xbf16>, vector<8x512xf32> -> vector<8x512xf32>
      %31 = arith.addf %28, %30 : vector<8x512xf32>
      %32 = vector.extract_strided_slice %31 {offsets = [0, 0], sizes = [8, 128], strides = [1, 1]} : vector<8x512xf32> to vector<8x128xf32>
      %33 = arith.negf %32 : vector<8x128xf32>
      %34 = math.exp %33 : vector<8x128xf32>
      %cst_25 = arith.constant 1.000000e+00 : f32
      %35 = vector.broadcast %cst_25 : f32 to vector<8x128xf32>
      %36 = arith.addf %35, %34 : vector<8x128xf32>
      %37 = arith.divf %35, %36 : vector<8x128xf32>
      %38 = vector.extract_strided_slice %31 {offsets = [0, 128], sizes = [8, 128], strides = [1, 1]} : vector<8x512xf32> to vector<8x128xf32>
      %39 = arith.negf %38 : vector<8x128xf32>
      %40 = math.exp %39 : vector<8x128xf32>
      %cst_26 = arith.constant 1.000000e+00 : f32
      %41 = vector.broadcast %cst_26 : f32 to vector<8x128xf32>
      %42 = arith.addf %41, %40 : vector<8x128xf32>
      %43 = arith.divf %41, %42 : vector<8x128xf32>
      %44 = vector.extract_strided_slice %31 {offsets = [0, 256], sizes = [8, 128], strides = [1, 1]} : vector<8x512xf32> to vector<8x128xf32>
      %45 = math.tanh %44 : vector<8x128xf32>
      %46 = vector.extract_strided_slice %31 {offsets = [0, 384], sizes = [8, 128], strides = [1, 1]} : vector<8x512xf32> to vector<8x128xf32>
      %47 = arith.negf %46 : vector<8x128xf32>
      %48 = math.exp %47 : vector<8x128xf32>
      %cst_27 = arith.constant 1.000000e+00 : f32
      %49 = vector.broadcast %cst_27 : f32 to vector<8x128xf32>
      %50 = arith.addf %49, %48 : vector<8x128xf32>
      %51 = arith.divf %49, %50 : vector<8x128xf32>
      %52 = arith.mulf %43, %27 : vector<8x128xf32>
      %53 = arith.mulf %37, %45 : vector<8x128xf32>
      %54 = arith.addf %52, %53 : vector<8x128xf32>
      %55 = math.tanh %54 : vector<8x128xf32>
      %56 = arith.mulf %51, %55 : vector<8x128xf32>
      %c0_i32_28 = arith.constant 0 : i32
      %57 = arith.addi %23, %c0_i32_28 : i32
      %58 = vector.broadcast %57 : i32 to vector<8x1xi32>
      %59 = arith.cmpi slt, %58, %16 : vector<8x1xi32>
      %60 = vector.shape_cast %59 : vector<8x1xi1> to vector<8x1xi1>
      %61 = vector.broadcast %60 : vector<8x1xi1> to vector<8x128xi1>
      %62 = arith.select %61, %54, %27 : vector<8x128xi1>, vector<8x128xf32>
      %63 = vector.shape_cast %59 : vector<8x1xi1> to vector<8x1xi1>
      %64 = vector.broadcast %63 : vector<8x1xi1> to vector<8x128xi1>
      %65 = arith.select %64, %56, %25 : vector<8x128xi1>, vector<8x128xf32>
      %c0_29 = arith.constant 0 : index
      %c0_30 = arith.constant 0 : index
      %c0_31 = arith.constant 0 : index
      %c0_32 = arith.constant 0 : index
      %66 = vector.load %arg7[%c0_29, %c0_30, %c0_31, %c0_32] : memref<1x8x8x128xf32, #tpu.memory_space<vmem>>, vector<1x1x8x128xf32>
      %67 = vector.shape_cast %66 : vector<1x1x8x128xf32> to vector<8x128xf32>
      %68 = vector.shape_cast %65 : vector<8x128xf32> to vector<1x1x8x128xf32>
      tpu.vector_store %arg7[%c0_29, %c0_30, %c0_31, %c0_32], %68 {strides = array<i32>} : memref<1x8x8x128xf32, #tpu.memory_space<vmem>>, vector<1x1x8x128xf32>,
      %69 = vector.extract_strided_slice %13 {offsets = [8, 0], sizes = [8, 512], strides = [1, 1]} : vector<64x512xf32> to vector<8x512xf32>
      %70 = arith.truncf %65 : vector<8x128xf32> to vector<8x128xbf16>
      %cst_33 = arith.constant dense<0.000000e+00> : vector<8x512xf32>
      %71 = tpu.matmul %70, %15, %cst_33 {dimension_numbers = #tpu.dot_dimension_numbers<[1], [0], [0], [1], [0, 0, 1, 1], [], []>} : vector<8x128xbf16>, vector<128x512xbf16>, vector<8x512xf32> -> vector<8x512xf32>
      %72 = arith.addf %69, %71 : vector<8x512xf32>
      %73 = vector.extract_strided_slice %72 {offsets = [0, 0], sizes = [8, 128], strides = [1, 1]} : vector<8x512xf32> to vector<8x128xf32>
      %74 = arith.negf %73 : vector<8x128xf32>
      %75 = math.exp %74 : vector<8x128xf32>
      %cst_34 = arith.constant 1.000000e+00 : f32
      %76 = vector.broadcast %cst_34 : f32 to vector<8x128xf32>
      %77 = arith.addf %76, %75 : vector<8x128xf32>
      %78 = arith.divf %76, %77 : vector<8x128xf32>
      %79 = vector.extract_strided_slice %72 {offsets = [0, 128], sizes = [8, 128], strides = [1, 1]} : vector<8x512xf32> to vector<8x128xf32>
      %80 = arith.negf %79 : vector<8x128xf32>
      %81 = math.exp %80 : vector<8x128xf32>
      %cst_35 = arith.constant 1.000000e+00 : f32
      %82 = vector.broadcast %cst_35 : f32 to vector<8x128xf32>
      %83 = arith.addf %82, %81 : vector<8x128xf32>
      %84 = arith.divf %82, %83 : vector<8x128xf32>
      %85 = vector.extract_strided_slice %72 {offsets = [0, 256], sizes = [8, 128], strides = [1, 1]} : vector<8x512xf32> to vector<8x128xf32>
      %86 = math.tanh %85 : vector<8x128xf32>
      %87 = vector.extract_strided_slice %72 {offsets = [0, 384], sizes = [8, 128], strides = [1, 1]} : vector<8x512xf32> to vector<8x128xf32>
      %88 = arith.negf %87 : vector<8x128xf32>
      %89 = math.exp %88 : vector<8x128xf32>
      %cst_36 = arith.constant 1.000000e+00 : f32
      %90 = vector.broadcast %cst_36 : f32 to vector<8x128xf32>
      %91 = arith.addf %90, %89 : vector<8x128xf32>
      %92 = arith.divf %90, %91 : vector<8x128xf32>
      %93 = arith.mulf %84, %62 : vector<8x128xf32>
      %94 = arith.mulf %78, %86 : vector<8x128xf32>
      %95 = arith.addf %93, %94 : vector<8x128xf32>
      %96 = math.tanh %95 : vector<8x128xf32>
      %97 = arith.mulf %92, %96 : vector<8x128xf32>
      %c1_i32_37 = arith.constant 1 : i32
      %98 = arith.addi %23, %c1_i32_37 : i32
      %99 = vector.broadcast %98 : i32 to vector<8x1xi32>
      %100 = arith.cmpi slt, %99, %16 : vector<8x1xi32>
      %101 = vector.shape_cast %100 : vector<8x1xi1> to vector<8x1xi1>
      %102 = vector.broadcast %101 : vector<8x1xi1> to vector<8x128xi1>
      %103 = arith.select %102, %95, %62 : vector<8x128xi1>, vector<8x128xf32>
      %104 = vector.shape_cast %100 : vector<8x1xi1> to vector<8x1xi1>
      %105 = vector.broadcast %104 : vector<8x1xi1> to vector<8x128xi1>
      %106 = arith.select %105, %97, %65 : vector<8x128xi1>, vector<8x128xf32>
      %c0_38 = arith.constant 0 : index
      %c1 = arith.constant 1 : index
      %c0_39 = arith.constant 0 : index
      %c0_40 = arith.constant 0 : index
      %107 = vector.load %arg7[%c0_38, %c1, %c0_39, %c0_40] : memref<1x8x8x128xf32, #tpu.memory_space<vmem>>, vector<1x1x8x128xf32>
      %108 = vector.shape_cast %107 : vector<1x1x8x128xf32> to vector<8x128xf32>
      %109 = vector.shape_cast %106 : vector<8x128xf32> to vector<1x1x8x128xf32>
      tpu.vector_store %arg7[%c0_38, %c1, %c0_39, %c0_40], %109 {strides = array<i32>} : memref<1x8x8x128xf32, #tpu.memory_space<vmem>>, vector<1x1x8x128xf32>,
      %110 = vector.extract_strided_slice %13 {offsets = [16, 0], sizes = [8, 512], strides = [1, 1]} : vector<64x512xf32> to vector<8x512xf32>
      %111 = arith.truncf %106 : vector<8x128xf32> to vector<8x128xbf16>
      %cst_41 = arith.constant dense<0.000000e+00> : vector<8x512xf32>
      %112 = tpu.matmul %111, %15, %cst_41 {dimension_numbers = #tpu.dot_dimension_numbers<[1], [0], [0], [1], [0, 0, 1, 1], [], []>} : vector<8x128xbf16>, vector<128x512xbf16>, vector<8x512xf32> -> vector<8x512xf32>
      %113 = arith.addf %110, %112 : vector<8x512xf32>
      %114 = vector.extract_strided_slice %113 {offsets = [0, 0], sizes = [8, 128], strides = [1, 1]} : vector<8x512xf32> to vector<8x128xf32>
      %115 = arith.negf %114 : vector<8x128xf32>
      %116 = math.exp %115 : vector<8x128xf32>
      %cst_42 = arith.constant 1.000000e+00 : f32
      %117 = vector.broadcast %cst_42 : f32 to vector<8x128xf32>
      %118 = arith.addf %117, %116 : vector<8x128xf32>
      %119 = arith.divf %117, %118 : vector<8x128xf32>
      %120 = vector.extract_strided_slice %113 {offsets = [0, 128], sizes = [8, 128], strides = [1, 1]} : vector<8x512xf32> to vector<8x128xf32>
      %121 = arith.negf %120 : vector<8x128xf32>
      %122 = math.exp %121 : vector<8x128xf32>
      %cst_43 = arith.constant 1.000000e+00 : f32
      %123 = vector.broadcast %cst_43 : f32 to vector<8x128xf32>
      %124 = arith.addf %123, %122 : vector<8x128xf32>
      %125 = arith.divf %123, %124 : vector<8x128xf32>
      %126 = vector.extract_strided_slice %113 {offsets = [0, 256], sizes = [8, 128], strides = [1, 1]} : vector<8x512xf32> to vector<8x128xf32>
      %127 = math.tanh %126 : vector<8x128xf32>
      %128 = vector.extract_strided_slice %113 {offsets = [0, 384], sizes = [8, 128], strides = [1, 1]} : vector<8x512xf32> to vector<8x128xf32>
      %129 = arith.negf %128 : vector<8x128xf32>
      %130 = math.exp %129 : vector<8x128xf32>
      %cst_44 = arith.constant 1.000000e+00 : f32
      %131 = vector.broadcast %cst_44 : f32 to vector<8x128xf32>
      %132 = arith.addf %131, %130 : vector<8x128xf32>
      %133 = arith.divf %131, %132 : vector<8x128xf32>
      %134 = arith.mulf %125, %103 : vector<8x128xf32>
      %135 = arith.mulf %119, %127 : vector<8x128xf32>
      %136 = arith.addf %134, %135 : vector<8x128xf32>
      %137 = math.tanh %136 : vector<8x128xf32>
      %138 = arith.mulf %133, %137 : vector<8x128xf32>
      %c2_i32 = arith.constant 2 : i32
      %139 = arith.addi %23, %c2_i32 : i32
      %140 = vector.broadcast %139 : i32 to vector<8x1xi32>
      %141 = arith.cmpi slt, %140, %16 : vector<8x1xi32>
      %142 = vector.shape_cast %141 : vector<8x1xi1> to vector<8x1xi1>
      %143 = vector.broadcast %142 : vector<8x1xi1> to vector<8x128xi1>
      %144 = arith.select %143, %136, %103 : vector<8x128xi1>, vector<8x128xf32>
      %145 = vector.shape_cast %141 : vector<8x1xi1> to vector<8x1xi1>
      %146 = vector.broadcast %145 : vector<8x1xi1> to vector<8x128xi1>
      %147 = arith.select %146, %138, %106 : vector<8x128xi1>, vector<8x128xf32>
      %c0_45 = arith.constant 0 : index
      %c2 = arith.constant 2 : index
      %c0_46 = arith.constant 0 : index
      %c0_47 = arith.constant 0 : index
      %148 = vector.load %arg7[%c0_45, %c2, %c0_46, %c0_47] : memref<1x8x8x128xf32, #tpu.memory_space<vmem>>, vector<1x1x8x128xf32>
      %149 = vector.shape_cast %148 : vector<1x1x8x128xf32> to vector<8x128xf32>
      %150 = vector.shape_cast %147 : vector<8x128xf32> to vector<1x1x8x128xf32>
      tpu.vector_store %arg7[%c0_45, %c2, %c0_46, %c0_47], %150 {strides = array<i32>} : memref<1x8x8x128xf32, #tpu.memory_space<vmem>>, vector<1x1x8x128xf32>,
      %151 = vector.extract_strided_slice %13 {offsets = [24, 0], sizes = [8, 512], strides = [1, 1]} : vector<64x512xf32> to vector<8x512xf32>
      %152 = arith.truncf %147 : vector<8x128xf32> to vector<8x128xbf16>
      %cst_48 = arith.constant dense<0.000000e+00> : vector<8x512xf32>
      %153 = tpu.matmul %152, %15, %cst_48 {dimension_numbers = #tpu.dot_dimension_numbers<[1], [0], [0], [1], [0, 0, 1, 1], [], []>} : vector<8x128xbf16>, vector<128x512xbf16>, vector<8x512xf32> -> vector<8x512xf32>
      %154 = arith.addf %151, %153 : vector<8x512xf32>
      %155 = vector.extract_strided_slice %154 {offsets = [0, 0], sizes = [8, 128], strides = [1, 1]} : vector<8x512xf32> to vector<8x128xf32>
      %156 = arith.negf %155 : vector<8x128xf32>
      %157 = math.exp %156 : vector<8x128xf32>
      %cst_49 = arith.constant 1.000000e+00 : f32
      %158 = vector.broadcast %cst_49 : f32 to vector<8x128xf32>
      %159 = arith.addf %158, %157 : vector<8x128xf32>
      %160 = arith.divf %158, %159 : vector<8x128xf32>
      %161 = vector.extract_strided_slice %154 {offsets = [0, 128], sizes = [8, 128], strides = [1, 1]} : vector<8x512xf32> to vector<8x128xf32>
      %162 = arith.negf %161 : vector<8x128xf32>
      %163 = math.exp %162 : vector<8x128xf32>
      %cst_50 = arith.constant 1.000000e+00 : f32
      %164 = vector.broadcast %cst_50 : f32 to vector<8x128xf32>
      %165 = arith.addf %164, %163 : vector<8x128xf32>
      %166 = arith.divf %164, %165 : vector<8x128xf32>
      %167 = vector.extract_strided_slice %154 {offsets = [0, 256], sizes = [8, 128], strides = [1, 1]} : vector<8x512xf32> to vector<8x128xf32>
      %168 = math.tanh %167 : vector<8x128xf32>
      %169 = vector.extract_strided_slice %154 {offsets = [0, 384], sizes = [8, 128], strides = [1, 1]} : vector<8x512xf32> to vector<8x128xf32>
      %170 = arith.negf %169 : vector<8x128xf32>
      %171 = math.exp %170 : vector<8x128xf32>
      %cst_51 = arith.constant 1.000000e+00 : f32
      %172 = vector.broadcast %cst_51 : f32 to vector<8x128xf32>
      %173 = arith.addf %172, %171 : vector<8x128xf32>
      %174 = arith.divf %172, %173 : vector<8x128xf32>
      %175 = arith.mulf %166, %144 : vector<8x128xf32>
      %176 = arith.mulf %160, %168 : vector<8x128xf32>
      %177 = arith.addf %175, %176 : vector<8x128xf32>
      %178 = math.tanh %177 : vector<8x128xf32>
      %179 = arith.mulf %174, %178 : vector<8x128xf32>
      %c3_i32 = arith.constant 3 : i32
      %180 = arith.addi %23, %c3_i32 : i32
      %181 = vector.broadcast %180 : i32 to vector<8x1xi32>
      %182 = arith.cmpi slt, %181, %16 : vector<8x1xi32>
      %183 = vector.shape_cast %182 : vector<8x1xi1> to vector<8x1xi1>
      %184 = vector.broadcast %183 : vector<8x1xi1> to vector<8x128xi1>
      %185 = arith.select %184, %177, %144 : vector<8x128xi1>, vector<8x128xf32>
      %186 = vector.shape_cast %182 : vector<8x1xi1> to vector<8x1xi1>
      %187 = vector.broadcast %186 : vector<8x1xi1> to vector<8x128xi1>
      %188 = arith.select %187, %179, %147 : vector<8x128xi1>, vector<8x128xf32>
      %c0_52 = arith.constant 0 : index
      %c3 = arith.constant 3 : index
      %c0_53 = arith.constant 0 : index
      %c0_54 = arith.constant 0 : index
      %189 = vector.load %arg7[%c0_52, %c3, %c0_53, %c0_54] : memref<1x8x8x128xf32, #tpu.memory_space<vmem>>, vector<1x1x8x128xf32>
      %190 = vector.shape_cast %189 : vector<1x1x8x128xf32> to vector<8x128xf32>
      %191 = vector.shape_cast %188 : vector<8x128xf32> to vector<1x1x8x128xf32>
      tpu.vector_store %arg7[%c0_52, %c3, %c0_53, %c0_54], %191 {strides = array<i32>} : memref<1x8x8x128xf32, #tpu.memory_space<vmem>>, vector<1x1x8x128xf32>,
      %192 = vector.extract_strided_slice %13 {offsets = [32, 0], sizes = [8, 512], strides = [1, 1]} : vector<64x512xf32> to vector<8x512xf32>
      %193 = arith.truncf %188 : vector<8x128xf32> to vector<8x128xbf16>
      %cst_55 = arith.constant dense<0.000000e+00> : vector<8x512xf32>
      %194 = tpu.matmul %193, %15, %cst_55 {dimension_numbers = #tpu.dot_dimension_numbers<[1], [0], [0], [1], [0, 0, 1, 1], [], []>} : vector<8x128xbf16>, vector<128x512xbf16>, vector<8x512xf32> -> vector<8x512xf32>
      %195 = arith.addf %192, %194 : vector<8x512xf32>
      %196 = vector.extract_strided_slice %195 {offsets = [0, 0], sizes = [8, 128], strides = [1, 1]} : vector<8x512xf32> to vector<8x128xf32>
      %197 = arith.negf %196 : vector<8x128xf32>
      %198 = math.exp %197 : vector<8x128xf32>
      %cst_56 = arith.constant 1.000000e+00 : f32
      %199 = vector.broadcast %cst_56 : f32 to vector<8x128xf32>
      %200 = arith.addf %199, %198 : vector<8x128xf32>
      %201 = arith.divf %199, %200 : vector<8x128xf32>
      %202 = vector.extract_strided_slice %195 {offsets = [0, 128], sizes = [8, 128], strides = [1, 1]} : vector<8x512xf32> to vector<8x128xf32>
      %203 = arith.negf %202 : vector<8x128xf32>
      %204 = math.exp %203 : vector<8x128xf32>
      %cst_57 = arith.constant 1.000000e+00 : f32
      %205 = vector.broadcast %cst_57 : f32 to vector<8x128xf32>
      %206 = arith.addf %205, %204 : vector<8x128xf32>
      %207 = arith.divf %205, %206 : vector<8x128xf32>
      %208 = vector.extract_strided_slice %195 {offsets = [0, 256], sizes = [8, 128], strides = [1, 1]} : vector<8x512xf32> to vector<8x128xf32>
      %209 = math.tanh %208 : vector<8x128xf32>
      %210 = vector.extract_strided_slice %195 {offsets = [0, 384], sizes = [8, 128], strides = [1, 1]} : vector<8x512xf32> to vector<8x128xf32>
      %211 = arith.negf %210 : vector<8x128xf32>
      %212 = math.exp %211 : vector<8x128xf32>
      %cst_58 = arith.constant 1.000000e+00 : f32
      %213 = vector.broadcast %cst_58 : f32 to vector<8x128xf32>
      %214 = arith.addf %213, %212 : vector<8x128xf32>
      %215 = arith.divf %213, %214 : vector<8x128xf32>
      %216 = arith.mulf %207, %185 : vector<8x128xf32>
      %217 = arith.mulf %201, %209 : vector<8x128xf32>
      %218 = arith.addf %216, %217 : vector<8x128xf32>
      %219 = math.tanh %218 : vector<8x128xf32>
      %220 = arith.mulf %215, %219 : vector<8x128xf32>
      %c4_i32 = arith.constant 4 : i32
      %221 = arith.addi %23, %c4_i32 : i32
      %222 = vector.broadcast %221 : i32 to vector<8x1xi32>
      %223 = arith.cmpi slt, %222, %16 : vector<8x1xi32>
      %224 = vector.shape_cast %223 : vector<8x1xi1> to vector<8x1xi1>
      %225 = vector.broadcast %224 : vector<8x1xi1> to vector<8x128xi1>
      %226 = arith.select %225, %218, %185 : vector<8x128xi1>, vector<8x128xf32>
      %227 = vector.shape_cast %223 : vector<8x1xi1> to vector<8x1xi1>
      %228 = vector.broadcast %227 : vector<8x1xi1> to vector<8x128xi1>
      %229 = arith.select %228, %220, %188 : vector<8x128xi1>, vector<8x128xf32>
      %c0_59 = arith.constant 0 : index
      %c4 = arith.constant 4 : index
      %c0_60 = arith.constant 0 : index
      %c0_61 = arith.constant 0 : index
      %230 = vector.load %arg7[%c0_59, %c4, %c0_60, %c0_61] : memref<1x8x8x128xf32, #tpu.memory_space<vmem>>, vector<1x1x8x128xf32>
      %231 = vector.shape_cast %230 : vector<1x1x8x128xf32> to vector<8x128xf32>
      %232 = vector.shape_cast %229 : vector<8x128xf32> to vector<1x1x8x128xf32>
      tpu.vector_store %arg7[%c0_59, %c4, %c0_60, %c0_61], %232 {strides = array<i32>} : memref<1x8x8x128xf32, #tpu.memory_space<vmem>>, vector<1x1x8x128xf32>,
      %233 = vector.extract_strided_slice %13 {offsets = [40, 0], sizes = [8, 512], strides = [1, 1]} : vector<64x512xf32> to vector<8x512xf32>
      %234 = arith.truncf %229 : vector<8x128xf32> to vector<8x128xbf16>
      %cst_62 = arith.constant dense<0.000000e+00> : vector<8x512xf32>
      %235 = tpu.matmul %234, %15, %cst_62 {dimension_numbers = #tpu.dot_dimension_numbers<[1], [0], [0], [1], [0, 0, 1, 1], [], []>} : vector<8x128xbf16>, vector<128x512xbf16>, vector<8x512xf32> -> vector<8x512xf32>
      %236 = arith.addf %233, %235 : vector<8x512xf32>
      %237 = vector.extract_strided_slice %236 {offsets = [0, 0], sizes = [8, 128], strides = [1, 1]} : vector<8x512xf32> to vector<8x128xf32>
      %238 = arith.negf %237 : vector<8x128xf32>
      %239 = math.exp %238 : vector<8x128xf32>
      %cst_63 = arith.constant 1.000000e+00 : f32
      %240 = vector.broadcast %cst_63 : f32 to vector<8x128xf32>
      %241 = arith.addf %240, %239 : vector<8x128xf32>
      %242 = arith.divf %240, %241 : vector<8x128xf32>
      %243 = vector.extract_strided_slice %236 {offsets = [0, 128], sizes = [8, 128], strides = [1, 1]} : vector<8x512xf32> to vector<8x128xf32>
      %244 = arith.negf %243 : vector<8x128xf32>
      %245 = math.exp %244 : vector<8x128xf32>
      %cst_64 = arith.constant 1.000000e+00 : f32
      %246 = vector.broadcast %cst_64 : f32 to vector<8x128xf32>
      %247 = arith.addf %246, %245 : vector<8x128xf32>
      %248 = arith.divf %246, %247 : vector<8x128xf32>
      %249 = vector.extract_strided_slice %236 {offsets = [0, 256], sizes = [8, 128], strides = [1, 1]} : vector<8x512xf32> to vector<8x128xf32>
      %250 = math.tanh %249 : vector<8x128xf32>
      %251 = vector.extract_strided_slice %236 {offsets = [0, 384], sizes = [8, 128], strides = [1, 1]} : vector<8x512xf32> to vector<8x128xf32>
      %252 = arith.negf %251 : vector<8x128xf32>
      %253 = math.exp %252 : vector<8x128xf32>
      %cst_65 = arith.constant 1.000000e+00 : f32
      %254 = vector.broadcast %cst_65 : f32 to vector<8x128xf32>
      %255 = arith.addf %254, %253 : vector<8x128xf32>
      %256 = arith.divf %254, %255 : vector<8x128xf32>
      %257 = arith.mulf %248, %226 : vector<8x128xf32>
      %258 = arith.mulf %242, %250 : vector<8x128xf32>
      %259 = arith.addf %257, %258 : vector<8x128xf32>
      %260 = math.tanh %259 : vector<8x128xf32>
      %261 = arith.mulf %256, %260 : vector<8x128xf32>
      %c5_i32 = arith.constant 5 : i32
      %262 = arith.addi %23, %c5_i32 : i32
      %263 = vector.broadcast %262 : i32 to vector<8x1xi32>
      %264 = arith.cmpi slt, %263, %16 : vector<8x1xi32>
      %265 = vector.shape_cast %264 : vector<8x1xi1> to vector<8x1xi1>
      %266 = vector.broadcast %265 : vector<8x1xi1> to vector<8x128xi1>
      %267 = arith.select %266, %259, %226 : vector<8x128xi1>, vector<8x128xf32>
      %268 = vector.shape_cast %264 : vector<8x1xi1> to vector<8x1xi1>
      %269 = vector.broadcast %268 : vector<8x1xi1> to vector<8x128xi1>
      %270 = arith.select %269, %261, %229 : vector<8x128xi1>, vector<8x128xf32>
      %c0_66 = arith.constant 0 : index
      %c5 = arith.constant 5 : index
      %c0_67 = arith.constant 0 : index
      %c0_68 = arith.constant 0 : index
      %271 = vector.load %arg7[%c0_66, %c5, %c0_67, %c0_68] : memref<1x8x8x128xf32, #tpu.memory_space<vmem>>, vector<1x1x8x128xf32>
      %272 = vector.shape_cast %271 : vector<1x1x8x128xf32> to vector<8x128xf32>
      %273 = vector.shape_cast %270 : vector<8x128xf32> to vector<1x1x8x128xf32>
      tpu.vector_store %arg7[%c0_66, %c5, %c0_67, %c0_68], %273 {strides = array<i32>} : memref<1x8x8x128xf32, #tpu.memory_space<vmem>>, vector<1x1x8x128xf32>,
      %274 = vector.extract_strided_slice %13 {offsets = [48, 0], sizes = [8, 512], strides = [1, 1]} : vector<64x512xf32> to vector<8x512xf32>
      %275 = arith.truncf %270 : vector<8x128xf32> to vector<8x128xbf16>
      %cst_69 = arith.constant dense<0.000000e+00> : vector<8x512xf32>
      %276 = tpu.matmul %275, %15, %cst_69 {dimension_numbers = #tpu.dot_dimension_numbers<[1], [0], [0], [1], [0, 0, 1, 1], [], []>} : vector<8x128xbf16>, vector<128x512xbf16>, vector<8x512xf32> -> vector<8x512xf32>
      %277 = arith.addf %274, %276 : vector<8x512xf32>
      %278 = vector.extract_strided_slice %277 {offsets = [0, 0], sizes = [8, 128], strides = [1, 1]} : vector<8x512xf32> to vector<8x128xf32>
      %279 = arith.negf %278 : vector<8x128xf32>
      %280 = math.exp %279 : vector<8x128xf32>
      %cst_70 = arith.constant 1.000000e+00 : f32
      %281 = vector.broadcast %cst_70 : f32 to vector<8x128xf32>
      %282 = arith.addf %281, %280 : vector<8x128xf32>
      %283 = arith.divf %281, %282 : vector<8x128xf32>
      %284 = vector.extract_strided_slice %277 {offsets = [0, 128], sizes = [8, 128], strides = [1, 1]} : vector<8x512xf32> to vector<8x128xf32>
      %285 = arith.negf %284 : vector<8x128xf32>
      %286 = math.exp %285 : vector<8x128xf32>
      %cst_71 = arith.constant 1.000000e+00 : f32
      %287 = vector.broadcast %cst_71 : f32 to vector<8x128xf32>
      %288 = arith.addf %287, %286 : vector<8x128xf32>
      %289 = arith.divf %287, %288 : vector<8x128xf32>
      %290 = vector.extract_strided_slice %277 {offsets = [0, 256], sizes = [8, 128], strides = [1, 1]} : vector<8x512xf32> to vector<8x128xf32>
      %291 = math.tanh %290 : vector<8x128xf32>
      %292 = vector.extract_strided_slice %277 {offsets = [0, 384], sizes = [8, 128], strides = [1, 1]} : vector<8x512xf32> to vector<8x128xf32>
      %293 = arith.negf %292 : vector<8x128xf32>
      %294 = math.exp %293 : vector<8x128xf32>
      %cst_72 = arith.constant 1.000000e+00 : f32
      %295 = vector.broadcast %cst_72 : f32 to vector<8x128xf32>
      %296 = arith.addf %295, %294 : vector<8x128xf32>
      %297 = arith.divf %295, %296 : vector<8x128xf32>
      %298 = arith.mulf %289, %267 : vector<8x128xf32>
      %299 = arith.mulf %283, %291 : vector<8x128xf32>
      %300 = arith.addf %298, %299 : vector<8x128xf32>
      %301 = math.tanh %300 : vector<8x128xf32>
      %302 = arith.mulf %297, %301 : vector<8x128xf32>
      %c6_i32 = arith.constant 6 : i32
      %303 = arith.addi %23, %c6_i32 : i32
      %304 = vector.broadcast %303 : i32 to vector<8x1xi32>
      %305 = arith.cmpi slt, %304, %16 : vector<8x1xi32>
      %306 = vector.shape_cast %305 : vector<8x1xi1> to vector<8x1xi1>
      %307 = vector.broadcast %306 : vector<8x1xi1> to vector<8x128xi1>
      %308 = arith.select %307, %300, %267 : vector<8x128xi1>, vector<8x128xf32>
      %309 = vector.shape_cast %305 : vector<8x1xi1> to vector<8x1xi1>
      %310 = vector.broadcast %309 : vector<8x1xi1> to vector<8x128xi1>
      %311 = arith.select %310, %302, %270 : vector<8x128xi1>, vector<8x128xf32>
      %c0_73 = arith.constant 0 : index
      %c6 = arith.constant 6 : index
      %c0_74 = arith.constant 0 : index
      %c0_75 = arith.constant 0 : index
      %312 = vector.load %arg7[%c0_73, %c6, %c0_74, %c0_75] : memref<1x8x8x128xf32, #tpu.memory_space<vmem>>, vector<1x1x8x128xf32>
      %313 = vector.shape_cast %312 : vector<1x1x8x128xf32> to vector<8x128xf32>
      %314 = vector.shape_cast %311 : vector<8x128xf32> to vector<1x1x8x128xf32>
      tpu.vector_store %arg7[%c0_73, %c6, %c0_74, %c0_75], %314 {strides = array<i32>} : memref<1x8x8x128xf32, #tpu.memory_space<vmem>>, vector<1x1x8x128xf32>,
      %315 = vector.extract_strided_slice %13 {offsets = [56, 0], sizes = [8, 512], strides = [1, 1]} : vector<64x512xf32> to vector<8x512xf32>
      %316 = arith.truncf %311 : vector<8x128xf32> to vector<8x128xbf16>
      %cst_76 = arith.constant dense<0.000000e+00> : vector<8x512xf32>
      %317 = tpu.matmul %316, %15, %cst_76 {dimension_numbers = #tpu.dot_dimension_numbers<[1], [0], [0], [1], [0, 0, 1, 1], [], []>} : vector<8x128xbf16>, vector<128x512xbf16>, vector<8x512xf32> -> vector<8x512xf32>
      %318 = arith.addf %315, %317 : vector<8x512xf32>
      %319 = vector.extract_strided_slice %318 {offsets = [0, 0], sizes = [8, 128], strides = [1, 1]} : vector<8x512xf32> to vector<8x128xf32>
      %320 = arith.negf %319 : vector<8x128xf32>
      %321 = math.exp %320 : vector<8x128xf32>
      %cst_77 = arith.constant 1.000000e+00 : f32
      %322 = vector.broadcast %cst_77 : f32 to vector<8x128xf32>
      %323 = arith.addf %322, %321 : vector<8x128xf32>
      %324 = arith.divf %322, %323 : vector<8x128xf32>
      %325 = vector.extract_strided_slice %318 {offsets = [0, 128], sizes = [8, 128], strides = [1, 1]} : vector<8x512xf32> to vector<8x128xf32>
      %326 = arith.negf %325 : vector<8x128xf32>
      %327 = math.exp %326 : vector<8x128xf32>
      %cst_78 = arith.constant 1.000000e+00 : f32
      %328 = vector.broadcast %cst_78 : f32 to vector<8x128xf32>
      %329 = arith.addf %328, %327 : vector<8x128xf32>
      %330 = arith.divf %328, %329 : vector<8x128xf32>
      %331 = vector.extract_strided_slice %318 {offsets = [0, 256], sizes = [8, 128], strides = [1, 1]} : vector<8x512xf32> to vector<8x128xf32>
      %332 = math.tanh %331 : vector<8x128xf32>
      %333 = vector.extract_strided_slice %318 {offsets = [0, 384], sizes = [8, 128], strides = [1, 1]} : vector<8x512xf32> to vector<8x128xf32>
      %334 = arith.negf %333 : vector<8x128xf32>
      %335 = math.exp %334 : vector<8x128xf32>
      %cst_79 = arith.constant 1.000000e+00 : f32
      %336 = vector.broadcast %cst_79 : f32 to vector<8x128xf32>
      %337 = arith.addf %336, %335 : vector<8x128xf32>
      %338 = arith.divf %336, %337 : vector<8x128xf32>
      %339 = arith.mulf %330, %308 : vector<8x128xf32>
      %340 = arith.mulf %324, %332 : vector<8x128xf32>
      %341 = arith.addf %339, %340 : vector<8x128xf32>
      %342 = math.tanh %341 : vector<8x128xf32>
      %343 = arith.mulf %338, %342 : vector<8x128xf32>
      %c7_i32 = arith.constant 7 : i32
      %344 = arith.addi %23, %c7_i32 : i32
      %345 = vector.broadcast %344 : i32 to vector<8x1xi32>
      %346 = arith.cmpi slt, %345, %16 : vector<8x1xi32>
      %347 = vector.shape_cast %346 : vector<8x1xi1> to vector<8x1xi1>
      %348 = vector.broadcast %347 : vector<8x1xi1> to vector<8x128xi1>
      %349 = arith.select %348, %341, %308 : vector<8x128xi1>, vector<8x128xf32>
      %350 = vector.shape_cast %346 : vector<8x1xi1> to vector<8x1xi1>
      %351 = vector.broadcast %350 : vector<8x1xi1> to vector<8x128xi1>
      %352 = arith.select %351, %343, %311 : vector<8x128xi1>, vector<8x128xf32>
      %c0_80 = arith.constant 0 : index
      %c7 = arith.constant 7 : index
      %c0_81 = arith.constant 0 : index
      %c0_82 = arith.constant 0 : index
      %353 = vector.load %arg7[%c0_80, %c7, %c0_81, %c0_82] : memref<1x8x8x128xf32, #tpu.memory_space<vmem>>, vector<1x1x8x128xf32>
      %354 = vector.shape_cast %353 : vector<1x1x8x128xf32> to vector<8x128xf32>
      %355 = vector.shape_cast %352 : vector<8x128xf32> to vector<1x1x8x128xf32>
      tpu.vector_store %arg7[%c0_80, %c7, %c0_81, %c0_82], %355 {strides = array<i32>} : memref<1x8x8x128xf32, #tpu.memory_space<vmem>>, vector<1x1x8x128xf32>,
      %c0_83 = arith.constant 0 : index
      %c0_84 = arith.constant 0 : index
      %c0_85 = arith.constant 0 : index
      %356 = vector.load %arg8[%c0_83, %c0_84, %c0_85] : memref<1x8x128xf32, #tpu.memory_space<vmem>>, vector<1x8x128xf32>
      %357 = vector.shape_cast %356 : vector<1x8x128xf32> to vector<8x128xf32>
      %358 = vector.shape_cast %352 : vector<8x128xf32> to vector<1x8x128xf32>
      tpu.vector_store %arg8[%c0_83, %c0_84, %c0_85], %358 {strides = array<i32>} : memref<1x8x128xf32, #tpu.memory_space<vmem>>, vector<1x8x128xf32>,
      %c0_86 = arith.constant 0 : index
      %c0_87 = arith.constant 0 : index
      %c0_88 = arith.constant 0 : index
      %359 = vector.load %arg9[%c0_86, %c0_87, %c0_88] : memref<1x8x128xf32, #tpu.memory_space<vmem>>, vector<1x8x128xf32>
      %360 = vector.shape_cast %359 : vector<1x8x128xf32> to vector<8x128xf32>
      %361 = vector.shape_cast %349 : vector<8x128xf32> to vector<1x8x128xf32>
      tpu.vector_store %arg9[%c0_86, %c0_87, %c0_88], %361 {strides = array<i32>} : memref<1x8x128xf32, #tpu.memory_space<vmem>>, vector<1x8x128xf32>,
    } else {
    }
    %c1_i32 = arith.constant 1 : i32
    %20 = arith.cmpi eq, %arg0, %c1_i32 : i32
    %21 = arith.extui %20 : i1 to i32
    %c0_i32_17 = arith.constant 0 : i32
    %22 = arith.cmpi ne, %21, %c0_i32_17 : i32
    scf.if %22 {
      %c1_i32_18 = arith.constant 1 : i32
      %23 = arith.subi %c1_i32_18, %arg1 : i32
      %c8_i32 = arith.constant 8 : i32
      %24 = arith.muli %23, %c8_i32 : i32
      %c0_19 = arith.constant 0 : index
      %c0_20 = arith.constant 0 : index
      %c0_21 = arith.constant 0 : index
      %25 = vector.load %arg8[%c0_19, %c0_20, %c0_21] : memref<1x8x128xf32, #tpu.memory_space<vmem>>, vector<1x8x128xf32>
      %26 = vector.shape_cast %25 : vector<1x8x128xf32> to vector<8x128xf32>
      %c0_22 = arith.constant 0 : index
      %c0_23 = arith.constant 0 : index
      %c0_24 = arith.constant 0 : index
      %27 = vector.load %arg9[%c0_22, %c0_23, %c0_24] : memref<1x8x128xf32, #tpu.memory_space<vmem>>, vector<1x8x128xf32>
      %28 = vector.shape_cast %27 : vector<1x8x128xf32> to vector<8x128xf32>
      %29 = vector.extract_strided_slice %13 {offsets = [56, 0], sizes = [8, 512], strides = [1, 1]} : vector<64x512xf32> to vector<8x512xf32>
      %30 = arith.truncf %26 : vector<8x128xf32> to vector<8x128xbf16>
      %cst_25 = arith.constant dense<0.000000e+00> : vector<8x512xf32>
      %31 = tpu.matmul %30, %15, %cst_25 {dimension_numbers = #tpu.dot_dimension_numbers<[1], [0], [0], [1], [0, 0, 1, 1], [], []>} : vector<8x128xbf16>, vector<128x512xbf16>, vector<8x512xf32> -> vector<8x512xf32>
      %32 = arith.addf %29, %31 : vector<8x512xf32>
      %33 = vector.extract_strided_slice %32 {offsets = [0, 0], sizes = [8, 128], strides = [1, 1]} : vector<8x512xf32> to vector<8x128xf32>
      %34 = arith.negf %33 : vector<8x128xf32>
      %35 = math.exp %34 : vector<8x128xf32>
      %cst_26 = arith.constant 1.000000e+00 : f32
      %36 = vector.broadcast %cst_26 : f32 to vector<8x128xf32>
      %37 = arith.addf %36, %35 : vector<8x128xf32>
      %38 = arith.divf %36, %37 : vector<8x128xf32>
      %39 = vector.extract_strided_slice %32 {offsets = [0, 128], sizes = [8, 128], strides = [1, 1]} : vector<8x512xf32> to vector<8x128xf32>
      %40 = arith.negf %39 : vector<8x128xf32>
      %41 = math.exp %40 : vector<8x128xf32>
      %cst_27 = arith.constant 1.000000e+00 : f32
      %42 = vector.broadcast %cst_27 : f32 to vector<8x128xf32>
      %43 = arith.addf %42, %41 : vector<8x128xf32>
      %44 = arith.divf %42, %43 : vector<8x128xf32>
      %45 = vector.extract_strided_slice %32 {offsets = [0, 256], sizes = [8, 128], strides = [1, 1]} : vector<8x512xf32> to vector<8x128xf32>
      %46 = math.tanh %45 : vector<8x128xf32>
      %47 = vector.extract_strided_slice %32 {offsets = [0, 384], sizes = [8, 128], strides = [1, 1]} : vector<8x512xf32> to vector<8x128xf32>
      %48 = arith.negf %47 : vector<8x128xf32>
      %49 = math.exp %48 : vector<8x128xf32>
      %cst_28 = arith.constant 1.000000e+00 : f32
      %50 = vector.broadcast %cst_28 : f32 to vector<8x128xf32>
      %51 = arith.addf %50, %49 : vector<8x128xf32>
      %52 = arith.divf %50, %51 : vector<8x128xf32>
      %53 = arith.mulf %44, %28 : vector<8x128xf32>
      %54 = arith.mulf %38, %46 : vector<8x128xf32>
      %55 = arith.addf %53, %54 : vector<8x128xf32>
      %56 = math.tanh %55 : vector<8x128xf32>
      %57 = arith.mulf %52, %56 : vector<8x128xf32>
      %c7_i32 = arith.constant 7 : i32
      %58 = arith.addi %24, %c7_i32 : i32
      %59 = vector.broadcast %58 : i32 to vector<8x1xi32>
      %60 = arith.cmpi slt, %59, %16 : vector<8x1xi32>
      %61 = vector.shape_cast %60 : vector<8x1xi1> to vector<8x1xi1>
      %62 = vector.broadcast %61 : vector<8x1xi1> to vector<8x128xi1>
      %63 = arith.select %62, %55, %28 : vector<8x128xi1>, vector<8x128xf32>
      %64 = vector.shape_cast %60 : vector<8x1xi1> to vector<8x1xi1>
      %65 = vector.broadcast %64 : vector<8x1xi1> to vector<8x128xi1>
      %66 = arith.select %65, %57, %26 : vector<8x128xi1>, vector<8x128xf32>
      %c0_29 = arith.constant 0 : index
      %c7 = arith.constant 7 : index
      %c0_30 = arith.constant 0 : index
      %c0_31 = arith.constant 0 : index
      %67 = vector.load %arg7[%c0_29, %c7, %c0_30, %c0_31] : memref<1x8x8x128xf32, #tpu.memory_space<vmem>>, vector<1x1x8x128xf32>
      %68 = vector.shape_cast %67 : vector<1x1x8x128xf32> to vector<8x128xf32>
      %69 = vector.shape_cast %66 : vector<8x128xf32> to vector<1x1x8x128xf32>
      tpu.vector_store %arg7[%c0_29, %c7, %c0_30, %c0_31], %69 {strides = array<i32>} : memref<1x8x8x128xf32, #tpu.memory_space<vmem>>, vector<1x1x8x128xf32>,
      %70 = vector.extract_strided_slice %13 {offsets = [48, 0], sizes = [8, 512], strides = [1, 1]} : vector<64x512xf32> to vector<8x512xf32>
      %71 = arith.truncf %66 : vector<8x128xf32> to vector<8x128xbf16>
      %cst_32 = arith.constant dense<0.000000e+00> : vector<8x512xf32>
      %72 = tpu.matmul %71, %15, %cst_32 {dimension_numbers = #tpu.dot_dimension_numbers<[1], [0], [0], [1], [0, 0, 1, 1], [], []>} : vector<8x128xbf16>, vector<128x512xbf16>, vector<8x512xf32> -> vector<8x512xf32>
      %73 = arith.addf %70, %72 : vector<8x512xf32>
      %74 = vector.extract_strided_slice %73 {offsets = [0, 0], sizes = [8, 128], strides = [1, 1]} : vector<8x512xf32> to vector<8x128xf32>
      %75 = arith.negf %74 : vector<8x128xf32>
      %76 = math.exp %75 : vector<8x128xf32>
      %cst_33 = arith.constant 1.000000e+00 : f32
      %77 = vector.broadcast %cst_33 : f32 to vector<8x128xf32>
      %78 = arith.addf %77, %76 : vector<8x128xf32>
      %79 = arith.divf %77, %78 : vector<8x128xf32>
      %80 = vector.extract_strided_slice %73 {offsets = [0, 128], sizes = [8, 128], strides = [1, 1]} : vector<8x512xf32> to vector<8x128xf32>
      %81 = arith.negf %80 : vector<8x128xf32>
      %82 = math.exp %81 : vector<8x128xf32>
      %cst_34 = arith.constant 1.000000e+00 : f32
      %83 = vector.broadcast %cst_34 : f32 to vector<8x128xf32>
      %84 = arith.addf %83, %82 : vector<8x128xf32>
      %85 = arith.divf %83, %84 : vector<8x128xf32>
      %86 = vector.extract_strided_slice %73 {offsets = [0, 256], sizes = [8, 128], strides = [1, 1]} : vector<8x512xf32> to vector<8x128xf32>
      %87 = math.tanh %86 : vector<8x128xf32>
      %88 = vector.extract_strided_slice %73 {offsets = [0, 384], sizes = [8, 128], strides = [1, 1]} : vector<8x512xf32> to vector<8x128xf32>
      %89 = arith.negf %88 : vector<8x128xf32>
      %90 = math.exp %89 : vector<8x128xf32>
      %cst_35 = arith.constant 1.000000e+00 : f32
      %91 = vector.broadcast %cst_35 : f32 to vector<8x128xf32>
      %92 = arith.addf %91, %90 : vector<8x128xf32>
      %93 = arith.divf %91, %92 : vector<8x128xf32>
      %94 = arith.mulf %85, %63 : vector<8x128xf32>
      %95 = arith.mulf %79, %87 : vector<8x128xf32>
      %96 = arith.addf %94, %95 : vector<8x128xf32>
      %97 = math.tanh %96 : vector<8x128xf32>
      %98 = arith.mulf %93, %97 : vector<8x128xf32>
      %c6_i32 = arith.constant 6 : i32
      %99 = arith.addi %24, %c6_i32 : i32
      %100 = vector.broadcast %99 : i32 to vector<8x1xi32>
      %101 = arith.cmpi slt, %100, %16 : vector<8x1xi32>
      %102 = vector.shape_cast %101 : vector<8x1xi1> to vector<8x1xi1>
      %103 = vector.broadcast %102 : vector<8x1xi1> to vector<8x128xi1>
      %104 = arith.select %103, %96, %63 : vector<8x128xi1>, vector<8x128xf32>
      %105 = vector.shape_cast %101 : vector<8x1xi1> to vector<8x1xi1>
      %106 = vector.broadcast %105 : vector<8x1xi1> to vector<8x128xi1>
      %107 = arith.select %106, %98, %66 : vector<8x128xi1>, vector<8x128xf32>
      %c0_36 = arith.constant 0 : index
      %c6 = arith.constant 6 : index
      %c0_37 = arith.constant 0 : index
      %c0_38 = arith.constant 0 : index
      %108 = vector.load %arg7[%c0_36, %c6, %c0_37, %c0_38] : memref<1x8x8x128xf32, #tpu.memory_space<vmem>>, vector<1x1x8x128xf32>
      %109 = vector.shape_cast %108 : vector<1x1x8x128xf32> to vector<8x128xf32>
      %110 = vector.shape_cast %107 : vector<8x128xf32> to vector<1x1x8x128xf32>
      tpu.vector_store %arg7[%c0_36, %c6, %c0_37, %c0_38], %110 {strides = array<i32>} : memref<1x8x8x128xf32, #tpu.memory_space<vmem>>, vector<1x1x8x128xf32>,
      %111 = vector.extract_strided_slice %13 {offsets = [40, 0], sizes = [8, 512], strides = [1, 1]} : vector<64x512xf32> to vector<8x512xf32>
      %112 = arith.truncf %107 : vector<8x128xf32> to vector<8x128xbf16>
      %cst_39 = arith.constant dense<0.000000e+00> : vector<8x512xf32>
      %113 = tpu.matmul %112, %15, %cst_39 {dimension_numbers = #tpu.dot_dimension_numbers<[1], [0], [0], [1], [0, 0, 1, 1], [], []>} : vector<8x128xbf16>, vector<128x512xbf16>, vector<8x512xf32> -> vector<8x512xf32>
      %114 = arith.addf %111, %113 : vector<8x512xf32>
      %115 = vector.extract_strided_slice %114 {offsets = [0, 0], sizes = [8, 128], strides = [1, 1]} : vector<8x512xf32> to vector<8x128xf32>
      %116 = arith.negf %115 : vector<8x128xf32>
      %117 = math.exp %116 : vector<8x128xf32>
      %cst_40 = arith.constant 1.000000e+00 : f32
      %118 = vector.broadcast %cst_40 : f32 to vector<8x128xf32>
      %119 = arith.addf %118, %117 : vector<8x128xf32>
      %120 = arith.divf %118, %119 : vector<8x128xf32>
      %121 = vector.extract_strided_slice %114 {offsets = [0, 128], sizes = [8, 128], strides = [1, 1]} : vector<8x512xf32> to vector<8x128xf32>
      %122 = arith.negf %121 : vector<8x128xf32>
      %123 = math.exp %122 : vector<8x128xf32>
      %cst_41 = arith.constant 1.000000e+00 : f32
      %124 = vector.broadcast %cst_41 : f32 to vector<8x128xf32>
      %125 = arith.addf %124, %123 : vector<8x128xf32>
      %126 = arith.divf %124, %125 : vector<8x128xf32>
      %127 = vector.extract_strided_slice %114 {offsets = [0, 256], sizes = [8, 128], strides = [1, 1]} : vector<8x512xf32> to vector<8x128xf32>
      %128 = math.tanh %127 : vector<8x128xf32>
      %129 = vector.extract_strided_slice %114 {offsets = [0, 384], sizes = [8, 128], strides = [1, 1]} : vector<8x512xf32> to vector<8x128xf32>
      %130 = arith.negf %129 : vector<8x128xf32>
      %131 = math.exp %130 : vector<8x128xf32>
      %cst_42 = arith.constant 1.000000e+00 : f32
      %132 = vector.broadcast %cst_42 : f32 to vector<8x128xf32>
      %133 = arith.addf %132, %131 : vector<8x128xf32>
      %134 = arith.divf %132, %133 : vector<8x128xf32>
      %135 = arith.mulf %126, %104 : vector<8x128xf32>
      %136 = arith.mulf %120, %128 : vector<8x128xf32>
      %137 = arith.addf %135, %136 : vector<8x128xf32>
      %138 = math.tanh %137 : vector<8x128xf32>
      %139 = arith.mulf %134, %138 : vector<8x128xf32>
      %c5_i32 = arith.constant 5 : i32
      %140 = arith.addi %24, %c5_i32 : i32
      %141 = vector.broadcast %140 : i32 to vector<8x1xi32>
      %142 = arith.cmpi slt, %141, %16 : vector<8x1xi32>
      %143 = vector.shape_cast %142 : vector<8x1xi1> to vector<8x1xi1>
      %144 = vector.broadcast %143 : vector<8x1xi1> to vector<8x128xi1>
      %145 = arith.select %144, %137, %104 : vector<8x128xi1>, vector<8x128xf32>
      %146 = vector.shape_cast %142 : vector<8x1xi1> to vector<8x1xi1>
      %147 = vector.broadcast %146 : vector<8x1xi1> to vector<8x128xi1>
      %148 = arith.select %147, %139, %107 : vector<8x128xi1>, vector<8x128xf32>
      %c0_43 = arith.constant 0 : index
      %c5 = arith.constant 5 : index
      %c0_44 = arith.constant 0 : index
      %c0_45 = arith.constant 0 : index
      %149 = vector.load %arg7[%c0_43, %c5, %c0_44, %c0_45] : memref<1x8x8x128xf32, #tpu.memory_space<vmem>>, vector<1x1x8x128xf32>
      %150 = vector.shape_cast %149 : vector<1x1x8x128xf32> to vector<8x128xf32>
      %151 = vector.shape_cast %148 : vector<8x128xf32> to vector<1x1x8x128xf32>
      tpu.vector_store %arg7[%c0_43, %c5, %c0_44, %c0_45], %151 {strides = array<i32>} : memref<1x8x8x128xf32, #tpu.memory_space<vmem>>, vector<1x1x8x128xf32>,
      %152 = vector.extract_strided_slice %13 {offsets = [32, 0], sizes = [8, 512], strides = [1, 1]} : vector<64x512xf32> to vector<8x512xf32>
      %153 = arith.truncf %148 : vector<8x128xf32> to vector<8x128xbf16>
      %cst_46 = arith.constant dense<0.000000e+00> : vector<8x512xf32>
      %154 = tpu.matmul %153, %15, %cst_46 {dimension_numbers = #tpu.dot_dimension_numbers<[1], [0], [0], [1], [0, 0, 1, 1], [], []>} : vector<8x128xbf16>, vector<128x512xbf16>, vector<8x512xf32> -> vector<8x512xf32>
      %155 = arith.addf %152, %154 : vector<8x512xf32>
      %156 = vector.extract_strided_slice %155 {offsets = [0, 0], sizes = [8, 128], strides = [1, 1]} : vector<8x512xf32> to vector<8x128xf32>
      %157 = arith.negf %156 : vector<8x128xf32>
      %158 = math.exp %157 : vector<8x128xf32>
      %cst_47 = arith.constant 1.000000e+00 : f32
      %159 = vector.broadcast %cst_47 : f32 to vector<8x128xf32>
      %160 = arith.addf %159, %158 : vector<8x128xf32>
      %161 = arith.divf %159, %160 : vector<8x128xf32>
      %162 = vector.extract_strided_slice %155 {offsets = [0, 128], sizes = [8, 128], strides = [1, 1]} : vector<8x512xf32> to vector<8x128xf32>
      %163 = arith.negf %162 : vector<8x128xf32>
      %164 = math.exp %163 : vector<8x128xf32>
      %cst_48 = arith.constant 1.000000e+00 : f32
      %165 = vector.broadcast %cst_48 : f32 to vector<8x128xf32>
      %166 = arith.addf %165, %164 : vector<8x128xf32>
      %167 = arith.divf %165, %166 : vector<8x128xf32>
      %168 = vector.extract_strided_slice %155 {offsets = [0, 256], sizes = [8, 128], strides = [1, 1]} : vector<8x512xf32> to vector<8x128xf32>
      %169 = math.tanh %168 : vector<8x128xf32>
      %170 = vector.extract_strided_slice %155 {offsets = [0, 384], sizes = [8, 128], strides = [1, 1]} : vector<8x512xf32> to vector<8x128xf32>
      %171 = arith.negf %170 : vector<8x128xf32>
      %172 = math.exp %171 : vector<8x128xf32>
      %cst_49 = arith.constant 1.000000e+00 : f32
      %173 = vector.broadcast %cst_49 : f32 to vector<8x128xf32>
      %174 = arith.addf %173, %172 : vector<8x128xf32>
      %175 = arith.divf %173, %174 : vector<8x128xf32>
      %176 = arith.mulf %167, %145 : vector<8x128xf32>
      %177 = arith.mulf %161, %169 : vector<8x128xf32>
      %178 = arith.addf %176, %177 : vector<8x128xf32>
      %179 = math.tanh %178 : vector<8x128xf32>
      %180 = arith.mulf %175, %179 : vector<8x128xf32>
      %c4_i32 = arith.constant 4 : i32
      %181 = arith.addi %24, %c4_i32 : i32
      %182 = vector.broadcast %181 : i32 to vector<8x1xi32>
      %183 = arith.cmpi slt, %182, %16 : vector<8x1xi32>
      %184 = vector.shape_cast %183 : vector<8x1xi1> to vector<8x1xi1>
      %185 = vector.broadcast %184 : vector<8x1xi1> to vector<8x128xi1>
      %186 = arith.select %185, %178, %145 : vector<8x128xi1>, vector<8x128xf32>
      %187 = vector.shape_cast %183 : vector<8x1xi1> to vector<8x1xi1>
      %188 = vector.broadcast %187 : vector<8x1xi1> to vector<8x128xi1>
      %189 = arith.select %188, %180, %148 : vector<8x128xi1>, vector<8x128xf32>
      %c0_50 = arith.constant 0 : index
      %c4 = arith.constant 4 : index
      %c0_51 = arith.constant 0 : index
      %c0_52 = arith.constant 0 : index
      %190 = vector.load %arg7[%c0_50, %c4, %c0_51, %c0_52] : memref<1x8x8x128xf32, #tpu.memory_space<vmem>>, vector<1x1x8x128xf32>
      %191 = vector.shape_cast %190 : vector<1x1x8x128xf32> to vector<8x128xf32>
      %192 = vector.shape_cast %189 : vector<8x128xf32> to vector<1x1x8x128xf32>
      tpu.vector_store %arg7[%c0_50, %c4, %c0_51, %c0_52], %192 {strides = array<i32>} : memref<1x8x8x128xf32, #tpu.memory_space<vmem>>, vector<1x1x8x128xf32>,
      %193 = vector.extract_strided_slice %13 {offsets = [24, 0], sizes = [8, 512], strides = [1, 1]} : vector<64x512xf32> to vector<8x512xf32>
      %194 = arith.truncf %189 : vector<8x128xf32> to vector<8x128xbf16>
      %cst_53 = arith.constant dense<0.000000e+00> : vector<8x512xf32>
      %195 = tpu.matmul %194, %15, %cst_53 {dimension_numbers = #tpu.dot_dimension_numbers<[1], [0], [0], [1], [0, 0, 1, 1], [], []>} : vector<8x128xbf16>, vector<128x512xbf16>, vector<8x512xf32> -> vector<8x512xf32>
      %196 = arith.addf %193, %195 : vector<8x512xf32>
      %197 = vector.extract_strided_slice %196 {offsets = [0, 0], sizes = [8, 128], strides = [1, 1]} : vector<8x512xf32> to vector<8x128xf32>
      %198 = arith.negf %197 : vector<8x128xf32>
      %199 = math.exp %198 : vector<8x128xf32>
      %cst_54 = arith.constant 1.000000e+00 : f32
      %200 = vector.broadcast %cst_54 : f32 to vector<8x128xf32>
      %201 = arith.addf %200, %199 : vector<8x128xf32>
      %202 = arith.divf %200, %201 : vector<8x128xf32>
      %203 = vector.extract_strided_slice %196 {offsets = [0, 128], sizes = [8, 128], strides = [1, 1]} : vector<8x512xf32> to vector<8x128xf32>
      %204 = arith.negf %203 : vector<8x128xf32>
      %205 = math.exp %204 : vector<8x128xf32>
      %cst_55 = arith.constant 1.000000e+00 : f32
      %206 = vector.broadcast %cst_55 : f32 to vector<8x128xf32>
      %207 = arith.addf %206, %205 : vector<8x128xf32>
      %208 = arith.divf %206, %207 : vector<8x128xf32>
      %209 = vector.extract_strided_slice %196 {offsets = [0, 256], sizes = [8, 128], strides = [1, 1]} : vector<8x512xf32> to vector<8x128xf32>
      %210 = math.tanh %209 : vector<8x128xf32>
      %211 = vector.extract_strided_slice %196 {offsets = [0, 384], sizes = [8, 128], strides = [1, 1]} : vector<8x512xf32> to vector<8x128xf32>
      %212 = arith.negf %211 : vector<8x128xf32>
      %213 = math.exp %212 : vector<8x128xf32>
      %cst_56 = arith.constant 1.000000e+00 : f32
      %214 = vector.broadcast %cst_56 : f32 to vector<8x128xf32>
      %215 = arith.addf %214, %213 : vector<8x128xf32>
      %216 = arith.divf %214, %215 : vector<8x128xf32>
      %217 = arith.mulf %208, %186 : vector<8x128xf32>
      %218 = arith.mulf %202, %210 : vector<8x128xf32>
      %219 = arith.addf %217, %218 : vector<8x128xf32>
      %220 = math.tanh %219 : vector<8x128xf32>
      %221 = arith.mulf %216, %220 : vector<8x128xf32>
      %c3_i32 = arith.constant 3 : i32
      %222 = arith.addi %24, %c3_i32 : i32
      %223 = vector.broadcast %222 : i32 to vector<8x1xi32>
      %224 = arith.cmpi slt, %223, %16 : vector<8x1xi32>
      %225 = vector.shape_cast %224 : vector<8x1xi1> to vector<8x1xi1>
      %226 = vector.broadcast %225 : vector<8x1xi1> to vector<8x128xi1>
      %227 = arith.select %226, %219, %186 : vector<8x128xi1>, vector<8x128xf32>
      %228 = vector.shape_cast %224 : vector<8x1xi1> to vector<8x1xi1>
      %229 = vector.broadcast %228 : vector<8x1xi1> to vector<8x128xi1>
      %230 = arith.select %229, %221, %189 : vector<8x128xi1>, vector<8x128xf32>
      %c0_57 = arith.constant 0 : index
      %c3 = arith.constant 3 : index
      %c0_58 = arith.constant 0 : index
      %c0_59 = arith.constant 0 : index
      %231 = vector.load %arg7[%c0_57, %c3, %c0_58, %c0_59] : memref<1x8x8x128xf32, #tpu.memory_space<vmem>>, vector<1x1x8x128xf32>
      %232 = vector.shape_cast %231 : vector<1x1x8x128xf32> to vector<8x128xf32>
      %233 = vector.shape_cast %230 : vector<8x128xf32> to vector<1x1x8x128xf32>
      tpu.vector_store %arg7[%c0_57, %c3, %c0_58, %c0_59], %233 {strides = array<i32>} : memref<1x8x8x128xf32, #tpu.memory_space<vmem>>, vector<1x1x8x128xf32>,
      %234 = vector.extract_strided_slice %13 {offsets = [16, 0], sizes = [8, 512], strides = [1, 1]} : vector<64x512xf32> to vector<8x512xf32>
      %235 = arith.truncf %230 : vector<8x128xf32> to vector<8x128xbf16>
      %cst_60 = arith.constant dense<0.000000e+00> : vector<8x512xf32>
      %236 = tpu.matmul %235, %15, %cst_60 {dimension_numbers = #tpu.dot_dimension_numbers<[1], [0], [0], [1], [0, 0, 1, 1], [], []>} : vector<8x128xbf16>, vector<128x512xbf16>, vector<8x512xf32> -> vector<8x512xf32>
      %237 = arith.addf %234, %236 : vector<8x512xf32>
      %238 = vector.extract_strided_slice %237 {offsets = [0, 0], sizes = [8, 128], strides = [1, 1]} : vector<8x512xf32> to vector<8x128xf32>
      %239 = arith.negf %238 : vector<8x128xf32>
      %240 = math.exp %239 : vector<8x128xf32>
      %cst_61 = arith.constant 1.000000e+00 : f32
      %241 = vector.broadcast %cst_61 : f32 to vector<8x128xf32>
      %242 = arith.addf %241, %240 : vector<8x128xf32>
      %243 = arith.divf %241, %242 : vector<8x128xf32>
      %244 = vector.extract_strided_slice %237 {offsets = [0, 128], sizes = [8, 128], strides = [1, 1]} : vector<8x512xf32> to vector<8x128xf32>
      %245 = arith.negf %244 : vector<8x128xf32>
      %246 = math.exp %245 : vector<8x128xf32>
      %cst_62 = arith.constant 1.000000e+00 : f32
      %247 = vector.broadcast %cst_62 : f32 to vector<8x128xf32>
      %248 = arith.addf %247, %246 : vector<8x128xf32>
      %249 = arith.divf %247, %248 : vector<8x128xf32>
      %250 = vector.extract_strided_slice %237 {offsets = [0, 256], sizes = [8, 128], strides = [1, 1]} : vector<8x512xf32> to vector<8x128xf32>
      %251 = math.tanh %250 : vector<8x128xf32>
      %252 = vector.extract_strided_slice %237 {offsets = [0, 384], sizes = [8, 128], strides = [1, 1]} : vector<8x512xf32> to vector<8x128xf32>
      %253 = arith.negf %252 : vector<8x128xf32>
      %254 = math.exp %253 : vector<8x128xf32>
      %cst_63 = arith.constant 1.000000e+00 : f32
      %255 = vector.broadcast %cst_63 : f32 to vector<8x128xf32>
      %256 = arith.addf %255, %254 : vector<8x128xf32>
      %257 = arith.divf %255, %256 : vector<8x128xf32>
      %258 = arith.mulf %249, %227 : vector<8x128xf32>
      %259 = arith.mulf %243, %251 : vector<8x128xf32>
      %260 = arith.addf %258, %259 : vector<8x128xf32>
      %261 = math.tanh %260 : vector<8x128xf32>
      %262 = arith.mulf %257, %261 : vector<8x128xf32>
      %c2_i32 = arith.constant 2 : i32
      %263 = arith.addi %24, %c2_i32 : i32
      %264 = vector.broadcast %263 : i32 to vector<8x1xi32>
      %265 = arith.cmpi slt, %264, %16 : vector<8x1xi32>
      %266 = vector.shape_cast %265 : vector<8x1xi1> to vector<8x1xi1>
      %267 = vector.broadcast %266 : vector<8x1xi1> to vector<8x128xi1>
      %268 = arith.select %267, %260, %227 : vector<8x128xi1>, vector<8x128xf32>
      %269 = vector.shape_cast %265 : vector<8x1xi1> to vector<8x1xi1>
      %270 = vector.broadcast %269 : vector<8x1xi1> to vector<8x128xi1>
      %271 = arith.select %270, %262, %230 : vector<8x128xi1>, vector<8x128xf32>
      %c0_64 = arith.constant 0 : index
      %c2 = arith.constant 2 : index
      %c0_65 = arith.constant 0 : index
      %c0_66 = arith.constant 0 : index
      %272 = vector.load %arg7[%c0_64, %c2, %c0_65, %c0_66] : memref<1x8x8x128xf32, #tpu.memory_space<vmem>>, vector<1x1x8x128xf32>
      %273 = vector.shape_cast %272 : vector<1x1x8x128xf32> to vector<8x128xf32>
      %274 = vector.shape_cast %271 : vector<8x128xf32> to vector<1x1x8x128xf32>
      tpu.vector_store %arg7[%c0_64, %c2, %c0_65, %c0_66], %274 {strides = array<i32>} : memref<1x8x8x128xf32, #tpu.memory_space<vmem>>, vector<1x1x8x128xf32>,
      %275 = vector.extract_strided_slice %13 {offsets = [8, 0], sizes = [8, 512], strides = [1, 1]} : vector<64x512xf32> to vector<8x512xf32>
      %276 = arith.truncf %271 : vector<8x128xf32> to vector<8x128xbf16>
      %cst_67 = arith.constant dense<0.000000e+00> : vector<8x512xf32>
      %277 = tpu.matmul %276, %15, %cst_67 {dimension_numbers = #tpu.dot_dimension_numbers<[1], [0], [0], [1], [0, 0, 1, 1], [], []>} : vector<8x128xbf16>, vector<128x512xbf16>, vector<8x512xf32> -> vector<8x512xf32>
      %278 = arith.addf %275, %277 : vector<8x512xf32>
      %279 = vector.extract_strided_slice %278 {offsets = [0, 0], sizes = [8, 128], strides = [1, 1]} : vector<8x512xf32> to vector<8x128xf32>
      %280 = arith.negf %279 : vector<8x128xf32>
      %281 = math.exp %280 : vector<8x128xf32>
      %cst_68 = arith.constant 1.000000e+00 : f32
      %282 = vector.broadcast %cst_68 : f32 to vector<8x128xf32>
      %283 = arith.addf %282, %281 : vector<8x128xf32>
      %284 = arith.divf %282, %283 : vector<8x128xf32>
      %285 = vector.extract_strided_slice %278 {offsets = [0, 128], sizes = [8, 128], strides = [1, 1]} : vector<8x512xf32> to vector<8x128xf32>
      %286 = arith.negf %285 : vector<8x128xf32>
      %287 = math.exp %286 : vector<8x128xf32>
      %cst_69 = arith.constant 1.000000e+00 : f32
      %288 = vector.broadcast %cst_69 : f32 to vector<8x128xf32>
      %289 = arith.addf %288, %287 : vector<8x128xf32>
      %290 = arith.divf %288, %289 : vector<8x128xf32>
      %291 = vector.extract_strided_slice %278 {offsets = [0, 256], sizes = [8, 128], strides = [1, 1]} : vector<8x512xf32> to vector<8x128xf32>
      %292 = math.tanh %291 : vector<8x128xf32>
      %293 = vector.extract_strided_slice %278 {offsets = [0, 384], sizes = [8, 128], strides = [1, 1]} : vector<8x512xf32> to vector<8x128xf32>
      %294 = arith.negf %293 : vector<8x128xf32>
      %295 = math.exp %294 : vector<8x128xf32>
      %cst_70 = arith.constant 1.000000e+00 : f32
      %296 = vector.broadcast %cst_70 : f32 to vector<8x128xf32>
      %297 = arith.addf %296, %295 : vector<8x128xf32>
      %298 = arith.divf %296, %297 : vector<8x128xf32>
      %299 = arith.mulf %290, %268 : vector<8x128xf32>
      %300 = arith.mulf %284, %292 : vector<8x128xf32>
      %301 = arith.addf %299, %300 : vector<8x128xf32>
      %302 = math.tanh %301 : vector<8x128xf32>
      %303 = arith.mulf %298, %302 : vector<8x128xf32>
      %c1_i32_71 = arith.constant 1 : i32
      %304 = arith.addi %24, %c1_i32_71 : i32
      %305 = vector.broadcast %304 : i32 to vector<8x1xi32>
      %306 = arith.cmpi slt, %305, %16 : vector<8x1xi32>
      %307 = vector.shape_cast %306 : vector<8x1xi1> to vector<8x1xi1>
      %308 = vector.broadcast %307 : vector<8x1xi1> to vector<8x128xi1>
      %309 = arith.select %308, %301, %268 : vector<8x128xi1>, vector<8x128xf32>
      %310 = vector.shape_cast %306 : vector<8x1xi1> to vector<8x1xi1>
      %311 = vector.broadcast %310 : vector<8x1xi1> to vector<8x128xi1>
      %312 = arith.select %311, %303, %271 : vector<8x128xi1>, vector<8x128xf32>
      %c0_72 = arith.constant 0 : index
      %c1 = arith.constant 1 : index
      %c0_73 = arith.constant 0 : index
      %c0_74 = arith.constant 0 : index
      %313 = vector.load %arg7[%c0_72, %c1, %c0_73, %c0_74] : memref<1x8x8x128xf32, #tpu.memory_space<vmem>>, vector<1x1x8x128xf32>
      %314 = vector.shape_cast %313 : vector<1x1x8x128xf32> to vector<8x128xf32>
      %315 = vector.shape_cast %312 : vector<8x128xf32> to vector<1x1x8x128xf32>
      tpu.vector_store %arg7[%c0_72, %c1, %c0_73, %c0_74], %315 {strides = array<i32>} : memref<1x8x8x128xf32, #tpu.memory_space<vmem>>, vector<1x1x8x128xf32>,
      %316 = vector.extract_strided_slice %13 {offsets = [0, 0], sizes = [8, 512], strides = [1, 1]} : vector<64x512xf32> to vector<8x512xf32>
      %317 = arith.truncf %312 : vector<8x128xf32> to vector<8x128xbf16>
      %cst_75 = arith.constant dense<0.000000e+00> : vector<8x512xf32>
      %318 = tpu.matmul %317, %15, %cst_75 {dimension_numbers = #tpu.dot_dimension_numbers<[1], [0], [0], [1], [0, 0, 1, 1], [], []>} : vector<8x128xbf16>, vector<128x512xbf16>, vector<8x512xf32> -> vector<8x512xf32>
      %319 = arith.addf %316, %318 : vector<8x512xf32>
      %320 = vector.extract_strided_slice %319 {offsets = [0, 0], sizes = [8, 128], strides = [1, 1]} : vector<8x512xf32> to vector<8x128xf32>
      %321 = arith.negf %320 : vector<8x128xf32>
      %322 = math.exp %321 : vector<8x128xf32>
      %cst_76 = arith.constant 1.000000e+00 : f32
      %323 = vector.broadcast %cst_76 : f32 to vector<8x128xf32>
      %324 = arith.addf %323, %322 : vector<8x128xf32>
      %325 = arith.divf %323, %324 : vector<8x128xf32>
      %326 = vector.extract_strided_slice %319 {offsets = [0, 128], sizes = [8, 128], strides = [1, 1]} : vector<8x512xf32> to vector<8x128xf32>
      %327 = arith.negf %326 : vector<8x128xf32>
      %328 = math.exp %327 : vector<8x128xf32>
      %cst_77 = arith.constant 1.000000e+00 : f32
      %329 = vector.broadcast %cst_77 : f32 to vector<8x128xf32>
      %330 = arith.addf %329, %328 : vector<8x128xf32>
      %331 = arith.divf %329, %330 : vector<8x128xf32>
      %332 = vector.extract_strided_slice %319 {offsets = [0, 256], sizes = [8, 128], strides = [1, 1]} : vector<8x512xf32> to vector<8x128xf32>
      %333 = math.tanh %332 : vector<8x128xf32>
      %334 = vector.extract_strided_slice %319 {offsets = [0, 384], sizes = [8, 128], strides = [1, 1]} : vector<8x512xf32> to vector<8x128xf32>
      %335 = arith.negf %334 : vector<8x128xf32>
      %336 = math.exp %335 : vector<8x128xf32>
      %cst_78 = arith.constant 1.000000e+00 : f32
      %337 = vector.broadcast %cst_78 : f32 to vector<8x128xf32>
      %338 = arith.addf %337, %336 : vector<8x128xf32>
      %339 = arith.divf %337, %338 : vector<8x128xf32>
      %340 = arith.mulf %331, %309 : vector<8x128xf32>
      %341 = arith.mulf %325, %333 : vector<8x128xf32>
      %342 = arith.addf %340, %341 : vector<8x128xf32>
      %343 = math.tanh %342 : vector<8x128xf32>
      %344 = arith.mulf %339, %343 : vector<8x128xf32>
      %c0_i32_79 = arith.constant 0 : i32
      %345 = arith.addi %24, %c0_i32_79 : i32
      %346 = vector.broadcast %345 : i32 to vector<8x1xi32>
      %347 = arith.cmpi slt, %346, %16 : vector<8x1xi32>
      %348 = vector.shape_cast %347 : vector<8x1xi1> to vector<8x1xi1>
      %349 = vector.broadcast %348 : vector<8x1xi1> to vector<8x128xi1>
      %350 = arith.select %349, %342, %309 : vector<8x128xi1>, vector<8x128xf32>
      %351 = vector.shape_cast %347 : vector<8x1xi1> to vector<8x1xi1>
      %352 = vector.broadcast %351 : vector<8x1xi1> to vector<8x128xi1>
      %353 = arith.select %352, %344, %312 : vector<8x128xi1>, vector<8x128xf32>
      %c0_80 = arith.constant 0 : index
      %c0_81 = arith.constant 0 : index
      %c0_82 = arith.constant 0 : index
      %c0_83 = arith.constant 0 : index
      %354 = vector.load %arg7[%c0_80, %c0_81, %c0_82, %c0_83] : memref<1x8x8x128xf32, #tpu.memory_space<vmem>>, vector<1x1x8x128xf32>
      %355 = vector.shape_cast %354 : vector<1x1x8x128xf32> to vector<8x128xf32>
      %356 = vector.shape_cast %353 : vector<8x128xf32> to vector<1x1x8x128xf32>
      tpu.vector_store %arg7[%c0_80, %c0_81, %c0_82, %c0_83], %356 {strides = array<i32>} : memref<1x8x8x128xf32, #tpu.memory_space<vmem>>, vector<1x1x8x128xf32>,
      %c0_84 = arith.constant 0 : index
      %c0_85 = arith.constant 0 : index
      %c0_86 = arith.constant 0 : index
      %357 = vector.load %arg8[%c0_84, %c0_85, %c0_86] : memref<1x8x128xf32, #tpu.memory_space<vmem>>, vector<1x8x128xf32>
      %358 = vector.shape_cast %357 : vector<1x8x128xf32> to vector<8x128xf32>
      %359 = vector.shape_cast %353 : vector<8x128xf32> to vector<1x8x128xf32>
      tpu.vector_store %arg8[%c0_84, %c0_85, %c0_86], %359 {strides = array<i32>} : memref<1x8x128xf32, #tpu.memory_space<vmem>>, vector<1x8x128xf32>,
      %c0_87 = arith.constant 0 : index
      %c0_88 = arith.constant 0 : index
      %c0_89 = arith.constant 0 : index
      %360 = vector.load %arg9[%c0_87, %c0_88, %c0_89] : memref<1x8x128xf32, #tpu.memory_space<vmem>>, vector<1x8x128xf32>
      %361 = vector.shape_cast %360 : vector<1x8x128xf32> to vector<8x128xf32>
      %362 = vector.shape_cast %350 : vector<8x128xf32> to vector<1x8x128xf32>
      tpu.vector_store %arg9[%c0_87, %c0_88, %c0_89], %362 {strides = array<i32>} : memref<1x8x128xf32, #tpu.memory_space<vmem>>, vector<1x8x128xf32>,
    } else {
    }
    return
  }
  func.func @transform_0(%arg0: i32, %arg1: i32) -> (i32, i32, i32, i32) {
    %c1_i32 = arith.constant 1 : i32
    %0 = arith.subi %c1_i32, %arg0 : i32
    %1 = arith.muli %0, %arg1 : i32
    %c1_i32_0 = arith.constant 1 : i32
    %2 = arith.subi %c1_i32_0, %arg1 : i32
    %3 = arith.muli %arg0, %2 : i32
    %4 = arith.addi %1, %3 : i32
    %c0_i32 = arith.constant 0 : i32
    %c0_i32_1 = arith.constant 0 : i32
    %c0_i32_2 = arith.constant 0 : i32
    %c0_i32_3 = arith.constant 0 : i32
    return %c0_i32, %4, %c0_i32_1, %c0_i32_2 : i32, i32, i32, i32
  }
  func.func @transform_1(%arg0: i32, %arg1: i32) -> (i32, i32, i32) {
    %c0_i32 = arith.constant 0 : i32
    %c0_i32_0 = arith.constant 0 : i32
    %c0_i32_1 = arith.constant 0 : i32
    return %arg0, %c0_i32, %c0_i32_0 : i32, i32, i32
  }
  func.func @transform_2(%arg0: i32, %arg1: i32) -> (i32, i32, i32) {
    %c0_i32 = arith.constant 0 : i32
    %c0_i32_0 = arith.constant 0 : i32
    %c0_i32_1 = arith.constant 0 : i32
    return %arg0, %c0_i32, %c0_i32_0 : i32, i32, i32
  }
  func.func @transform_3(%arg0: i32, %arg1: i32) -> (i32, i32, i32) {
    %c0_i32 = arith.constant 0 : i32
    %c0_i32_0 = arith.constant 0 : i32
    %c0_i32_1 = arith.constant 0 : i32
    return %arg0, %c0_i32, %c0_i32_0 : i32, i32, i32
  }
  func.func @transform_4(%arg0: i32, %arg1: i32) -> (i32, i32) {
    %c0_i32 = arith.constant 0 : i32
    %c0_i32_0 = arith.constant 0 : i32
    %c0_i32_1 = arith.constant 0 : i32
    return %c0_i32, %c0_i32_0 : i32, i32
  }
  func.func @transform_5(%arg0: i32, %arg1: i32) -> (i32, i32, i32, i32) {
    %c1_i32 = arith.constant 1 : i32
    %0 = arith.subi %c1_i32, %arg0 : i32
    %1 = arith.muli %0, %arg1 : i32
    %c1_i32_0 = arith.constant 1 : i32
    %2 = arith.subi %c1_i32_0, %arg1 : i32
    %3 = arith.muli %arg0, %2 : i32
    %4 = arith.addi %1, %3 : i32
    %c0_i32 = arith.constant 0 : i32
    %c0_i32_1 = arith.constant 0 : i32
    %c0_i32_2 = arith.constant 0 : i32
    return %arg0, %4, %c0_i32, %c0_i32_1 : i32, i32, i32, i32
  }
  func.func @transform_6(%arg0: i32, %arg1: i32) -> (i32, i32, i32) {
    %c0_i32 = arith.constant 0 : i32
    %c0_i32_0 = arith.constant 0 : i32
    %c0_i32_1 = arith.constant 0 : i32
    return %arg0, %c0_i32, %c0_i32_0 : i32, i32, i32
  }
  func.func @transform_7(%arg0: i32, %arg1: i32) -> (i32, i32, i32) {
    %c0_i32 = arith.constant 0 : i32
    %c0_i32_0 = arith.constant 0 : i32
    %c0_i32_1 = arith.constant 0 : i32
    return %arg0, %c0_i32, %c0_i32_0 : i32, i32, i32
  }
}

module attributes {stable_mosaic.version = 11 : i64} {
  func.func @_linear_kernel(%arg0: memref<8x256xf32, #tpu.memory_space<vmem>>, %arg1: memref<256x4xf32, #tpu.memory_space<vmem>>, %arg2: memref<1x4xf32, #tpu.memory_space<vmem>>, %arg3: memref<8x4xf32, #tpu.memory_space<vmem>>) attributes {dimension_semantics = [], scalar_prefetch = 0 : i64, scratch_operands = 0 : i64, tpu.core_type = #tpu.core_type<tc>} {
    %c0 = arith.constant 0 : index
    %c0_0 = arith.constant 0 : index
    %0 = vector.load %arg0[%c0, %c0_0] : memref<8x256xf32, #tpu.memory_space<vmem>>, vector<8x256xf32>
    %c0_1 = arith.constant 0 : index
    %c0_2 = arith.constant 0 : index
    %1 = vector.load %arg1[%c0_1, %c0_2] : memref<256x4xf32, #tpu.memory_space<vmem>>, vector<256x4xf32>
    %cst = arith.constant dense<0.000000e+00> : vector<8x4xf32>
    %2 = tpu.matmul %0, %1, %cst {dimension_numbers = #tpu.dot_dimension_numbers<[1], [0], [0], [1], [0, 0, 1, 1], [], []>} : vector<8x256xf32>, vector<256x4xf32>, vector<8x4xf32> -> vector<8x4xf32>
    %c0_3 = arith.constant 0 : index
    %c0_4 = arith.constant 0 : index
    %3 = vector.load %arg2[%c0_3, %c0_4] : memref<1x4xf32, #tpu.memory_space<vmem>>, vector<1x4xf32>
    %4 = vector.broadcast %3 : vector<1x4xf32> to vector<8x4xf32>
    %5 = arith.addf %2, %4 : vector<8x4xf32>
    %c0_5 = arith.constant 0 : index
    %c0_6 = arith.constant 0 : index
    %6 = vector.load %arg3[%c0_5, %c0_6] : memref<8x4xf32, #tpu.memory_space<vmem>>, vector<8x4xf32>
    tpu.vector_store %arg3[%c0_5, %c0_6], %5 {strides = array<i32>} : memref<8x4xf32, #tpu.memory_space<vmem>>, vector<8x4xf32>,
    return
  }
}

module attributes {stable_mosaic.version = 11 : i64} {
  func.func @_bilstm_layer_kernel(%arg0: i32, %arg1: i32, %arg2: memref<2x8x8x128xf32, #tpu.memory_space<vmem>>, %arg3: memref<1x256x512xbf16, #tpu.memory_space<vmem>>, %arg4: memref<1x128x512xbf16, #tpu.memory_space<vmem>>, %arg5: memref<1x1x512xf32, #tpu.memory_space<vmem>>, %arg6: memref<8x1xi32, #tpu.memory_space<vmem>>, %arg7: memref<1x8x8x128xf32, #tpu.memory_space<vmem>>, %arg8: memref<1x8x128xf32, #tpu.memory_space<vmem>>, %arg9: memref<1x8x128xf32, #tpu.memory_space<vmem>>) attributes {dimension_semantics = [#tpu.dimension_semantics<parallel>, #tpu.dimension_semantics<arbitrary>], iteration_bounds = array<i64: 2, 2>, scalar_prefetch = 0 : i64, scratch_operands = 0 : i64, tpu.core_type = #tpu.core_type<tc>, window_params = [{transform_indices = @transform_0, window_bounds = array<i64: 2, 8, 8, 128>}, {transform_indices = @transform_1, window_bounds = array<i64: 1, 256, 512>}, {transform_indices = @transform_2, window_bounds = array<i64: 1, 128, 512>}, {transform_indices = @transform_3, window_bounds = array<i64: 1, 1, 512>}, {pipeline_mode = #tpu.pipeline_mode<synchronous>, transform_indices = @transform_4, window_bounds = array<i64: 8, 1>}, {transform_indices = @transform_5, window_bounds = array<i64: 1, 8, 8, 128>}, {transform_indices = @transform_6, window_bounds = array<i64: 1, 8, 128>}, {transform_indices = @transform_7, window_bounds = array<i64: 1, 8, 128>}]} {
    %c0_i32 = arith.constant 0 : i32
    %0 = arith.cmpi eq, %arg1, %c0_i32 : i32
    %1 = arith.extui %0 : i1 to i32
    %c0_i32_0 = arith.constant 0 : i32
    %2 = arith.cmpi ne, %1, %c0_i32_0 : i32
    scf.if %2 {
      %cst_22 = arith.constant 0.000000e+00 : f32
      %31 = vector.broadcast %cst_22 : f32 to vector<1x8x128xf32>
      %c0_23 = arith.constant 0 : index
      %c0_24 = arith.constant 0 : index
      %c0_25 = arith.constant 0 : index
      %32 = vector.load %arg8[%c0_23, %c0_24, %c0_25] : memref<1x8x128xf32, #tpu.memory_space<vmem>>, vector<1x8x128xf32>
      tpu.vector_store %arg8[%c0_23, %c0_24, %c0_25], %31 {strides = array<i32>} : memref<1x8x128xf32, #tpu.memory_space<vmem>>, vector<1x8x128xf32>,
      %cst_26 = arith.constant 0.000000e+00 : f32
      %33 = vector.broadcast %cst_26 : f32 to vector<1x8x128xf32>
      %c0_27 = arith.constant 0 : index
      %c0_28 = arith.constant 0 : index
      %c0_29 = arith.constant 0 : index
      %34 = vector.load %arg9[%c0_27, %c0_28, %c0_29] : memref<1x8x128xf32, #tpu.memory_space<vmem>>, vector<1x8x128xf32>
      tpu.vector_store %arg9[%c0_27, %c0_28, %c0_29], %33 {strides = array<i32>} : memref<1x8x128xf32, #tpu.memory_space<vmem>>, vector<1x8x128xf32>,
    } else {
    }
    %c0 = arith.constant 0 : index
    %c0_1 = arith.constant 0 : index
    %c0_2 = arith.constant 0 : index
    %3 = vector.load %arg3[%c0, %c0_1, %c0_2] : memref<1x256x512xbf16, #tpu.memory_space<vmem>>, vector<1x256x512xbf16>
    %4 = vector.shape_cast %3 : vector<1x256x512xbf16> to vector<256x512xbf16>
    %c0_3 = arith.constant 0 : index
    %c0_4 = arith.constant 0 : index
    %c0_5 = arith.constant 0 : index
    %5 = vector.load %arg5[%c0_3, %c0_4, %c0_5] : memref<1x1x512xf32, #tpu.memory_space<vmem>>, vector<1x1x512xf32>
    %6 = vector.shape_cast %5 : vector<1x1x512xf32> to vector<1x512xf32>
    %c0_6 = arith.constant 0 : index
    %c0_7 = arith.constant 0 : index
    %c0_8 = arith.constant 0 : index
    %c0_9 = arith.constant 0 : index
    %7 = vector.load %arg2[%c0_6, %c0_7, %c0_8, %c0_9] : memref<2x8x8x128xf32, #tpu.memory_space<vmem>>, vector<1x8x8x128xf32>
    %8 = vector.shape_cast %7 : vector<1x8x8x128xf32> to vector<8x8x128xf32>
    %9 = vector.shape_cast %8 : vector<8x8x128xf32> to vector<64x128xf32>
    %10 = arith.truncf %9 : vector<64x128xf32> to vector<64x128xbf16>
    %11 = vector.extract_strided_slice %4 {offsets = [0, 0], sizes = [128, 512], strides = [1, 1]} : vector<256x512xbf16> to vector<128x512xbf16>
    %cst = arith.constant dense<0.000000e+00> : vector<64x512xf32>
    %12 = tpu.matmul %10, %11, %cst {dimension_numbers = #tpu.dot_dimension_numbers<[1], [0], [0], [1], [0, 0, 1, 1], [], []>} : vector<64x128xbf16>, vector<128x512xbf16>, vector<64x512xf32> -> vector<64x512xf32>
    %13 = vector.broadcast %6 : vector<1x512xf32> to vector<64x512xf32>
    %14 = arith.addf %13, %12 : vector<64x512xf32>
    %c1 = arith.constant 1 : index
    %c0_10 = arith.constant 0 : index
    %c0_11 = arith.constant 0 : index
    %c0_12 = arith.constant 0 : index
    %15 = vector.load %arg2[%c1, %c0_10, %c0_11, %c0_12] : memref<2x8x8x128xf32, #tpu.memory_space<vmem>>, vector<1x8x8x128xf32>
    %16 = vector.shape_cast %15 : vector<1x8x8x128xf32> to vector<8x8x128xf32>
    %17 = vector.shape_cast %16 : vector<8x8x128xf32> to vector<64x128xf32>
    %18 = arith.truncf %17 : vector<64x128xf32> to vector<64x128xbf16>
    %19 = vector.extract_strided_slice %4 {offsets = [128, 0], sizes = [128, 512], strides = [1, 1]} : vector<256x512xbf16> to vector<128x512xbf16>
    %cst_13 = arith.constant dense<0.000000e+00> : vector<64x512xf32>
    %20 = tpu.matmul %18, %19, %cst_13 {dimension_numbers = #tpu.dot_dimension_numbers<[1], [0], [0], [1], [0, 0, 1, 1], [], []>} : vector<64x128xbf16>, vector<128x512xbf16>, vector<64x512xf32> -> vector<64x512xf32>
    %21 = arith.addf %14, %20 : vector<64x512xf32>
    %c0_14 = arith.constant 0 : index
    %c0_15 = arith.constant 0 : index
    %c0_16 = arith.constant 0 : index
    %22 = vector.load %arg4[%c0_14, %c0_15, %c0_16] : memref<1x128x512xbf16, #tpu.memory_space<vmem>>, vector<1x128x512xbf16>
    %23 = vector.shape_cast %22 : vector<1x128x512xbf16> to vector<128x512xbf16>
    %c0_17 = arith.constant 0 : index
    %c0_18 = arith.constant 0 : index
    %24 = vector.load %arg6[%c0_17, %c0_18] : memref<8x1xi32, #tpu.memory_space<vmem>>, vector<8x1xi32>
    %c0_i32_19 = arith.constant 0 : i32
    %25 = arith.cmpi eq, %arg0, %c0_i32_19 : i32
    %26 = arith.extui %25 : i1 to i32
    %c0_i32_20 = arith.constant 0 : i32
    %27 = arith.cmpi ne, %26, %c0_i32_20 : i32
    scf.if %27 {
      %c8_i32 = arith.constant 8 : i32
      %31 = arith.muli %arg1, %c8_i32 : i32
      %c0_22 = arith.constant 0 : index
      %c0_23 = arith.constant 0 : index
      %c0_24 = arith.constant 0 : index
      %32 = vector.load %arg8[%c0_22, %c0_23, %c0_24] : memref<1x8x128xf32, #tpu.memory_space<vmem>>, vector<1x8x128xf32>
      %33 = vector.shape_cast %32 : vector<1x8x128xf32> to vector<8x128xf32>
      %c0_25 = arith.constant 0 : index
      %c0_26 = arith.constant 0 : index
      %c0_27 = arith.constant 0 : index
      %34 = vector.load %arg9[%c0_25, %c0_26, %c0_27] : memref<1x8x128xf32, #tpu.memory_space<vmem>>, vector<1x8x128xf32>
      %35 = vector.shape_cast %34 : vector<1x8x128xf32> to vector<8x128xf32>
      %36 = vector.extract_strided_slice %21 {offsets = [0, 0], sizes = [8, 512], strides = [1, 1]} : vector<64x512xf32> to vector<8x512xf32>
      %37 = arith.truncf %33 : vector<8x128xf32> to vector<8x128xbf16>
      %cst_28 = arith.constant dense<0.000000e+00> : vector<8x512xf32>
      %38 = tpu.matmul %37, %23, %cst_28 {dimension_numbers = #tpu.dot_dimension_numbers<[1], [0], [0], [1], [0, 0, 1, 1], [], []>} : vector<8x128xbf16>, vector<128x512xbf16>, vector<8x512xf32> -> vector<8x512xf32>
      %39 = arith.addf %36, %38 : vector<8x512xf32>
      %40 = vector.extract_strided_slice %39 {offsets = [0, 0], sizes = [8, 128], strides = [1, 1]} : vector<8x512xf32> to vector<8x128xf32>
      %41 = arith.negf %40 : vector<8x128xf32>
      %42 = math.exp %41 : vector<8x128xf32>
      %cst_29 = arith.constant 1.000000e+00 : f32
      %43 = vector.broadcast %cst_29 : f32 to vector<8x128xf32>
      %44 = arith.addf %43, %42 : vector<8x128xf32>
      %45 = arith.divf %43, %44 : vector<8x128xf32>
      %46 = vector.extract_strided_slice %39 {offsets = [0, 128], sizes = [8, 128], strides = [1, 1]} : vector<8x512xf32> to vector<8x128xf32>
      %47 = arith.negf %46 : vector<8x128xf32>
      %48 = math.exp %47 : vector<8x128xf32>
      %cst_30 = arith.constant 1.000000e+00 : f32
      %49 = vector.broadcast %cst_30 : f32 to vector<8x128xf32>
      %50 = arith.addf %49, %48 : vector<8x128xf32>
      %51 = arith.divf %49, %50 : vector<8x128xf32>
      %52 = vector.extract_strided_slice %39 {offsets = [0, 256], sizes = [8, 128], strides = [1, 1]} : vector<8x512xf32> to vector<8x128xf32>
      %53 = math.tanh %52 : vector<8x128xf32>
      %54 = vector.extract_strided_slice %39 {offsets = [0, 384], sizes = [8, 128], strides = [1, 1]} : vector<8x512xf32> to vector<8x128xf32>
      %55 = arith.negf %54 : vector<8x128xf32>
      %56 = math.exp %55 : vector<8x128xf32>
      %cst_31 = arith.constant 1.000000e+00 : f32
      %57 = vector.broadcast %cst_31 : f32 to vector<8x128xf32>
      %58 = arith.addf %57, %56 : vector<8x128xf32>
      %59 = arith.divf %57, %58 : vector<8x128xf32>
      %60 = arith.mulf %51, %35 : vector<8x128xf32>
      %61 = arith.mulf %45, %53 : vector<8x128xf32>
      %62 = arith.addf %60, %61 : vector<8x128xf32>
      %63 = math.tanh %62 : vector<8x128xf32>
      %64 = arith.mulf %59, %63 : vector<8x128xf32>
      %c0_i32_32 = arith.constant 0 : i32
      %65 = arith.addi %31, %c0_i32_32 : i32
      %66 = vector.broadcast %65 : i32 to vector<8x1xi32>
      %67 = arith.cmpi slt, %66, %24 : vector<8x1xi32>
      %68 = vector.shape_cast %67 : vector<8x1xi1> to vector<8x1xi1>
      %69 = vector.broadcast %68 : vector<8x1xi1> to vector<8x128xi1>
      %70 = arith.select %69, %62, %35 : vector<8x128xi1>, vector<8x128xf32>
      %71 = vector.shape_cast %67 : vector<8x1xi1> to vector<8x1xi1>
      %72 = vector.broadcast %71 : vector<8x1xi1> to vector<8x128xi1>
      %73 = arith.select %72, %64, %33 : vector<8x128xi1>, vector<8x128xf32>
      %c0_33 = arith.constant 0 : index
      %c0_34 = arith.constant 0 : index
      %c0_35 = arith.constant 0 : index
      %c0_36 = arith.constant 0 : index
      %74 = vector.load %arg7[%c0_33, %c0_34, %c0_35, %c0_36] : memref<1x8x8x128xf32, #tpu.memory_space<vmem>>, vector<1x1x8x128xf32>
      %75 = vector.shape_cast %74 : vector<1x1x8x128xf32> to vector<8x128xf32>
      %76 = vector.shape_cast %73 : vector<8x128xf32> to vector<1x1x8x128xf32>
      tpu.vector_store %arg7[%c0_33, %c0_34, %c0_35, %c0_36], %76 {strides = array<i32>} : memref<1x8x8x128xf32, #tpu.memory_space<vmem>>, vector<1x1x8x128xf32>,
      %77 = vector.extract_strided_slice %21 {offsets = [8, 0], sizes = [8, 512], strides = [1, 1]} : vector<64x512xf32> to vector<8x512xf32>
      %78 = arith.truncf %73 : vector<8x128xf32> to vector<8x128xbf16>
      %cst_37 = arith.constant dense<0.000000e+00> : vector<8x512xf32>
      %79 = tpu.matmul %78, %23, %cst_37 {dimension_numbers = #tpu.dot_dimension_numbers<[1], [0], [0], [1], [0, 0, 1, 1], [], []>} : vector<8x128xbf16>, vector<128x512xbf16>, vector<8x512xf32> -> vector<8x512xf32>
      %80 = arith.addf %77, %79 : vector<8x512xf32>
      %81 = vector.extract_strided_slice %80 {offsets = [0, 0], sizes = [8, 128], strides = [1, 1]} : vector<8x512xf32> to vector<8x128xf32>
      %82 = arith.negf %81 : vector<8x128xf32>
      %83 = math.exp %82 : vector<8x128xf32>
      %cst_38 = arith.constant 1.000000e+00 : f32
      %84 = vector.broadcast %cst_38 : f32 to vector<8x128xf32>
      %85 = arith.addf %84, %83 : vector<8x128xf32>
      %86 = arith.divf %84, %85 : vector<8x128xf32>
      %87 = vector.extract_strided_slice %80 {offsets = [0, 128], sizes = [8, 128], strides = [1, 1]} : vector<8x512xf32> to vector<8x128xf32>
      %88 = arith.negf %87 : vector<8x128xf32>
      %89 = math.exp %88 : vector<8x128xf32>
      %cst_39 = arith.constant 1.000000e+00 : f32
      %90 = vector.broadcast %cst_39 : f32 to vector<8x128xf32>
      %91 = arith.addf %90, %89 : vector<8x128xf32>
      %92 = arith.divf %90, %91 : vector<8x128xf32>
      %93 = vector.extract_strided_slice %80 {offsets = [0, 256], sizes = [8, 128], strides = [1, 1]} : vector<8x512xf32> to vector<8x128xf32>
      %94 = math.tanh %93 : vector<8x128xf32>
      %95 = vector.extract_strided_slice %80 {offsets = [0, 384], sizes = [8, 128], strides = [1, 1]} : vector<8x512xf32> to vector<8x128xf32>
      %96 = arith.negf %95 : vector<8x128xf32>
      %97 = math.exp %96 : vector<8x128xf32>
      %cst_40 = arith.constant 1.000000e+00 : f32
      %98 = vector.broadcast %cst_40 : f32 to vector<8x128xf32>
      %99 = arith.addf %98, %97 : vector<8x128xf32>
      %100 = arith.divf %98, %99 : vector<8x128xf32>
      %101 = arith.mulf %92, %70 : vector<8x128xf32>
      %102 = arith.mulf %86, %94 : vector<8x128xf32>
      %103 = arith.addf %101, %102 : vector<8x128xf32>
      %104 = math.tanh %103 : vector<8x128xf32>
      %105 = arith.mulf %100, %104 : vector<8x128xf32>
      %c1_i32_41 = arith.constant 1 : i32
      %106 = arith.addi %31, %c1_i32_41 : i32
      %107 = vector.broadcast %106 : i32 to vector<8x1xi32>
      %108 = arith.cmpi slt, %107, %24 : vector<8x1xi32>
      %109 = vector.shape_cast %108 : vector<8x1xi1> to vector<8x1xi1>
      %110 = vector.broadcast %109 : vector<8x1xi1> to vector<8x128xi1>
      %111 = arith.select %110, %103, %70 : vector<8x128xi1>, vector<8x128xf32>
      %112 = vector.shape_cast %108 : vector<8x1xi1> to vector<8x1xi1>
      %113 = vector.broadcast %112 : vector<8x1xi1> to vector<8x128xi1>
      %114 = arith.select %113, %105, %73 : vector<8x128xi1>, vector<8x128xf32>
      %c0_42 = arith.constant 0 : index
      %c1_43 = arith.constant 1 : index
      %c0_44 = arith.constant 0 : index
      %c0_45 = arith.constant 0 : index
      %115 = vector.load %arg7[%c0_42, %c1_43, %c0_44, %c0_45] : memref<1x8x8x128xf32, #tpu.memory_space<vmem>>, vector<1x1x8x128xf32>
      %116 = vector.shape_cast %115 : vector<1x1x8x128xf32> to vector<8x128xf32>
      %117 = vector.shape_cast %114 : vector<8x128xf32> to vector<1x1x8x128xf32>
      tpu.vector_store %arg7[%c0_42, %c1_43, %c0_44, %c0_45], %117 {strides = array<i32>} : memref<1x8x8x128xf32, #tpu.memory_space<vmem>>, vector<1x1x8x128xf32>,
      %118 = vector.extract_strided_slice %21 {offsets = [16, 0], sizes = [8, 512], strides = [1, 1]} : vector<64x512xf32> to vector<8x512xf32>
      %119 = arith.truncf %114 : vector<8x128xf32> to vector<8x128xbf16>
      %cst_46 = arith.constant dense<0.000000e+00> : vector<8x512xf32>
      %120 = tpu.matmul %119, %23, %cst_46 {dimension_numbers = #tpu.dot_dimension_numbers<[1], [0], [0], [1], [0, 0, 1, 1], [], []>} : vector<8x128xbf16>, vector<128x512xbf16>, vector<8x512xf32> -> vector<8x512xf32>
      %121 = arith.addf %118, %120 : vector<8x512xf32>
      %122 = vector.extract_strided_slice %121 {offsets = [0, 0], sizes = [8, 128], strides = [1, 1]} : vector<8x512xf32> to vector<8x128xf32>
      %123 = arith.negf %122 : vector<8x128xf32>
      %124 = math.exp %123 : vector<8x128xf32>
      %cst_47 = arith.constant 1.000000e+00 : f32
      %125 = vector.broadcast %cst_47 : f32 to vector<8x128xf32>
      %126 = arith.addf %125, %124 : vector<8x128xf32>
      %127 = arith.divf %125, %126 : vector<8x128xf32>
      %128 = vector.extract_strided_slice %121 {offsets = [0, 128], sizes = [8, 128], strides = [1, 1]} : vector<8x512xf32> to vector<8x128xf32>
      %129 = arith.negf %128 : vector<8x128xf32>
      %130 = math.exp %129 : vector<8x128xf32>
      %cst_48 = arith.constant 1.000000e+00 : f32
      %131 = vector.broadcast %cst_48 : f32 to vector<8x128xf32>
      %132 = arith.addf %131, %130 : vector<8x128xf32>
      %133 = arith.divf %131, %132 : vector<8x128xf32>
      %134 = vector.extract_strided_slice %121 {offsets = [0, 256], sizes = [8, 128], strides = [1, 1]} : vector<8x512xf32> to vector<8x128xf32>
      %135 = math.tanh %134 : vector<8x128xf32>
      %136 = vector.extract_strided_slice %121 {offsets = [0, 384], sizes = [8, 128], strides = [1, 1]} : vector<8x512xf32> to vector<8x128xf32>
      %137 = arith.negf %136 : vector<8x128xf32>
      %138 = math.exp %137 : vector<8x128xf32>
      %cst_49 = arith.constant 1.000000e+00 : f32
      %139 = vector.broadcast %cst_49 : f32 to vector<8x128xf32>
      %140 = arith.addf %139, %138 : vector<8x128xf32>
      %141 = arith.divf %139, %140 : vector<8x128xf32>
      %142 = arith.mulf %133, %111 : vector<8x128xf32>
      %143 = arith.mulf %127, %135 : vector<8x128xf32>
      %144 = arith.addf %142, %143 : vector<8x128xf32>
      %145 = math.tanh %144 : vector<8x128xf32>
      %146 = arith.mulf %141, %145 : vector<8x128xf32>
      %c2_i32 = arith.constant 2 : i32
      %147 = arith.addi %31, %c2_i32 : i32
      %148 = vector.broadcast %147 : i32 to vector<8x1xi32>
      %149 = arith.cmpi slt, %148, %24 : vector<8x1xi32>
      %150 = vector.shape_cast %149 : vector<8x1xi1> to vector<8x1xi1>
      %151 = vector.broadcast %150 : vector<8x1xi1> to vector<8x128xi1>
      %152 = arith.select %151, %144, %111 : vector<8x128xi1>, vector<8x128xf32>
      %153 = vector.shape_cast %149 : vector<8x1xi1> to vector<8x1xi1>
      %154 = vector.broadcast %153 : vector<8x1xi1> to vector<8x128xi1>
      %155 = arith.select %154, %146, %114 : vector<8x128xi1>, vector<8x128xf32>
      %c0_50 = arith.constant 0 : index
      %c2 = arith.constant 2 : index
      %c0_51 = arith.constant 0 : index
      %c0_52 = arith.constant 0 : index
      %156 = vector.load %arg7[%c0_50, %c2, %c0_51, %c0_52] : memref<1x8x8x128xf32, #tpu.memory_space<vmem>>, vector<1x1x8x128xf32>
      %157 = vector.shape_cast %156 : vector<1x1x8x128xf32> to vector<8x128xf32>
      %158 = vector.shape_cast %155 : vector<8x128xf32> to vector<1x1x8x128xf32>
      tpu.vector_store %arg7[%c0_50, %c2, %c0_51, %c0_52], %158 {strides = array<i32>} : memref<1x8x8x128xf32, #tpu.memory_space<vmem>>, vector<1x1x8x128xf32>,
      %159 = vector.extract_strided_slice %21 {offsets = [24, 0], sizes = [8, 512], strides = [1, 1]} : vector<64x512xf32> to vector<8x512xf32>
      %160 = arith.truncf %155 : vector<8x128xf32> to vector<8x128xbf16>
      %cst_53 = arith.constant dense<0.000000e+00> : vector<8x512xf32>
      %161 = tpu.matmul %160, %23, %cst_53 {dimension_numbers = #tpu.dot_dimension_numbers<[1], [0], [0], [1], [0, 0, 1, 1], [], []>} : vector<8x128xbf16>, vector<128x512xbf16>, vector<8x512xf32> -> vector<8x512xf32>
      %162 = arith.addf %159, %161 : vector<8x512xf32>
      %163 = vector.extract_strided_slice %162 {offsets = [0, 0], sizes = [8, 128], strides = [1, 1]} : vector<8x512xf32> to vector<8x128xf32>
      %164 = arith.negf %163 : vector<8x128xf32>
      %165 = math.exp %164 : vector<8x128xf32>
      %cst_54 = arith.constant 1.000000e+00 : f32
      %166 = vector.broadcast %cst_54 : f32 to vector<8x128xf32>
      %167 = arith.addf %166, %165 : vector<8x128xf32>
      %168 = arith.divf %166, %167 : vector<8x128xf32>
      %169 = vector.extract_strided_slice %162 {offsets = [0, 128], sizes = [8, 128], strides = [1, 1]} : vector<8x512xf32> to vector<8x128xf32>
      %170 = arith.negf %169 : vector<8x128xf32>
      %171 = math.exp %170 : vector<8x128xf32>
      %cst_55 = arith.constant 1.000000e+00 : f32
      %172 = vector.broadcast %cst_55 : f32 to vector<8x128xf32>
      %173 = arith.addf %172, %171 : vector<8x128xf32>
      %174 = arith.divf %172, %173 : vector<8x128xf32>
      %175 = vector.extract_strided_slice %162 {offsets = [0, 256], sizes = [8, 128], strides = [1, 1]} : vector<8x512xf32> to vector<8x128xf32>
      %176 = math.tanh %175 : vector<8x128xf32>
      %177 = vector.extract_strided_slice %162 {offsets = [0, 384], sizes = [8, 128], strides = [1, 1]} : vector<8x512xf32> to vector<8x128xf32>
      %178 = arith.negf %177 : vector<8x128xf32>
      %179 = math.exp %178 : vector<8x128xf32>
      %cst_56 = arith.constant 1.000000e+00 : f32
      %180 = vector.broadcast %cst_56 : f32 to vector<8x128xf32>
      %181 = arith.addf %180, %179 : vector<8x128xf32>
      %182 = arith.divf %180, %181 : vector<8x128xf32>
      %183 = arith.mulf %174, %152 : vector<8x128xf32>
      %184 = arith.mulf %168, %176 : vector<8x128xf32>
      %185 = arith.addf %183, %184 : vector<8x128xf32>
      %186 = math.tanh %185 : vector<8x128xf32>
      %187 = arith.mulf %182, %186 : vector<8x128xf32>
      %c3_i32 = arith.constant 3 : i32
      %188 = arith.addi %31, %c3_i32 : i32
      %189 = vector.broadcast %188 : i32 to vector<8x1xi32>
      %190 = arith.cmpi slt, %189, %24 : vector<8x1xi32>
      %191 = vector.shape_cast %190 : vector<8x1xi1> to vector<8x1xi1>
      %192 = vector.broadcast %191 : vector<8x1xi1> to vector<8x128xi1>
      %193 = arith.select %192, %185, %152 : vector<8x128xi1>, vector<8x128xf32>
      %194 = vector.shape_cast %190 : vector<8x1xi1> to vector<8x1xi1>
      %195 = vector.broadcast %194 : vector<8x1xi1> to vector<8x128xi1>
      %196 = arith.select %195, %187, %155 : vector<8x128xi1>, vector<8x128xf32>
      %c0_57 = arith.constant 0 : index
      %c3 = arith.constant 3 : index
      %c0_58 = arith.constant 0 : index
      %c0_59 = arith.constant 0 : index
      %197 = vector.load %arg7[%c0_57, %c3, %c0_58, %c0_59] : memref<1x8x8x128xf32, #tpu.memory_space<vmem>>, vector<1x1x8x128xf32>
      %198 = vector.shape_cast %197 : vector<1x1x8x128xf32> to vector<8x128xf32>
      %199 = vector.shape_cast %196 : vector<8x128xf32> to vector<1x1x8x128xf32>
      tpu.vector_store %arg7[%c0_57, %c3, %c0_58, %c0_59], %199 {strides = array<i32>} : memref<1x8x8x128xf32, #tpu.memory_space<vmem>>, vector<1x1x8x128xf32>,
      %200 = vector.extract_strided_slice %21 {offsets = [32, 0], sizes = [8, 512], strides = [1, 1]} : vector<64x512xf32> to vector<8x512xf32>
      %201 = arith.truncf %196 : vector<8x128xf32> to vector<8x128xbf16>
      %cst_60 = arith.constant dense<0.000000e+00> : vector<8x512xf32>
      %202 = tpu.matmul %201, %23, %cst_60 {dimension_numbers = #tpu.dot_dimension_numbers<[1], [0], [0], [1], [0, 0, 1, 1], [], []>} : vector<8x128xbf16>, vector<128x512xbf16>, vector<8x512xf32> -> vector<8x512xf32>
      %203 = arith.addf %200, %202 : vector<8x512xf32>
      %204 = vector.extract_strided_slice %203 {offsets = [0, 0], sizes = [8, 128], strides = [1, 1]} : vector<8x512xf32> to vector<8x128xf32>
      %205 = arith.negf %204 : vector<8x128xf32>
      %206 = math.exp %205 : vector<8x128xf32>
      %cst_61 = arith.constant 1.000000e+00 : f32
      %207 = vector.broadcast %cst_61 : f32 to vector<8x128xf32>
      %208 = arith.addf %207, %206 : vector<8x128xf32>
      %209 = arith.divf %207, %208 : vector<8x128xf32>
      %210 = vector.extract_strided_slice %203 {offsets = [0, 128], sizes = [8, 128], strides = [1, 1]} : vector<8x512xf32> to vector<8x128xf32>
      %211 = arith.negf %210 : vector<8x128xf32>
      %212 = math.exp %211 : vector<8x128xf32>
      %cst_62 = arith.constant 1.000000e+00 : f32
      %213 = vector.broadcast %cst_62 : f32 to vector<8x128xf32>
      %214 = arith.addf %213, %212 : vector<8x128xf32>
      %215 = arith.divf %213, %214 : vector<8x128xf32>
      %216 = vector.extract_strided_slice %203 {offsets = [0, 256], sizes = [8, 128], strides = [1, 1]} : vector<8x512xf32> to vector<8x128xf32>
      %217 = math.tanh %216 : vector<8x128xf32>
      %218 = vector.extract_strided_slice %203 {offsets = [0, 384], sizes = [8, 128], strides = [1, 1]} : vector<8x512xf32> to vector<8x128xf32>
      %219 = arith.negf %218 : vector<8x128xf32>
      %220 = math.exp %219 : vector<8x128xf32>
      %cst_63 = arith.constant 1.000000e+00 : f32
      %221 = vector.broadcast %cst_63 : f32 to vector<8x128xf32>
      %222 = arith.addf %221, %220 : vector<8x128xf32>
      %223 = arith.divf %221, %222 : vector<8x128xf32>
      %224 = arith.mulf %215, %193 : vector<8x128xf32>
      %225 = arith.mulf %209, %217 : vector<8x128xf32>
      %226 = arith.addf %224, %225 : vector<8x128xf32>
      %227 = math.tanh %226 : vector<8x128xf32>
      %228 = arith.mulf %223, %227 : vector<8x128xf32>
      %c4_i32 = arith.constant 4 : i32
      %229 = arith.addi %31, %c4_i32 : i32
      %230 = vector.broadcast %229 : i32 to vector<8x1xi32>
      %231 = arith.cmpi slt, %230, %24 : vector<8x1xi32>
      %232 = vector.shape_cast %231 : vector<8x1xi1> to vector<8x1xi1>
      %233 = vector.broadcast %232 : vector<8x1xi1> to vector<8x128xi1>
      %234 = arith.select %233, %226, %193 : vector<8x128xi1>, vector<8x128xf32>
      %235 = vector.shape_cast %231 : vector<8x1xi1> to vector<8x1xi1>
      %236 = vector.broadcast %235 : vector<8x1xi1> to vector<8x128xi1>
      %237 = arith.select %236, %228, %196 : vector<8x128xi1>, vector<8x128xf32>
      %c0_64 = arith.constant 0 : index
      %c4 = arith.constant 4 : index
      %c0_65 = arith.constant 0 : index
      %c0_66 = arith.constant 0 : index
      %238 = vector.load %arg7[%c0_64, %c4, %c0_65, %c0_66] : memref<1x8x8x128xf32, #tpu.memory_space<vmem>>, vector<1x1x8x128xf32>
      %239 = vector.shape_cast %238 : vector<1x1x8x128xf32> to vector<8x128xf32>
      %240 = vector.shape_cast %237 : vector<8x128xf32> to vector<1x1x8x128xf32>
      tpu.vector_store %arg7[%c0_64, %c4, %c0_65, %c0_66], %240 {strides = array<i32>} : memref<1x8x8x128xf32, #tpu.memory_space<vmem>>, vector<1x1x8x128xf32>,
      %241 = vector.extract_strided_slice %21 {offsets = [40, 0], sizes = [8, 512], strides = [1, 1]} : vector<64x512xf32> to vector<8x512xf32>
      %242 = arith.truncf %237 : vector<8x128xf32> to vector<8x128xbf16>
      %cst_67 = arith.constant dense<0.000000e+00> : vector<8x512xf32>
      %243 = tpu.matmul %242, %23, %cst_67 {dimension_numbers = #tpu.dot_dimension_numbers<[1], [0], [0], [1], [0, 0, 1, 1], [], []>} : vector<8x128xbf16>, vector<128x512xbf16>, vector<8x512xf32> -> vector<8x512xf32>
      %244 = arith.addf %241, %243 : vector<8x512xf32>
      %245 = vector.extract_strided_slice %244 {offsets = [0, 0], sizes = [8, 128], strides = [1, 1]} : vector<8x512xf32> to vector<8x128xf32>
      %246 = arith.negf %245 : vector<8x128xf32>
      %247 = math.exp %246 : vector<8x128xf32>
      %cst_68 = arith.constant 1.000000e+00 : f32
      %248 = vector.broadcast %cst_68 : f32 to vector<8x128xf32>
      %249 = arith.addf %248, %247 : vector<8x128xf32>
      %250 = arith.divf %248, %249 : vector<8x128xf32>
      %251 = vector.extract_strided_slice %244 {offsets = [0, 128], sizes = [8, 128], strides = [1, 1]} : vector<8x512xf32> to vector<8x128xf32>
      %252 = arith.negf %251 : vector<8x128xf32>
      %253 = math.exp %252 : vector<8x128xf32>
      %cst_69 = arith.constant 1.000000e+00 : f32
      %254 = vector.broadcast %cst_69 : f32 to vector<8x128xf32>
      %255 = arith.addf %254, %253 : vector<8x128xf32>
      %256 = arith.divf %254, %255 : vector<8x128xf32>
      %257 = vector.extract_strided_slice %244 {offsets = [0, 256], sizes = [8, 128], strides = [1, 1]} : vector<8x512xf32> to vector<8x128xf32>
      %258 = math.tanh %257 : vector<8x128xf32>
      %259 = vector.extract_strided_slice %244 {offsets = [0, 384], sizes = [8, 128], strides = [1, 1]} : vector<8x512xf32> to vector<8x128xf32>
      %260 = arith.negf %259 : vector<8x128xf32>
      %261 = math.exp %260 : vector<8x128xf32>
      %cst_70 = arith.constant 1.000000e+00 : f32
      %262 = vector.broadcast %cst_70 : f32 to vector<8x128xf32>
      %263 = arith.addf %262, %261 : vector<8x128xf32>
      %264 = arith.divf %262, %263 : vector<8x128xf32>
      %265 = arith.mulf %256, %234 : vector<8x128xf32>
      %266 = arith.mulf %250, %258 : vector<8x128xf32>
      %267 = arith.addf %265, %266 : vector<8x128xf32>
      %268 = math.tanh %267 : vector<8x128xf32>
      %269 = arith.mulf %264, %268 : vector<8x128xf32>
      %c5_i32 = arith.constant 5 : i32
      %270 = arith.addi %31, %c5_i32 : i32
      %271 = vector.broadcast %270 : i32 to vector<8x1xi32>
      %272 = arith.cmpi slt, %271, %24 : vector<8x1xi32>
      %273 = vector.shape_cast %272 : vector<8x1xi1> to vector<8x1xi1>
      %274 = vector.broadcast %273 : vector<8x1xi1> to vector<8x128xi1>
      %275 = arith.select %274, %267, %234 : vector<8x128xi1>, vector<8x128xf32>
      %276 = vector.shape_cast %272 : vector<8x1xi1> to vector<8x1xi1>
      %277 = vector.broadcast %276 : vector<8x1xi1> to vector<8x128xi1>
      %278 = arith.select %277, %269, %237 : vector<8x128xi1>, vector<8x128xf32>
      %c0_71 = arith.constant 0 : index
      %c5 = arith.constant 5 : index
      %c0_72 = arith.constant 0 : index
      %c0_73 = arith.constant 0 : index
      %279 = vector.load %arg7[%c0_71, %c5, %c0_72, %c0_73] : memref<1x8x8x128xf32, #tpu.memory_space<vmem>>, vector<1x1x8x128xf32>
      %280 = vector.shape_cast %279 : vector<1x1x8x128xf32> to vector<8x128xf32>
      %281 = vector.shape_cast %278 : vector<8x128xf32> to vector<1x1x8x128xf32>
      tpu.vector_store %arg7[%c0_71, %c5, %c0_72, %c0_73], %281 {strides = array<i32>} : memref<1x8x8x128xf32, #tpu.memory_space<vmem>>, vector<1x1x8x128xf32>,
      %282 = vector.extract_strided_slice %21 {offsets = [48, 0], sizes = [8, 512], strides = [1, 1]} : vector<64x512xf32> to vector<8x512xf32>
      %283 = arith.truncf %278 : vector<8x128xf32> to vector<8x128xbf16>
      %cst_74 = arith.constant dense<0.000000e+00> : vector<8x512xf32>
      %284 = tpu.matmul %283, %23, %cst_74 {dimension_numbers = #tpu.dot_dimension_numbers<[1], [0], [0], [1], [0, 0, 1, 1], [], []>} : vector<8x128xbf16>, vector<128x512xbf16>, vector<8x512xf32> -> vector<8x512xf32>
      %285 = arith.addf %282, %284 : vector<8x512xf32>
      %286 = vector.extract_strided_slice %285 {offsets = [0, 0], sizes = [8, 128], strides = [1, 1]} : vector<8x512xf32> to vector<8x128xf32>
      %287 = arith.negf %286 : vector<8x128xf32>
      %288 = math.exp %287 : vector<8x128xf32>
      %cst_75 = arith.constant 1.000000e+00 : f32
      %289 = vector.broadcast %cst_75 : f32 to vector<8x128xf32>
      %290 = arith.addf %289, %288 : vector<8x128xf32>
      %291 = arith.divf %289, %290 : vector<8x128xf32>
      %292 = vector.extract_strided_slice %285 {offsets = [0, 128], sizes = [8, 128], strides = [1, 1]} : vector<8x512xf32> to vector<8x128xf32>
      %293 = arith.negf %292 : vector<8x128xf32>
      %294 = math.exp %293 : vector<8x128xf32>
      %cst_76 = arith.constant 1.000000e+00 : f32
      %295 = vector.broadcast %cst_76 : f32 to vector<8x128xf32>
      %296 = arith.addf %295, %294 : vector<8x128xf32>
      %297 = arith.divf %295, %296 : vector<8x128xf32>
      %298 = vector.extract_strided_slice %285 {offsets = [0, 256], sizes = [8, 128], strides = [1, 1]} : vector<8x512xf32> to vector<8x128xf32>
      %299 = math.tanh %298 : vector<8x128xf32>
      %300 = vector.extract_strided_slice %285 {offsets = [0, 384], sizes = [8, 128], strides = [1, 1]} : vector<8x512xf32> to vector<8x128xf32>
      %301 = arith.negf %300 : vector<8x128xf32>
      %302 = math.exp %301 : vector<8x128xf32>
      %cst_77 = arith.constant 1.000000e+00 : f32
      %303 = vector.broadcast %cst_77 : f32 to vector<8x128xf32>
      %304 = arith.addf %303, %302 : vector<8x128xf32>
      %305 = arith.divf %303, %304 : vector<8x128xf32>
      %306 = arith.mulf %297, %275 : vector<8x128xf32>
      %307 = arith.mulf %291, %299 : vector<8x128xf32>
      %308 = arith.addf %306, %307 : vector<8x128xf32>
      %309 = math.tanh %308 : vector<8x128xf32>
      %310 = arith.mulf %305, %309 : vector<8x128xf32>
      %c6_i32 = arith.constant 6 : i32
      %311 = arith.addi %31, %c6_i32 : i32
      %312 = vector.broadcast %311 : i32 to vector<8x1xi32>
      %313 = arith.cmpi slt, %312, %24 : vector<8x1xi32>
      %314 = vector.shape_cast %313 : vector<8x1xi1> to vector<8x1xi1>
      %315 = vector.broadcast %314 : vector<8x1xi1> to vector<8x128xi1>
      %316 = arith.select %315, %308, %275 : vector<8x128xi1>, vector<8x128xf32>
      %317 = vector.shape_cast %313 : vector<8x1xi1> to vector<8x1xi1>
      %318 = vector.broadcast %317 : vector<8x1xi1> to vector<8x128xi1>
      %319 = arith.select %318, %310, %278 : vector<8x128xi1>, vector<8x128xf32>
      %c0_78 = arith.constant 0 : index
      %c6 = arith.constant 6 : index
      %c0_79 = arith.constant 0 : index
      %c0_80 = arith.constant 0 : index
      %320 = vector.load %arg7[%c0_78, %c6, %c0_79, %c0_80] : memref<1x8x8x128xf32, #tpu.memory_space<vmem>>, vector<1x1x8x128xf32>
      %321 = vector.shape_cast %320 : vector<1x1x8x128xf32> to vector<8x128xf32>
      %322 = vector.shape_cast %319 : vector<8x128xf32> to vector<1x1x8x128xf32>
      tpu.vector_store %arg7[%c0_78, %c6, %c0_79, %c0_80], %322 {strides = array<i32>} : memref<1x8x8x128xf32, #tpu.memory_space<vmem>>, vector<1x1x8x128xf32>,
      %323 = vector.extract_strided_slice %21 {offsets = [56, 0], sizes = [8, 512], strides = [1, 1]} : vector<64x512xf32> to vector<8x512xf32>
      %324 = arith.truncf %319 : vector<8x128xf32> to vector<8x128xbf16>
      %cst_81 = arith.constant dense<0.000000e+00> : vector<8x512xf32>
      %325 = tpu.matmul %324, %23, %cst_81 {dimension_numbers = #tpu.dot_dimension_numbers<[1], [0], [0], [1], [0, 0, 1, 1], [], []>} : vector<8x128xbf16>, vector<128x512xbf16>, vector<8x512xf32> -> vector<8x512xf32>
      %326 = arith.addf %323, %325 : vector<8x512xf32>
      %327 = vector.extract_strided_slice %326 {offsets = [0, 0], sizes = [8, 128], strides = [1, 1]} : vector<8x512xf32> to vector<8x128xf32>
      %328 = arith.negf %327 : vector<8x128xf32>
      %329 = math.exp %328 : vector<8x128xf32>
      %cst_82 = arith.constant 1.000000e+00 : f32
      %330 = vector.broadcast %cst_82 : f32 to vector<8x128xf32>
      %331 = arith.addf %330, %329 : vector<8x128xf32>
      %332 = arith.divf %330, %331 : vector<8x128xf32>
      %333 = vector.extract_strided_slice %326 {offsets = [0, 128], sizes = [8, 128], strides = [1, 1]} : vector<8x512xf32> to vector<8x128xf32>
      %334 = arith.negf %333 : vector<8x128xf32>
      %335 = math.exp %334 : vector<8x128xf32>
      %cst_83 = arith.constant 1.000000e+00 : f32
      %336 = vector.broadcast %cst_83 : f32 to vector<8x128xf32>
      %337 = arith.addf %336, %335 : vector<8x128xf32>
      %338 = arith.divf %336, %337 : vector<8x128xf32>
      %339 = vector.extract_strided_slice %326 {offsets = [0, 256], sizes = [8, 128], strides = [1, 1]} : vector<8x512xf32> to vector<8x128xf32>
      %340 = math.tanh %339 : vector<8x128xf32>
      %341 = vector.extract_strided_slice %326 {offsets = [0, 384], sizes = [8, 128], strides = [1, 1]} : vector<8x512xf32> to vector<8x128xf32>
      %342 = arith.negf %341 : vector<8x128xf32>
      %343 = math.exp %342 : vector<8x128xf32>
      %cst_84 = arith.constant 1.000000e+00 : f32
      %344 = vector.broadcast %cst_84 : f32 to vector<8x128xf32>
      %345 = arith.addf %344, %343 : vector<8x128xf32>
      %346 = arith.divf %344, %345 : vector<8x128xf32>
      %347 = arith.mulf %338, %316 : vector<8x128xf32>
      %348 = arith.mulf %332, %340 : vector<8x128xf32>
      %349 = arith.addf %347, %348 : vector<8x128xf32>
      %350 = math.tanh %349 : vector<8x128xf32>
      %351 = arith.mulf %346, %350 : vector<8x128xf32>
      %c7_i32 = arith.constant 7 : i32
      %352 = arith.addi %31, %c7_i32 : i32
      %353 = vector.broadcast %352 : i32 to vector<8x1xi32>
      %354 = arith.cmpi slt, %353, %24 : vector<8x1xi32>
      %355 = vector.shape_cast %354 : vector<8x1xi1> to vector<8x1xi1>
      %356 = vector.broadcast %355 : vector<8x1xi1> to vector<8x128xi1>
      %357 = arith.select %356, %349, %316 : vector<8x128xi1>, vector<8x128xf32>
      %358 = vector.shape_cast %354 : vector<8x1xi1> to vector<8x1xi1>
      %359 = vector.broadcast %358 : vector<8x1xi1> to vector<8x128xi1>
      %360 = arith.select %359, %351, %319 : vector<8x128xi1>, vector<8x128xf32>
      %c0_85 = arith.constant 0 : index
      %c7 = arith.constant 7 : index
      %c0_86 = arith.constant 0 : index
      %c0_87 = arith.constant 0 : index
      %361 = vector.load %arg7[%c0_85, %c7, %c0_86, %c0_87] : memref<1x8x8x128xf32, #tpu.memory_space<vmem>>, vector<1x1x8x128xf32>
      %362 = vector.shape_cast %361 : vector<1x1x8x128xf32> to vector<8x128xf32>
      %363 = vector.shape_cast %360 : vector<8x128xf32> to vector<1x1x8x128xf32>
      tpu.vector_store %arg7[%c0_85, %c7, %c0_86, %c0_87], %363 {strides = array<i32>} : memref<1x8x8x128xf32, #tpu.memory_space<vmem>>, vector<1x1x8x128xf32>,
      %c0_88 = arith.constant 0 : index
      %c0_89 = arith.constant 0 : index
      %c0_90 = arith.constant 0 : index
      %364 = vector.load %arg8[%c0_88, %c0_89, %c0_90] : memref<1x8x128xf32, #tpu.memory_space<vmem>>, vector<1x8x128xf32>
      %365 = vector.shape_cast %364 : vector<1x8x128xf32> to vector<8x128xf32>
      %366 = vector.shape_cast %360 : vector<8x128xf32> to vector<1x8x128xf32>
      tpu.vector_store %arg8[%c0_88, %c0_89, %c0_90], %366 {strides = array<i32>} : memref<1x8x128xf32, #tpu.memory_space<vmem>>, vector<1x8x128xf32>,
      %c0_91 = arith.constant 0 : index
      %c0_92 = arith.constant 0 : index
      %c0_93 = arith.constant 0 : index
      %367 = vector.load %arg9[%c0_91, %c0_92, %c0_93] : memref<1x8x128xf32, #tpu.memory_space<vmem>>, vector<1x8x128xf32>
      %368 = vector.shape_cast %367 : vector<1x8x128xf32> to vector<8x128xf32>
      %369 = vector.shape_cast %357 : vector<8x128xf32> to vector<1x8x128xf32>
      tpu.vector_store %arg9[%c0_91, %c0_92, %c0_93], %369 {strides = array<i32>} : memref<1x8x128xf32, #tpu.memory_space<vmem>>, vector<1x8x128xf32>,
    } else {
    }
    %c1_i32 = arith.constant 1 : i32
    %28 = arith.cmpi eq, %arg0, %c1_i32 : i32
    %29 = arith.extui %28 : i1 to i32
    %c0_i32_21 = arith.constant 0 : i32
    %30 = arith.cmpi ne, %29, %c0_i32_21 : i32
    scf.if %30 {
      %c1_i32_22 = arith.constant 1 : i32
      %31 = arith.subi %c1_i32_22, %arg1 : i32
      %c8_i32 = arith.constant 8 : i32
      %32 = arith.muli %31, %c8_i32 : i32
      %c0_23 = arith.constant 0 : index
      %c0_24 = arith.constant 0 : index
      %c0_25 = arith.constant 0 : index
      %33 = vector.load %arg8[%c0_23, %c0_24, %c0_25] : memref<1x8x128xf32, #tpu.memory_space<vmem>>, vector<1x8x128xf32>
      %34 = vector.shape_cast %33 : vector<1x8x128xf32> to vector<8x128xf32>
      %c0_26 = arith.constant 0 : index
      %c0_27 = arith.constant 0 : index
      %c0_28 = arith.constant 0 : index
      %35 = vector.load %arg9[%c0_26, %c0_27, %c0_28] : memref<1x8x128xf32, #tpu.memory_space<vmem>>, vector<1x8x128xf32>
      %36 = vector.shape_cast %35 : vector<1x8x128xf32> to vector<8x128xf32>
      %37 = vector.extract_strided_slice %21 {offsets = [56, 0], sizes = [8, 512], strides = [1, 1]} : vector<64x512xf32> to vector<8x512xf32>
      %38 = arith.truncf %34 : vector<8x128xf32> to vector<8x128xbf16>
      %cst_29 = arith.constant dense<0.000000e+00> : vector<8x512xf32>
      %39 = tpu.matmul %38, %23, %cst_29 {dimension_numbers = #tpu.dot_dimension_numbers<[1], [0], [0], [1], [0, 0, 1, 1], [], []>} : vector<8x128xbf16>, vector<128x512xbf16>, vector<8x512xf32> -> vector<8x512xf32>
      %40 = arith.addf %37, %39 : vector<8x512xf32>
      %41 = vector.extract_strided_slice %40 {offsets = [0, 0], sizes = [8, 128], strides = [1, 1]} : vector<8x512xf32> to vector<8x128xf32>
      %42 = arith.negf %41 : vector<8x128xf32>
      %43 = math.exp %42 : vector<8x128xf32>
      %cst_30 = arith.constant 1.000000e+00 : f32
      %44 = vector.broadcast %cst_30 : f32 to vector<8x128xf32>
      %45 = arith.addf %44, %43 : vector<8x128xf32>
      %46 = arith.divf %44, %45 : vector<8x128xf32>
      %47 = vector.extract_strided_slice %40 {offsets = [0, 128], sizes = [8, 128], strides = [1, 1]} : vector<8x512xf32> to vector<8x128xf32>
      %48 = arith.negf %47 : vector<8x128xf32>
      %49 = math.exp %48 : vector<8x128xf32>
      %cst_31 = arith.constant 1.000000e+00 : f32
      %50 = vector.broadcast %cst_31 : f32 to vector<8x128xf32>
      %51 = arith.addf %50, %49 : vector<8x128xf32>
      %52 = arith.divf %50, %51 : vector<8x128xf32>
      %53 = vector.extract_strided_slice %40 {offsets = [0, 256], sizes = [8, 128], strides = [1, 1]} : vector<8x512xf32> to vector<8x128xf32>
      %54 = math.tanh %53 : vector<8x128xf32>
      %55 = vector.extract_strided_slice %40 {offsets = [0, 384], sizes = [8, 128], strides = [1, 1]} : vector<8x512xf32> to vector<8x128xf32>
      %56 = arith.negf %55 : vector<8x128xf32>
      %57 = math.exp %56 : vector<8x128xf32>
      %cst_32 = arith.constant 1.000000e+00 : f32
      %58 = vector.broadcast %cst_32 : f32 to vector<8x128xf32>
      %59 = arith.addf %58, %57 : vector<8x128xf32>
      %60 = arith.divf %58, %59 : vector<8x128xf32>
      %61 = arith.mulf %52, %36 : vector<8x128xf32>
      %62 = arith.mulf %46, %54 : vector<8x128xf32>
      %63 = arith.addf %61, %62 : vector<8x128xf32>
      %64 = math.tanh %63 : vector<8x128xf32>
      %65 = arith.mulf %60, %64 : vector<8x128xf32>
      %c7_i32 = arith.constant 7 : i32
      %66 = arith.addi %32, %c7_i32 : i32
      %67 = vector.broadcast %66 : i32 to vector<8x1xi32>
      %68 = arith.cmpi slt, %67, %24 : vector<8x1xi32>
      %69 = vector.shape_cast %68 : vector<8x1xi1> to vector<8x1xi1>
      %70 = vector.broadcast %69 : vector<8x1xi1> to vector<8x128xi1>
      %71 = arith.select %70, %63, %36 : vector<8x128xi1>, vector<8x128xf32>
      %72 = vector.shape_cast %68 : vector<8x1xi1> to vector<8x1xi1>
      %73 = vector.broadcast %72 : vector<8x1xi1> to vector<8x128xi1>
      %74 = arith.select %73, %65, %34 : vector<8x128xi1>, vector<8x128xf32>
      %c0_33 = arith.constant 0 : index
      %c7 = arith.constant 7 : index
      %c0_34 = arith.constant 0 : index
      %c0_35 = arith.constant 0 : index
      %75 = vector.load %arg7[%c0_33, %c7, %c0_34, %c0_35] : memref<1x8x8x128xf32, #tpu.memory_space<vmem>>, vector<1x1x8x128xf32>
      %76 = vector.shape_cast %75 : vector<1x1x8x128xf32> to vector<8x128xf32>
      %77 = vector.shape_cast %74 : vector<8x128xf32> to vector<1x1x8x128xf32>
      tpu.vector_store %arg7[%c0_33, %c7, %c0_34, %c0_35], %77 {strides = array<i32>} : memref<1x8x8x128xf32, #tpu.memory_space<vmem>>, vector<1x1x8x128xf32>,
      %78 = vector.extract_strided_slice %21 {offsets = [48, 0], sizes = [8, 512], strides = [1, 1]} : vector<64x512xf32> to vector<8x512xf32>
      %79 = arith.truncf %74 : vector<8x128xf32> to vector<8x128xbf16>
      %cst_36 = arith.constant dense<0.000000e+00> : vector<8x512xf32>
      %80 = tpu.matmul %79, %23, %cst_36 {dimension_numbers = #tpu.dot_dimension_numbers<[1], [0], [0], [1], [0, 0, 1, 1], [], []>} : vector<8x128xbf16>, vector<128x512xbf16>, vector<8x512xf32> -> vector<8x512xf32>
      %81 = arith.addf %78, %80 : vector<8x512xf32>
      %82 = vector.extract_strided_slice %81 {offsets = [0, 0], sizes = [8, 128], strides = [1, 1]} : vector<8x512xf32> to vector<8x128xf32>
      %83 = arith.negf %82 : vector<8x128xf32>
      %84 = math.exp %83 : vector<8x128xf32>
      %cst_37 = arith.constant 1.000000e+00 : f32
      %85 = vector.broadcast %cst_37 : f32 to vector<8x128xf32>
      %86 = arith.addf %85, %84 : vector<8x128xf32>
      %87 = arith.divf %85, %86 : vector<8x128xf32>
      %88 = vector.extract_strided_slice %81 {offsets = [0, 128], sizes = [8, 128], strides = [1, 1]} : vector<8x512xf32> to vector<8x128xf32>
      %89 = arith.negf %88 : vector<8x128xf32>
      %90 = math.exp %89 : vector<8x128xf32>
      %cst_38 = arith.constant 1.000000e+00 : f32
      %91 = vector.broadcast %cst_38 : f32 to vector<8x128xf32>
      %92 = arith.addf %91, %90 : vector<8x128xf32>
      %93 = arith.divf %91, %92 : vector<8x128xf32>
      %94 = vector.extract_strided_slice %81 {offsets = [0, 256], sizes = [8, 128], strides = [1, 1]} : vector<8x512xf32> to vector<8x128xf32>
      %95 = math.tanh %94 : vector<8x128xf32>
      %96 = vector.extract_strided_slice %81 {offsets = [0, 384], sizes = [8, 128], strides = [1, 1]} : vector<8x512xf32> to vector<8x128xf32>
      %97 = arith.negf %96 : vector<8x128xf32>
      %98 = math.exp %97 : vector<8x128xf32>
      %cst_39 = arith.constant 1.000000e+00 : f32
      %99 = vector.broadcast %cst_39 : f32 to vector<8x128xf32>
      %100 = arith.addf %99, %98 : vector<8x128xf32>
      %101 = arith.divf %99, %100 : vector<8x128xf32>
      %102 = arith.mulf %93, %71 : vector<8x128xf32>
      %103 = arith.mulf %87, %95 : vector<8x128xf32>
      %104 = arith.addf %102, %103 : vector<8x128xf32>
      %105 = math.tanh %104 : vector<8x128xf32>
      %106 = arith.mulf %101, %105 : vector<8x128xf32>
      %c6_i32 = arith.constant 6 : i32
      %107 = arith.addi %32, %c6_i32 : i32
      %108 = vector.broadcast %107 : i32 to vector<8x1xi32>
      %109 = arith.cmpi slt, %108, %24 : vector<8x1xi32>
      %110 = vector.shape_cast %109 : vector<8x1xi1> to vector<8x1xi1>
      %111 = vector.broadcast %110 : vector<8x1xi1> to vector<8x128xi1>
      %112 = arith.select %111, %104, %71 : vector<8x128xi1>, vector<8x128xf32>
      %113 = vector.shape_cast %109 : vector<8x1xi1> to vector<8x1xi1>
      %114 = vector.broadcast %113 : vector<8x1xi1> to vector<8x128xi1>
      %115 = arith.select %114, %106, %74 : vector<8x128xi1>, vector<8x128xf32>
      %c0_40 = arith.constant 0 : index
      %c6 = arith.constant 6 : index
      %c0_41 = arith.constant 0 : index
      %c0_42 = arith.constant 0 : index
      %116 = vector.load %arg7[%c0_40, %c6, %c0_41, %c0_42] : memref<1x8x8x128xf32, #tpu.memory_space<vmem>>, vector<1x1x8x128xf32>
      %117 = vector.shape_cast %116 : vector<1x1x8x128xf32> to vector<8x128xf32>
      %118 = vector.shape_cast %115 : vector<8x128xf32> to vector<1x1x8x128xf32>
      tpu.vector_store %arg7[%c0_40, %c6, %c0_41, %c0_42], %118 {strides = array<i32>} : memref<1x8x8x128xf32, #tpu.memory_space<vmem>>, vector<1x1x8x128xf32>,
      %119 = vector.extract_strided_slice %21 {offsets = [40, 0], sizes = [8, 512], strides = [1, 1]} : vector<64x512xf32> to vector<8x512xf32>
      %120 = arith.truncf %115 : vector<8x128xf32> to vector<8x128xbf16>
      %cst_43 = arith.constant dense<0.000000e+00> : vector<8x512xf32>
      %121 = tpu.matmul %120, %23, %cst_43 {dimension_numbers = #tpu.dot_dimension_numbers<[1], [0], [0], [1], [0, 0, 1, 1], [], []>} : vector<8x128xbf16>, vector<128x512xbf16>, vector<8x512xf32> -> vector<8x512xf32>
      %122 = arith.addf %119, %121 : vector<8x512xf32>
      %123 = vector.extract_strided_slice %122 {offsets = [0, 0], sizes = [8, 128], strides = [1, 1]} : vector<8x512xf32> to vector<8x128xf32>
      %124 = arith.negf %123 : vector<8x128xf32>
      %125 = math.exp %124 : vector<8x128xf32>
      %cst_44 = arith.constant 1.000000e+00 : f32
      %126 = vector.broadcast %cst_44 : f32 to vector<8x128xf32>
      %127 = arith.addf %126, %125 : vector<8x128xf32>
      %128 = arith.divf %126, %127 : vector<8x128xf32>
      %129 = vector.extract_strided_slice %122 {offsets = [0, 128], sizes = [8, 128], strides = [1, 1]} : vector<8x512xf32> to vector<8x128xf32>
      %130 = arith.negf %129 : vector<8x128xf32>
      %131 = math.exp %130 : vector<8x128xf32>
      %cst_45 = arith.constant 1.000000e+00 : f32
      %132 = vector.broadcast %cst_45 : f32 to vector<8x128xf32>
      %133 = arith.addf %132, %131 : vector<8x128xf32>
      %134 = arith.divf %132, %133 : vector<8x128xf32>
      %135 = vector.extract_strided_slice %122 {offsets = [0, 256], sizes = [8, 128], strides = [1, 1]} : vector<8x512xf32> to vector<8x128xf32>
      %136 = math.tanh %135 : vector<8x128xf32>
      %137 = vector.extract_strided_slice %122 {offsets = [0, 384], sizes = [8, 128], strides = [1, 1]} : vector<8x512xf32> to vector<8x128xf32>
      %138 = arith.negf %137 : vector<8x128xf32>
      %139 = math.exp %138 : vector<8x128xf32>
      %cst_46 = arith.constant 1.000000e+00 : f32
      %140 = vector.broadcast %cst_46 : f32 to vector<8x128xf32>
      %141 = arith.addf %140, %139 : vector<8x128xf32>
      %142 = arith.divf %140, %141 : vector<8x128xf32>
      %143 = arith.mulf %134, %112 : vector<8x128xf32>
      %144 = arith.mulf %128, %136 : vector<8x128xf32>
      %145 = arith.addf %143, %144 : vector<8x128xf32>
      %146 = math.tanh %145 : vector<8x128xf32>
      %147 = arith.mulf %142, %146 : vector<8x128xf32>
      %c5_i32 = arith.constant 5 : i32
      %148 = arith.addi %32, %c5_i32 : i32
      %149 = vector.broadcast %148 : i32 to vector<8x1xi32>
      %150 = arith.cmpi slt, %149, %24 : vector<8x1xi32>
      %151 = vector.shape_cast %150 : vector<8x1xi1> to vector<8x1xi1>
      %152 = vector.broadcast %151 : vector<8x1xi1> to vector<8x128xi1>
      %153 = arith.select %152, %145, %112 : vector<8x128xi1>, vector<8x128xf32>
      %154 = vector.shape_cast %150 : vector<8x1xi1> to vector<8x1xi1>
      %155 = vector.broadcast %154 : vector<8x1xi1> to vector<8x128xi1>
      %156 = arith.select %155, %147, %115 : vector<8x128xi1>, vector<8x128xf32>
      %c0_47 = arith.constant 0 : index
      %c5 = arith.constant 5 : index
      %c0_48 = arith.constant 0 : index
      %c0_49 = arith.constant 0 : index
      %157 = vector.load %arg7[%c0_47, %c5, %c0_48, %c0_49] : memref<1x8x8x128xf32, #tpu.memory_space<vmem>>, vector<1x1x8x128xf32>
      %158 = vector.shape_cast %157 : vector<1x1x8x128xf32> to vector<8x128xf32>
      %159 = vector.shape_cast %156 : vector<8x128xf32> to vector<1x1x8x128xf32>
      tpu.vector_store %arg7[%c0_47, %c5, %c0_48, %c0_49], %159 {strides = array<i32>} : memref<1x8x8x128xf32, #tpu.memory_space<vmem>>, vector<1x1x8x128xf32>,
      %160 = vector.extract_strided_slice %21 {offsets = [32, 0], sizes = [8, 512], strides = [1, 1]} : vector<64x512xf32> to vector<8x512xf32>
      %161 = arith.truncf %156 : vector<8x128xf32> to vector<8x128xbf16>
      %cst_50 = arith.constant dense<0.000000e+00> : vector<8x512xf32>
      %162 = tpu.matmul %161, %23, %cst_50 {dimension_numbers = #tpu.dot_dimension_numbers<[1], [0], [0], [1], [0, 0, 1, 1], [], []>} : vector<8x128xbf16>, vector<128x512xbf16>, vector<8x512xf32> -> vector<8x512xf32>
      %163 = arith.addf %160, %162 : vector<8x512xf32>
      %164 = vector.extract_strided_slice %163 {offsets = [0, 0], sizes = [8, 128], strides = [1, 1]} : vector<8x512xf32> to vector<8x128xf32>
      %165 = arith.negf %164 : vector<8x128xf32>
      %166 = math.exp %165 : vector<8x128xf32>
      %cst_51 = arith.constant 1.000000e+00 : f32
      %167 = vector.broadcast %cst_51 : f32 to vector<8x128xf32>
      %168 = arith.addf %167, %166 : vector<8x128xf32>
      %169 = arith.divf %167, %168 : vector<8x128xf32>
      %170 = vector.extract_strided_slice %163 {offsets = [0, 128], sizes = [8, 128], strides = [1, 1]} : vector<8x512xf32> to vector<8x128xf32>
      %171 = arith.negf %170 : vector<8x128xf32>
      %172 = math.exp %171 : vector<8x128xf32>
      %cst_52 = arith.constant 1.000000e+00 : f32
      %173 = vector.broadcast %cst_52 : f32 to vector<8x128xf32>
      %174 = arith.addf %173, %172 : vector<8x128xf32>
      %175 = arith.divf %173, %174 : vector<8x128xf32>
      %176 = vector.extract_strided_slice %163 {offsets = [0, 256], sizes = [8, 128], strides = [1, 1]} : vector<8x512xf32> to vector<8x128xf32>
      %177 = math.tanh %176 : vector<8x128xf32>
      %178 = vector.extract_strided_slice %163 {offsets = [0, 384], sizes = [8, 128], strides = [1, 1]} : vector<8x512xf32> to vector<8x128xf32>
      %179 = arith.negf %178 : vector<8x128xf32>
      %180 = math.exp %179 : vector<8x128xf32>
      %cst_53 = arith.constant 1.000000e+00 : f32
      %181 = vector.broadcast %cst_53 : f32 to vector<8x128xf32>
      %182 = arith.addf %181, %180 : vector<8x128xf32>
      %183 = arith.divf %181, %182 : vector<8x128xf32>
      %184 = arith.mulf %175, %153 : vector<8x128xf32>
      %185 = arith.mulf %169, %177 : vector<8x128xf32>
      %186 = arith.addf %184, %185 : vector<8x128xf32>
      %187 = math.tanh %186 : vector<8x128xf32>
      %188 = arith.mulf %183, %187 : vector<8x128xf32>
      %c4_i32 = arith.constant 4 : i32
      %189 = arith.addi %32, %c4_i32 : i32
      %190 = vector.broadcast %189 : i32 to vector<8x1xi32>
      %191 = arith.cmpi slt, %190, %24 : vector<8x1xi32>
      %192 = vector.shape_cast %191 : vector<8x1xi1> to vector<8x1xi1>
      %193 = vector.broadcast %192 : vector<8x1xi1> to vector<8x128xi1>
      %194 = arith.select %193, %186, %153 : vector<8x128xi1>, vector<8x128xf32>
      %195 = vector.shape_cast %191 : vector<8x1xi1> to vector<8x1xi1>
      %196 = vector.broadcast %195 : vector<8x1xi1> to vector<8x128xi1>
      %197 = arith.select %196, %188, %156 : vector<8x128xi1>, vector<8x128xf32>
      %c0_54 = arith.constant 0 : index
      %c4 = arith.constant 4 : index
      %c0_55 = arith.constant 0 : index
      %c0_56 = arith.constant 0 : index
      %198 = vector.load %arg7[%c0_54, %c4, %c0_55, %c0_56] : memref<1x8x8x128xf32, #tpu.memory_space<vmem>>, vector<1x1x8x128xf32>
      %199 = vector.shape_cast %198 : vector<1x1x8x128xf32> to vector<8x128xf32>
      %200 = vector.shape_cast %197 : vector<8x128xf32> to vector<1x1x8x128xf32>
      tpu.vector_store %arg7[%c0_54, %c4, %c0_55, %c0_56], %200 {strides = array<i32>} : memref<1x8x8x128xf32, #tpu.memory_space<vmem>>, vector<1x1x8x128xf32>,
      %201 = vector.extract_strided_slice %21 {offsets = [24, 0], sizes = [8, 512], strides = [1, 1]} : vector<64x512xf32> to vector<8x512xf32>
      %202 = arith.truncf %197 : vector<8x128xf32> to vector<8x128xbf16>
      %cst_57 = arith.constant dense<0.000000e+00> : vector<8x512xf32>
      %203 = tpu.matmul %202, %23, %cst_57 {dimension_numbers = #tpu.dot_dimension_numbers<[1], [0], [0], [1], [0, 0, 1, 1], [], []>} : vector<8x128xbf16>, vector<128x512xbf16>, vector<8x512xf32> -> vector<8x512xf32>
      %204 = arith.addf %201, %203 : vector<8x512xf32>
      %205 = vector.extract_strided_slice %204 {offsets = [0, 0], sizes = [8, 128], strides = [1, 1]} : vector<8x512xf32> to vector<8x128xf32>
      %206 = arith.negf %205 : vector<8x128xf32>
      %207 = math.exp %206 : vector<8x128xf32>
      %cst_58 = arith.constant 1.000000e+00 : f32
      %208 = vector.broadcast %cst_58 : f32 to vector<8x128xf32>
      %209 = arith.addf %208, %207 : vector<8x128xf32>
      %210 = arith.divf %208, %209 : vector<8x128xf32>
      %211 = vector.extract_strided_slice %204 {offsets = [0, 128], sizes = [8, 128], strides = [1, 1]} : vector<8x512xf32> to vector<8x128xf32>
      %212 = arith.negf %211 : vector<8x128xf32>
      %213 = math.exp %212 : vector<8x128xf32>
      %cst_59 = arith.constant 1.000000e+00 : f32
      %214 = vector.broadcast %cst_59 : f32 to vector<8x128xf32>
      %215 = arith.addf %214, %213 : vector<8x128xf32>
      %216 = arith.divf %214, %215 : vector<8x128xf32>
      %217 = vector.extract_strided_slice %204 {offsets = [0, 256], sizes = [8, 128], strides = [1, 1]} : vector<8x512xf32> to vector<8x128xf32>
      %218 = math.tanh %217 : vector<8x128xf32>
      %219 = vector.extract_strided_slice %204 {offsets = [0, 384], sizes = [8, 128], strides = [1, 1]} : vector<8x512xf32> to vector<8x128xf32>
      %220 = arith.negf %219 : vector<8x128xf32>
      %221 = math.exp %220 : vector<8x128xf32>
      %cst_60 = arith.constant 1.000000e+00 : f32
      %222 = vector.broadcast %cst_60 : f32 to vector<8x128xf32>
      %223 = arith.addf %222, %221 : vector<8x128xf32>
      %224 = arith.divf %222, %223 : vector<8x128xf32>
      %225 = arith.mulf %216, %194 : vector<8x128xf32>
      %226 = arith.mulf %210, %218 : vector<8x128xf32>
      %227 = arith.addf %225, %226 : vector<8x128xf32>
      %228 = math.tanh %227 : vector<8x128xf32>
      %229 = arith.mulf %224, %228 : vector<8x128xf32>
      %c3_i32 = arith.constant 3 : i32
      %230 = arith.addi %32, %c3_i32 : i32
      %231 = vector.broadcast %230 : i32 to vector<8x1xi32>
      %232 = arith.cmpi slt, %231, %24 : vector<8x1xi32>
      %233 = vector.shape_cast %232 : vector<8x1xi1> to vector<8x1xi1>
      %234 = vector.broadcast %233 : vector<8x1xi1> to vector<8x128xi1>
      %235 = arith.select %234, %227, %194 : vector<8x128xi1>, vector<8x128xf32>
      %236 = vector.shape_cast %232 : vector<8x1xi1> to vector<8x1xi1>
      %237 = vector.broadcast %236 : vector<8x1xi1> to vector<8x128xi1>
      %238 = arith.select %237, %229, %197 : vector<8x128xi1>, vector<8x128xf32>
      %c0_61 = arith.constant 0 : index
      %c3 = arith.constant 3 : index
      %c0_62 = arith.constant 0 : index
      %c0_63 = arith.constant 0 : index
      %239 = vector.load %arg7[%c0_61, %c3, %c0_62, %c0_63] : memref<1x8x8x128xf32, #tpu.memory_space<vmem>>, vector<1x1x8x128xf32>
      %240 = vector.shape_cast %239 : vector<1x1x8x128xf32> to vector<8x128xf32>
      %241 = vector.shape_cast %238 : vector<8x128xf32> to vector<1x1x8x128xf32>
      tpu.vector_store %arg7[%c0_61, %c3, %c0_62, %c0_63], %241 {strides = array<i32>} : memref<1x8x8x128xf32, #tpu.memory_space<vmem>>, vector<1x1x8x128xf32>,
      %242 = vector.extract_strided_slice %21 {offsets = [16, 0], sizes = [8, 512], strides = [1, 1]} : vector<64x512xf32> to vector<8x512xf32>
      %243 = arith.truncf %238 : vector<8x128xf32> to vector<8x128xbf16>
      %cst_64 = arith.constant dense<0.000000e+00> : vector<8x512xf32>
      %244 = tpu.matmul %243, %23, %cst_64 {dimension_numbers = #tpu.dot_dimension_numbers<[1], [0], [0], [1], [0, 0, 1, 1], [], []>} : vector<8x128xbf16>, vector<128x512xbf16>, vector<8x512xf32> -> vector<8x512xf32>
      %245 = arith.addf %242, %244 : vector<8x512xf32>
      %246 = vector.extract_strided_slice %245 {offsets = [0, 0], sizes = [8, 128], strides = [1, 1]} : vector<8x512xf32> to vector<8x128xf32>
      %247 = arith.negf %246 : vector<8x128xf32>
      %248 = math.exp %247 : vector<8x128xf32>
      %cst_65 = arith.constant 1.000000e+00 : f32
      %249 = vector.broadcast %cst_65 : f32 to vector<8x128xf32>
      %250 = arith.addf %249, %248 : vector<8x128xf32>
      %251 = arith.divf %249, %250 : vector<8x128xf32>
      %252 = vector.extract_strided_slice %245 {offsets = [0, 128], sizes = [8, 128], strides = [1, 1]} : vector<8x512xf32> to vector<8x128xf32>
      %253 = arith.negf %252 : vector<8x128xf32>
      %254 = math.exp %253 : vector<8x128xf32>
      %cst_66 = arith.constant 1.000000e+00 : f32
      %255 = vector.broadcast %cst_66 : f32 to vector<8x128xf32>
      %256 = arith.addf %255, %254 : vector<8x128xf32>
      %257 = arith.divf %255, %256 : vector<8x128xf32>
      %258 = vector.extract_strided_slice %245 {offsets = [0, 256], sizes = [8, 128], strides = [1, 1]} : vector<8x512xf32> to vector<8x128xf32>
      %259 = math.tanh %258 : vector<8x128xf32>
      %260 = vector.extract_strided_slice %245 {offsets = [0, 384], sizes = [8, 128], strides = [1, 1]} : vector<8x512xf32> to vector<8x128xf32>
      %261 = arith.negf %260 : vector<8x128xf32>
      %262 = math.exp %261 : vector<8x128xf32>
      %cst_67 = arith.constant 1.000000e+00 : f32
      %263 = vector.broadcast %cst_67 : f32 to vector<8x128xf32>
      %264 = arith.addf %263, %262 : vector<8x128xf32>
      %265 = arith.divf %263, %264 : vector<8x128xf32>
      %266 = arith.mulf %257, %235 : vector<8x128xf32>
      %267 = arith.mulf %251, %259 : vector<8x128xf32>
      %268 = arith.addf %266, %267 : vector<8x128xf32>
      %269 = math.tanh %268 : vector<8x128xf32>
      %270 = arith.mulf %265, %269 : vector<8x128xf32>
      %c2_i32 = arith.constant 2 : i32
      %271 = arith.addi %32, %c2_i32 : i32
      %272 = vector.broadcast %271 : i32 to vector<8x1xi32>
      %273 = arith.cmpi slt, %272, %24 : vector<8x1xi32>
      %274 = vector.shape_cast %273 : vector<8x1xi1> to vector<8x1xi1>
      %275 = vector.broadcast %274 : vector<8x1xi1> to vector<8x128xi1>
      %276 = arith.select %275, %268, %235 : vector<8x128xi1>, vector<8x128xf32>
      %277 = vector.shape_cast %273 : vector<8x1xi1> to vector<8x1xi1>
      %278 = vector.broadcast %277 : vector<8x1xi1> to vector<8x128xi1>
      %279 = arith.select %278, %270, %238 : vector<8x128xi1>, vector<8x128xf32>
      %c0_68 = arith.constant 0 : index
      %c2 = arith.constant 2 : index
      %c0_69 = arith.constant 0 : index
      %c0_70 = arith.constant 0 : index
      %280 = vector.load %arg7[%c0_68, %c2, %c0_69, %c0_70] : memref<1x8x8x128xf32, #tpu.memory_space<vmem>>, vector<1x1x8x128xf32>
      %281 = vector.shape_cast %280 : vector<1x1x8x128xf32> to vector<8x128xf32>
      %282 = vector.shape_cast %279 : vector<8x128xf32> to vector<1x1x8x128xf32>
      tpu.vector_store %arg7[%c0_68, %c2, %c0_69, %c0_70], %282 {strides = array<i32>} : memref<1x8x8x128xf32, #tpu.memory_space<vmem>>, vector<1x1x8x128xf32>,
      %283 = vector.extract_strided_slice %21 {offsets = [8, 0], sizes = [8, 512], strides = [1, 1]} : vector<64x512xf32> to vector<8x512xf32>
      %284 = arith.truncf %279 : vector<8x128xf32> to vector<8x128xbf16>
      %cst_71 = arith.constant dense<0.000000e+00> : vector<8x512xf32>
      %285 = tpu.matmul %284, %23, %cst_71 {dimension_numbers = #tpu.dot_dimension_numbers<[1], [0], [0], [1], [0, 0, 1, 1], [], []>} : vector<8x128xbf16>, vector<128x512xbf16>, vector<8x512xf32> -> vector<8x512xf32>
      %286 = arith.addf %283, %285 : vector<8x512xf32>
      %287 = vector.extract_strided_slice %286 {offsets = [0, 0], sizes = [8, 128], strides = [1, 1]} : vector<8x512xf32> to vector<8x128xf32>
      %288 = arith.negf %287 : vector<8x128xf32>
      %289 = math.exp %288 : vector<8x128xf32>
      %cst_72 = arith.constant 1.000000e+00 : f32
      %290 = vector.broadcast %cst_72 : f32 to vector<8x128xf32>
      %291 = arith.addf %290, %289 : vector<8x128xf32>
      %292 = arith.divf %290, %291 : vector<8x128xf32>
      %293 = vector.extract_strided_slice %286 {offsets = [0, 128], sizes = [8, 128], strides = [1, 1]} : vector<8x512xf32> to vector<8x128xf32>
      %294 = arith.negf %293 : vector<8x128xf32>
      %295 = math.exp %294 : vector<8x128xf32>
      %cst_73 = arith.constant 1.000000e+00 : f32
      %296 = vector.broadcast %cst_73 : f32 to vector<8x128xf32>
      %297 = arith.addf %296, %295 : vector<8x128xf32>
      %298 = arith.divf %296, %297 : vector<8x128xf32>
      %299 = vector.extract_strided_slice %286 {offsets = [0, 256], sizes = [8, 128], strides = [1, 1]} : vector<8x512xf32> to vector<8x128xf32>
      %300 = math.tanh %299 : vector<8x128xf32>
      %301 = vector.extract_strided_slice %286 {offsets = [0, 384], sizes = [8, 128], strides = [1, 1]} : vector<8x512xf32> to vector<8x128xf32>
      %302 = arith.negf %301 : vector<8x128xf32>
      %303 = math.exp %302 : vector<8x128xf32>
      %cst_74 = arith.constant 1.000000e+00 : f32
      %304 = vector.broadcast %cst_74 : f32 to vector<8x128xf32>
      %305 = arith.addf %304, %303 : vector<8x128xf32>
      %306 = arith.divf %304, %305 : vector<8x128xf32>
      %307 = arith.mulf %298, %276 : vector<8x128xf32>
      %308 = arith.mulf %292, %300 : vector<8x128xf32>
      %309 = arith.addf %307, %308 : vector<8x128xf32>
      %310 = math.tanh %309 : vector<8x128xf32>
      %311 = arith.mulf %306, %310 : vector<8x128xf32>
      %c1_i32_75 = arith.constant 1 : i32
      %312 = arith.addi %32, %c1_i32_75 : i32
      %313 = vector.broadcast %312 : i32 to vector<8x1xi32>
      %314 = arith.cmpi slt, %313, %24 : vector<8x1xi32>
      %315 = vector.shape_cast %314 : vector<8x1xi1> to vector<8x1xi1>
      %316 = vector.broadcast %315 : vector<8x1xi1> to vector<8x128xi1>
      %317 = arith.select %316, %309, %276 : vector<8x128xi1>, vector<8x128xf32>
      %318 = vector.shape_cast %314 : vector<8x1xi1> to vector<8x1xi1>
      %319 = vector.broadcast %318 : vector<8x1xi1> to vector<8x128xi1>
      %320 = arith.select %319, %311, %279 : vector<8x128xi1>, vector<8x128xf32>
      %c0_76 = arith.constant 0 : index
      %c1_77 = arith.constant 1 : index
      %c0_78 = arith.constant 0 : index
      %c0_79 = arith.constant 0 : index
      %321 = vector.load %arg7[%c0_76, %c1_77, %c0_78, %c0_79] : memref<1x8x8x128xf32, #tpu.memory_space<vmem>>, vector<1x1x8x128xf32>
      %322 = vector.shape_cast %321 : vector<1x1x8x128xf32> to vector<8x128xf32>
      %323 = vector.shape_cast %320 : vector<8x128xf32> to vector<1x1x8x128xf32>
      tpu.vector_store %arg7[%c0_76, %c1_77, %c0_78, %c0_79], %323 {strides = array<i32>} : memref<1x8x8x128xf32, #tpu.memory_space<vmem>>, vector<1x1x8x128xf32>,
      %324 = vector.extract_strided_slice %21 {offsets = [0, 0], sizes = [8, 512], strides = [1, 1]} : vector<64x512xf32> to vector<8x512xf32>
      %325 = arith.truncf %320 : vector<8x128xf32> to vector<8x128xbf16>
      %cst_80 = arith.constant dense<0.000000e+00> : vector<8x512xf32>
      %326 = tpu.matmul %325, %23, %cst_80 {dimension_numbers = #tpu.dot_dimension_numbers<[1], [0], [0], [1], [0, 0, 1, 1], [], []>} : vector<8x128xbf16>, vector<128x512xbf16>, vector<8x512xf32> -> vector<8x512xf32>
      %327 = arith.addf %324, %326 : vector<8x512xf32>
      %328 = vector.extract_strided_slice %327 {offsets = [0, 0], sizes = [8, 128], strides = [1, 1]} : vector<8x512xf32> to vector<8x128xf32>
      %329 = arith.negf %328 : vector<8x128xf32>
      %330 = math.exp %329 : vector<8x128xf32>
      %cst_81 = arith.constant 1.000000e+00 : f32
      %331 = vector.broadcast %cst_81 : f32 to vector<8x128xf32>
      %332 = arith.addf %331, %330 : vector<8x128xf32>
      %333 = arith.divf %331, %332 : vector<8x128xf32>
      %334 = vector.extract_strided_slice %327 {offsets = [0, 128], sizes = [8, 128], strides = [1, 1]} : vector<8x512xf32> to vector<8x128xf32>
      %335 = arith.negf %334 : vector<8x128xf32>
      %336 = math.exp %335 : vector<8x128xf32>
      %cst_82 = arith.constant 1.000000e+00 : f32
      %337 = vector.broadcast %cst_82 : f32 to vector<8x128xf32>
      %338 = arith.addf %337, %336 : vector<8x128xf32>
      %339 = arith.divf %337, %338 : vector<8x128xf32>
      %340 = vector.extract_strided_slice %327 {offsets = [0, 256], sizes = [8, 128], strides = [1, 1]} : vector<8x512xf32> to vector<8x128xf32>
      %341 = math.tanh %340 : vector<8x128xf32>
      %342 = vector.extract_strided_slice %327 {offsets = [0, 384], sizes = [8, 128], strides = [1, 1]} : vector<8x512xf32> to vector<8x128xf32>
      %343 = arith.negf %342 : vector<8x128xf32>
      %344 = math.exp %343 : vector<8x128xf32>
      %cst_83 = arith.constant 1.000000e+00 : f32
      %345 = vector.broadcast %cst_83 : f32 to vector<8x128xf32>
      %346 = arith.addf %345, %344 : vector<8x128xf32>
      %347 = arith.divf %345, %346 : vector<8x128xf32>
      %348 = arith.mulf %339, %317 : vector<8x128xf32>
      %349 = arith.mulf %333, %341 : vector<8x128xf32>
      %350 = arith.addf %348, %349 : vector<8x128xf32>
      %351 = math.tanh %350 : vector<8x128xf32>
      %352 = arith.mulf %347, %351 : vector<8x128xf32>
      %c0_i32_84 = arith.constant 0 : i32
      %353 = arith.addi %32, %c0_i32_84 : i32
      %354 = vector.broadcast %353 : i32 to vector<8x1xi32>
      %355 = arith.cmpi slt, %354, %24 : vector<8x1xi32>
      %356 = vector.shape_cast %355 : vector<8x1xi1> to vector<8x1xi1>
      %357 = vector.broadcast %356 : vector<8x1xi1> to vector<8x128xi1>
      %358 = arith.select %357, %350, %317 : vector<8x128xi1>, vector<8x128xf32>
      %359 = vector.shape_cast %355 : vector<8x1xi1> to vector<8x1xi1>
      %360 = vector.broadcast %359 : vector<8x1xi1> to vector<8x128xi1>
      %361 = arith.select %360, %352, %320 : vector<8x128xi1>, vector<8x128xf32>
      %c0_85 = arith.constant 0 : index
      %c0_86 = arith.constant 0 : index
      %c0_87 = arith.constant 0 : index
      %c0_88 = arith.constant 0 : index
      %362 = vector.load %arg7[%c0_85, %c0_86, %c0_87, %c0_88] : memref<1x8x8x128xf32, #tpu.memory_space<vmem>>, vector<1x1x8x128xf32>
      %363 = vector.shape_cast %362 : vector<1x1x8x128xf32> to vector<8x128xf32>
      %364 = vector.shape_cast %361 : vector<8x128xf32> to vector<1x1x8x128xf32>
      tpu.vector_store %arg7[%c0_85, %c0_86, %c0_87, %c0_88], %364 {strides = array<i32>} : memref<1x8x8x128xf32, #tpu.memory_space<vmem>>, vector<1x1x8x128xf32>,
      %c0_89 = arith.constant 0 : index
      %c0_90 = arith.constant 0 : index
      %c0_91 = arith.constant 0 : index
      %365 = vector.load %arg8[%c0_89, %c0_90, %c0_91] : memref<1x8x128xf32, #tpu.memory_space<vmem>>, vector<1x8x128xf32>
      %366 = vector.shape_cast %365 : vector<1x8x128xf32> to vector<8x128xf32>
      %367 = vector.shape_cast %361 : vector<8x128xf32> to vector<1x8x128xf32>
      tpu.vector_store %arg8[%c0_89, %c0_90, %c0_91], %367 {strides = array<i32>} : memref<1x8x128xf32, #tpu.memory_space<vmem>>, vector<1x8x128xf32>,
      %c0_92 = arith.constant 0 : index
      %c0_93 = arith.constant 0 : index
      %c0_94 = arith.constant 0 : index
      %368 = vector.load %arg9[%c0_92, %c0_93, %c0_94] : memref<1x8x128xf32, #tpu.memory_space<vmem>>, vector<1x8x128xf32>
      %369 = vector.shape_cast %368 : vector<1x8x128xf32> to vector<8x128xf32>
      %370 = vector.shape_cast %358 : vector<8x128xf32> to vector<1x8x128xf32>
      tpu.vector_store %arg9[%c0_92, %c0_93, %c0_94], %370 {strides = array<i32>} : memref<1x8x128xf32, #tpu.memory_space<vmem>>, vector<1x8x128xf32>,
    } else {
    }
    return
  }
  func.func @transform_0(%arg0: i32, %arg1: i32) -> (i32, i32, i32, i32) {
    %c1_i32 = arith.constant 1 : i32
    %0 = arith.subi %c1_i32, %arg0 : i32
    %1 = arith.muli %0, %arg1 : i32
    %c1_i32_0 = arith.constant 1 : i32
    %2 = arith.subi %c1_i32_0, %arg1 : i32
    %3 = arith.muli %arg0, %2 : i32
    %4 = arith.addi %1, %3 : i32
    %c0_i32 = arith.constant 0 : i32
    %c0_i32_1 = arith.constant 0 : i32
    %c0_i32_2 = arith.constant 0 : i32
    %c0_i32_3 = arith.constant 0 : i32
    return %c0_i32, %4, %c0_i32_1, %c0_i32_2 : i32, i32, i32, i32
  }
  func.func @transform_1(%arg0: i32, %arg1: i32) -> (i32, i32, i32) {
    %c0_i32 = arith.constant 0 : i32
    %c0_i32_0 = arith.constant 0 : i32
    %c0_i32_1 = arith.constant 0 : i32
    return %arg0, %c0_i32, %c0_i32_0 : i32, i32, i32
  }
  func.func @transform_2(%arg0: i32, %arg1: i32) -> (i32, i32, i32) {
    %c0_i32 = arith.constant 0 : i32
    %c0_i32_0 = arith.constant 0 : i32
    %c0_i32_1 = arith.constant 0 : i32
    return %arg0, %c0_i32, %c0_i32_0 : i32, i32, i32
  }
  func.func @transform_3(%arg0: i32, %arg1: i32) -> (i32, i32, i32) {
    %c0_i32 = arith.constant 0 : i32
    %c0_i32_0 = arith.constant 0 : i32
    %c0_i32_1 = arith.constant 0 : i32
    return %arg0, %c0_i32, %c0_i32_0 : i32, i32, i32
  }
  func.func @transform_4(%arg0: i32, %arg1: i32) -> (i32, i32) {
    %c0_i32 = arith.constant 0 : i32
    %c0_i32_0 = arith.constant 0 : i32
    %c0_i32_1 = arith.constant 0 : i32
    return %c0_i32, %c0_i32_0 : i32, i32
  }
  func.func @transform_5(%arg0: i32, %arg1: i32) -> (i32, i32, i32, i32) {
    %c1_i32 = arith.constant 1 : i32
    %0 = arith.subi %c1_i32, %arg0 : i32
    %1 = arith.muli %0, %arg1 : i32
    %c1_i32_0 = arith.constant 1 : i32
    %2 = arith.subi %c1_i32_0, %arg1 : i32
    %3 = arith.muli %arg0, %2 : i32
    %4 = arith.addi %1, %3 : i32
    %c0_i32 = arith.constant 0 : i32
    %c0_i32_1 = arith.constant 0 : i32
    %c0_i32_2 = arith.constant 0 : i32
    return %arg0, %4, %c0_i32, %c0_i32_1 : i32, i32, i32, i32
  }
  func.func @transform_6(%arg0: i32, %arg1: i32) -> (i32, i32, i32) {
    %c0_i32 = arith.constant 0 : i32
    %c0_i32_0 = arith.constant 0 : i32
    %c0_i32_1 = arith.constant 0 : i32
    return %arg0, %c0_i32, %c0_i32_0 : i32, i32, i32
  }
  func.func @transform_7(%arg0: i32, %arg1: i32) -> (i32, i32, i32) {
    %c0_i32 = arith.constant 0 : i32
    %c0_i32_0 = arith.constant 0 : i32
    %c0_i32_1 = arith.constant 0 : i32
    return %arg0, %c0_i32, %c0_i32_0 : i32, i32, i32
  }
}

</mosaic_0001>

<bundles_post_ra>
// kernel: better_lstm_forward.5
= control target key start
LH: loop header
LB: loop body
LE: loop exit
PB: predicated region body
PF: predicated region fallthrough
CT: control target
= control target key end

     0   :  { %vm125_vm0 = vcmask 31744   ;;  %s327_s1 = inlined_call_operand.vmem [shape: f32[256,4], index: 1, kind: input, shape index: {}]   ;;  %s328_s0 = inlined_call_operand.vmem [shape: f32[8,256], index: 0, kind: input, shape index: {}]   ;;  %s329_s2 = inlined_call_operand.vmem [shape: f32[1,4], index: 2, kind: input, shape index: {}]   ;;  %s330_s3 = inlined_call_operand.vmem [shape: f32[8,4], index: 3, kind: output, shape index: {}]  }
   0x1   :  { %v32_v0 = vld [vmem:[%s327_s1 + $0x80] sm:$0xff]  ;;  %v33_v1 = vld [vmem:[%s327_s1 + $0x88] sm:$0xff]  ;;  %v34_v5 = vld [vmem:[%s327_s1 + $0x90] sm:$0xff] }
   0x2   :  { %v16_v2 = vld [vmem:[%s327_s1] sm:$0xff]  ;;  %v167_v3 = vpack.c.bf16 %v33_v1, %v32_v0  ;;  %v17_v4 = vld [vmem:[%s327_s1 + $0x8] sm:$0xff]  ;;  %v35_v6 = vld [vmem:[%s327_s1 + $0x98] sm:$0xff] }
   0x3   :  { %v169_v7 = vpack.c.bf16 %v17_v4, %v16_v2  ;;  %v171_v8 = vpack.c.bf16 %v35_v6, %v34_v5  ;;  %v18_v9 = vld [vmem:[%s327_s1 + $0x10] sm:$0xff]  ;;  %v19_v10 = vld [vmem:[%s327_s1 + $0x18] sm:$0xff]  ;;  %v36_v11 = vld [vmem:[%s327_s1 + $0xa0] sm:$0xff] }
   0x4   :  { %168 = vmatprep.subr.bf16.mxu0 %v167_v3  ;;  %v37_v12 = vld [vmem:[%s327_s1 + $0xa8] sm:$0xff]  ;;  %v173_v13 = vpack.c.bf16 %v19_v10, %v18_v9  ;;  %v20_v15 = vld [vmem:[%s327_s1 + $0x20] sm:$0xff]  ;;  %v38_v17 = vld [vmem:[%s327_s1 + $0xb0] sm:$0xff] }
   0x5   :  { %170 = vmatpush3.bf16.msra.mxu0 %v169_v7  ;;  %v175_v14 = vpack.c.bf16 %v37_v12, %v36_v11  ;;  %v21_v16 = vld [vmem:[%s327_s1 + $0x28] sm:$0xff]  ;;  %v39_v18 = vld [vmem:[%s327_s1 + $0xb8] sm:$0xff]  ;;  %v22_v21 = vld [vmem:[%s327_s1 + $0x30] sm:$0xff] }
   0x6   :  { %172 = vmatprep.subr.bf16.mxu0 %v171_v8  ;;  %v177_v19 = vpack.c.bf16 %v21_v16, %v20_v15  ;;  %v179_v20 = vpack.c.bf16 %v39_v18, %v38_v17  ;;  %v23_v22 = vld [vmem:[%s327_s1 + $0x38] sm:$0xff]  ;;  %v40_v23 = vld [vmem:[%s327_s1 + $0xc0] sm:$0xff]  ;;  %v41_v24 = vld [vmem:[%s327_s1 + $0xc8] sm:$0xff] }
   0x7   :  { %v15_v25 = vld [vmem:[%s328_s0 + $0x8] sm:$0xff]  ;;  %v181_v26 = vpack.c.bf16 %v23_v22, %v22_v21  ;;  %v183_v27 = vpack.c.bf16 %v41_v24, %v40_v23  ;;  %v24_v28 = vld [vmem:[%s327_s1 + $0x40] sm:$0xff]  ;;  %v42_v30 = vld [vmem:[%s327_s1 + $0xd0] sm:$0xff] }
   0x8   :  { %119 = vmatprep.mubr.f32.mxu0 %v15_v25  ;;  %v25_v29 = vld [vmem:[%s327_s1 + $0x48] sm:$0xff]  ;;  %v43_v31 = vld [vmem:[%s327_s1 + $0xd8] sm:$0xff]  ;;  %v26_v34 = vld [vmem:[%s327_s1 + $0x50] sm:$0xff] }
   0x9   :  { %174 = vmatpush3.bf16.msra.mxu0 %v173_v13  ;;  %v185_v32 = vpack.c.bf16 %v25_v29, %v24_v28  ;;  %v187_v33 = vpack.c.bf16 %v43_v31, %v42_v30  ;;  %v27_v35 = vld [vmem:[%s327_s1 + $0x58] sm:$0xff]  ;;  %v44_v36 = vld [vmem:[%s327_s1 + $0xe0] sm:$0xff]  ;;  %v45_v37 = vld [vmem:[%s327_s1 + $0xe8] sm:$0xff] }
   0xa   :  { %176 = vmatprep.subr.bf16.mxu0 %v175_v14  ;;  %v189_v38 = vpack.c.bf16 %v27_v35, %v26_v34  ;;  %v191_v39 = vpack.c.bf16 %v45_v37, %v44_v36  ;;  %v28_v40 = vld [vmem:[%s327_s1 + $0x60] sm:$0xff]  ;;  %v29_v41 = vld [vmem:[%s327_s1 + $0x68] sm:$0xff]  ;;  %v46_v42 = vld [vmem:[%s327_s1 + $0xf0] sm:$0xff] }
   0xb   :  { %v47_v43 = vld [vmem:[%s327_s1 + $0xf8] sm:$0xff]  ;;  %v193_v44 = vpack.c.bf16 %v29_v41, %v28_v40  ;;  %v30_v46 = vld [vmem:[%s327_s1 + $0x70] sm:$0xff]  ;;  %v14_v49 = vld [vmem:[%s328_s0] sm:$0xff] }
   0xc   :  { %v195_v45 = vpack.c.bf16 %v47_v43, %v46_v42  ;;  %v31_v47 = vld [vmem:[%s327_s1 + $0x78] sm:$0xff]  ;;  %v131_v51 = vld [vmem:[%s329_s2] ss:$0 sm:$0xff] }
   0xd   :  { %178 = vmatpush3.bf16.msra.mxu0 %v177_v19  ;;  %v197_v48 = vpack.c.bf16 %v31_v47, %v30_v46 }
   0xe   :  { %180 = vmatprep.subr.bf16.mxu0 %v179_v20 }
  0x11   :  { %182 = vmatpush3.bf16.msra.mxu0 %v181_v26 }
  0x12   :  { %184 = vmatprep.subr.bf16.mxu0 %v183_v27 }
  0x15   :  { %186 = vmatpush3.bf16.msra.mxu0 %v185_v32 }
  0x16   :  { %188 = vmatprep.subr.bf16.mxu0 %v187_v33 }
  0x19   :  { %190 = vmatpush3.bf16.msra.mxu0 %v189_v38 }
  0x1a   :  { %192 = vmatprep.subr.bf16.mxu0 %v191_v39 }
  0x1d   :  { %194 = vmatpush3.bf16.msra.mxu0 %v193_v44 }
  0x1e   :  { %196 = vmatprep.subr.bf16.mxu0 %v195_v45 }
  0x21   :  { %198 = vmatpush3.bf16.msra.mxu0 %v197_v48 }
  0x24   :  { %120 = vmatmul.mubr.f32.vlgmr.msra.gmra.mrb[0].mxu0 %v14_v49 }
  0xf7   :  { %v164_v50 = vpop.f32.mrb[0].mxu0 }
  0xf8   :  { %v165_v52 = vpop.f32.mrb[1].mxu0 }
  0xf9   :  { %v166_v53 = vadd.f32 %v165_v52, %v164_v50 }
  0xfb   :  { %v122_v54 = vadd.f32 %v166_v53, %v131_v51 }
  0xfd   :  { %126 = vst.msk [vmem:[%s330_s3] sm:$0xff] %vm125_vm0, %v122_v54 }

// kernel: better_lstm_forward.3
= control target key start
LH: loop header
LB: loop body
LE: loop exit
PB: predicated region body
PF: predicated region fallthrough
CT: control target
= control target key end

     0   :  { %s5813_s0 = inlined_call_operand.vmem [shape: f32[1,16,8,64], index: 0, kind: input, shape index: {}]   ;;  %s5814_s1 = inlined_call_operand.hbm [shape: bf16[2,64,512], index: 1, kind: input, shape index: {}]   ;;  %s5815_s2 = inlined_call_operand.hbm [shape: bf16[2,128,512], index: 2, kind: input, shape index: {}]   ;;  %s5816_s3 = inlined_call_operand.vmem [shape: f32[2,1,512], index: 3, kind: input, shape index: {}]   ;;  %s5817_s4 = inlined_call_operand.vmem [shape: s32[8,1], index: 4, kind: input, shape index: {}]   ;;  %s5818_s5 = inlined_call_operand.vmem [shape: f32[2,16,8,128], index: 5, kind: output, shape index: {0}]   ;;  %s5819_s6 = inlined_call_operand.hbm [shape: f32[2,8,128], index: 6, kind: output, shape index: {1}]   ;;  %s5820_s7 = inlined_call_operand.hbm [shape: f32[2,8,128], index: 7, kind: output, shape index: {2}]  }
   0x1   :  { %5904 = sst [smem:[#allocation80_spill]] %s5814_s1 }
   0x2   :  { %5905 = sst [smem:[#allocation81_spill]] %s5815_s2 }
   0x3   :  { %13 = vsyncpa [#allocation3], 0 }
   0x4   :  { %15 = vsyncpa [#allocation3 + $0x1], 0 }
   0x5   :  { %16 = vsyncpa [#allocation6], 0 }
   0x6   :  { %18 = vsyncpa [#allocation6 + $0x1], 0 }
   0x7   :  { %19 = vsyncpa [#allocation4], 0 }
   0x8   :  { %21 = vsyncpa [#allocation4 + $0x1], 0 }
   0x9   :  { %22 = vsyncpa [#allocation9], 0 }
   0xa   :  { %24 = vsyncpa [#allocation9 + $0x1], 0  ;;  %s4211_s24 = smov 0   ;;  %s4213_s25 = smov 0  }
   0xb   :  { %s4215_s26 = smov 0   ;;  %s4217_s27 = smov 0  }
   0xc   :  { %s4219_s28 = smov 0   ;;  %s4221_s29 = smov 0  }
   0xd   :  { %s4223_s30 = smov 0   ;;  %s4225_s8 = smov 0  }
   0xe LB: > { %5906 = sst [smem:[#allocation14_spill]] %s4131_s24  ;;  %s3403_s9 = sadd.s32 4294967295, %s4159_s8   ;;  %s4159_s8 = sphi %s4225_s8, %s30_s8   ;;  %s4155_s30 = sphi %s4223_s30, %s6072_s30   ;;  %s4151_s29 = sphi %s4221_s29, %s6071_s29   ;;  %s4147_s28 = sphi %s4219_s28, %s6070_s28   ;;  %s4143_s27 = sphi %s4217_s27, %s6069_s27   ;;  %s4139_s26 = sphi %s4215_s26, %s6068_s26   ;;  %s4135_s25 = sphi %s4213_s25, %s6067_s25   ;;  %s4131_s24 = sphi %s4211_s24, %s6066_s24  }
   0xf   : > { %5907 = sst [smem:[#allocation15_spill]] %s4135_s25  ;;  %s3404_s10 = sadd.s32 4294967294, %s4159_s8  }
  0x10   : > { %5908 = sst [smem:[#allocation16_spill]] %s4139_s26  ;;  %s39_s11 = sadd.s32 1, %s4151_s29 }
  0x11   : > { %5909 = sst [smem:[#allocation17_spill]] %s4151_s29  ;;  %s42_s12 = sadd.s32 1, %s4155_s30 }
  0x12   : > { %5910 = sst [smem:[#allocation18_spill]] %s4155_s30  ;;  %p40_p0 = scmp.ge.s32.totalorder %s39_s11, 2 }
  0x13   : > { %s85_s13 = sadd.s32 1, %s4139_s26  ;;  %p92_p1 = scmp.ne.s32.totalorder %s4139_s26, %s4135_s25 }
  0x14   : > { %p93_p2 = scmp.eq.s32.totalorder %s4159_s8, 0  ;;  %s6074_s11 = smov (%p40_p0, %s39_s11), 0 }
  0x15   : > { %5911 = sst [smem:[#allocation19_spill]] %s6074_s11  ;;  %s6076_s12 = smov (!%p40_p0, %s42_s12), %s4155_s30 }
  0x16   : > { %p4262_p3 = por %p93_p2, %p92_p1  ;;  %p98_p4 = scmp.ne.s32.totalorder %s4135_s25, %s4131_s24 }
  0x17   : > { %p44_p5 = scmp.ge.s32.totalorder %s6076_s12, 2  ;;  %p99_p6 = scmp.eq.s32.totalorder %s3403_s9, 0 }
  0x18   : > { %p233_p7 = scmp.eq.s32.totalorder %s3403_s9, 3  ;;  %p239_p8 = scmp.eq.s32.totalorder %s3404_s10, 3 }
  0x19   : > { %s6078_s12 = smov (%p44_p5, %s6076_s12), 0  ;;  %p4270_p9 = por %p99_p6, %p98_p4 }
  0x1a   : > { %5913 = sst [smem:[#allocation20_spill]] %s6078_s12  ;;  %p4274_p10 = por %p233_p7, %p92_p1 }
  0x1b   : > { %s5914_s15 = scalar_select %p4270_p9, 1, 0 }
  0x1c   : > { %s5915_s16 = scalar_select %p4274_p10, 1, 0 }
  0x1d   : > { %s82_s17 = ssub.s32 %s4155_s30, %s6078_s12  ;;  %p4280_p11 = por %p239_p8, %p98_p4 }
  0x1e   : > { %p83_p12 = scmp.eq.s32.totalorder %s82_s17, 0  ;;  %p3609_p13 = scmp.lt.s32.totalorder %s4159_s8, 4 }
  0x1f   : > { %s5916_s18 = scalar_select %p4280_p11, 1, 0 }
  0x20   : > { %s4286_s19 = sand.u32 1, %s4139_s26   ;;  %s3585_s22 = sshll.u32 %s4155_s30, 11 }
  0x21   : > { %5917 = sst [smem:[#allocation21_spill]] %s5916_s18  ;;  %s3407_s21 = sshll.u32 %s4286_s19, 7 }
  0x22   : > { %s4289_s20 = scalar_select %p83_p12, %s4139_s26, %s85_s13  }
  0x23   : > { %s5919_s1 = sld [smem:[#allocation80_spill]]  ;;  %s311_s12 = scalar_lea.vmem [#allocation2], %s3407_s21 }
  0x24   : > { %5918 = sst [smem:[#allocation22_spill]] %s4289_s20  ;;  %s318_s17 = sshll.u32 %s311_s12, 4  ;;  %s4298_s17 = int_to_ptr.vmem [resolvable:$true] %s318_s17 }
  0x25   : > { %p4302_p0 = pnand %p3609_p13, %p4262_p3 }
  0x27   : > { %p3967_p4 = pneg %p4302_p0 }
  0x29   : > { %s4296_s10 = scalar_lea.hbm %s5919_s1, %s3585_s22  ;;  %s3970_s14 = scalar_lea.hbm %s5919_s1, 4096 }
  0x2a   : > { %s3965_s23 = scalar_lea.hbm %s4296_s10, 2048  ;;  %p3971_p3 = scmp.lt.u32.totalorder %s4296_s10, %s5919_s1 }
  0x2b   : > { %p3966_p2 = scmp.ne.s32.totalorder %s4296_s10, %s3965_s23  ;;  %p3972_p7 = scmp.lt.u32.totalorder %s3970_s14, %s3965_s23 }
  0x2c   : > { %p3974_p12 = scmp.lt.u32.totalorder %s3965_s23, %s4296_s10 }
  0x2d   : > { %p3968_p5 = pnand %p3967_p4, %p3966_p2  ;;  %p3973_p8 = por %p3972_p7, %p3971_p3 }
  0x2f   : > { %p3969_p6 = pneg %p3968_p5  ;;  %p3975_p13 = por %p3974_p12, %p3973_p8 }
  0x31   : > { %p3976_p1 = pnand %p3975_p13, %p3969_p6 }
  0x33   : > { %3979 = shalt.err (!%p3976_p1)
}
  0x34   : > { %s3980_s13 = scalar_lea.vmem %s4298_s17, 2048  ;;  %s4161_s12 = smov [#allocation2]  }
  0x35   : > { %p3981_p2 = scmp.ne.s32.totalorder %s4298_s17, %s3980_s13  ;;  %s3985_s21 = sshll.u32 %s4161_s12, 4  ;;  %s3986_s21 = int_to_ptr.vmem [resolvable:$false] %s3985_s21 }
  0x36   : > { %s3987_s22 = scalar_lea.vmem %s3986_s21, 4096  ;;  %p3988_p10 = scmp.lt.s32.totalorder %s4298_s17, %s3986_s21 }
  0x37   : > { %p3983_p5 = pnand %p3981_p2, %p3967_p4  ;;  %p3989_p3 = scmp.lt.s32.totalorder %s3987_s22, %s3980_s13 }
  0x39   : > { %p3984_p11 = pneg %p3983_p5  ;;  %p3990_p7 = por %p3989_p3, %p3988_p10 }
  0x3b   : > { %p3991_p8 = pnand %p3990_p7, %p3984_p11 }
  0x3d   : > { %3994 = shalt.err (!%p3991_p8)
}
  0x3e   : > { %s5825_s23 = smov 256   ;;  %s4163_s14 = smov 16  }
  0x3f   : > { %s5921_s13 = scalar_lea.sflag [#allocation3], %s4286_s19  ;;  %p354_p10 = scmp.lt.s32.totalorder %s4159_s8, 5 }
  0x40   : > { %3598 = dma.hbm_to_vmem [thread:$0]  (!%p4302_p0), %s4296_s10, 2048, %s4298_s17, %s5921_s13, %s5825_s23, %s5825_s23, %s4163_s14  }
  0x41   : > { %s3410_s9 = sshll.u32 %s4286_s19, 8  ;;  %s3586_s12 = sshll.u32 %s4155_s30, 12 }
  0x42   : > { %p5922_p11 = scmp.ge.s32.totalorder %s4159_s8, 1  ;;  %s5924_s2 = sld [smem:[#allocation81_spill]] }
  0x43   : > { %s332_s20 = scalar_lea.vmem [#allocation5], %s3410_s9  ;;  %s329_s10 = scalar_lea.sflag [#allocation6], %s4286_s19 }
  0x44   : > { %p4343_p1 = pnand %p5922_p11, %p354_p10  ;;  %s339_s26 = sshll.u32 %s332_s20, 4  ;;  %s4352_s26 = int_to_ptr.vmem [resolvable:$true] %s339_s26 }
  0x48   : > { %s4350_s29 = scalar_lea.hbm %s5924_s2, %s3586_s12  ;;  %s4000_s1 = scalar_lea.hbm %s5924_s2, 8192 }
  0x49   : > { %s3995_s17 = scalar_lea.hbm %s4350_s29, 4096  ;;  %p4001_p2 = scmp.lt.u32.totalorder %s4350_s29, %s5924_s2 }
  0x4a   : > { %p3996_p6 = scmp.ne.s32.totalorder %s4350_s29, %s3995_s17  ;;  %p4002_p5 = scmp.lt.u32.totalorder %s4000_s1, %s3995_s17 }
  0x4b   : > { %p4004_p7 = scmp.lt.u32.totalorder %s3995_s17, %s4350_s29 }
  0x4c   : > { %p3998_p12 = pnand %p3996_p6, %p3967_p4  ;;  %p4003_p3 = por %p4002_p5, %p4001_p2 }
  0x4e   : > { %p3999_p13 = pneg %p3998_p12  ;;  %p4005_p8 = por %p4004_p7, %p4003_p3 }
  0x50   : > { %p4006_p10 = pnand %p4005_p8, %p3999_p13 }
  0x52   : > { %4009 = shalt.err (!%p4006_p10)
}
  0x53   : > { %s4010_s20 = scalar_lea.vmem %s4352_s26, 4096  ;;  %s4164_s23 = smov [#allocation5]  }
  0x54   : > { %p4011_p11 = scmp.ne.s32.totalorder %s4352_s26, %s4010_s20  ;;  %s4015_s9 = sshll.u32 %s4164_s23, 4  ;;  %s4016_s9 = int_to_ptr.vmem [resolvable:$false] %s4015_s9 }
  0x55   : > { %s4017_s13 = scalar_lea.vmem %s4016_s9, 8192  ;;  %p4018_p9 = scmp.lt.s32.totalorder %s4352_s26, %s4016_s9 }
  0x56   : > { %p4013_p6 = pnand %p4011_p11, %p3967_p4  ;;  %p4019_p2 = scmp.lt.s32.totalorder %s4017_s13, %s4010_s20 }
  0x58   : > { %p4014_p12 = pneg %p4013_p6  ;;  %p4020_p5 = por %p4019_p2, %p4018_p9 }
  0x5a   : > { %p4021_p3 = pnand %p4020_p5, %p4014_p12 }
  0x5c   : > { %4024 = shalt.err (!%p4021_p3)
}
  0x5d   : > { %s5925_s17 = smov 256   ;;  %358 = sbr.rel (%p4343_p1) target bundleno = 4670 (0x123e), region = 40 }
  0x5e   : > { %3601 = dma.hbm_to_vmem [thread:$0]  (!%p4302_p0), %s4350_s29, 4096, %s4352_s26, %s329_s10, %s5925_s17, %s5925_s17, %s4163_s14  }
  0x64   : > { %s4386_s1 = sand.u32 1, %s4135_s25   ;;  %p5926_p9 = scmp.ne.s32.totalorder %s5914_s15, 0 }
  0x65   : > { %s3414_s12 = sshll.u32 %s4386_s1, 7  ;;  %s361_s22 = scalar_lea.sflag [#allocation3], %s4386_s1 }
  0x66   : > { %s4390_s11 = scalar_lea.vmem [#allocation2], %s3414_s12 }
  0x67   : > { %4114 = dma.done.wait (%p5926_p9), %s361_s22, 2048  }
  0x68   : > { %4116 = vsyncadd (%p5926_p9), %s361_s22, 4294965248  ;;  %s3415_s26 = sshll.u32 %s4386_s1, 8  ;;  %s370_s29 = scalar_lea.sflag [#allocation6], %s4386_s1 }
  0x69   : > { %s4398_s19 = scalar_lea.vmem [#allocation5], %s3415_s26 }
  0x6a   : > { %4118 = dma.done.wait (%p5926_p9), %s370_s29, 4096  }
  0x6b   : > { %4120 = vsyncadd (%p5926_p9), %s370_s29, 4294963200  ;;  %s3416_s14 = sshll.u32 %s4386_s1, 3  ;;  %s442_s21 = ssub.s32 1, %s4147_s28 }
  0x6c   : > { %s443_s10 = smul.u32 %s4143_s27, %s442_s21  ;;  %s5829_s20 = ssub.s32 1, %s4143_s27 }
  0x6d   : > { %s445_s23 = smul.u32 %s4147_s28, %s5829_s20  ;;  %p458_p0 = scmp.lt.s32.totalorder %s4147_s28, 1 }
  0x6e   : > { %s4428_s24 = scalar_lea.vmem [#allocation7], %s3416_s14  ;;  %p3424_p1 = scmp.ne.s32.totalorder %s4143_s27, 0 }
  0x6f   : > { %s446_s9 = sadd.s32 %s445_s23, %s443_s10  ;;  %v4165_v0 = vmov (!%p3424_p1), 0.0  }
  0x70   : > { %s3418_s13 = sshll.u32 %s446_s9, 3  ;;  %487 = vst [vmem:[%s4428_s24] sm:$0xff] (!%p3424_p1), %v4165_v0 }
  0x71   : > { %p448_p4 = scmp.lt.s32.totalorder %s3418_s13, 15 }
  0x72   : > { %s459_s15 = scalar_select %p458_p0, %s4147_s28, 1 }
  0x73   : > { %s6080_s13 = smov (!%p448_p4, %s3418_s13), 15  ;;  %486 = sbr.rel (%p3424_p1) target bundleno = 122 (0x7a), region = 52 }
  0x74   : > { %s3420_s17 = sshll.u32 %s459_s15, 2  ;;  %s3422_s12 = sshll.u32 %s459_s15, 4 }
  0x75   : > { %s3419_s22 = sshll.u32 %s6080_s13, 3  ;;  %s4416_s2 = scalar_lea.vmem %s5816_s3, %s3420_s17 }
  0x76   : > { %s4421_s21 = scalar_lea.vmem %s5813_s0, %s3419_s22  ;;  %s473_s20 = sadd.s32 %s3422_s12, %s6080_s13 }
  0x77   : > { %s3423_s18 = sshll.u32 %s473_s20, 3  ;;  %s4430_s15 = scalar_lea.vmem [#allocation8], %s3416_s14 }
  0x78   : > { %s4426_s9 = scalar_lea.vmem %s5818_s5, %s3423_s18  ;;  %488 = vst [vmem:[%s4430_s15] sm:$0xff] (!%p3424_p1), %v4165_v0 }
  0x7a PF: > { %v3681_v1 = vld [vmem:[%s4390_s11 + $0x4] ss:$16 sps:$4 sm:$0xff]   ;;  %v3683_v2 = vld [vmem:[%s4390_s11 + $0xc] ss:$16 sps:$4 sm:$0xff]   ;;  %v4166_v3 = vmov 0   ;;  %vm598_vm0 = vcmask 523264   ;;  %v758_v63 = vlaneseq }
  0x7b   : > { %643 = vmatprep.mubr.bf16.mxu0 %v4166_v3  ;;  %716 = vmatprep.mubr.bf16.mxu1 %v4166_v3  ;;  %v3685_v4 = vld [vmem:[%s4390_s11] ss:$16 sps:$4 sm:$0xff]   ;;  %v3686_v5 = vld [vmem:[%s4390_s11 + $0x8] ss:$16 sps:$4 sm:$0xff]   ;;  %v3687_v6 = vld [vmem:[%s4390_s11 + $0x24] ss:$16 sps:$4 sm:$0xff]  }
  0x7c   : > { %611 = vmatprep.subr.bf16.mxu0 %v3681_v1  ;;  %684 = vmatprep.subr.bf16.mxu1 %v3683_v2  ;;  %v3689_v7 = vld [vmem:[%s4390_s11 + $0x2c] ss:$16 sps:$4 sm:$0xff]   ;;  %v3691_v8 = vld [vmem:[%s4390_s11 + $0x20] ss:$16 sps:$4 sm:$0xff]   ;;  %v3692_v9 = vld [vmem:[%s4390_s11 + $0x28] ss:$16 sps:$4 sm:$0xff]  }
  0x7d   : > { %612 = vmatpush1.bf16.msra.mxu0 %v3685_v4  ;;  %685 = vmatpush1.bf16.msra.mxu1 %v3686_v5  ;;  %v3693_v10 = vld [vmem:[%s4390_s11 + $0x44] ss:$16 sps:$4 sm:$0xff]   ;;  %v3695_v11 = vld [vmem:[%s4390_s11 + $0x4c] ss:$16 sps:$4 sm:$0xff]   ;;  %v3697_v12 = vld [vmem:[%s4390_s11 + $0x40] ss:$16 sps:$4 sm:$0xff]  }
  0x7e   : > { %613 = vmatprep.subr.bf16.mxu0 %v3687_v6  ;;  %686 = vmatprep.subr.bf16.mxu1 %v3689_v7  ;;  %v3698_v13 = vld [vmem:[%s4390_s11 + $0x48] ss:$16 sps:$4 sm:$0xff]   ;;  %v3699_v14 = vld [vmem:[%s4390_s11 + $0x64] ss:$16 sps:$4 sm:$0xff]   ;;  %v3701_v15 = vld [vmem:[%s4390_s11 + $0x6c] ss:$16 sps:$4 sm:$0xff]  }
  0x7f   : > { %v3703_v16 = vld [vmem:[%s4390_s11 + $0x60] ss:$16 sps:$4 sm:$0xff]   ;;  %v3704_v17 = vld [vmem:[%s4390_s11 + $0x68] ss:$16 sps:$4 sm:$0xff]   ;;  %v759_v0 = vshrl.u32 %v758_v63, 7  ;;  %p3449_p13 = scmp.ne.s32.totalorder %s4147_s28, 0 }
  0x80   : > { %v506_v18 = vld [vmem:[%s4421_s21] sm:$0xff]  ;;  %v507_v19 = vld [vmem:[%s4421_s21 + $0x8] sm:$0xff]  ;;  %v508_v21 = vld [vmem:[%s4421_s21 + $0x10] sm:$0xff] }
  0x81   : > { %614 = vmatpush1.bf16.msra.mxu0 %v3691_v8  ;;  %687 = vmatpush1.bf16.msra.mxu1 %v3692_v9  ;;  %v514_v20 = vpack.c.bf16 %v507_v19, %v506_v18  ;;  %v509_v22 = vld [vmem:[%s4421_s21 + $0x18] sm:$0xff]  ;;  %v510_v24 = vld [vmem:[%s4421_s21 + $0x20] sm:$0xff]  ;;  %v511_v25 = vld [vmem:[%s4421_s21 + $0x28] sm:$0xff]  ;;  %v760_v1 = vsub.s32 0, %v759_v0  ;;  %v768_v2 = vsub.s32 2, %v759_v0  ;;  %v764_v4 = vsub.s32 1, %v759_v0 }
  0x82   : > { %615 = vmatprep.subr.bf16.mxu0 %v3693_v10  ;;  %688 = vmatprep.subr.bf16.mxu1 %v3695_v11  ;;  %v515_v23 = vpack.c.bf16 %v509_v22, %v508_v21  ;;  %v516_v26 = vpack.c.bf16 %v511_v25, %v510_v24  ;;  %v512_v27 = vld [vmem:[%s4421_s21 + $0x30] sm:$0xff]  ;;  %v513_v28 = vld [vmem:[%s4421_s21 + $0x38] sm:$0xff]  ;;  %v4468_v30 = vld [vmem:[%s4398_s19] sm:$0xff]  ;;  %v772_v5 = vsub.s32 3, %v759_v0 }
  0x83   : > { %v517_v29 = vpack.c.bf16 %v513_v28, %v512_v27  ;;  %5927 = vst [vmem:[#allocation23_spill] sm:$0xff] %v4468_v30  ;;  %v4471_v31 = vld [vmem:[%s4398_s19 + $0x8] sm:$0xff]  ;;  %v4474_v32 = vld [vmem:[%s4398_s19 + $0x10] sm:$0xff]  ;;  %v4477_v33 = vld [vmem:[%s4398_s19 + $0x18] sm:$0xff] }
  0x84   : > { %5928 = vst [vmem:[#allocation24_spill] sm:$0xff] %v4471_v31  ;;  %5929 = vst [vmem:[#allocation25_spill] sm:$0xff] %v4474_v32  ;;  %v4480_v34 = vld [vmem:[%s4398_s19 + $0x20] sm:$0xff]  ;;  %v4483_v35 = vld [vmem:[%s4398_s19 + $0x28] sm:$0xff] }
  0x85   : > { %616 = vmatpush1.bf16.msra.mxu0 %v3697_v12  ;;  %689 = vmatpush1.bf16.msra.mxu1 %v3698_v13  ;;  %5930 = vst [vmem:[#allocation26_spill] sm:$0xff] %v4477_v33  ;;  %5931 = vst [vmem:[#allocation27_spill] sm:$0xff] %v4480_v34  ;;  %v4486_v36 = vld [vmem:[%s4398_s19 + $0x30] sm:$0xff]  ;;  %v4489_v37 = vld [vmem:[%s4398_s19 + $0x38] sm:$0xff] }
  0x86   : > { %617 = vmatprep.subr.bf16.mxu0 %v3699_v14  ;;  %690 = vmatprep.subr.bf16.mxu1 %v3701_v15  ;;  %5932 = vst [vmem:[#allocation28_spill] sm:$0xff] %v4483_v35  ;;  %5933 = vst [vmem:[#allocation29_spill] sm:$0xff] %v4486_v36  ;;  %v4492_v38 = vld [vmem:[%s4398_s19 + $0x40] sm:$0xff]  ;;  %v4495_v39 = vld [vmem:[%s4398_s19 + $0x48] sm:$0xff] }
  0x87   : > { %5934 = vst [vmem:[#allocation30_spill] sm:$0xff] %v4489_v37  ;;  %5935 = vst [vmem:[#allocation31_spill] sm:$0xff] %v4492_v38  ;;  %v4498_v40 = vld [vmem:[%s4398_s19 + $0x50] sm:$0xff]  ;;  %v4501_v41 = vld [vmem:[%s4398_s19 + $0x58] sm:$0xff] }
  0x88   : > { %5936 = vst [vmem:[#allocation32_spill] sm:$0xff] %v4495_v39  ;;  %5937 = vst [vmem:[#allocation33_spill] sm:$0xff] %v4498_v40  ;;  %v4504_v42 = vld [vmem:[%s4398_s19 + $0x60] sm:$0xff]  ;;  %v4507_v43 = vld [vmem:[%s4398_s19 + $0x68] sm:$0xff] }
  0x89   : > { %618 = vmatpush1.bf16.msra.mxu0 %v3703_v16  ;;  %691 = vmatpush1.bf16.msra.mxu1 %v3704_v17  ;;  %5938 = vst [vmem:[#allocation34_spill] sm:$0xff] %v4501_v41  ;;  %5939 = vst [vmem:[#allocation35_spill] sm:$0xff] %v4504_v42  ;;  %v4510_v44 = vld [vmem:[%s4398_s19 + $0x70] sm:$0xff]  ;;  %v4513_v45 = vld [vmem:[%s4398_s19 + $0x78] sm:$0xff] }
  0x8a   : > { %5940 = vst [vmem:[#allocation36_spill] sm:$0xff] %v4507_v43  ;;  %5941 = vst [vmem:[#allocation37_spill] sm:$0xff] %v4510_v44  ;;  %v4516_v46 = vld [vmem:[%s4398_s19 + $0x80] sm:$0xff]  ;;  %v4519_v47 = vld [vmem:[%s4398_s19 + $0x88] sm:$0xff] }
  0x8b   : > { %5942 = vst [vmem:[#allocation38_spill] sm:$0xff] %v4513_v45  ;;  %5943 = vst [vmem:[#allocation39_spill] sm:$0xff] %v4516_v46  ;;  %v4522_v48 = vld [vmem:[%s4398_s19 + $0x90] sm:$0xff]  ;;  %v4525_v49 = vld [vmem:[%s4398_s19 + $0x98] sm:$0xff] }
  0x8c   : > { %3441 = vmatmul.mubr.msk.bf16.vlgmr.msra.gmra.mrb[0].mxu0 %vm598_vm0, %v514_v20  ;;  %3445 = vmatmul.mubr.msk.bf16.vlgmr.msra.gmra.mrb[0].mxu1 %vm598_vm0, %v514_v20  ;;  %5944 = vst [vmem:[#allocation40_spill] sm:$0xff] %v4519_v47  ;;  %5945 = vst [vmem:[#allocation41_spill] sm:$0xff] %v4522_v48  ;;  %v4528_v50 = vld [vmem:[%s4398_s19 + $0xa0] sm:$0xff]  ;;  %v4531_v51 = vld [vmem:[%s4398_s19 + $0xa8] sm:$0xff] }
  0x8d   : > { %653 = vmatprep.mubr.bf16.mxu0 %v4166_v3  ;;  %726 = vmatprep.mubr.bf16.mxu1 %v4166_v3  ;;  %5946 = vst [vmem:[#allocation42_spill] sm:$0xff] %v4525_v49  ;;  %5947 = vst [vmem:[#allocation43_spill] sm:$0xff] %v4528_v50  ;;  %v4534_v52 = vld [vmem:[%s4398_s19 + $0xb0] sm:$0xff]  ;;  %v4537_v53 = vld [vmem:[%s4398_s19 + $0xb8] sm:$0xff] }
  0x8e   : > { %5948 = vst [vmem:[#allocation44_spill] sm:$0xff] %v4531_v51  ;;  %5949 = vst [vmem:[#allocation45_spill] sm:$0xff] %v4534_v52  ;;  %v4540_v54 = vld [vmem:[%s4398_s19 + $0xc0] sm:$0xff]  ;;  %v4543_v55 = vld [vmem:[%s4398_s19 + $0xc8] sm:$0xff] }
  0x8f   : > { %5950 = vst [vmem:[#allocation46_spill] sm:$0xff] %v4537_v53  ;;  %5951 = vst [vmem:[#allocation47_spill] sm:$0xff] %v4540_v54  ;;  %v4546_v56 = vld [vmem:[%s4398_s19 + $0xd0] sm:$0xff]  ;;  %v4549_v57 = vld [vmem:[%s4398_s19 + $0xd8] sm:$0xff] }
  0x90   : > { %5952 = vst [vmem:[#allocation48_spill] sm:$0xff] %v4543_v55  ;;  %5953 = vst [vmem:[#allocation49_spill] sm:$0xff] %v4546_v56  ;;  %v4552_v58 = vld [vmem:[%s4398_s19 + $0xe0] sm:$0xff]  ;;  %v4555_v59 = vld [vmem:[%s4398_s19 + $0xe8] sm:$0xff] }
  0x91   : > { %5954 = vst [vmem:[#allocation50_spill] sm:$0xff] %v4549_v57  ;;  %5955 = vst [vmem:[#allocation51_spill] sm:$0xff] %v4552_v58  ;;  %v4558_v60 = vld [vmem:[%s4398_s19 + $0xf0] sm:$0xff]  ;;  %v4561_v61 = vld [vmem:[%s4398_s19 + $0xf8] sm:$0xff] }
  0x92   : > { %5956 = vst [vmem:[#allocation52_spill] sm:$0xff] %v4555_v59  ;;  %5957 = vst [vmem:[#allocation53_spill] sm:$0xff] %v4558_v60  ;;  %v4566_v62 = vld [vmem:[%s5817_s4] sm:$0xff] }
  0x93   : > { %5958 = vst [vmem:[#allocation54_spill] sm:$0xff] %v4561_v61 }
  0x94   : > { %3442 = vmatmul.mubr.msk.bf16.gmra.mrb[4].mxu0 %vm598_vm0, %v515_v23  ;;  %3446 = vmatmul.mubr.msk.bf16.gmra.mrb[4].mxu1 %vm598_vm0, %v515_v23 }
  0x95   : > { %663 = vmatprep.mubr.bf16.mxu0 %v4166_v3  ;;  %736 = vmatprep.mubr.bf16.mxu1 %v4166_v3 }
  0x9c   : > { %3443 = vmatmul.mubr.msk.bf16.gmra.mrb[8].mxu0 %vm598_vm0, %v516_v26  ;;  %3447 = vmatmul.mubr.msk.bf16.gmra.mrb[8].mxu1 %vm598_vm0, %v516_v26 }
  0x9d   : > { %673 = vmatprep.mubr.bf16.mxu0 %v4166_v3  ;;  %746 = vmatprep.mubr.bf16.mxu1 %v4166_v3  ;;  %v505_v3 = vld [vmem:[%s4416_s2] sm:$0xf]  ;;  %s4686_s2 = sshll.u32 (!%p3449_p13), %s4143_s27, 3 }
  0x9e   : > { %v761_v6 = vrot.slane %v505_v3, %v760_v1  ;;  %v769_v7 = vrot.slane %v505_v3, %v768_v2  ;;  %v4569_v8 = vrot.slane %v505_v3, %v764_v4  ;;  %v4571_v9 = vrot.slane %v505_v3, %v772_v5  ;;  %s1242_s18 = sadd.s32 (!%p3449_p13), 1, %s4686_s2  ;;  %s1611_s11 = sadd.s32 (!%p3449_p13), 4, %s4686_s2 }
  0x9f   : > { %s1857_s19 = sadd.s32 (!%p3449_p13), 6, %s4686_s2  ;;  %s1365_s14 = sadd.s32 (!%p3449_p13), 2, %s4686_s2 }
  0xa0   : > { %s1488_s20 = sadd.s32 (!%p3449_p13), 3, %s4686_s2  ;;  %s1734_s13 = sadd.s32 (!%p3449_p13), 5, %s4686_s2 }
  0xa1   : > { %s1980_s17 = sadd.s32 (!%p3449_p13), 7, %s4686_s2 }
  0xa4   : > { %3444 = vmatmul.mubr.msk.bf16.gmra.mrb[12].mxu0 %vm598_vm0, %v517_v29  ;;  %3448 = vmatmul.mubr.msk.bf16.gmra.mrb[12].mxu1 %vm598_vm0, %v517_v29 }
 0x15f   : > { %v645_v10 = vpop.f32.mrb[0].mxu0  ;;  %v718_v11 = vpop.f32.mrb[0].mxu1 }
 0x160   : > { %v4573_v12 = vadd.f32 %v761_v6, %v645_v10  ;;  %v4575_v13 = vadd.f32 %v769_v7, %v718_v11  ;;  %v647_v14 = vpop.f32.mrb[1].mxu0  ;;  %v720_v15 = vpop.f32.mrb[1].mxu1 }
 0x161   : > { %v4578_v16 = vadd.f32 %v4569_v8, %v647_v14  ;;  %v4581_v17 = vadd.f32 %v4571_v9, %v720_v15  ;;  %v649_v18 = vpop.f32.mrb[2].mxu0  ;;  %v722_v19 = vpop.f32.mrb[2].mxu1 }
 0x162   : > { %5959 = vst [vmem:[#allocation55_spill] sm:$0xff] %v4573_v12  ;;  %5960 = vst [vmem:[#allocation56_spill] sm:$0xff] %v4575_v13  ;;  %v4583_v20 = vadd.f32 %v761_v6, %v649_v18  ;;  %v4585_v21 = vadd.f32 %v769_v7, %v722_v19  ;;  %v651_v22 = vpop.f32.mrb[3].mxu0  ;;  %v724_v23 = vpop.f32.mrb[3].mxu1 }
 0x163   : > { %5961 = vst [vmem:[#allocation57_spill] sm:$0xff] %v4578_v16  ;;  %5962 = vst [vmem:[#allocation58_spill] sm:$0xff] %v4581_v17  ;;  %v4588_v24 = vadd.f32 %v4569_v8, %v651_v22  ;;  %v4591_v25 = vadd.f32 %v4571_v9, %v724_v23 }
 0x164   : > { %5963 = vst [vmem:[#allocation59_spill] sm:$0xff] %v4585_v21 }
 0x165   : > { %5964 = vst [vmem:[#allocation60_spill] sm:$0xff] %v4591_v25 }
 0x167   : > { %v655_v26 = vpop.f32.mrb[4].mxu0  ;;  %v728_v27 = vpop.f32.mrb[4].mxu1 }
 0x168   : > { %v4593_v28 = vadd.f32 %v761_v6, %v655_v26  ;;  %v4595_v29 = vadd.f32 %v769_v7, %v728_v27  ;;  %v657_v63 = vpop.f32.mrb[5].mxu0  ;;  %v730_v0 = vpop.f32.mrb[5].mxu1 }
 0x169   : > { %v4598_v1 = vadd.f32 %v4569_v8, %v657_v63  ;;  %v4601_v2 = vadd.f32 %v4571_v9, %v730_v0  ;;  %v659_v3 = vpop.f32.mrb[6].mxu0  ;;  %v732_v4 = vpop.f32.mrb[6].mxu1 }
 0x16a   : > { %v4603_v5 = vadd.f32 %v761_v6, %v659_v3  ;;  %v4605_v10 = vadd.f32 %v769_v7, %v732_v4  ;;  %v661_v11 = vpop.f32.mrb[7].mxu0  ;;  %v734_v14 = vpop.f32.mrb[7].mxu1 }
 0x16b   : > { %v4608_v15 = vadd.f32 %v4569_v8, %v661_v11  ;;  %v4611_v18 = vadd.f32 %v4571_v9, %v734_v14 }
 0x16c   : > { %5965 = vst [vmem:[#allocation61_spill] sm:$0xff] %v4605_v10 }
 0x16d   : > { %5966 = vst [vmem:[#allocation62_spill] sm:$0xff] %v4608_v15  ;;  %5967 = vst [vmem:[#allocation63_spill] sm:$0xff] %v4611_v18 }
 0x16f   : > { %v665_v19 = vpop.f32.mrb[8].mxu0  ;;  %v738_v22 = vpop.f32.mrb[8].mxu1 }
 0x170   : > { %v4613_v23 = vadd.f32 %v761_v6, %v665_v19  ;;  %v4615_v26 = vadd.f32 %v769_v7, %v738_v22  ;;  %v667_v27 = vpop.f32.mrb[9].mxu0  ;;  %v740_v63 = vpop.f32.mrb[9].mxu1 }
 0x171   : > { %v4618_v0 = vadd.f32 %v4569_v8, %v667_v27  ;;  %v4621_v3 = vadd.f32 %v4571_v9, %v740_v63  ;;  %v669_v4 = vpop.f32.mrb[10].mxu0  ;;  %v742_v11 = vpop.f32.mrb[10].mxu1 }
 0x172   : > { %5968 = vst [vmem:[#allocation64_spill] sm:$0xff] %v4613_v23  ;;  %5969 = vst [vmem:[#allocation65_spill] sm:$0xff] %v4615_v26  ;;  %v4623_v10 = vadd.f32 %v761_v6, %v669_v4  ;;  %v4625_v14 = vadd.f32 %v769_v7, %v742_v11  ;;  %v671_v18 = vpop.f32.mrb[11].mxu0  ;;  %v744_v15 = vpop.f32.mrb[11].mxu1 }
 0x173   : > { %5970 = vst [vmem:[#allocation66_spill] sm:$0xff] %v4618_v0  ;;  %5971 = vst [vmem:[#allocation67_spill] sm:$0xff] %v4621_v3  ;;  %v4628_v19 = vadd.f32 %v4569_v8, %v671_v18  ;;  %v4631_v22 = vadd.f32 %v4571_v9, %v744_v15 }
 0x174   : > { %5972 = vst [vmem:[#allocation68_spill] sm:$0xff] %v4623_v10  ;;  %5973 = vst [vmem:[#allocation69_spill] sm:$0xff] %v4625_v14 }
 0x175   : > { %5974 = vst [vmem:[#allocation70_spill] sm:$0xff] %v4628_v19  ;;  %5975 = vst [vmem:[#allocation71_spill] sm:$0xff] %v4631_v22 }
 0x177   : > { %v675_v26 = vpop.f32.mrb[12].mxu0  ;;  %v748_v27 = vpop.f32.mrb[12].mxu1  ;;  %846 = sbr.rel (%p3449_p13) target bundleno = 2498 (0x9c2), region = 56 }
 0x178   : > { %v4633_v0 = vadd.f32 %v761_v6, %v675_v26  ;;  %v4635_v63 = vadd.f32 %v769_v7, %v748_v27  ;;  %v677_v3 = vpop.f32.mrb[13].mxu0  ;;  %v750_v23 = vpop.f32.mrb[13].mxu1 }
 0x179   : > { %v4638_v4 = vadd.f32 %v4569_v8, %v677_v3  ;;  %v4641_v11 = vadd.f32 %v4571_v9, %v750_v23  ;;  %v679_v14 = vpop.f32.mrb[14].mxu0  ;;  %v752_v18 = vpop.f32.mrb[14].mxu1  ;;  %v4656_v23 = vcombine.high (!%p3449_p13), %v4468_v30, %v4474_v32  ;;  %v4682_v3 = vcombine.low (!%p3449_p13), %v4480_v34, %v4486_v36 }
 0x17a   : > { %5976 = vst [vmem:[#allocation72_spill] sm:$0xff] %v4633_v0  ;;  %5977 = vst [vmem:[#allocation73_spill] sm:$0xff] %v4635_v63  ;;  %v4643_v19 = vadd.f32 %v761_v6, %v679_v14  ;;  %v4645_v15 = vadd.f32 %v769_v7, %v752_v18  ;;  %v681_v22 = vpop.f32.mrb[15].mxu0  ;;  %v754_v10 = vpop.f32.mrb[15].mxu1  ;;  %v4660_v6 = vcombine.low (!%p3449_p13), %v4468_v30, %v4474_v32  ;;  %v1612_v30 = vstv (!%p3449_p13), %s1611_s11 }
 0x17b   : > { %5978 = vst [vmem:[#allocation74_spill] sm:$0xff] %v4638_v4  ;;  %5979 = vst [vmem:[#allocation75_spill] sm:$0xff] %v4641_v11  ;;  %v4648_v26 = vadd.f32 %v4569_v8, %v681_v22  ;;  %v4651_v27 = vadd.f32 %v4571_v9, %v754_v10  ;;  %v4664_v7 = vcombine.high (!%p3449_p13), %v4480_v34, %v4486_v36  ;;  %1011 = vmatprep.subr.bf16.mxu0 (!%p3449_p13), %v4656_v23 }
 0x17c   : > { %5980 = vst [vmem:[#allocation76_spill] sm:$0xff] %v4643_v19  ;;  %5981 = vst [vmem:[#allocation77_spill] sm:$0xff] %v4645_v15  ;;  %v4668_v8 = vcombine.high (!%p3449_p13), %v4471_v31, %v4477_v33  ;;  %v4673_v9 = vcombine.low (!%p3449_p13), %v4471_v31, %v4477_v33  ;;  %v4677_v10 = vcombine.high (!%p3449_p13), %v4483_v35, %v4489_v37  ;;  %1012 = vmatpush1.bf16.msra.mxu0 (!%p3449_p13), %v4660_v6  ;;  %v5840_v31 = vmov (!%p3449_p13), 0  }
 0x17d   : > { %5982 = vst [vmem:[#allocation78_spill] sm:$0xff] %v4648_v26  ;;  %5983 = vst [vmem:[#allocation79_spill] sm:$0xff] %v4651_v27  ;;  %1013 = vmatprep.subr.bf16.mxu0 (!%p3449_p13), %v4664_v7  ;;  %v4691_v14 = vcombine.high (!%p3449_p13), %v4492_v38, %v4498_v40  ;;  %v4696_v22 = vcombine.low (!%p3449_p13), %v4483_v35, %v4489_v37  ;;  %v4701_v18 = vcombine.high (!%p3449_p13), %v4495_v39, %v4501_v41 }
 0x17e   : > { %1052 = vmatprep.subr.bf16.mxu1 %v4668_v8  ;;  %1043 = vmatprep.mubr.bf16.mxu0 %v5840_v31  ;;  %v1121_v33 = vstv %s4686_s2  ;;  %v4709_v34 = vcombine.low %v4492_v38, %v4498_v40  ;;  %v4715_v35 = vcombine.high %v4504_v42, %v4510_v44  ;;  %v4720_v31 = vcombine.low %v4495_v39, %v4501_v41 }
 0x17f   : > { %1053 = vmatpush1.bf16.msra.mxu1 %v4673_v9  ;;  %v1243_v37 = vstv %s1242_s18  ;;  %v4725_v38 = vcombine.high %v4507_v43, %v4513_v45  ;;  %v5984_v40 = vmov 0   ;;  %vm1122_vm1 = vcmp.lt.s32.totalorder %v1121_v33, %v4566_v62 }
 0x180   : > { %1054 = vmatprep.subr.bf16.mxu1 %v4677_v10  ;;  %1014 = vmatpush1.bf16.msra.mxu0 %v4682_v3  ;;  %vm1244_vm2 = vcmp.lt.s32.totalorder %v1243_v37, %v4566_v62  ;;  %v1123_v36 = vsel %vm1122_vm1, 1, %v5984_v40  ;;  %v4736_v39 = vcombine.low %v4504_v42, %v4510_v44  ;;  %v4742_v33 = vcombine.high %v4516_v46, %v4522_v48 }
 0x181   : > { %1015 = vmatprep.subr.bf16.mxu0 %v4691_v14  ;;  %1084 = vmatprep.mubr.bf16.mxu1 %v5984_v40  ;;  %v4747_v37 = vcombine.low %v4507_v43, %v4513_v45  ;;  %v1245_v41 = vsel %vm1244_vm2, 1, %v5984_v40  ;;  %vm1613_vm3 = vcmp.lt.s32.totalorder %v1612_v30, %v4566_v62  ;;  %v1858_v42 = vstv %s1857_s19 }
 0x182   : > { %3705 = vset.pattern.permute.xlu0 %v5984_v40  ;;  %3706 = vset.pattern.permute.xlu1 %v5984_v40  ;;  %v4759_v44 = vcombine.low %v4516_v46, %v4522_v48  ;;  %v4764_v43 = vcombine.high %v4528_v50, %v4534_v52  ;;  %v4769_v45 = vcombine.low %v4519_v47, %v4525_v49  ;;  %v1614_v30 = vsel %vm1613_vm3, 1, %v5984_v40 }
 0x183   : > { %1055 = vmatpush1.bf16.msra.mxu1 %v4696_v22  ;;  %1125 = vperm.xlu0 %3705, %v1123_v36   ;;  %v4753_v36 = vcombine.high %v4519_v47, %v4525_v49  ;;  %v4775_v46 = vcombine.high %v4531_v51, %v4537_v53  ;;  %vm1859_vm4 = vcmp.lt.s32.totalorder %v1858_v42, %v4566_v62 }
 0x184   : > { %1056 = vmatprep.subr.bf16.mxu1 %v4701_v18  ;;  %1016 = vmatpush1.bf16.msra.mxu0 %v4709_v34  ;;  %v4786_v47 = vcombine.high %v4540_v54, %v4546_v56  ;;  %v4791_v49 = vcombine.low %v4531_v51, %v4537_v53  ;;  %v1860_v42 = vsel %vm1859_vm4, 1, %v5984_v40  ;;  %v4807_v51 = vcombine.high %v4552_v58, %v4558_v60 }
 0x185   : > { %1017 = vmatprep.subr.bf16.mxu0 %v4715_v35  ;;  %v4812_v53 = vcombine.low %v4543_v55, %v4549_v57 }
 0x187   : > { %1057 = vmatpush1.bf16.msra.mxu1 %v4720_v31  ;;  %1247 = vperm.xlu0 %3705, %v1245_v41   ;;  %v4781_v41 = vcombine.low %v4528_v50, %v4534_v52  ;;  %v4802_v50 = vcombine.low %v4540_v54, %v4546_v56  ;;  %v4817_v52 = vcombine.high %v4555_v59, %v4561_v61  ;;  %v4825_v54 = vld [vmem:[%s4428_s24] sm:$0xff] }
 0x188   : > { %1058 = vmatprep.subr.bf16.mxu1 %v4725_v38  ;;  %1018 = vmatpush1.bf16.msra.mxu0 %v4736_v39 }
 0x189   : > { %1019 = vmatprep.subr.bf16.mxu0 %v4742_v33 }
 0x18b   : > { %1059 = vmatpush1.bf16.msra.mxu1 %v4747_v37  ;;  %1616 = vperm.xlu0 %3705, %v1614_v30   ;;  %v4797_v30 = vcombine.high %v4543_v55, %v4549_v57  ;;  %v4831_v55 = vcombine.low %v4555_v59, %v4561_v61  ;;  %v850_v57 = vpack.c.bf16 %v4825_v54, %v4825_v54 }
 0x18c   : > { %1060 = vmatprep.subr.bf16.mxu1 %v4753_v36  ;;  %1020 = vmatpush1.bf16.msra.mxu0 %v4759_v44 }
 0x18d   : > { %1021 = vmatprep.subr.bf16.mxu0 %v4764_v43 }
 0x18f   : > { %1061 = vmatpush1.bf16.msra.mxu1 %v4769_v45  ;;  %1862 = vperm.xlu0 %3705, %v1860_v42   ;;  %v4822_v42 = vcombine.low %v4552_v58, %v4558_v60 }
 0x190   : > { %1062 = vmatprep.subr.bf16.mxu1 %v4775_v46  ;;  %1022 = vmatpush1.bf16.msra.mxu0 %v4781_v41 }
 0x191   : > { %1023 = vmatprep.subr.bf16.mxu0 %v4786_v47 }
 0x193   : > { %1063 = vmatpush1.bf16.msra.mxu1 %v4791_v49 }
 0x194   : > { %1064 = vmatprep.subr.bf16.mxu1 %v4797_v30  ;;  %1024 = vmatpush1.bf16.msra.mxu0 %v4802_v50 }
 0x195   : > { %1025 = vmatprep.subr.bf16.mxu0 %v4807_v51 }
 0x197   : > { %1065 = vmatpush1.bf16.msra.mxu1 %v4812_v53 }
 0x198   : > { %1066 = vmatprep.subr.bf16.mxu1 %v4817_v52  ;;  %1026 = vmatpush1.bf16.msra.mxu0 %v4822_v42 }
 0x199   : > { %1132 = vmatprep.subr.bf16.mxu0 %v4656_v23 }
 0x19b   : > { %1067 = vmatpush1.bf16.msra.mxu1 %v4831_v55  ;;  %1044 = vmatmul.mubr.bf16.vlgmr.msra.gmra.mrb[0].mxu0 %v850_v57 }
 0x19c   : > { %1173 = vmatprep.subr.bf16.mxu1 %v4668_v8  ;;  %1133 = vmatpush1.bf16.msra.mxu0 %v4660_v6 }
 0x19d   : > { %1134 = vmatprep.subr.bf16.mxu0 %v4664_v7  ;;  %1164 = vmatprep.mubr.bf16.mxu0 %v5984_v40 }
 0x19e   : > { %1085 = vmatmul.mubr.bf16.vlgmr.msra.gmra.mrb[0].mxu1 %v850_v57 }
 0x19f   : > { %1174 = vmatpush1.bf16.msra.mxu1 %v4673_v9  ;;  %1205 = vmatprep.mubr.bf16.mxu1 %v5984_v40 }
 0x1a0   : > { %1175 = vmatprep.subr.bf16.mxu1 %v4677_v10  ;;  %1135 = vmatpush1.bf16.msra.mxu0 %v4682_v3 }
 0x1a1   : > { %1136 = vmatprep.subr.bf16.mxu0 %v4691_v14 }
 0x1a3   : > { %1176 = vmatpush1.bf16.msra.mxu1 %v4696_v22 }
 0x1a4   : > { %1177 = vmatprep.subr.bf16.mxu1 %v4701_v18  ;;  %1137 = vmatpush1.bf16.msra.mxu0 %v4709_v34 }
 0x1a5   : > { %1138 = vmatprep.subr.bf16.mxu0 %v4715_v35 }
 0x1a7   : > { %1178 = vmatpush1.bf16.msra.mxu1 %v4720_v31 }
 0x1a8   : > { %1179 = vmatprep.subr.bf16.mxu1 %v4725_v38  ;;  %1139 = vmatpush1.bf16.msra.mxu0 %v4736_v39 }
 0x1a9   : > { %1140 = vmatprep.subr.bf16.mxu0 %v4742_v33 }
 0x1ab   : > { %1180 = vmatpush1.bf16.msra.mxu1 %v4747_v37 }
 0x1ac   : > { %1181 = vmatprep.subr.bf16.mxu1 %v4753_v36  ;;  %1141 = vmatpush1.bf16.msra.mxu0 %v4759_v44 }
 0x1ad   : > { %1142 = vmatprep.subr.bf16.mxu0 %v4764_v43 }
 0x1af   : > { %1182 = vmatpush1.bf16.msra.mxu1 %v4769_v45 }
 0x1b0   : > { %1183 = vmatprep.subr.bf16.mxu1 %v4775_v46  ;;  %1143 = vmatpush1.bf16.msra.mxu0 %v4781_v41 }
 0x1b1   : > { %1144 = vmatprep.subr.bf16.mxu0 %v4786_v47 }
 0x1b3   : > { %1184 = vmatpush1.bf16.msra.mxu1 %v4791_v49 }
 0x1b4   : > { %1185 = vmatprep.subr.bf16.mxu1 %v4797_v30  ;;  %1145 = vmatpush1.bf16.msra.mxu0 %v4802_v50 }
 0x1b5   : > { %1146 = vmatprep.subr.bf16.mxu0 %v4807_v51 }
 0x1b7   : > { %1186 = vmatpush1.bf16.msra.mxu1 %v4812_v53 }
 0x1b8   : > { %1187 = vmatprep.subr.bf16.mxu1 %v4817_v52  ;;  %1147 = vmatpush1.bf16.msra.mxu0 %v4822_v42 }
 0x1b9   : > { %1255 = vmatprep.subr.bf16.mxu0 %v4656_v23 }
 0x1bb   : > { %1188 = vmatpush1.bf16.msra.mxu1 %v4831_v55 }
 0x1bc   : > { %1296 = vmatprep.subr.bf16.mxu1 %v4668_v8 }
 0x26e   : > { %v1045_v57 = vpop.f32.mrb[0].mxu0 }
 0x26f   : > { %v1093_v59 = vadd.f32 %v1045_v57, %v4573_v12  ;;  %v1047_v61 = vpop.f32.mrb[1].mxu0 }
 0x270   : > { %v1094_v60 = vadd.f32 %v1047_v61, %v4578_v16  ;;  %v1049_v56 = vpop.f32.mrb[2].mxu0 }
 0x271   : > { %v1086_v58 = vpop.f32.mrb[0].mxu1  ;;  %v3483_v32 = vmul.f32 -1.442695, %v1093_v59  ;;  %v1050_v15 = vpop.f32.mrb[3].mxu0 }
 0x272   : > { %v1088_v48 = vpop.f32.mrb[1].mxu1  ;;  %v3484_v26 = vmul.f32 -1.442695, %v1094_v60  ;;  %v1095_v4 = vadd.f32 %v1086_v58, %v4575_v13  ;;  %v849_v60 = vld [vmem:[%s4430_s15] sm:$0xff]  ;;  %v1126_v15 = vpop.permute.xlu0 %1125 }
 0x273   : > { %v1090_v27 = vpop.f32.mrb[2].mxu1  ;;  %3707 = vpow2.f32 %v3483_v32  ;;  %v1096_v63 = vadd.f32 %v1088_v48, %v4581_v17  ;;  %vm1127_vm5 = vcmp.eq.s32.totalorder %v1126_v15, 1 }
 0x274   : > { %v1091_v19 = vpop.f32.mrb[3].mxu1  ;;  %3709 = vpow2.f32 %v3484_v26 }
 0x275   : > { %v3485_v11 = vmul.f32 -1.442695, %v1096_v63 }
 0x277   : > { %3711 = vpow2.f32 %v3485_v11 }
 0x278   : > { %3713 = vtanh.f32 %v1095_v4 }
 0x27d   : > { %v3708_v57 = vpop.eup %3707 }
 0x27e   : > { %v3710_v12 = vpop.eup %3709  ;;  %v1100_v0 = vadd.f32 1.0, %v3708_v57 }
 0x27f   : > { %v1106_v56 = vadd.f32 1.0, %v3710_v12 }
 0x280   : > { %3715 = vrcp.f32 %v1100_v0 }
 0x281   : > { %3717 = vrcp.f32 %v1106_v56  ;;  %v3712_v59 = vpop.eup %3711  ;;  %v1489_v56 = vstv %s1488_s20 }
 0x282   : > { %v3714_v61 = vpop.eup %3713  ;;  %v1113_v32 = vadd.f32 1.0, %v3712_v59  ;;  %vm1490_vm7 = vcmp.lt.s32.totalorder %v1489_v56, %v4566_v62 }
 0x284   : > { %3719 = vrcp.f32 %v1113_v32 }
 0x28a   : > { %v3716_v19 = vpop.eup %3715 }
 0x28b   : > { %v3718_v26 = vpop.eup %3717  ;;  %v1117_v48 = vmul.f32 %v3716_v19, %v3714_v61  ;;  %v1735_v61 = vstv %s1734_s13  ;;  %v1981_v19 = vstv %s1980_s17 }
 0x28c   : > { %v1116_v63 = vmul.f32 %v3718_v26, %v849_v60  ;;  %vm1736_vm8 = vcmp.lt.s32.totalorder %v1735_v61, %v4566_v62  ;;  %vm1982_vm9 = vcmp.lt.s32.totalorder %v1981_v19, %v4566_v62 }
 0x28d   : > { %v1737_v32 = vsel %vm1736_vm8, 1, %v5984_v40  ;;  %v1983_v15 = vsel %vm1982_vm9, 1, %v5984_v40 }
 0x28e   : > { %v1118_v58 = vadd.f32 %v1117_v48, %v1116_v63  ;;  %v3720_v4 = vpop.eup %3719 }
 0x290   : > { %3721 = vtanh.f32 %v1118_v58  ;;  %v4879_v11 = vsel %vm1127_vm5, %v1118_v58, %v849_v60  ;;  %v1491_v60 = vsel %vm1490_vm7, 1, %v5984_v40 }
 0x29a   : > { %v3722_v12 = vpop.eup %3721 }
 0x29b   : > { %v1120_v0 = vmul.f32 %v3722_v12, %v3720_v4 }
 0x29d   : > { %v4882_v27 = vsel %vm1127_vm5, %v1120_v0, %v4825_v54  ;;  %v1366_v54 = vstv %s1365_s14 }
 0x29e   : > { %1130 = vst [vmem:[%s4426_s9] sm:$0xff] %v4882_v27  ;;  %v1131_v57 = vpack.c.bf16 %v4882_v27, %v4882_v27  ;;  %vm1367_vm6 = vcmp.lt.s32.totalorder %v1366_v54, %v4566_v62 }
 0x29f   : > { %v1368_v59 = vsel %vm1367_vm6, 1, %v5984_v40 }
 0x2a0   : > { %1165 = vmatmul.mubr.bf16.vlgmr.msra.gmra.mrb[4].mxu0 %v1131_v57  ;;  %1206 = vmatmul.mubr.bf16.vlgmr.msra.gmra.mrb[4].mxu1 %v1131_v57 }
 0x2a1   : > { %1256 = vmatpush1.bf16.msra.mxu0 %v4660_v6  ;;  %1297 = vmatpush1.bf16.msra.mxu1 %v4673_v9 }
 0x2a2   : > { %1257 = vmatprep.subr.bf16.mxu0 %v4664_v7  ;;  %1298 = vmatprep.subr.bf16.mxu1 %v4677_v10 }
 0x2a3   : > { %1287 = vmatprep.mubr.bf16.mxu0 %v5984_v40  ;;  %1328 = vmatprep.mubr.bf16.mxu1 %v5984_v40 }
 0x2a4   : > { %1370 = vperm.xlu1 %3706, %v1368_v59  }
 0x2a5   : > { %1258 = vmatpush1.bf16.msra.mxu0 %v4682_v3  ;;  %1299 = vmatpush1.bf16.msra.mxu1 %v4696_v22 }
 0x2a6   : > { %1259 = vmatprep.subr.bf16.mxu0 %v4691_v14  ;;  %1300 = vmatprep.subr.bf16.mxu1 %v4701_v18 }
 0x2a8   : > { %1493 = vperm.xlu1 %3706, %v1491_v60  }
 0x2a9   : > { %1260 = vmatpush1.bf16.msra.mxu0 %v4709_v34  ;;  %1301 = vmatpush1.bf16.msra.mxu1 %v4720_v31 }
 0x2aa   : > { %1261 = vmatprep.subr.bf16.mxu0 %v4715_v35  ;;  %1302 = vmatprep.subr.bf16.mxu1 %v4725_v38 }
 0x2ac   : > { %1739 = vperm.xlu1 %3706, %v1737_v32  }
 0x2ad   : > { %1262 = vmatpush1.bf16.msra.mxu0 %v4736_v39  ;;  %1303 = vmatpush1.bf16.msra.mxu1 %v4747_v37 }
 0x2ae   : > { %1263 = vmatprep.subr.bf16.mxu0 %v4742_v33  ;;  %1304 = vmatprep.subr.bf16.mxu1 %v4753_v36 }
 0x2b0   : > { %1985 = vperm.xlu1 %3706, %v1983_v15  }
 0x2b1   : > { %1264 = vmatpush1.bf16.msra.mxu0 %v4759_v44  ;;  %1305 = vmatpush1.bf16.msra.mxu1 %v4769_v45 }
 0x2b2   : > { %1265 = vmatprep.subr.bf16.mxu0 %v4764_v43  ;;  %1306 = vmatprep.subr.bf16.mxu1 %v4775_v46 }
 0x2b5   : > { %1266 = vmatpush1.bf16.msra.mxu0 %v4781_v41  ;;  %1307 = vmatpush1.bf16.msra.mxu1 %v4791_v49 }
 0x2b6   : > { %1267 = vmatprep.subr.bf16.mxu0 %v4786_v47  ;;  %1308 = vmatprep.subr.bf16.mxu1 %v4797_v30 }
 0x2b9   : > { %1268 = vmatpush1.bf16.msra.mxu0 %v4802_v50  ;;  %1309 = vmatpush1.bf16.msra.mxu1 %v4812_v53 }
 0x2ba   : > { %1269 = vmatprep.subr.bf16.mxu0 %v4807_v51  ;;  %1310 = vmatprep.subr.bf16.mxu1 %v4817_v52 }
 0x2bd   : > { %1270 = vmatpush1.bf16.msra.mxu0 %v4822_v42  ;;  %1311 = vmatpush1.bf16.msra.mxu1 %v4831_v55 }
 0x2be   : > { %1378 = vmatprep.subr.bf16.mxu0 %v4656_v23  ;;  %1419 = vmatprep.subr.bf16.mxu1 %v4668_v8 }
 0x373   : > { %v1166_v26 = vpop.f32.mrb[4].mxu0  ;;  %v1207_v48 = vpop.f32.mrb[4].mxu1 }
 0x374   : > { %v1214_v63 = vadd.f32 %v1166_v26, %v4583_v20  ;;  %v1168_v58 = vpop.f32.mrb[5].mxu0  ;;  %v1209_v4 = vpop.f32.mrb[5].mxu1  ;;  %v1216_v32 = vadd.f32 %v1207_v48, %v4585_v21 }
 0x375   : > { %v1215_v12 = vadd.f32 %v1168_v58, %v4588_v24  ;;  %v1170_v0 = vpop.f32.mrb[6].mxu0  ;;  %v1211_v57 = vpop.f32.mrb[6].mxu1  ;;  %v1217_v60 = vadd.f32 %v1209_v4, %v4591_v25 }
 0x376   : > { %v3486_v54 = vmul.f32 -1.442695, %v1214_v63  ;;  %v1171_v56 = vpop.f32.mrb[7].mxu0  ;;  %v1212_v59 = vpop.f32.mrb[7].mxu1 }
 0x377   : > { %v3487_v61 = vmul.f32 -1.442695, %v1215_v12  ;;  %v3488_v19 = vmul.f32 -1.442695, %v1217_v60  ;;  %v1248_v56 = vpop.permute.xlu0 %1247 }
 0x378   : > { %3723 = vpow2.f32 %v3486_v54  ;;  %vm1249_vm10 = vcmp.eq.s32.totalorder %v1248_v56, 1 }
 0x379   : > { %3725 = vpow2.f32 %v3487_v61 }
 0x37a   : > { %3727 = vpow2.f32 %v3488_v19 }
 0x37b   : > { %3729 = vtanh.f32 %v1216_v32 }
 0x382   : > { %v3724_v15 = vpop.eup %3723 }
 0x383   : > { %v3726_v13 = vpop.eup %3725  ;;  %v1221_v26 = vadd.f32 1.0, %v3724_v15 }
 0x384   : > { %v1227_v17 = vadd.f32 1.0, %v3726_v13  ;;  %v3728_v58 = vpop.eup %3727 }
 0x385   : > { %3731 = vrcp.f32 %v1221_v26  ;;  %v3730_v63 = vpop.eup %3729  ;;  %v1234_v54 = vadd.f32 1.0, %v3728_v58 }
 0x386   : > { %3733 = vrcp.f32 %v1227_v17 }
 0x387   : > { %3735 = vrcp.f32 %v1234_v54 }
 0x38f   : > { %v3732_v0 = vpop.eup %3731 }
 0x390   : > { %v3734_v12 = vpop.eup %3733  ;;  %v1238_v57 = vmul.f32 %v3732_v0, %v3730_v63 }
 0x391   : > { %v1237_v4 = vmul.f32 %v3734_v12, %v4879_v11  ;;  %v3736_v13 = vpop.eup %3735 }
 0x393   : > { %v1239_v59 = vadd.f32 %v1238_v57, %v1237_v4 }
 0x395   : > { %3737 = vtanh.f32 %v1239_v59  ;;  %v4940_v48 = vsel %vm1249_vm10, %v1239_v59, %v4879_v11 }
 0x39f   : > { %v3738_v61 = vpop.eup %3737 }
 0x3a0   : > { %v1241_v17 = vmul.f32 %v3738_v61, %v3736_v13 }
 0x3a2   : > { %v4943_v60 = vsel %vm1249_vm10, %v1241_v17, %v4882_v27 }
 0x3a3   : > { %3489 = vst [vmem:[%s4426_s9 + $0x8] sm:$0xff] %v4943_v60  ;;  %v1254_v19 = vpack.c.bf16 %v4943_v60, %v4943_v60 }
 0x3a5   : > { %1288 = vmatmul.mubr.bf16.vlgmr.msra.gmra.mrb[8].mxu0 %v1254_v19  ;;  %1329 = vmatmul.mubr.bf16.vlgmr.msra.gmra.mrb[8].mxu1 %v1254_v19 }
 0x3a6   : > { %1379 = vmatpush1.bf16.msra.mxu0 %v4660_v6  ;;  %1420 = vmatpush1.bf16.msra.mxu1 %v4673_v9 }
 0x3a7   : > { %1380 = vmatprep.subr.bf16.mxu0 %v4664_v7  ;;  %1421 = vmatprep.subr.bf16.mxu1 %v4677_v10 }
 0x3a8   : > { %1410 = vmatprep.mubr.bf16.mxu0 %v5984_v40  ;;  %1451 = vmatprep.mubr.bf16.mxu1 %v5984_v40 }
 0x3aa   : > { %1381 = vmatpush1.bf16.msra.mxu0 %v4682_v3  ;;  %1422 = vmatpush1.bf16.msra.mxu1 %v4696_v22 }
 0x3ab   : > { %1382 = vmatprep.subr.bf16.mxu0 %v4691_v14  ;;  %1423 = vmatprep.subr.bf16.mxu1 %v4701_v18 }
 0x3ae   : > { %1383 = vmatpush1.bf16.msra.mxu0 %v4709_v34  ;;  %1424 = vmatpush1.bf16.msra.mxu1 %v4720_v31 }
 0x3af   : > { %1384 = vmatprep.subr.bf16.mxu0 %v4715_v35  ;;  %1425 = vmatprep.subr.bf16.mxu1 %v4725_v38 }
 0x3b2   : > { %1385 = vmatpush1.bf16.msra.mxu0 %v4736_v39  ;;  %1426 = vmatpush1.bf16.msra.mxu1 %v4747_v37 }
 0x3b3   : > { %1386 = vmatprep.subr.bf16.mxu0 %v4742_v33  ;;  %1427 = vmatprep.subr.bf16.mxu1 %v4753_v36 }
 0x3b6   : > { %1387 = vmatpush1.bf16.msra.mxu0 %v4759_v44  ;;  %1428 = vmatpush1.bf16.msra.mxu1 %v4769_v45 }
 0x3b7   : > { %1388 = vmatprep.subr.bf16.mxu0 %v4764_v43  ;;  %1429 = vmatprep.subr.bf16.mxu1 %v4775_v46 }
 0x3ba   : > { %1389 = vmatpush1.bf16.msra.mxu0 %v4781_v41  ;;  %1430 = vmatpush1.bf16.msra.mxu1 %v4791_v49 }
 0x3bb   : > { %1390 = vmatprep.subr.bf16.mxu0 %v4786_v47  ;;  %1431 = vmatprep.subr.bf16.mxu1 %v4797_v30 }
 0x3be   : > { %1391 = vmatpush1.bf16.msra.mxu0 %v4802_v50  ;;  %1432 = vmatpush1.bf16.msra.mxu1 %v4812_v53 }
 0x3bf   : > { %1392 = vmatprep.subr.bf16.mxu0 %v4807_v51  ;;  %1433 = vmatprep.subr.bf16.mxu1 %v4817_v52 }
 0x3c2   : > { %1393 = vmatpush1.bf16.msra.mxu0 %v4822_v42  ;;  %1434 = vmatpush1.bf16.msra.mxu1 %v4831_v55 }
 0x3c3   : > { %1501 = vmatprep.subr.bf16.mxu0 %v4656_v23  ;;  %1542 = vmatprep.subr.bf16.mxu1 %v4668_v8 }
 0x478   : > { %v1289_v11 = vpop.f32.mrb[8].mxu0  ;;  %v1330_v27 = vpop.f32.mrb[8].mxu1 }
 0x479   : > { %v1337_v32 = vadd.f32 %v1289_v11, %v4593_v28  ;;  %v1291_v15 = vpop.f32.mrb[9].mxu0  ;;  %v1332_v26 = vpop.f32.mrb[9].mxu1  ;;  %v1339_v13 = vadd.f32 %v1330_v27, %v4595_v29 }
 0x47a   : > { %v1338_v58 = vadd.f32 %v1291_v15, %v4598_v1  ;;  %v1293_v63 = vpop.f32.mrb[10].mxu0  ;;  %v1334_v0 = vpop.f32.mrb[10].mxu1  ;;  %v1340_v56 = vadd.f32 %v1332_v26, %v4601_v2 }
 0x47b   : > { %v3490_v12 = vmul.f32 -1.442695, %v1337_v32  ;;  %v1294_v57 = vpop.f32.mrb[11].mxu0  ;;  %v1335_v54 = vpop.f32.mrb[11].mxu1 }
 0x47c   : > { %v3491_v4 = vmul.f32 -1.442695, %v1338_v58  ;;  %v3492_v59 = vmul.f32 -1.442695, %v1340_v56  ;;  %v1371_v58 = vpop.permute.xlu1 %1370 }
 0x47d   : > { %3739 = vpow2.f32 %v3490_v12  ;;  %vm1372_vm11 = vcmp.eq.s32.totalorder %v1371_v58, 1 }
 0x47e   : > { %3741 = vpow2.f32 %v3491_v4 }
 0x47f   : > { %3743 = vpow2.f32 %v3492_v59 }
 0x480   : > { %3745 = vtanh.f32 %v1339_v13 }
 0x487   : > { %v3740_v61 = vpop.eup %3739 }
 0x488   : > { %v3742_v17 = vpop.eup %3741  ;;  %v1344_v19 = vadd.f32 1.0, %v3740_v61 }
 0x489   : > { %v1350_v11 = vadd.f32 1.0, %v3742_v17  ;;  %v3744_v15 = vpop.eup %3743 }
 0x48a   : > { %3747 = vrcp.f32 %v1344_v19  ;;  %v3746_v32 = vpop.eup %3745  ;;  %v1357_v12 = vadd.f32 1.0, %v3744_v15  ;;  %v5985_v15 = vld [vmem:[#allocation62_spill] sm:$0xff] }
 0x48b   : > { %3749 = vrcp.f32 %v1350_v11 }
 0x48c   : > { %3751 = vrcp.f32 %v1357_v12 }
 0x494   : > { %v3748_v63 = vpop.eup %3747 }
 0x495   : > { %v3750_v0 = vpop.eup %3749  ;;  %v1361_v57 = vmul.f32 %v3748_v63, %v3746_v32 }
 0x496   : > { %v1360_v26 = vmul.f32 %v3750_v0, %v4940_v48  ;;  %v3752_v4 = vpop.eup %3751 }
 0x498   : > { %v1362_v27 = vadd.f32 %v1361_v57, %v1360_v26 }
 0x49a   : > { %3753 = vtanh.f32 %v1362_v27  ;;  %v4989_v54 = vsel %vm1372_vm11, %v1362_v27, %v4940_v48  ;;  %v5986_v27 = vld [vmem:[#allocation63_spill] sm:$0xff] }
 0x4a4   : > { %v3754_v56 = vpop.eup %3753 }
 0x4a5   : > { %v1364_v59 = vmul.f32 %v3754_v56, %v3752_v4 }
 0x4a7   : > { %v4992_v13 = vsel %vm1372_vm11, %v1364_v59, %v4943_v60  ;;  %v5987_v59 = vld [vmem:[#allocation61_spill] sm:$0xff] }
 0x4a8   : > { %3493 = vst [vmem:[%s4426_s9 + $0x10] sm:$0xff] %v4992_v13  ;;  %v1377_v61 = vpack.c.bf16 %v4992_v13, %v4992_v13 }
 0x4aa   : > { %1411 = vmatmul.mubr.bf16.vlgmr.msra.gmra.mrb[12].mxu0 %v1377_v61  ;;  %1452 = vmatmul.mubr.bf16.vlgmr.msra.gmra.mrb[12].mxu1 %v1377_v61 }
 0x4ab   : > { %1502 = vmatpush1.bf16.msra.mxu0 %v4660_v6  ;;  %1543 = vmatpush1.bf16.msra.mxu1 %v4673_v9 }
 0x4ac   : > { %1503 = vmatprep.subr.bf16.mxu0 %v4664_v7  ;;  %1544 = vmatprep.subr.bf16.mxu1 %v4677_v10 }
 0x4ad   : > { %1533 = vmatprep.mubr.bf16.mxu0 %v5984_v40  ;;  %1574 = vmatprep.mubr.bf16.mxu1 %v5984_v40 }
 0x4af   : > { %1504 = vmatpush1.bf16.msra.mxu0 %v4682_v3  ;;  %1545 = vmatpush1.bf16.msra.mxu1 %v4696_v22 }
 0x4b0   : > { %1505 = vmatprep.subr.bf16.mxu0 %v4691_v14  ;;  %1546 = vmatprep.subr.bf16.mxu1 %v4701_v18 }
 0x4b3   : > { %1506 = vmatpush1.bf16.msra.mxu0 %v4709_v34  ;;  %1547 = vmatpush1.bf16.msra.mxu1 %v4720_v31 }
 0x4b4   : > { %1507 = vmatprep.subr.bf16.mxu0 %v4715_v35  ;;  %1548 = vmatprep.subr.bf16.mxu1 %v4725_v38 }
 0x4b7   : > { %1508 = vmatpush1.bf16.msra.mxu0 %v4736_v39  ;;  %1549 = vmatpush1.bf16.msra.mxu1 %v4747_v37 }
 0x4b8   : > { %1509 = vmatprep.subr.bf16.mxu0 %v4742_v33  ;;  %1550 = vmatprep.subr.bf16.mxu1 %v4753_v36 }
 0x4bb   : > { %1510 = vmatpush1.bf16.msra.mxu0 %v4759_v44  ;;  %1551 = vmatpush1.bf16.msra.mxu1 %v4769_v45 }
 0x4bc   : > { %1511 = vmatprep.subr.bf16.mxu0 %v4764_v43  ;;  %1552 = vmatprep.subr.bf16.mxu1 %v4775_v46 }
 0x4bf   : > { %1512 = vmatpush1.bf16.msra.mxu0 %v4781_v41  ;;  %1553 = vmatpush1.bf16.msra.mxu1 %v4791_v49 }
 0x4c0   : > { %1513 = vmatprep.subr.bf16.mxu0 %v4786_v47  ;;  %1554 = vmatprep.subr.bf16.mxu1 %v4797_v30 }
 0x4c3   : > { %1514 = vmatpush1.bf16.msra.mxu0 %v4802_v50  ;;  %1555 = vmatpush1.bf16.msra.mxu1 %v4812_v53 }
 0x4c4   : > { %1515 = vmatprep.subr.bf16.mxu0 %v4807_v51  ;;  %1556 = vmatprep.subr.bf16.mxu1 %v4817_v52 }
 0x4c7   : > { %1516 = vmatpush1.bf16.msra.mxu0 %v4822_v42  ;;  %1557 = vmatpush1.bf16.msra.mxu1 %v4831_v55 }
 0x4c8   : > { %1624 = vmatprep.subr.bf16.mxu0 %v4656_v23  ;;  %1665 = vmatprep.subr.bf16.mxu1 %v4668_v8 }
 0x57d   : > { %v1412_v48 = vpop.f32.mrb[12].mxu0  ;;  %v1453_v60 = vpop.f32.mrb[12].mxu1 }
 0x57e   : > { %v1460_v17 = vadd.f32 %v1412_v48, %v4603_v5  ;;  %v1414_v19 = vpop.f32.mrb[13].mxu0  ;;  %v1455_v11 = vpop.f32.mrb[13].mxu1  ;;  %v1462_v61 = vadd.f32 %v1453_v60, %v5987_v59 }
 0x57f   : > { %v1461_v32 = vadd.f32 %v1414_v19, %v5985_v15  ;;  %v1416_v63 = vpop.f32.mrb[14].mxu0  ;;  %v1457_v58 = vpop.f32.mrb[14].mxu1  ;;  %v1463_v4 = vadd.f32 %v1455_v11, %v5986_v27  ;;  %v5988_v27 = vld [vmem:[#allocation64_spill] sm:$0xff] }
 0x580   : > { %v3494_v0 = vmul.f32 -1.442695, %v1460_v17  ;;  %v1417_v12 = vpop.f32.mrb[15].mxu0  ;;  %v1458_v57 = vpop.f32.mrb[15].mxu1 }
 0x581   : > { %v3495_v26 = vmul.f32 -1.442695, %v1461_v32  ;;  %v3496_v56 = vmul.f32 -1.442695, %v1463_v4 }
 0x582   : > { %3755 = vpow2.f32 %v3494_v0  ;;  %v1494_v0 = vpop.permute.xlu1 %1493 }
 0x583   : > { %3757 = vpow2.f32 %v3495_v26  ;;  %vm1495_vm12 = vcmp.eq.s32.totalorder %v1494_v0, 1 }
 0x584   : > { %3759 = vpow2.f32 %v3496_v56 }
 0x585   : > { %3761 = vtanh.f32 %v1462_v61  ;;  %v5989_v61 = vld [vmem:[#allocation66_spill] sm:$0xff] }
 0x58c   : > { %v3756_v16 = vpop.eup %3755 }
 0x58d   : > { %v3758_v21 = vpop.eup %3757  ;;  %v1467_v48 = vadd.f32 1.0, %v3756_v16 }
 0x58e   : > { %v1473_v25 = vadd.f32 1.0, %v3758_v21  ;;  %v3760_v19 = vpop.eup %3759 }
 0x58f   : > { %3763 = vrcp.f32 %v1467_v48  ;;  %v3762_v17 = vpop.eup %3761  ;;  %v1480_v58 = vadd.f32 1.0, %v3760_v19 }
 0x590   : > { %3765 = vrcp.f32 %v1473_v25 }
 0x591   : > { %3767 = vrcp.f32 %v1480_v58 }
 0x599   : > { %v3764_v15 = vpop.eup %3763 }
 0x59a   : > { %v3766_v32 = vpop.eup %3765  ;;  %v1484_v63 = vmul.f32 %v3764_v15, %v3762_v17 }
 0x59b   : > { %v1483_v11 = vmul.f32 %v3766_v32, %v4989_v54  ;;  %v3768_v21 = vpop.eup %3767 }
 0x59d   : > { %v1485_v12 = vadd.f32 %v1484_v63, %v1483_v11  ;;  %v5990_v11 = vld [vmem:[#allocation67_spill] sm:$0xff] }
 0x59f   : > { %3769 = vtanh.f32 %v1485_v12  ;;  %v5038_v16 = vsel %vm1495_vm12, %v1485_v12, %v4989_v54 }
 0x5a9   : > { %v3770_v60 = vpop.eup %3769 }
 0x5aa   : > { %v1487_v25 = vmul.f32 %v3770_v60, %v3768_v21  ;;  %v5991_v21 = vld [vmem:[#allocation65_spill] sm:$0xff] }
 0x5ac   : > { %v5041_v57 = vsel %vm1495_vm12, %v1487_v25, %v4992_v13 }
 0x5ad   : > { %3497 = vst [vmem:[%s4426_s9 + $0x18] sm:$0xff] %v5041_v57  ;;  %v1500_v26 = vpack.c.bf16 %v5041_v57, %v5041_v57 }
 0x5af   : > { %1534 = vmatmul.mubr.bf16.vlgmr.msra.gmra.mrb[16].mxu0 %v1500_v26  ;;  %1575 = vmatmul.mubr.bf16.vlgmr.msra.gmra.mrb[16].mxu1 %v1500_v26 }
 0x5b0   : > { %1625 = vmatpush1.bf16.msra.mxu0 %v4660_v6  ;;  %1666 = vmatpush1.bf16.msra.mxu1 %v4673_v9 }
 0x5b1   : > { %1626 = vmatprep.subr.bf16.mxu0 %v4664_v7  ;;  %1667 = vmatprep.subr.bf16.mxu1 %v4677_v10 }
 0x5b2   : > { %1656 = vmatprep.mubr.bf16.mxu0 %v5984_v40  ;;  %1697 = vmatprep.mubr.bf16.mxu1 %v5984_v40 }
 0x5b4   : > { %1627 = vmatpush1.bf16.msra.mxu0 %v4682_v3  ;;  %1668 = vmatpush1.bf16.msra.mxu1 %v4696_v22 }
 0x5b5   : > { %1628 = vmatprep.subr.bf16.mxu0 %v4691_v14  ;;  %1669 = vmatprep.subr.bf16.mxu1 %v4701_v18 }
 0x5b8   : > { %1629 = vmatpush1.bf16.msra.mxu0 %v4709_v34  ;;  %1670 = vmatpush1.bf16.msra.mxu1 %v4720_v31 }
 0x5b9   : > { %1630 = vmatprep.subr.bf16.mxu0 %v4715_v35  ;;  %1671 = vmatprep.subr.bf16.mxu1 %v4725_v38 }
 0x5bc   : > { %1631 = vmatpush1.bf16.msra.mxu0 %v4736_v39  ;;  %1672 = vmatpush1.bf16.msra.mxu1 %v4747_v37 }
 0x5bd   : > { %1632 = vmatprep.subr.bf16.mxu0 %v4742_v33  ;;  %1673 = vmatprep.subr.bf16.mxu1 %v4753_v36 }
 0x5c0   : > { %1633 = vmatpush1.bf16.msra.mxu0 %v4759_v44  ;;  %1674 = vmatpush1.bf16.msra.mxu1 %v4769_v45 }
 0x5c1   : > { %1634 = vmatprep.subr.bf16.mxu0 %v4764_v43  ;;  %1675 = vmatprep.subr.bf16.mxu1 %v4775_v46 }
 0x5c4   : > { %1635 = vmatpush1.bf16.msra.mxu0 %v4781_v41  ;;  %1676 = vmatpush1.bf16.msra.mxu1 %v4791_v49 }
 0x5c5   : > { %1636 = vmatprep.subr.bf16.mxu0 %v4786_v47  ;;  %1677 = vmatprep.subr.bf16.mxu1 %v4797_v30 }
 0x5c8   : > { %1637 = vmatpush1.bf16.msra.mxu0 %v4802_v50  ;;  %1678 = vmatpush1.bf16.msra.mxu1 %v4812_v53 }
 0x5c9   : > { %1638 = vmatprep.subr.bf16.mxu0 %v4807_v51  ;;  %1679 = vmatprep.subr.bf16.mxu1 %v4817_v52 }
 0x5cc   : > { %1639 = vmatpush1.bf16.msra.mxu0 %v4822_v42  ;;  %1680 = vmatpush1.bf16.msra.mxu1 %v4831_v55 }
 0x5cd   : > { %1747 = vmatprep.subr.bf16.mxu0 %v4656_v23  ;;  %1788 = vmatprep.subr.bf16.mxu1 %v4668_v8 }
 0x682   : > { %v1535_v54 = vpop.f32.mrb[16].mxu0  ;;  %v1576_v13 = vpop.f32.mrb[16].mxu1 }
 0x683   : > { %v1583_v4 = vadd.f32 %v1535_v54, %v5988_v27  ;;  %v1537_v56 = vpop.f32.mrb[17].mxu0  ;;  %v1578_v59 = vpop.f32.mrb[17].mxu1  ;;  %v1585_v60 = vadd.f32 %v1576_v13, %v5991_v21  ;;  %v5992_v21 = vld [vmem:[#allocation68_spill] sm:$0xff] }
 0x684   : > { %v1584_v48 = vadd.f32 %v1537_v56, %v5989_v61  ;;  %v1539_v19 = vpop.f32.mrb[18].mxu0  ;;  %v1580_v17 = vpop.f32.mrb[18].mxu1  ;;  %v1586_v0 = vadd.f32 %v1578_v59, %v5990_v11 }
 0x685   : > { %v3498_v15 = vmul.f32 -1.442695, %v1583_v4  ;;  %v1540_v32 = vpop.f32.mrb[19].mxu0  ;;  %v1581_v63 = vpop.f32.mrb[19].mxu1 }
 0x686   : > { %v3499_v58 = vmul.f32 -1.442695, %v1584_v48  ;;  %v3500_v12 = vmul.f32 -1.442695, %v1586_v0 }
 0x687   : > { %3771 = vpow2.f32 %v3498_v15  ;;  %v1617_v15 = vpop.permute.xlu0 %1616 }
 0x688   : > { %3773 = vpow2.f32 %v3499_v58  ;;  %vm1618_vm13 = vcmp.eq.s32.totalorder %v1617_v15, 1 }
 0x689   : > { %3775 = vpow2.f32 %v3500_v12 }
 0x68a   : > { %3777 = vtanh.f32 %v1585_v60 }
 0x691   : > { %v3772_v25 = vpop.eup %3771 }
 0x692   : > { %v3774_v26 = vpop.eup %3773  ;;  %v1590_v54 = vadd.f32 1.0, %v3772_v25 }
 0x693   : > { %v1596_v27 = vadd.f32 1.0, %v3774_v26  ;;  %v3776_v56 = vpop.eup %3775 }
 0x694   : > { %3779 = vrcp.f32 %v1590_v54  ;;  %v3778_v4 = vpop.eup %3777  ;;  %v1603_v17 = vadd.f32 1.0, %v3776_v56  ;;  %v5993_v54 = vld [vmem:[#allocation70_spill] sm:$0xff] }
 0x695   : > { %3781 = vrcp.f32 %v1596_v27 }
 0x696   : > { %3783 = vrcp.f32 %v1603_v17 }
 0x69e   : > { %v3780_v61 = vpop.eup %3779 }
 0x69f   : > { %v3782_v48 = vpop.eup %3781  ;;  %v1607_v19 = vmul.f32 %v3780_v61, %v3778_v4 }
 0x6a0   : > { %v1606_v59 = vmul.f32 %v3782_v48, %v5038_v16  ;;  %v3784_v63 = vpop.eup %3783 }
 0x6a2   : > { %v1608_v32 = vadd.f32 %v1607_v19, %v1606_v59  ;;  %v5994_v59 = vld [vmem:[#allocation71_spill] sm:$0xff] }
 0x6a4   : > { %3785 = vtanh.f32 %v1608_v32  ;;  %v5087_v13 = vsel %vm1618_vm13, %v1608_v32, %v5038_v16 }
 0x6ae   : > { %v3786_v58 = vpop.eup %3785 }
 0x6af   : > { %v1610_v11 = vmul.f32 %v3786_v58, %v3784_v63 }
 0x6b1   : > { %v5090_v0 = vsel %vm1618_vm13, %v1610_v11, %v5041_v57 }
 0x6b2   : > { %3501 = vst [vmem:[%s4426_s9 + $0x20] sm:$0xff] %v5090_v0  ;;  %v1623_v12 = vpack.c.bf16 %v5090_v0, %v5090_v0 }
 0x6b4   : > { %1657 = vmatmul.mubr.bf16.vlgmr.msra.gmra.mrb[20].mxu0 %v1623_v12  ;;  %1698 = vmatmul.mubr.bf16.vlgmr.msra.gmra.mrb[20].mxu1 %v1623_v12 }
 0x6b5   : > { %1748 = vmatpush1.bf16.msra.mxu0 %v4660_v6  ;;  %1789 = vmatpush1.bf16.msra.mxu1 %v4673_v9 }
 0x6b6   : > { %1749 = vmatprep.subr.bf16.mxu0 %v4664_v7  ;;  %1790 = vmatprep.subr.bf16.mxu1 %v4677_v10 }
 0x6b7   : > { %1779 = vmatprep.mubr.bf16.mxu0 %v5984_v40  ;;  %1820 = vmatprep.mubr.bf16.mxu1 %v5984_v40 }
 0x6b9   : > { %1750 = vmatpush1.bf16.msra.mxu0 %v4682_v3  ;;  %1791 = vmatpush1.bf16.msra.mxu1 %v4696_v22 }
 0x6ba   : > { %1751 = vmatprep.subr.bf16.mxu0 %v4691_v14  ;;  %1792 = vmatprep.subr.bf16.mxu1 %v4701_v18 }
 0x6bd   : > { %1752 = vmatpush1.bf16.msra.mxu0 %v4709_v34  ;;  %1793 = vmatpush1.bf16.msra.mxu1 %v4720_v31 }
 0x6be   : > { %1753 = vmatprep.subr.bf16.mxu0 %v4715_v35  ;;  %1794 = vmatprep.subr.bf16.mxu1 %v4725_v38 }
 0x6c1   : > { %1754 = vmatpush1.bf16.msra.mxu0 %v4736_v39  ;;  %1795 = vmatpush1.bf16.msra.mxu1 %v4747_v37 }
 0x6c2   : > { %1755 = vmatprep.subr.bf16.mxu0 %v4742_v33  ;;  %1796 = vmatprep.subr.bf16.mxu1 %v4753_v36 }
 0x6c5   : > { %1756 = vmatpush1.bf16.msra.mxu0 %v4759_v44  ;;  %1797 = vmatpush1.bf16.msra.mxu1 %v4769_v45 }
 0x6c6   : > { %1757 = vmatprep.subr.bf16.mxu0 %v4764_v43  ;;  %1798 = vmatprep.subr.bf16.mxu1 %v4775_v46 }
 0x6c9   : > { %1758 = vmatpush1.bf16.msra.mxu0 %v4781_v41  ;;  %1799 = vmatpush1.bf16.msra.mxu1 %v4791_v49 }
 0x6ca   : > { %1759 = vmatprep.subr.bf16.mxu0 %v4786_v47  ;;  %1800 = vmatprep.subr.bf16.mxu1 %v4797_v30 }
 0x6cd   : > { %1760 = vmatpush1.bf16.msra.mxu0 %v4802_v50  ;;  %1801 = vmatpush1.bf16.msra.mxu1 %v4812_v53 }
 0x6ce   : > { %1761 = vmatprep.subr.bf16.mxu0 %v4807_v51  ;;  %1802 = vmatprep.subr.bf16.mxu1 %v4817_v52 }
 0x6d1   : > { %1762 = vmatpush1.bf16.msra.mxu0 %v4822_v42  ;;  %1803 = vmatpush1.bf16.msra.mxu1 %v4831_v55 }
 0x6d2   : > { %1870 = vmatprep.subr.bf16.mxu0 %v4656_v23  ;;  %1911 = vmatprep.subr.bf16.mxu1 %v4668_v8  ;;  %v5995_v8 = vld [vmem:[#allocation69_spill] sm:$0xff] }
 0x787   : > { %v1658_v16 = vpop.f32.mrb[20].mxu0  ;;  %v1699_v57 = vpop.f32.mrb[20].mxu1 }
 0x788   : > { %v1706_v60 = vadd.f32 %v1658_v16, %v5992_v21  ;;  %v1660_v25 = vpop.f32.mrb[21].mxu0  ;;  %v1701_v26 = vpop.f32.mrb[21].mxu1  ;;  %v1708_v32 = vadd.f32 %v1699_v57, %v5995_v8 }
 0x789   : > { %v1707_v27 = vadd.f32 %v1660_v25, %v5993_v54  ;;  %v1662_v56 = vpop.f32.mrb[22].mxu0  ;;  %v1703_v4 = vpop.f32.mrb[22].mxu1  ;;  %v1709_v23 = vadd.f32 %v1701_v26, %v5994_v59 }
 0x78a   : > { %v3502_v61 = vmul.f32 -1.442695, %v1706_v60  ;;  %v1663_v48 = vpop.f32.mrb[23].mxu0  ;;  %v1704_v19 = vpop.f32.mrb[23].mxu1 }
 0x78b   : > { %v3503_v17 = vmul.f32 -1.442695, %v1707_v27  ;;  %v3504_v15 = vmul.f32 -1.442695, %v1709_v23  ;;  %v1740_v56 = vpop.permute.xlu1 %1739 }
 0x78c   : > { %3787 = vpow2.f32 %v3502_v61  ;;  %vm1741_vm14 = vcmp.eq.s32.totalorder %v1740_v56, 1 }
 0x78d   : > { %3789 = vpow2.f32 %v3503_v17 }
 0x78e   : > { %3791 = vpow2.f32 %v3504_v15 }
 0x78f   : > { %3793 = vtanh.f32 %v1708_v32 }
 0x796   : > { %v3788_v63 = vpop.eup %3787 }
 0x797   : > { %v3790_v58 = vpop.eup %3789  ;;  %v1713_v11 = vadd.f32 1.0, %v3788_v63 }
 0x798   : > { %v1719_v12 = vadd.f32 1.0, %v3790_v58  ;;  %v3792_v16 = vpop.eup %3791 }
 0x799   : > { %3795 = vrcp.f32 %v1713_v11  ;;  %v3794_v21 = vpop.eup %3793  ;;  %v1726_v27 = vadd.f32 1.0, %v3792_v16 }
 0x79a   : > { %3797 = vrcp.f32 %v1719_v12  ;;  %v6000_v12 = vld [vmem:[#allocation76_spill] sm:$0xff] }
 0x79b   : > { %3799 = vrcp.f32 %v1726_v27 }
 0x7a3   : > { %v3796_v60 = vpop.eup %3795 }
 0x7a4   : > { %v3798_v25 = vpop.eup %3797  ;;  %v1730_v54 = vmul.f32 %v3796_v60, %v3794_v21 }
 0x7a5   : > { %v1729_v26 = vmul.f32 %v3798_v25, %v5087_v13  ;;  %v3800_v61 = vpop.eup %3799  ;;  %v6001_v25 = vld [vmem:[#allocation78_spill] sm:$0xff] }
 0x7a7   : > { %v1731_v4 = vadd.f32 %v1730_v54, %v1729_v26 }
 0x7a9   : > { %3801 = vtanh.f32 %v1731_v4  ;;  %v5136_v57 = vsel %vm1741_vm14, %v1731_v4, %v5087_v13 }
 0x7b3   : > { %v3802_v48 = vpop.eup %3801 }
 0x7b4   : > { %v1733_v19 = vmul.f32 %v3802_v48, %v3800_v61  ;;  %v6002_v48 = vld [vmem:[#allocation79_spill] sm:$0xff] }
 0x7b6   : > { %v5139_v17 = vsel %vm1741_vm14, %v1733_v19, %v5090_v0 }
 0x7b7   : > { %3505 = vst [vmem:[%s4426_s9 + $0x28] sm:$0xff] %v5139_v17  ;;  %v1746_v59 = vpack.c.bf16 %v5139_v17, %v5139_v17 }
 0x7b9   : > { %1780 = vmatmul.mubr.bf16.vlgmr.msra.gmra.mrb[24].mxu0 %v1746_v59  ;;  %1821 = vmatmul.mubr.bf16.vlgmr.msra.gmra.mrb[24].mxu1 %v1746_v59  ;;  %v6003_v59 = vld [vmem:[#allocation77_spill] sm:$0xff] }
 0x7ba   : > { %1871 = vmatpush1.bf16.msra.mxu0 %v4660_v6  ;;  %1912 = vmatpush1.bf16.msra.mxu1 %v4673_v9 }
 0x7bb   : > { %1872 = vmatprep.subr.bf16.mxu0 %v4664_v7  ;;  %1913 = vmatprep.subr.bf16.mxu1 %v4677_v10 }
 0x7bc   : > { %1902 = vmatprep.mubr.bf16.mxu0 %v5984_v40  ;;  %1943 = vmatprep.mubr.bf16.mxu1 %v5984_v40 }
 0x7be   : > { %1873 = vmatpush1.bf16.msra.mxu0 %v4682_v3  ;;  %1914 = vmatpush1.bf16.msra.mxu1 %v4696_v22 }
 0x7bf   : > { %1874 = vmatprep.subr.bf16.mxu0 %v4691_v14  ;;  %1915 = vmatprep.subr.bf16.mxu1 %v4701_v18 }
 0x7c2   : > { %1875 = vmatpush1.bf16.msra.mxu0 %v4709_v34  ;;  %1916 = vmatpush1.bf16.msra.mxu1 %v4720_v31 }
 0x7c3   : > { %1876 = vmatprep.subr.bf16.mxu0 %v4715_v35  ;;  %1917 = vmatprep.subr.bf16.mxu1 %v4725_v38  ;;  %v5996_v35 = vld [vmem:[#allocation72_spill] sm:$0xff] }
 0x7c6   : > { %1877 = vmatpush1.bf16.msra.mxu0 %v4736_v39  ;;  %1918 = vmatpush1.bf16.msra.mxu1 %v4747_v37 }
 0x7c7   : > { %1878 = vmatprep.subr.bf16.mxu0 %v4742_v33  ;;  %1919 = vmatprep.subr.bf16.mxu1 %v4753_v36 }
 0x7ca   : > { %1879 = vmatpush1.bf16.msra.mxu0 %v4759_v44  ;;  %1920 = vmatpush1.bf16.msra.mxu1 %v4769_v45 }
 0x7cb   : > { %1880 = vmatprep.subr.bf16.mxu0 %v4764_v43  ;;  %1921 = vmatprep.subr.bf16.mxu1 %v4775_v46  ;;  %v5997_v43 = vld [vmem:[#allocation74_spill] sm:$0xff] }
 0x7ce   : > { %1881 = vmatpush1.bf16.msra.mxu0 %v4781_v41  ;;  %1922 = vmatpush1.bf16.msra.mxu1 %v4791_v49 }
 0x7cf   : > { %1882 = vmatprep.subr.bf16.mxu0 %v4786_v47  ;;  %1923 = vmatprep.subr.bf16.mxu1 %v4797_v30  ;;  %v1863_v30 = vpop.permute.xlu0 %1862 }
 0x7d0   : > { %vm1864_vm15 = vcmp.eq.s32.totalorder %v1863_v30, 1 }
 0x7d2   : > { %1883 = vmatpush1.bf16.msra.mxu0 %v4802_v50  ;;  %1924 = vmatpush1.bf16.msra.mxu1 %v4812_v53 }
 0x7d3   : > { %1884 = vmatprep.subr.bf16.mxu0 %v4807_v51  ;;  %1925 = vmatprep.subr.bf16.mxu1 %v4817_v52  ;;  %v5998_v52 = vld [vmem:[#allocation75_spill] sm:$0xff] }
 0x7d6   : > { %1885 = vmatpush1.bf16.msra.mxu0 %v4822_v42  ;;  %1926 = vmatpush1.bf16.msra.mxu1 %v4831_v55  ;;  %v5999_v55 = vld [vmem:[#allocation73_spill] sm:$0xff] }
 0x88c   : > { %v1781_v31 = vpop.f32.mrb[24].mxu0  ;;  %v1822_v34 = vpop.f32.mrb[24].mxu1 }
 0x88d   : > { %v1829_v38 = vadd.f32 %v1781_v31, %v5996_v35  ;;  %v1783_v39 = vpop.f32.mrb[25].mxu0  ;;  %v1824_v40 = vpop.f32.mrb[25].mxu1  ;;  %v1831_v7 = vadd.f32 %v1822_v34, %v5999_v55 }
 0x88e   : > { %v1830_v44 = vadd.f32 %v1783_v39, %v5997_v43  ;;  %v1785_v45 = vpop.f32.mrb[26].mxu0  ;;  %v1826_v46 = vpop.f32.mrb[26].mxu1  ;;  %v1832_v53 = vadd.f32 %v1824_v40, %v5998_v52 }
 0x88f   : > { %v3506_v47 = vmul.f32 -1.442695, %v1829_v38  ;;  %v1786_v49 = vpop.f32.mrb[27].mxu0  ;;  %v1827_v50 = vpop.f32.mrb[27].mxu1 }
 0x890   : > { %v3507_v51 = vmul.f32 -1.442695, %v1830_v44  ;;  %v3508_v6 = vmul.f32 -1.442695, %v1832_v53  ;;  %v1986_v49 = vpop.permute.xlu1 %1985 }
 0x891   : > { %3803 = vpow2.f32 %v3506_v47  ;;  %vm1987_vm0 = vcmp.eq.s32.totalorder %v1986_v49, 1 }
 0x892   : > { %3805 = vpow2.f32 %v3507_v51 }
 0x893   : > { %3807 = vpow2.f32 %v3508_v6 }
 0x894   : > { %3809 = vtanh.f32 %v1831_v7 }
 0x89b   : > { %v3804_v9 = vpop.eup %3803 }
 0x89c   : > { %v3806_v10 = vpop.eup %3805  ;;  %v1836_v3 = vadd.f32 1.0, %v3804_v9 }
 0x89d   : > { %v1842_v14 = vadd.f32 1.0, %v3806_v10  ;;  %v3808_v22 = vpop.eup %3807 }
 0x89e   : > { %3811 = vrcp.f32 %v1836_v3  ;;  %v3810_v18 = vpop.eup %3809  ;;  %v1849_v41 = vadd.f32 1.0, %v3808_v22 }
 0x89f   : > { %3813 = vrcp.f32 %v1842_v14 }
 0x8a0   : > { %3815 = vrcp.f32 %v1849_v41 }
 0x8a8   : > { %v3812_v33 = vpop.eup %3811 }
 0x8a9   : > { %v3814_v37 = vpop.eup %3813  ;;  %v1853_v36 = vmul.f32 %v3812_v33, %v3810_v18 }
 0x8aa   : > { %v1852_v42 = vmul.f32 %v3814_v37, %v5136_v57  ;;  %v3816_v23 = vpop.eup %3815 }
 0x8ac   : > { %v1854_v13 = vadd.f32 %v1853_v36, %v1852_v42 }
 0x8ae   : > { %3817 = vtanh.f32 %v1854_v13  ;;  %v1865_v0 = vsel %vm1864_vm15, %v1854_v13, %v5136_v57 }
 0x8b8   : > { %v3818_v15 = vpop.eup %3817 }
 0x8b9   : > { %v1856_v8 = vmul.f32 %v3818_v15, %v3816_v23 }
 0x8bb   : > { %v1866_v32 = vsel %vm1864_vm15, %v1856_v8, %v5139_v17 }
 0x8bc   : > { %3509 = vst [vmem:[%s4426_s9 + $0x30] sm:$0xff] %v1866_v32  ;;  %v1869_v63 = vpack.c.bf16 %v1866_v32, %v1866_v32 }
 0x8be   : > { %1903 = vmatmul.mubr.bf16.vlgmr.msra.gmra.mrb[28].mxu0 %v1869_v63  ;;  %1944 = vmatmul.mubr.bf16.vlgmr.msra.gmra.mrb[28].mxu1 %v1869_v63 }
 0x991   : > { %v1904_v58 = vpop.f32.mrb[28].mxu0  ;;  %v1945_v11 = vpop.f32.mrb[28].mxu1 }
 0x992   : > { %v1952_v16 = vadd.f32 %v1904_v58, %v6000_v12  ;;  %v1906_v21 = vpop.f32.mrb[29].mxu0  ;;  %v1947_v60 = vpop.f32.mrb[29].mxu1  ;;  %v1954_v31 = vadd.f32 %v1945_v11, %v6003_v59 }
 0x993   : > { %v1953_v54 = vadd.f32 %v1906_v21, %v6001_v25  ;;  %v1908_v27 = vpop.f32.mrb[30].mxu0  ;;  %v1949_v26 = vpop.f32.mrb[30].mxu1  ;;  %v1955_v19 = vadd.f32 %v1947_v60, %v6002_v48 }
 0x994   : > { %v3510_v56 = vmul.f32 -1.442695, %v1952_v16  ;;  %v1909_v4 = vpop.f32.mrb[31].mxu0  ;;  %v1950_v57 = vpop.f32.mrb[31].mxu1 }
 0x995   : > { %v3511_v61 = vmul.f32 -1.442695, %v1953_v54  ;;  %v3512_v17 = vmul.f32 -1.442695, %v1955_v19 }
 0x996   : > { %3819 = vpow2.f32 %v3510_v56 }
 0x997   : > { %3821 = vpow2.f32 %v3511_v61 }
 0x998   : > { %3823 = vpow2.f32 %v3512_v17 }
 0x999   : > { %3825 = vtanh.f32 %v1954_v31 }
 0x9a0   : > { %v3820_v34 = vpop.eup %3819 }
 0x9a1   : > { %v3822_v35 = vpop.eup %3821  ;;  %v1959_v38 = vadd.f32 1.0, %v3820_v34 }
 0x9a2   : > { %v1965_v39 = vadd.f32 1.0, %v3822_v35  ;;  %v3824_v40 = vpop.eup %3823 }
 0x9a3   : > { %3827 = vrcp.f32 %v1959_v38  ;;  %v3826_v43 = vpop.eup %3825  ;;  %v1972_v47 = vadd.f32 1.0, %v3824_v40 }
 0x9a4   : > { %3829 = vrcp.f32 %v1965_v39 }
 0x9a5   : > { %3831 = vrcp.f32 %v1972_v47 }
 0x9ad   : > { %v3828_v44 = vpop.eup %3827 }
 0x9ae   : > { %v3830_v45 = vpop.eup %3829  ;;  %v1976_v46 = vmul.f32 %v3828_v44, %v3826_v43 }
 0x9af   : > { %v1975_v50 = vmul.f32 %v3830_v45, %v1865_v0  ;;  %v3832_v53 = vpop.eup %3831 }
 0x9b1   : > { %v1977_v51 = vadd.f32 %v1976_v46, %v1975_v50 }
 0x9b3   : > { %3833 = vtanh.f32 %v1977_v51  ;;  %v1988_v52 = vsel %vm1987_vm0, %v1977_v51, %v1865_v0 }
 0x9b4   : > { %1993 = vst [vmem:[%s4430_s15] sm:$0xff] %v1988_v52 }
 0x9bd   : > { %v3834_v6 = vpop.eup %3833 }
 0x9be   : > { %v1979_v55 = vmul.f32 %v3834_v6, %v3832_v53 }
 0x9c0   : > { %v1989_v7 = vsel %vm1987_vm0, %v1979_v55, %v1866_v32 }
 0x9c1   : > { %3513 = vst [vmem:[%s4426_s9 + $0x38] sm:$0xff] %v1989_v7  ;;  %1992 = vst [vmem:[%s4428_s24] sm:$0xff] %v1989_v7 }
 0x9c2 PF: > { %p3514_p7 = scmp.ne.s32.totalorder %s4147_s28, 1 }
 0x9c3   : > { %v6004_v9 = vld [vmem:[#allocation25_spill] sm:$0xff] (!%p3514_p7)  ;;  %v6005_v10 = vld [vmem:[#allocation23_spill] sm:$0xff] (!%p3514_p7)  ;;  %s6008_s12 = ssub.s32 (!%p3514_p7), 1, %s4143_s27  ;;  %v6009_v37 = vld [vmem:[#allocation26_spill] sm:$0xff] (!%p3514_p7)  ;;  %v4168_v16 = vmov (!%p3514_p7), 0  }
 0x9c4   : > { %1997 = sbr.rel (%p3514_p7) target bundleno = 4621 (0x120d), region = 60  ;;  %v5195_v3 = vcombine.high (!%p3514_p7), %v6005_v10, %v6004_v9  ;;  %v5199_v14 = vcombine.low (!%p3514_p7), %v6005_v10, %v6004_v9  ;;  %v6006_v22 = vld [vmem:[#allocation29_spill] sm:$0xff] (!%p3514_p7)  ;;  %v6007_v18 = vld [vmem:[#allocation27_spill] sm:$0xff] (!%p3514_p7)  ;;  %s5207_s22 = sshll.u32 (!%p3514_p7), %s6008_s12, 3  ;;  %v6010_v36 = vld [vmem:[#allocation24_spill] sm:$0xff] (!%p3514_p7)  ;;  %2195 = vmatprep.mubr.bf16.mxu0 (!%p3514_p7), %v4168_v16  ;;  %2236 = vmatprep.mubr.bf16.mxu1 (!%p3514_p7), %v4168_v16 }
 0x9c5   : > { %v5203_v33 = vcombine.high (!%p3514_p7), %v6007_v18, %v6006_v22  ;;  %v5211_v41 = vcombine.high (!%p3514_p7), %v6010_v36, %v6009_v37  ;;  %v5216_v30 = vcombine.low (!%p3514_p7), %v6010_v36, %v6009_v37  ;;  %v6011_v42 = vld [vmem:[#allocation30_spill] sm:$0xff] (!%p3514_p7)  ;;  %v6012_v13 = vld [vmem:[#allocation28_spill] sm:$0xff] (!%p3514_p7)  ;;  %v5225_v23 = vcombine.low (!%p3514_p7), %v6007_v18, %v6006_v22  ;;  %s2273_s27 = sadd.s32 (!%p3514_p7), 7, %s5207_s22  ;;  %v6013_v15 = vld [vmem:[#allocation33_spill] sm:$0xff] (!%p3514_p7)  ;;  %s2396_s26 = sadd.s32 (!%p3514_p7), 6, %s5207_s22  ;;  %3835 = vset.pattern.permute.xlu0 (!%p3514_p7), %v4168_v16 }
 0x9c6   : > { %2163 = vmatprep.subr.bf16.mxu0 (!%p3514_p7), %v5195_v3  ;;  %v5220_v0 = vcombine.high (!%p3514_p7), %v6012_v13, %v6011_v42  ;;  %v6014_v8 = vld [vmem:[#allocation31_spill] sm:$0xff] (!%p3514_p7)  ;;  %v5237_v63 = vcombine.low (!%p3514_p7), %v6012_v13, %v6011_v42  ;;  %v6015_v58 = vld [vmem:[#allocation34_spill] sm:$0xff] (!%p3514_p7)  ;;  %v6016_v11 = vld [vmem:[#allocation32_spill] sm:$0xff] (!%p3514_p7)  ;;  %v2274_v21 = vstv (!%p3514_p7), %s2273_s27  ;;  %s2765_s29 = sadd.s32 (!%p3514_p7), 3, %s5207_s22  ;;  %v2397_v56 = vstv (!%p3514_p7), %s2396_s26  ;;  %3836 = vset.pattern.permute.xlu1 (!%p3514_p7), %v4168_v16  ;;  %s3011_s21 = sadd.s32 (!%p3514_p7), 1, %s5207_s22 }
 0x9c7   : > { %2164 = vmatpush1.bf16.msra.mxu0 (!%p3514_p7), %v5199_v14  ;;  %2204 = vmatprep.subr.bf16.mxu1 (!%p3514_p7), %v5211_v41  ;;  %v5232_v32 = vcombine.high (!%p3514_p7), %v6014_v8, %v6013_v15  ;;  %v5242_v12 = vcombine.high (!%p3514_p7), %v6016_v11, %v6015_v58  ;;  %v5249_v60 = vcombine.low (!%p3514_p7), %v6014_v8, %v6013_v15  ;;  %v6017_v25 = vld [vmem:[#allocation37_spill] sm:$0xff] (!%p3514_p7)  ;;  %v6018_v54 = vld [vmem:[#allocation35_spill] sm:$0xff] (!%p3514_p7)  ;;  %v6019_v4 = vld [vmem:[#allocation38_spill] sm:$0xff] (!%p3514_p7)  ;;  %v2766_v19 = vstv (!%p3514_p7), %s2765_s29  ;;  %s2519_s10 = sadd.s32 (!%p3514_p7), 5, %s5207_s22  ;;  %s2642_s23 = sadd.s32 (!%p3514_p7), 4, %s5207_s22 }
 0x9c8   : > { %2165 = vmatprep.subr.bf16.mxu0 (!%p3514_p7), %v5203_v33  ;;  %2205 = vmatpush1.bf16.msra.mxu1 (!%p3514_p7), %v5216_v30  ;;  %v5255_v27 = vcombine.high (!%p3514_p7), %v6018_v54, %v6017_v25  ;;  %v5260_v26 = vcombine.low (!%p3514_p7), %v6016_v11, %v6015_v58  ;;  %v6020_v57 = vld [vmem:[#allocation36_spill] sm:$0xff] (!%p3514_p7)  ;;  %vm2275_vm1 = vcmp.lt.s32.totalorder (!%p3514_p7), %v2274_v21, %v4566_v62  ;;  %v6021_v59 = vld [vmem:[#allocation41_spill] sm:$0xff] (!%p3514_p7)  ;;  %v6022_v31 = vld [vmem:[#allocation39_spill] sm:$0xff] (!%p3514_p7)  ;;  %v3012_v44 = vstv (!%p3514_p7), %s3011_s21  ;;  %s2888_s25 = sadd.s32 (!%p3514_p7), 2, %s5207_s22 }
 0x9c9   : > { %2206 = vmatprep.subr.bf16.mxu1 (!%p3514_p7), %v5220_v0  ;;  %v5265_v61 = vcombine.high (!%p3514_p7), %v6020_v57, %v6019_v4  ;;  %vm2398_vm2 = vcmp.lt.s32.totalorder (!%p3514_p7), %v2397_v56, %v4566_v62  ;;  %v2276_v48 = vsel (!%p3514_p7), %vm2275_vm1, 1, %v4168_v16  ;;  %v5276_v17 = vcombine.low (!%p3514_p7), %v6018_v54, %v6017_v25  ;;  %v6023_v39 = vld [vmem:[#allocation42_spill] sm:$0xff] (!%p3514_p7)  ;;  %v6024_v40 = vld [vmem:[#allocation40_spill] sm:$0xff] (!%p3514_p7)  ;;  %v6025_v46 = vld [vmem:[#allocation45_spill] sm:$0xff] (!%p3514_p7) }
 0x9ca   : > { %2278 = vperm.xlu0 (!%p3514_p7), %3835, %v2276_v48   ;;  %v5282_v34 = vcombine.high (!%p3514_p7), %v6022_v31, %v6021_v59  ;;  %v5287_v35 = vcombine.low (!%p3514_p7), %v6020_v57, %v6019_v4  ;;  %v2399_v38 = vsel (!%p3514_p7), %vm2398_vm2, 1, %v4168_v16  ;;  %v5293_v43 = vcombine.high (!%p3514_p7), %v6024_v40, %v6023_v39  ;;  %v6026_v47 = vld [vmem:[#allocation43_spill] sm:$0xff] (!%p3514_p7)  ;;  %v6027_v52 = vld [vmem:[#allocation46_spill] sm:$0xff] (!%p3514_p7)  ;;  %v6028_v53 = vld [vmem:[#allocation44_spill] sm:$0xff] (!%p3514_p7) }
 0x9cb   : > { %2166 = vmatpush1.bf16.msra.mxu0 %v5225_v23  ;;  %vm2767_vm3 = vcmp.lt.s32.totalorder %v2766_v19, %v4566_v62  ;;  %v5299_v45 = vcombine.low %v6022_v31, %v6021_v59  ;;  %v5304_v49 = vcombine.high %v6026_v47, %v6025_v46  ;;  %v5309_v50 = vcombine.low %v6024_v40, %v6023_v39  ;;  %v6029_v7 = vld [vmem:[#allocation49_spill] sm:$0xff]  ;;  %v6030_v9 = vld [vmem:[#allocation47_spill] sm:$0xff]  ;;  %v6031_v37 = vld [vmem:[#allocation50_spill] sm:$0xff] }
 0x9cc   : > { %2167 = vmatprep.subr.bf16.mxu0 %v5232_v32  ;;  %2207 = vmatpush1.bf16.msra.mxu1 %v5237_v63  ;;  %v2768_v51 = vsel %vm2767_vm3, 1, %v4168_v16  ;;  %v5315_v6 = vcombine.high %v6028_v53, %v6027_v52  ;;  %vm3013_vm4 = vcmp.lt.s32.totalorder %v3012_v44, %v4566_v62  ;;  %v5321_v55 = vcombine.low %v6026_v47, %v6025_v46  ;;  %v6032_v36 = vld [vmem:[#allocation48_spill] sm:$0xff]  ;;  %v6033_v15 = vld [vmem:[#allocation53_spill] sm:$0xff]  ;;  %v6034_v8 = vld [vmem:[#allocation51_spill] sm:$0xff] }
 0x9cd   : > { %2208 = vmatprep.subr.bf16.mxu1 %v5242_v12  ;;  %v5326_v10 = vcombine.high %v6030_v9, %v6029_v7  ;;  %v5331_v22 = vcombine.low %v6028_v53, %v6027_v52  ;;  %v3014_v18 = vsel %vm3013_vm4, 1, %v4168_v16  ;;  %v5337_v42 = vcombine.high %v6032_v36, %v6031_v37  ;;  %v6035_v21 = vld [vmem:[#allocation54_spill] sm:$0xff]  ;;  %v6036_v25 = vld [vmem:[#allocation52_spill] sm:$0xff] }
 0x9ce   : > { %2401 = vperm.xlu0 %3835, %v2399_v38   ;;  %v5342_v13 = vcombine.low %v6030_v9, %v6029_v7  ;;  %v5347_v58 = vcombine.high %v6034_v8, %v6033_v15  ;;  %v5352_v11 = vcombine.low %v6032_v36, %v6031_v37  ;;  %v5357_v54 = vcombine.high %v6036_v25, %v6035_v21  ;;  %v5365_v4 = vld [vmem:[%s4428_s24] sm:$0xff]  ;;  %v6038_v40 = vld [vmem:[#allocation78_spill] sm:$0xff] }
 0x9cf   : > { %2168 = vmatpush1.bf16.msra.mxu0 %v5249_v60  ;;  %v5362_v56 = vcombine.low %v6034_v8, %v6033_v15  ;;  %v5371_v57 = vcombine.low %v6036_v25, %v6035_v21  ;;  %v2002_v48 = vpack.c.bf16 %v5365_v4, %v5365_v4  ;;  %v6037_v59 = vld [vmem:[#allocation76_spill] sm:$0xff]  ;;  %v6040_v15 = vld [vmem:[#allocation77_spill] sm:$0xff] }
 0x9d0   : > { %2169 = vmatprep.subr.bf16.mxu0 %v5255_v27  ;;  %2209 = vmatpush1.bf16.msra.mxu1 %v5260_v26 }
 0x9d1   : > { %2210 = vmatprep.subr.bf16.mxu1 %v5265_v61 }
 0x9d2   : > { %2770 = vperm.xlu0 %3835, %v2768_v51  }
 0x9d3   : > { %2170 = vmatpush1.bf16.msra.mxu0 %v5276_v17 }
 0x9d4   : > { %2171 = vmatprep.subr.bf16.mxu0 %v5282_v34  ;;  %2211 = vmatpush1.bf16.msra.mxu1 %v5287_v35 }
 0x9d5   : > { %2212 = vmatprep.subr.bf16.mxu1 %v5293_v43 }
 0x9d6   : > { %3016 = vperm.xlu0 %3835, %v3014_v18   ;;  %v6039_v18 = vld [vmem:[#allocation79_spill] sm:$0xff] }
 0x9d7   : > { %2172 = vmatpush1.bf16.msra.mxu0 %v5299_v45 }
 0x9d8   : > { %2173 = vmatprep.subr.bf16.mxu0 %v5304_v49  ;;  %2213 = vmatpush1.bf16.msra.mxu1 %v5309_v50 }
 0x9d9   : > { %2214 = vmatprep.subr.bf16.mxu1 %v5315_v6 }
 0x9db   : > { %2174 = vmatpush1.bf16.msra.mxu0 %v5321_v55 }
 0x9dc   : > { %2175 = vmatprep.subr.bf16.mxu0 %v5326_v10  ;;  %2215 = vmatpush1.bf16.msra.mxu1 %v5331_v22 }
 0x9dd   : > { %2216 = vmatprep.subr.bf16.mxu1 %v5337_v42 }
 0x9df   : > { %2176 = vmatpush1.bf16.msra.mxu0 %v5342_v13 }
 0x9e0   : > { %2177 = vmatprep.subr.bf16.mxu0 %v5347_v58  ;;  %2217 = vmatpush1.bf16.msra.mxu1 %v5352_v11 }
 0x9e1   : > { %2218 = vmatprep.subr.bf16.mxu1 %v5357_v54 }
 0x9e3   : > { %2178 = vmatpush1.bf16.msra.mxu0 %v5362_v56 }
 0x9e4   : > { %2219 = vmatpush1.bf16.msra.mxu1 %v5371_v57  ;;  %2286 = vmatprep.subr.bf16.mxu0 %v5195_v3 }
 0x9e5   : > { %2327 = vmatprep.subr.bf16.mxu1 %v5211_v41 }
 0x9e6   : > { %2196 = vmatmul.mubr.bf16.vlgmr.msra.gmra.mrb[0].mxu0 %v2002_v48 }
 0x9e7   : > { %2237 = vmatmul.mubr.bf16.vlgmr.msra.gmra.mrb[0].mxu1 %v2002_v48  ;;  %2287 = vmatpush1.bf16.msra.mxu0 %v5199_v14 }
 0x9e8   : > { %2328 = vmatpush1.bf16.msra.mxu1 %v5216_v30  ;;  %2288 = vmatprep.subr.bf16.mxu0 %v5203_v33 }
 0x9e9   : > { %2329 = vmatprep.subr.bf16.mxu1 %v5220_v0  ;;  %2318 = vmatprep.mubr.bf16.mxu0 %v4168_v16 }
 0x9ea   : > { %2359 = vmatprep.mubr.bf16.mxu1 %v4168_v16 }
 0x9eb   : > { %2289 = vmatpush1.bf16.msra.mxu0 %v5225_v23 }
 0x9ec   : > { %2330 = vmatpush1.bf16.msra.mxu1 %v5237_v63  ;;  %2290 = vmatprep.subr.bf16.mxu0 %v5232_v32 }
 0x9ed   : > { %2331 = vmatprep.subr.bf16.mxu1 %v5242_v12 }
 0x9ef   : > { %2291 = vmatpush1.bf16.msra.mxu0 %v5249_v60 }
 0x9f0   : > { %2332 = vmatpush1.bf16.msra.mxu1 %v5260_v26  ;;  %2292 = vmatprep.subr.bf16.mxu0 %v5255_v27 }
 0x9f1   : > { %2333 = vmatprep.subr.bf16.mxu1 %v5265_v61 }
 0x9f3   : > { %2293 = vmatpush1.bf16.msra.mxu0 %v5276_v17 }
 0x9f4   : > { %2334 = vmatpush1.bf16.msra.mxu1 %v5287_v35  ;;  %2294 = vmatprep.subr.bf16.mxu0 %v5282_v34 }
 0x9f5   : > { %2335 = vmatprep.subr.bf16.mxu1 %v5293_v43 }
 0x9f7   : > { %2295 = vmatpush1.bf16.msra.mxu0 %v5299_v45 }
 0x9f8   : > { %2336 = vmatpush1.bf16.msra.mxu1 %v5309_v50  ;;  %2296 = vmatprep.subr.bf16.mxu0 %v5304_v49 }
 0x9f9   : > { %2337 = vmatprep.subr.bf16.mxu1 %v5315_v6 }
 0x9fb   : > { %2297 = vmatpush1.bf16.msra.mxu0 %v5321_v55 }
 0x9fc   : > { %2338 = vmatpush1.bf16.msra.mxu1 %v5331_v22  ;;  %2298 = vmatprep.subr.bf16.mxu0 %v5326_v10 }
 0x9fd   : > { %2339 = vmatprep.subr.bf16.mxu1 %v5337_v42 }
 0x9ff   : > { %2299 = vmatpush1.bf16.msra.mxu0 %v5342_v13 }
 0xa00   : > { %2340 = vmatpush1.bf16.msra.mxu1 %v5352_v11  ;;  %2300 = vmatprep.subr.bf16.mxu0 %v5347_v58 }
 0xa01   : > { %2341 = vmatprep.subr.bf16.mxu1 %v5357_v54 }
 0xa03   : > { %2301 = vmatpush1.bf16.msra.mxu0 %v5362_v56 }
 0xa04   : > { %2342 = vmatpush1.bf16.msra.mxu1 %v5371_v57  ;;  %2409 = vmatprep.subr.bf16.mxu0 %v5195_v3 }
 0xa05   : > { %2450 = vmatprep.subr.bf16.mxu1 %v5211_v41 }
 0xab9   : > { %v2197_v19 = vpop.f32.mrb[0].mxu0 }
 0xaba   : > { %v2245_v31 = vadd.f32 %v2197_v19, %v6037_v59  ;;  %v2199_v38 = vpop.f32.mrb[1].mxu0  ;;  %v2238_v39 = vpop.f32.mrb[0].mxu1 }
 0xabb   : > { %v2246_v44 = vadd.f32 %v2199_v38, %v6038_v40  ;;  %v2201_v46 = vpop.f32.mrb[2].mxu0  ;;  %v2240_v47 = vpop.f32.mrb[1].mxu1  ;;  %v2247_v8 = vadd.f32 %v2238_v39, %v6040_v15  ;;  %v2001_v38 = vld [vmem:[%s4430_s15] sm:$0xff]  ;;  %v2643_v15 = vstv %s2642_s23 }
 0xabc   : > { %v3548_v51 = vmul.f32 -1.442695, %v2245_v31  ;;  %v2202_v52 = vpop.f32.mrb[3].mxu0  ;;  %v2242_v53 = vpop.f32.mrb[2].mxu1  ;;  %v2248_v37 = vadd.f32 %v2240_v47, %v6039_v18  ;;  %vm2644_vm7 = vcmp.lt.s32.totalorder %v2643_v15, %v4566_v62 }
 0xabd   : > { %v3549_v7 = vmul.f32 -1.442695, %v2246_v44  ;;  %v2243_v9 = vpop.f32.mrb[3].mxu1  ;;  %v2279_v46 = vpop.permute.xlu0 %2278 }
 0xabe   : > { %3837 = vpow2.f32 %v3548_v51  ;;  %v3550_v36 = vmul.f32 -1.442695, %v2248_v37  ;;  %vm2280_vm5 = vcmp.eq.s32.totalorder %v2279_v46, 1 }
 0xabf   : > { %3839 = vpow2.f32 %v3549_v7 }
 0xac0   : > { %3841 = vpow2.f32 %v3550_v36 }
 0xac1   : > { %3843 = vtanh.f32 %v2247_v8 }
 0xac8   : > { %v3838_v21 = vpop.eup %3837 }
 0xac9   : > { %v3840_v25 = vpop.eup %3839  ;;  %v2252_v48 = vadd.f32 1.0, %v3838_v21  ;;  %v2889_v21 = vstv %s2888_s25 }
 0xaca   : > { %v2258_v19 = vadd.f32 1.0, %v3840_v25  ;;  %v3842_v59 = vpop.eup %3841  ;;  %v2645_v25 = vsel %vm2644_vm7, 1, %v4168_v16  ;;  %vm2890_vm8 = vcmp.lt.s32.totalorder %v2889_v21, %v4566_v62  ;;  %v6044_v21 = vld [vmem:[#allocation73_spill] sm:$0xff] }
 0xacb   : > { %3845 = vrcp.f32 %v2252_v48  ;;  %v3844_v31 = vpop.eup %3843  ;;  %v2265_v44 = vadd.f32 1.0, %v3842_v59  ;;  %v3134_v48 = vstv %s5207_s22 }
 0xacc   : > { %3847 = vrcp.f32 %v2258_v19  ;;  %v2891_v19 = vsel %vm2890_vm8, 1, %v4168_v16  ;;  %vm3135_vm9 = vcmp.lt.s32.totalorder %v3134_v48, %v4566_v62 }
 0xacd   : > { %3849 = vrcp.f32 %v2265_v44  ;;  %v3136_v59 = vsel %vm3135_vm9, 1, %v4168_v16 }
 0xad5   : > { %v3846_v40 = vpop.eup %3845 }
 0xad6   : > { %v3848_v51 = vpop.eup %3847  ;;  %v2269_v47 = vmul.f32 %v3846_v40, %v3844_v31  ;;  %v6041_v40 = vld [vmem:[#allocation72_spill] sm:$0xff] }
 0xad7   : > { %v2268_v52 = vmul.f32 %v3848_v51, %v2001_v38  ;;  %v3850_v7 = vpop.eup %3849 }
 0xad9   : > { %v2270_v39 = vadd.f32 %v2269_v47, %v2268_v52  ;;  %v6042_v47 = vld [vmem:[#allocation74_spill] sm:$0xff] }
 0xadb   : > { %3851 = vtanh.f32 %v2270_v39  ;;  %v5419_v53 = vsel %vm2280_vm5, %v2270_v39, %v2001_v38 }
 0xae5   : > { %v3852_v9 = vpop.eup %3851 }
 0xae6   : > { %v2272_v18 = vmul.f32 %v3852_v9, %v3850_v7 }
 0xae8   : > { %v5422_v37 = vsel %vm2280_vm5, %v2272_v18, %v5365_v4  ;;  %v2520_v4 = vstv %s2519_s10 }
 0xae9   : > { %3551 = vst [vmem:[%s4426_s9 + $0x38] sm:$0xff] %v5422_v37  ;;  %v2285_v36 = vpack.c.bf16 %v5422_v37, %v5422_v37  ;;  %vm2521_vm6 = vcmp.lt.s32.totalorder %v2520_v4, %v4566_v62  ;;  %v6043_v62 = vld [vmem:[#allocation75_spill] sm:$0xff] }
 0xaea   : > { %v2522_v8 = vsel %vm2521_vm6, 1, %v4168_v16 }
 0xaeb   : > { %2319 = vmatmul.mubr.bf16.vlgmr.msra.gmra.mrb[4].mxu0 %v2285_v36  ;;  %2360 = vmatmul.mubr.bf16.vlgmr.msra.gmra.mrb[4].mxu1 %v2285_v36 }
 0xaec   : > { %2410 = vmatpush1.bf16.msra.mxu0 %v5199_v14  ;;  %2451 = vmatpush1.bf16.msra.mxu1 %v5216_v30 }
 0xaed   : > { %2411 = vmatprep.subr.bf16.mxu0 %v5203_v33  ;;  %2452 = vmatprep.subr.bf16.mxu1 %v5220_v0 }
 0xaee   : > { %2441 = vmatprep.mubr.bf16.mxu0 %v4168_v16  ;;  %2482 = vmatprep.mubr.bf16.mxu1 %v4168_v16 }
 0xaef   : > { %2524 = vperm.xlu1 %3836, %v2522_v8  }
 0xaf0   : > { %2412 = vmatpush1.bf16.msra.mxu0 %v5225_v23  ;;  %2453 = vmatpush1.bf16.msra.mxu1 %v5237_v63 }
 0xaf1   : > { %2413 = vmatprep.subr.bf16.mxu0 %v5232_v32  ;;  %2454 = vmatprep.subr.bf16.mxu1 %v5242_v12 }
 0xaf3   : > { %2647 = vperm.xlu1 %3836, %v2645_v25  }
 0xaf4   : > { %2414 = vmatpush1.bf16.msra.mxu0 %v5249_v60  ;;  %2455 = vmatpush1.bf16.msra.mxu1 %v5260_v26 }
 0xaf5   : > { %2415 = vmatprep.subr.bf16.mxu0 %v5255_v27  ;;  %2456 = vmatprep.subr.bf16.mxu1 %v5265_v61 }
 0xaf7   : > { %2893 = vperm.xlu1 %3836, %v2891_v19  }
 0xaf8   : > { %2416 = vmatpush1.bf16.msra.mxu0 %v5276_v17  ;;  %2457 = vmatpush1.bf16.msra.mxu1 %v5287_v35 }
 0xaf9   : > { %2417 = vmatprep.subr.bf16.mxu0 %v5282_v34  ;;  %2458 = vmatprep.subr.bf16.mxu1 %v5293_v43 }
 0xafb   : > { %3138 = vperm.xlu1 %3836, %v3136_v59  }
 0xafc   : > { %2418 = vmatpush1.bf16.msra.mxu0 %v5299_v45  ;;  %2459 = vmatpush1.bf16.msra.mxu1 %v5309_v50 }
 0xafd   : > { %2419 = vmatprep.subr.bf16.mxu0 %v5304_v49  ;;  %2460 = vmatprep.subr.bf16.mxu1 %v5315_v6 }
 0xb00   : > { %2420 = vmatpush1.bf16.msra.mxu0 %v5321_v55  ;;  %2461 = vmatpush1.bf16.msra.mxu1 %v5331_v22 }
 0xb01   : > { %2421 = vmatprep.subr.bf16.mxu0 %v5326_v10  ;;  %2462 = vmatprep.subr.bf16.mxu1 %v5337_v42 }
 0xb04   : > { %2422 = vmatpush1.bf16.msra.mxu0 %v5342_v13  ;;  %2463 = vmatpush1.bf16.msra.mxu1 %v5352_v11 }
 0xb05   : > { %2423 = vmatprep.subr.bf16.mxu0 %v5347_v58  ;;  %2464 = vmatprep.subr.bf16.mxu1 %v5357_v54 }
 0xb08   : > { %2424 = vmatpush1.bf16.msra.mxu0 %v5362_v56  ;;  %2465 = vmatpush1.bf16.msra.mxu1 %v5371_v57 }
 0xb09   : > { %2532 = vmatprep.subr.bf16.mxu0 %v5195_v3  ;;  %2573 = vmatprep.subr.bf16.mxu1 %v5211_v41 }
 0xbbe   : > { %v2320_v31 = vpop.f32.mrb[4].mxu0  ;;  %v2361_v38 = vpop.f32.mrb[4].mxu1 }
 0xbbf   : > { %v2368_v44 = vadd.f32 %v2320_v31, %v6041_v40  ;;  %v2322_v46 = vpop.f32.mrb[5].mxu0  ;;  %v2363_v51 = vpop.f32.mrb[5].mxu1  ;;  %v2370_v25 = vadd.f32 %v2361_v38, %v6044_v21 }
 0xbc0   : > { %v2369_v52 = vadd.f32 %v2322_v46, %v6042_v47  ;;  %v2324_v39 = vpop.f32.mrb[6].mxu0  ;;  %v2365_v7 = vpop.f32.mrb[6].mxu1  ;;  %v2371_v15 = vadd.f32 %v2363_v51, %v6043_v62 }
 0xbc1   : > { %v3552_v9 = vmul.f32 -1.442695, %v2368_v44  ;;  %v2325_v18 = vpop.f32.mrb[7].mxu0  ;;  %v2366_v36 = vpop.f32.mrb[7].mxu1 }
 0xbc2   : > { %v3553_v4 = vmul.f32 -1.442695, %v2369_v52  ;;  %v3554_v8 = vmul.f32 -1.442695, %v2371_v15  ;;  %v2402_v7 = vpop.permute.xlu0 %2401 }
 0xbc3   : > { %3853 = vpow2.f32 %v3552_v9  ;;  %vm2403_vm10 = vcmp.eq.s32.totalorder %v2402_v7, 1 }
 0xbc4   : > { %3855 = vpow2.f32 %v3553_v4 }
 0xbc5   : > { %3857 = vpow2.f32 %v3554_v8  ;;  %v6045_v8 = vld [vmem:[#allocation68_spill] sm:$0xff] }
 0xbc6   : > { %3859 = vtanh.f32 %v2370_v25 }
 0xbcd   : > { %v3854_v48 = vpop.eup %3853 }
 0xbce   : > { %v3856_v19 = vpop.eup %3855  ;;  %v2375_v59 = vadd.f32 1.0, %v3854_v48 }
 0xbcf   : > { %v2381_v31 = vadd.f32 1.0, %v3856_v19  ;;  %v3858_v40 = vpop.eup %3857  ;;  %v6046_v19 = vld [vmem:[#allocation70_spill] sm:$0xff] }
 0xbd0   : > { %3861 = vrcp.f32 %v2375_v59  ;;  %v3860_v44 = vpop.eup %3859  ;;  %v2388_v39 = vadd.f32 1.0, %v3858_v40 }
 0xbd1   : > { %3863 = vrcp.f32 %v2381_v31 }
 0xbd2   : > { %3865 = vrcp.f32 %v2388_v39  ;;  %v6047_v39 = vld [vmem:[#allocation71_spill] sm:$0xff] }
 0xbda   : > { %v3862_v46 = vpop.eup %3861 }
 0xbdb   : > { %v3864_v47 = vpop.eup %3863  ;;  %v2392_v52 = vmul.f32 %v3862_v46, %v3860_v44 }
 0xbdc   : > { %v2391_v51 = vmul.f32 %v3864_v47, %v5419_v53  ;;  %v3866_v18 = vpop.eup %3865 }
 0xbde   : > { %v2393_v9 = vadd.f32 %v2392_v52, %v2391_v51 }
 0xbe0   : > { %3867 = vtanh.f32 %v2393_v9  ;;  %v5480_v38 = vsel %vm2403_vm10, %v2393_v9, %v5419_v53  ;;  %v6048_v9 = vld [vmem:[#allocation69_spill] sm:$0xff] }
 0xbea   : > { %v3868_v36 = vpop.eup %3867 }
 0xbeb   : > { %v2395_v4 = vmul.f32 %v3868_v36, %v3866_v18 }
 0xbed   : > { %v5483_v62 = vsel %vm2403_vm10, %v2395_v4, %v5422_v37 }
 0xbee   : > { %3555 = vst [vmem:[%s4426_s9 + $0x30] sm:$0xff] %v5483_v62  ;;  %v2408_v15 = vpack.c.bf16 %v5483_v62, %v5483_v62 }
 0xbf0   : > { %2442 = vmatmul.mubr.bf16.vlgmr.msra.gmra.mrb[8].mxu0 %v2408_v15  ;;  %2483 = vmatmul.mubr.bf16.vlgmr.msra.gmra.mrb[8].mxu1 %v2408_v15 }
 0xbf1   : > { %2533 = vmatpush1.bf16.msra.mxu0 %v5199_v14  ;;  %2574 = vmatpush1.bf16.msra.mxu1 %v5216_v30 }
 0xbf2   : > { %2534 = vmatprep.subr.bf16.mxu0 %v5203_v33  ;;  %2575 = vmatprep.subr.bf16.mxu1 %v5220_v0 }
 0xbf3   : > { %2564 = vmatprep.mubr.bf16.mxu0 %v4168_v16  ;;  %2605 = vmatprep.mubr.bf16.mxu1 %v4168_v16 }
 0xbf5   : > { %2535 = vmatpush1.bf16.msra.mxu0 %v5225_v23  ;;  %2576 = vmatpush1.bf16.msra.mxu1 %v5237_v63 }
 0xbf6   : > { %2536 = vmatprep.subr.bf16.mxu0 %v5232_v32  ;;  %2577 = vmatprep.subr.bf16.mxu1 %v5242_v12 }
 0xbf9   : > { %2537 = vmatpush1.bf16.msra.mxu0 %v5249_v60  ;;  %2578 = vmatpush1.bf16.msra.mxu1 %v5260_v26 }
 0xbfa   : > { %2538 = vmatprep.subr.bf16.mxu0 %v5255_v27  ;;  %2579 = vmatprep.subr.bf16.mxu1 %v5265_v61 }
 0xbfd   : > { %2539 = vmatpush1.bf16.msra.mxu0 %v5276_v17  ;;  %2580 = vmatpush1.bf16.msra.mxu1 %v5287_v35 }
 0xbfe   : > { %2540 = vmatprep.subr.bf16.mxu0 %v5282_v34  ;;  %2581 = vmatprep.subr.bf16.mxu1 %v5293_v43 }
 0xc01   : > { %2541 = vmatpush1.bf16.msra.mxu0 %v5299_v45  ;;  %2582 = vmatpush1.bf16.msra.mxu1 %v5309_v50 }
 0xc02   : > { %2542 = vmatprep.subr.bf16.mxu0 %v5304_v49  ;;  %2583 = vmatprep.subr.bf16.mxu1 %v5315_v6 }
 0xc05   : > { %2543 = vmatpush1.bf16.msra.mxu0 %v5321_v55  ;;  %2584 = vmatpush1.bf16.msra.mxu1 %v5331_v22 }
 0xc06   : > { %2544 = vmatprep.subr.bf16.mxu0 %v5326_v10  ;;  %2585 = vmatprep.subr.bf16.mxu1 %v5337_v42 }
 0xc09   : > { %2545 = vmatpush1.bf16.msra.mxu0 %v5342_v13  ;;  %2586 = vmatpush1.bf16.msra.mxu1 %v5352_v11 }
 0xc0a   : > { %2546 = vmatprep.subr.bf16.mxu0 %v5347_v58  ;;  %2587 = vmatprep.subr.bf16.mxu1 %v5357_v54 }
 0xc0d   : > { %2547 = vmatpush1.bf16.msra.mxu0 %v5362_v56  ;;  %2588 = vmatpush1.bf16.msra.mxu1 %v5371_v57 }
 0xc0e   : > { %2655 = vmatprep.subr.bf16.mxu0 %v5195_v3  ;;  %2696 = vmatprep.subr.bf16.mxu1 %v5211_v41 }
 0xcc3   : > { %v2443_v53 = vpop.f32.mrb[8].mxu0  ;;  %v2484_v37 = vpop.f32.mrb[8].mxu1 }
 0xcc4   : > { %v2491_v21 = vadd.f32 %v2443_v53, %v6045_v8  ;;  %v2445_v25 = vpop.f32.mrb[9].mxu0  ;;  %v2486_v48 = vpop.f32.mrb[9].mxu1  ;;  %v2493_v18 = vadd.f32 %v2484_v37, %v6048_v9 }
 0xcc5   : > { %v2492_v59 = vadd.f32 %v2445_v25, %v6046_v19  ;;  %v2447_v31 = vpop.f32.mrb[10].mxu0  ;;  %v2488_v40 = vpop.f32.mrb[10].mxu1  ;;  %v2494_v51 = vadd.f32 %v2486_v48, %v6047_v39 }
 0xcc6   : > { %v3556_v44 = vmul.f32 -1.442695, %v2491_v21  ;;  %v2448_v46 = vpop.f32.mrb[11].mxu0  ;;  %v2489_v47 = vpop.f32.mrb[11].mxu1 }
 0xcc7   : > { %v3557_v52 = vmul.f32 -1.442695, %v2492_v59  ;;  %v3558_v7 = vmul.f32 -1.442695, %v2494_v51  ;;  %v2525_v19 = vpop.permute.xlu1 %2524 }
 0xcc8   : > { %3869 = vpow2.f32 %v3556_v44  ;;  %vm2526_vm11 = vcmp.eq.s32.totalorder %v2525_v19, 1 }
 0xcc9   : > { %3871 = vpow2.f32 %v3557_v52 }
 0xcca   : > { %3873 = vpow2.f32 %v3558_v7  ;;  %v6049_v7 = vld [vmem:[#allocation64_spill] sm:$0xff] }
 0xccb   : > { %3875 = vtanh.f32 %v2493_v18 }
 0xcd2   : > { %v3870_v36 = vpop.eup %3869 }
 0xcd3   : > { %v3872_v4 = vpop.eup %3871  ;;  %v2498_v15 = vadd.f32 1.0, %v3870_v36 }
 0xcd4   : > { %v2504_v53 = vadd.f32 1.0, %v3872_v4  ;;  %v3874_v8 = vpop.eup %3873  ;;  %v6050_v4 = vld [vmem:[#allocation66_spill] sm:$0xff] }
 0xcd5   : > { %3877 = vrcp.f32 %v2498_v15  ;;  %v3876_v21 = vpop.eup %3875  ;;  %v2511_v31 = vadd.f32 1.0, %v3874_v8 }
 0xcd6   : > { %3879 = vrcp.f32 %v2504_v53 }
 0xcd7   : > { %3881 = vrcp.f32 %v2511_v31  ;;  %v6051_v31 = vld [vmem:[#allocation67_spill] sm:$0xff] }
 0xcdf   : > { %v3878_v25 = vpop.eup %3877 }
 0xce0   : > { %v3880_v59 = vpop.eup %3879  ;;  %v2515_v40 = vmul.f32 %v3878_v25, %v3876_v21 }
 0xce1   : > { %v2514_v48 = vmul.f32 %v3880_v59, %v5480_v38  ;;  %v3882_v46 = vpop.eup %3881 }
 0xce3   : > { %v2516_v37 = vadd.f32 %v2515_v40, %v2514_v48 }
 0xce5   : > { %3883 = vtanh.f32 %v2516_v37  ;;  %v5529_v44 = vsel %vm2526_vm11, %v2516_v37, %v5480_v38  ;;  %v6052_v37 = vld [vmem:[#allocation65_spill] sm:$0xff] }
 0xcef   : > { %v3884_v47 = vpop.eup %3883 }
 0xcf0   : > { %v2518_v52 = vmul.f32 %v3884_v47, %v3882_v46 }
 0xcf2   : > { %v5532_v39 = vsel %vm2526_vm11, %v2518_v52, %v5483_v62 }
 0xcf3   : > { %3559 = vst [vmem:[%s4426_s9 + $0x28] sm:$0xff] %v5532_v39  ;;  %v2531_v51 = vpack.c.bf16 %v5532_v39, %v5532_v39 }
 0xcf5   : > { %2565 = vmatmul.mubr.bf16.vlgmr.msra.gmra.mrb[12].mxu0 %v2531_v51  ;;  %2606 = vmatmul.mubr.bf16.vlgmr.msra.gmra.mrb[12].mxu1 %v2531_v51 }
 0xcf6   : > { %2656 = vmatpush1.bf16.msra.mxu0 %v5199_v14  ;;  %2697 = vmatpush1.bf16.msra.mxu1 %v5216_v30 }
 0xcf7   : > { %2657 = vmatprep.subr.bf16.mxu0 %v5203_v33  ;;  %2698 = vmatprep.subr.bf16.mxu1 %v5220_v0 }
 0xcf8   : > { %2687 = vmatprep.mubr.bf16.mxu0 %v4168_v16  ;;  %2728 = vmatprep.mubr.bf16.mxu1 %v4168_v16 }
 0xcfa   : > { %2658 = vmatpush1.bf16.msra.mxu0 %v5225_v23  ;;  %2699 = vmatpush1.bf16.msra.mxu1 %v5237_v63 }
 0xcfb   : > { %2659 = vmatprep.subr.bf16.mxu0 %v5232_v32  ;;  %2700 = vmatprep.subr.bf16.mxu1 %v5242_v12 }
 0xcfe   : > { %2660 = vmatpush1.bf16.msra.mxu0 %v5249_v60  ;;  %2701 = vmatpush1.bf16.msra.mxu1 %v5260_v26 }
 0xcff   : > { %2661 = vmatprep.subr.bf16.mxu0 %v5255_v27  ;;  %2702 = vmatprep.subr.bf16.mxu1 %v5265_v61 }
 0xd02   : > { %2662 = vmatpush1.bf16.msra.mxu0 %v5276_v17  ;;  %2703 = vmatpush1.bf16.msra.mxu1 %v5287_v35 }
 0xd03   : > { %2663 = vmatprep.subr.bf16.mxu0 %v5282_v34  ;;  %2704 = vmatprep.subr.bf16.mxu1 %v5293_v43 }
 0xd06   : > { %2664 = vmatpush1.bf16.msra.mxu0 %v5299_v45  ;;  %2705 = vmatpush1.bf16.msra.mxu1 %v5309_v50 }
 0xd07   : > { %2665 = vmatprep.subr.bf16.mxu0 %v5304_v49  ;;  %2706 = vmatprep.subr.bf16.mxu1 %v5315_v6 }
 0xd0a   : > { %2666 = vmatpush1.bf16.msra.mxu0 %v5321_v55  ;;  %2707 = vmatpush1.bf16.msra.mxu1 %v5331_v22 }
 0xd0b   : > { %2667 = vmatprep.subr.bf16.mxu0 %v5326_v10  ;;  %2708 = vmatprep.subr.bf16.mxu1 %v5337_v42 }
 0xd0e   : > { %2668 = vmatpush1.bf16.msra.mxu0 %v5342_v13  ;;  %2709 = vmatpush1.bf16.msra.mxu1 %v5352_v11 }
 0xd0f   : > { %2669 = vmatprep.subr.bf16.mxu0 %v5347_v58  ;;  %2710 = vmatprep.subr.bf16.mxu1 %v5357_v54 }
 0xd12   : > { %2670 = vmatpush1.bf16.msra.mxu0 %v5362_v56  ;;  %2711 = vmatpush1.bf16.msra.mxu1 %v5371_v57 }
 0xd13   : > { %2778 = vmatprep.subr.bf16.mxu0 %v5195_v3  ;;  %2819 = vmatprep.subr.bf16.mxu1 %v5211_v41 }
 0xdc8   : > { %v2566_v38 = vpop.f32.mrb[12].mxu0  ;;  %v2607_v62 = vpop.f32.mrb[12].mxu1 }
 0xdc9   : > { %v2614_v9 = vadd.f32 %v2566_v38, %v6049_v7  ;;  %v2568_v18 = vpop.f32.mrb[13].mxu0  ;;  %v2609_v36 = vpop.f32.mrb[13].mxu1  ;;  %v2616_v46 = vadd.f32 %v2607_v62, %v6052_v37 }
 0xdca   : > { %v2615_v15 = vadd.f32 %v2568_v18, %v6050_v4  ;;  %v2570_v53 = vpop.f32.mrb[14].mxu0  ;;  %v2611_v8 = vpop.f32.mrb[14].mxu1  ;;  %v2617_v40 = vadd.f32 %v2609_v36, %v6051_v31 }
 0xdcb   : > { %v3560_v21 = vmul.f32 -1.442695, %v2614_v9  ;;  %v2571_v25 = vpop.f32.mrb[15].mxu0  ;;  %v2612_v19 = vpop.f32.mrb[15].mxu1 }
 0xdcc   : > { %v3561_v59 = vmul.f32 -1.442695, %v2615_v15  ;;  %v3562_v48 = vmul.f32 -1.442695, %v2617_v40  ;;  %v2648_v8 = vpop.permute.xlu1 %2647 }
 0xdcd   : > { %3885 = vpow2.f32 %v3560_v21  ;;  %vm2649_vm12 = vcmp.eq.s32.totalorder %v2648_v8, 1  ;;  %v6055_v8 = vld [vmem:[#allocation61_spill] sm:$0xff] }
 0xdce   : > { %3887 = vpow2.f32 %v3561_v59 }
 0xdcf   : > { %3889 = vpow2.f32 %v3562_v48 }
 0xdd0   : > { %3891 = vtanh.f32 %v2616_v46 }
 0xdd7   : > { %v3886_v47 = vpop.eup %3885 }
 0xdd8   : > { %v3888_v52 = vpop.eup %3887  ;;  %v2621_v51 = vadd.f32 1.0, %v3886_v47  ;;  %v6053_v47 = vld [vmem:[#allocation62_spill] sm:$0xff] }
 0xdd9   : > { %v2627_v38 = vadd.f32 1.0, %v3888_v52  ;;  %v3890_v7 = vpop.eup %3889 }
 0xdda   : > { %3893 = vrcp.f32 %v2621_v51  ;;  %v3892_v9 = vpop.eup %3891  ;;  %v2634_v53 = vadd.f32 1.0, %v3890_v7 }
 0xddb   : > { %3895 = vrcp.f32 %v2627_v38 }
 0xddc   : > { %3897 = vrcp.f32 %v2634_v53 }
 0xde4   : > { %v3894_v18 = vpop.eup %3893 }
 0xde5   : > { %v3896_v4 = vpop.eup %3895  ;;  %v2638_v15 = vmul.f32 %v3894_v18, %v3892_v9 }
 0xde6   : > { %v2637_v36 = vmul.f32 %v3896_v4, %v5529_v44  ;;  %v3898_v25 = vpop.eup %3897 }
 0xde8   : > { %v2639_v21 = vadd.f32 %v2638_v15, %v2637_v36  ;;  %v6054_v15 = vld [vmem:[#allocation63_spill] sm:$0xff] }
 0xdea   : > { %3899 = vtanh.f32 %v2639_v21  ;;  %v5578_v62 = vsel %vm2649_vm12, %v2639_v21, %v5529_v44 }
 0xdf4   : > { %v3900_v19 = vpop.eup %3899 }
 0xdf5   : > { %v2641_v59 = vmul.f32 %v3900_v19, %v3898_v25 }
 0xdf7   : > { %v5581_v31 = vsel %vm2649_vm12, %v2641_v59, %v5532_v39 }
 0xdf8   : > { %3563 = vst [vmem:[%s4426_s9 + $0x20] sm:$0xff] %v5581_v31  ;;  %v2654_v40 = vpack.c.bf16 %v5581_v31, %v5581_v31 }
 0xdfa   : > { %2688 = vmatmul.mubr.bf16.vlgmr.msra.gmra.mrb[16].mxu0 %v2654_v40  ;;  %2729 = vmatmul.mubr.bf16.vlgmr.msra.gmra.mrb[16].mxu1 %v2654_v40 }
 0xdfb   : > { %2779 = vmatpush1.bf16.msra.mxu0 %v5199_v14  ;;  %2820 = vmatpush1.bf16.msra.mxu1 %v5216_v30 }
 0xdfc   : > { %2780 = vmatprep.subr.bf16.mxu0 %v5203_v33  ;;  %2821 = vmatprep.subr.bf16.mxu1 %v5220_v0 }
 0xdfd   : > { %2810 = vmatprep.mubr.bf16.mxu0 %v4168_v16  ;;  %2851 = vmatprep.mubr.bf16.mxu1 %v4168_v16 }
 0xdff   : > { %2781 = vmatpush1.bf16.msra.mxu0 %v5225_v23  ;;  %2822 = vmatpush1.bf16.msra.mxu1 %v5237_v63 }
 0xe00   : > { %2782 = vmatprep.subr.bf16.mxu0 %v5232_v32  ;;  %2823 = vmatprep.subr.bf16.mxu1 %v5242_v12 }
 0xe03   : > { %2783 = vmatpush1.bf16.msra.mxu0 %v5249_v60  ;;  %2824 = vmatpush1.bf16.msra.mxu1 %v5260_v26 }
 0xe04   : > { %2784 = vmatprep.subr.bf16.mxu0 %v5255_v27  ;;  %2825 = vmatprep.subr.bf16.mxu1 %v5265_v61 }
 0xe07   : > { %2785 = vmatpush1.bf16.msra.mxu0 %v5276_v17  ;;  %2826 = vmatpush1.bf16.msra.mxu1 %v5287_v35 }
 0xe08   : > { %2786 = vmatprep.subr.bf16.mxu0 %v5282_v34  ;;  %2827 = vmatprep.subr.bf16.mxu1 %v5293_v43 }
 0xe0b   : > { %2787 = vmatpush1.bf16.msra.mxu0 %v5299_v45  ;;  %2828 = vmatpush1.bf16.msra.mxu1 %v5309_v50 }
 0xe0c   : > { %2788 = vmatprep.subr.bf16.mxu0 %v5304_v49  ;;  %2829 = vmatprep.subr.bf16.mxu1 %v5315_v6 }
 0xe0f   : > { %2789 = vmatpush1.bf16.msra.mxu0 %v5321_v55  ;;  %2830 = vmatpush1.bf16.msra.mxu1 %v5331_v22 }
 0xe10   : > { %2790 = vmatprep.subr.bf16.mxu0 %v5326_v10  ;;  %2831 = vmatprep.subr.bf16.mxu1 %v5337_v42 }
 0xe13   : > { %2791 = vmatpush1.bf16.msra.mxu0 %v5342_v13  ;;  %2832 = vmatpush1.bf16.msra.mxu1 %v5352_v11 }
 0xe14   : > { %2792 = vmatprep.subr.bf16.mxu0 %v5347_v58  ;;  %2833 = vmatprep.subr.bf16.mxu1 %v5357_v54 }
 0xe17   : > { %2793 = vmatpush1.bf16.msra.mxu0 %v5362_v56  ;;  %2834 = vmatpush1.bf16.msra.mxu1 %v5371_v57 }
 0xe18   : > { %2901 = vmatprep.subr.bf16.mxu0 %v5195_v3  ;;  %2942 = vmatprep.subr.bf16.mxu1 %v5211_v41 }
 0xecd   : > { %v2689_v44 = vpop.f32.mrb[16].mxu0  ;;  %v2730_v39 = vpop.f32.mrb[16].mxu1 }
 0xece   : > { %v2737_v48 = vadd.f32 %v2689_v44, %v4603_v5  ;;  %v2691_v37 = vpop.f32.mrb[17].mxu0  ;;  %v2732_v46 = vpop.f32.mrb[17].mxu1  ;;  %v2739_v21 = vadd.f32 %v2730_v39, %v6055_v8 }
 0xecf   : > { %v2738_v52 = vadd.f32 %v2691_v37, %v6053_v47  ;;  %v2693_v51 = vpop.f32.mrb[18].mxu0  ;;  %v2734_v38 = vpop.f32.mrb[18].mxu1  ;;  %v2740_v53 = vadd.f32 %v2732_v46, %v6054_v15 }
 0xed0   : > { %v3564_v7 = vmul.f32 -1.442695, %v2737_v48  ;;  %v2694_v9 = vpop.f32.mrb[19].mxu0  ;;  %v2735_v18 = vpop.f32.mrb[19].mxu1 }
 0xed1   : > { %v3565_v4 = vmul.f32 -1.442695, %v2738_v52  ;;  %v3566_v36 = vmul.f32 -1.442695, %v2740_v53  ;;  %v2771_v51 = vpop.permute.xlu0 %2770 }
 0xed2   : > { %3901 = vpow2.f32 %v3564_v7  ;;  %vm2772_vm13 = vcmp.eq.s32.totalorder %v2771_v51, 1 }
 0xed3   : > { %3903 = vpow2.f32 %v3565_v4 }
 0xed4   : > { %3905 = vpow2.f32 %v3566_v36 }
 0xed5   : > { %3907 = vtanh.f32 %v2739_v21 }
 0xedc   : > { %v3902_v25 = vpop.eup %3901 }
 0xedd   : > { %v3904_v19 = vpop.eup %3903  ;;  %v2744_v5 = vadd.f32 1.0, %v3902_v25 }
 0xede   : > { %v2750_v59 = vadd.f32 1.0, %v3904_v19  ;;  %v3906_v40 = vpop.eup %3905 }
 0xedf   : > { %3909 = vrcp.f32 %v2744_v5  ;;  %v3908_v44 = vpop.eup %3907  ;;  %v2757_v52 = vadd.f32 1.0, %v3906_v40 }
 0xee0   : > { %3911 = vrcp.f32 %v2750_v59 }
 0xee1   : > { %3913 = vrcp.f32 %v2757_v52 }
 0xee9   : > { %v3910_v48 = vpop.eup %3909 }
 0xeea   : > { %v3912_v37 = vpop.eup %3911  ;;  %v2761_v47 = vmul.f32 %v3910_v48, %v3908_v44 }
 0xeeb   : > { %v2760_v46 = vmul.f32 %v3912_v37, %v5578_v62  ;;  %v3914_v7 = vpop.eup %3913 }
 0xeed   : > { %v2762_v38 = vadd.f32 %v2761_v47, %v2760_v46 }
 0xeef   : > { %3915 = vtanh.f32 %v2762_v38  ;;  %v5627_v39 = vsel %vm2772_vm13, %v2762_v38, %v5578_v62 }
 0xef9   : > { %v3916_v9 = vpop.eup %3915 }
 0xefa   : > { %v2764_v18 = vmul.f32 %v3916_v9, %v3914_v7 }
 0xefc   : > { %v5630_v4 = vsel %vm2772_vm13, %v2764_v18, %v5581_v31  ;;  %v2894_v18 = vpop.permute.xlu1 %2893 }
 0xefd   : > { %3567 = vst [vmem:[%s4426_s9 + $0x18] sm:$0xff] %v5630_v4  ;;  %v2777_v15 = vpack.c.bf16 %v5630_v4, %v5630_v4  ;;  %vm2895_vm14 = vcmp.eq.s32.totalorder %v2894_v18, 1 }
 0xeff   : > { %2811 = vmatmul.mubr.bf16.vlgmr.msra.gmra.mrb[20].mxu0 %v2777_v15  ;;  %2852 = vmatmul.mubr.bf16.vlgmr.msra.gmra.mrb[20].mxu1 %v2777_v15 }
 0xf00   : > { %2902 = vmatpush1.bf16.msra.mxu0 %v5199_v14  ;;  %2943 = vmatpush1.bf16.msra.mxu1 %v5216_v30 }
 0xf01   : > { %2903 = vmatprep.subr.bf16.mxu0 %v5203_v33  ;;  %2944 = vmatprep.subr.bf16.mxu1 %v5220_v0 }
 0xf02   : > { %2933 = vmatprep.mubr.bf16.mxu0 %v4168_v16  ;;  %2974 = vmatprep.mubr.bf16.mxu1 %v4168_v16 }
 0xf04   : > { %2904 = vmatpush1.bf16.msra.mxu0 %v5225_v23  ;;  %2945 = vmatpush1.bf16.msra.mxu1 %v5237_v63 }
 0xf05   : > { %2905 = vmatprep.subr.bf16.mxu0 %v5232_v32  ;;  %2946 = vmatprep.subr.bf16.mxu1 %v5242_v12 }
 0xf08   : > { %2906 = vmatpush1.bf16.msra.mxu0 %v5249_v60  ;;  %2947 = vmatpush1.bf16.msra.mxu1 %v5260_v26 }
 0xf09   : > { %2907 = vmatprep.subr.bf16.mxu0 %v5255_v27  ;;  %2948 = vmatprep.subr.bf16.mxu1 %v5265_v61 }
 0xf0c   : > { %2908 = vmatpush1.bf16.msra.mxu0 %v5276_v17  ;;  %2949 = vmatpush1.bf16.msra.mxu1 %v5287_v35 }
 0xf0d   : > { %2909 = vmatprep.subr.bf16.mxu0 %v5282_v34  ;;  %2950 = vmatprep.subr.bf16.mxu1 %v5293_v43 }
 0xf10   : > { %2910 = vmatpush1.bf16.msra.mxu0 %v5299_v45  ;;  %2951 = vmatpush1.bf16.msra.mxu1 %v5309_v50 }
 0xf11   : > { %2911 = vmatprep.subr.bf16.mxu0 %v5304_v49  ;;  %2952 = vmatprep.subr.bf16.mxu1 %v5315_v6 }
 0xf14   : > { %2912 = vmatpush1.bf16.msra.mxu0 %v5321_v55  ;;  %2953 = vmatpush1.bf16.msra.mxu1 %v5331_v22 }
 0xf15   : > { %2913 = vmatprep.subr.bf16.mxu0 %v5326_v10  ;;  %2954 = vmatprep.subr.bf16.mxu1 %v5337_v42 }
 0xf18   : > { %2914 = vmatpush1.bf16.msra.mxu0 %v5342_v13  ;;  %2955 = vmatpush1.bf16.msra.mxu1 %v5352_v11 }
 0xf19   : > { %2915 = vmatprep.subr.bf16.mxu0 %v5347_v58  ;;  %2956 = vmatprep.subr.bf16.mxu1 %v5357_v54 }
 0xf1c   : > { %2916 = vmatpush1.bf16.msra.mxu0 %v5362_v56  ;;  %2957 = vmatpush1.bf16.msra.mxu1 %v5371_v57 }
 0xf1d   : > { %3024 = vmatprep.subr.bf16.mxu0 %v5195_v3  ;;  %3065 = vmatprep.subr.bf16.mxu1 %v5211_v41 }
 0xfd2   : > { %v2812_v62 = vpop.f32.mrb[20].mxu0  ;;  %v2853_v31 = vpop.f32.mrb[20].mxu1 }
 0xfd3   : > { %v2860_v53 = vadd.f32 %v2812_v62, %v4593_v28  ;;  %v2814_v36 = vpop.f32.mrb[21].mxu0  ;;  %v2855_v8 = vpop.f32.mrb[21].mxu1  ;;  %v2862_v41 = vadd.f32 %v2853_v31, %v4595_v29 }
 0xfd4   : > { %v2861_v21 = vadd.f32 %v2814_v36, %v4598_v1  ;;  %v2816_v25 = vpop.f32.mrb[22].mxu0  ;;  %v2857_v19 = vpop.f32.mrb[22].mxu1  ;;  %v2863_v3 = vadd.f32 %v2855_v8, %v4601_v2 }
 0xfd5   : > { %v3568_v5 = vmul.f32 -1.442695, %v2860_v53  ;;  %v2817_v59 = vpop.f32.mrb[23].mxu0  ;;  %v2858_v40 = vpop.f32.mrb[23].mxu1 }
 0xfd6   : > { %v3569_v44 = vmul.f32 -1.442695, %v2861_v21  ;;  %v3570_v48 = vmul.f32 -1.442695, %v2863_v3  ;;  %v6059_v3 = vld [vmem:[#allocation57_spill] sm:$0xff] }
 0xfd7   : > { %3917 = vpow2.f32 %v3568_v5  ;;  %v6058_v5 = vld [vmem:[#allocation55_spill] sm:$0xff] }
 0xfd8   : > { %3919 = vpow2.f32 %v3569_v44 }
 0xfd9   : > { %3921 = vpow2.f32 %v3570_v48 }
 0xfda   : > { %3923 = vtanh.f32 %v2862_v41 }
 0xfe1   : > { %v3918_v37 = vpop.eup %3917 }
 0xfe2   : > { %v3920_v47 = vpop.eup %3919  ;;  %v2867_v28 = vadd.f32 1.0, %v3918_v37 }
 0xfe3   : > { %v2873_v52 = vadd.f32 1.0, %v3920_v47  ;;  %v3922_v1 = vpop.eup %3921 }
 0xfe4   : > { %3925 = vrcp.f32 %v2867_v28  ;;  %v3924_v46 = vpop.eup %3923  ;;  %v2880_v9 = vadd.f32 1.0, %v3922_v1 }
 0xfe5   : > { %3927 = vrcp.f32 %v2873_v52 }
 0xfe6   : > { %3929 = vrcp.f32 %v2880_v9 }
 0xfee   : > { %v3926_v51 = vpop.eup %3925 }
 0xfef   : > { %v3928_v38 = vpop.eup %3927  ;;  %v2884_v7 = vmul.f32 %v3926_v51, %v3924_v46  ;;  %v6060_v46 = vld [vmem:[#allocation58_spill] sm:$0xff] }
 0xff0   : > { %v2883_v2 = vmul.f32 %v3928_v38, %v5627_v39  ;;  %v3930_v62 = vpop.eup %3929 }
 0xff2   : > { %v2885_v15 = vadd.f32 %v2884_v7, %v2883_v2  ;;  %v6061_v7 = vld [vmem:[#allocation56_spill] sm:$0xff] }
 0xff4   : > { %3931 = vtanh.f32 %v2885_v15  ;;  %v5676_v29 = vsel %vm2895_vm14, %v2885_v15, %v5627_v39 }
 0xffe   : > { %v3932_v31 = vpop.eup %3931 }
 0xfff   : > { %v2887_v53 = vmul.f32 %v3932_v31, %v3930_v62 }
0x1001   : > { %v5679_v36 = vsel %vm2895_vm14, %v2887_v53, %v5630_v4 }
0x1002   : > { %3571 = vst [vmem:[%s4426_s9 + $0x10] sm:$0xff] %v5679_v36  ;;  %v2900_v8 = vpack.c.bf16 %v5679_v36, %v5679_v36 }
0x1004   : > { %2934 = vmatmul.mubr.bf16.vlgmr.msra.gmra.mrb[24].mxu0 %v2900_v8  ;;  %2975 = vmatmul.mubr.bf16.vlgmr.msra.gmra.mrb[24].mxu1 %v2900_v8 }
0x1005   : > { %3025 = vmatpush1.bf16.msra.mxu0 %v5199_v14  ;;  %3066 = vmatpush1.bf16.msra.mxu1 %v5216_v30 }
0x1006   : > { %3026 = vmatprep.subr.bf16.mxu0 %v5203_v33  ;;  %3067 = vmatprep.subr.bf16.mxu1 %v5220_v0 }
0x1007   : > { %3056 = vmatprep.mubr.bf16.mxu0 %v4168_v16  ;;  %3097 = vmatprep.mubr.bf16.mxu1 %v4168_v16 }
0x1009   : > { %3027 = vmatpush1.bf16.msra.mxu0 %v5225_v23  ;;  %3068 = vmatpush1.bf16.msra.mxu1 %v5237_v63 }
0x100a   : > { %3028 = vmatprep.subr.bf16.mxu0 %v5232_v32  ;;  %3069 = vmatprep.subr.bf16.mxu1 %v5242_v12 }
0x100d   : > { %3029 = vmatpush1.bf16.msra.mxu0 %v5249_v60  ;;  %3070 = vmatpush1.bf16.msra.mxu1 %v5260_v26 }
0x100e   : > { %3030 = vmatprep.subr.bf16.mxu0 %v5255_v27  ;;  %3071 = vmatprep.subr.bf16.mxu1 %v5265_v61  ;;  %v6056_v61 = vld [vmem:[#allocation60_spill] sm:$0xff] }
0x1011   : > { %3031 = vmatpush1.bf16.msra.mxu0 %v5276_v17  ;;  %3072 = vmatpush1.bf16.msra.mxu1 %v5287_v35  ;;  %v6057_v35 = vld [vmem:[#allocation59_spill] sm:$0xff] }
0x1012   : > { %3032 = vmatprep.subr.bf16.mxu0 %v5282_v34  ;;  %3073 = vmatprep.subr.bf16.mxu1 %v5293_v43 }
0x1015   : > { %3033 = vmatpush1.bf16.msra.mxu0 %v5299_v45  ;;  %3074 = vmatpush1.bf16.msra.mxu1 %v5309_v50 }
0x1016   : > { %3034 = vmatprep.subr.bf16.mxu0 %v5304_v49  ;;  %3075 = vmatprep.subr.bf16.mxu1 %v5315_v6 }
0x1019   : > { %3035 = vmatpush1.bf16.msra.mxu0 %v5321_v55  ;;  %3076 = vmatpush1.bf16.msra.mxu1 %v5331_v22 }
0x101a   : > { %3036 = vmatprep.subr.bf16.mxu0 %v5326_v10  ;;  %3077 = vmatprep.subr.bf16.mxu1 %v5337_v42 }
0x101d   : > { %3037 = vmatpush1.bf16.msra.mxu0 %v5342_v13  ;;  %3078 = vmatpush1.bf16.msra.mxu1 %v5352_v11  ;;  %v3017_v13 = vpop.permute.xlu0 %3016 }
0x101e   : > { %3038 = vmatprep.subr.bf16.mxu0 %v5347_v58  ;;  %3079 = vmatprep.subr.bf16.mxu1 %v5357_v54  ;;  %vm3018_vm15 = vcmp.eq.s32.totalorder %v3017_v13, 1 }
0x1021   : > { %3039 = vmatpush1.bf16.msra.mxu0 %v5362_v56  ;;  %3080 = vmatpush1.bf16.msra.mxu1 %v5371_v57 }
0x10d7   : > { %v2935_v14 = vpop.f32.mrb[24].mxu0  ;;  %v2976_v33 = vpop.f32.mrb[24].mxu1 }
0x10d8   : > { %v2983_v30 = vadd.f32 %v2935_v14, %v4583_v20  ;;  %v2937_v0 = vpop.f32.mrb[25].mxu0  ;;  %v2978_v23 = vpop.f32.mrb[25].mxu1  ;;  %v2985_v43 = vadd.f32 %v2976_v33, %v6057_v35 }
0x10d9   : > { %v2984_v32 = vadd.f32 %v2937_v0, %v4588_v24  ;;  %v2939_v63 = vpop.f32.mrb[26].mxu0  ;;  %v2980_v12 = vpop.f32.mrb[26].mxu1  ;;  %v2986_v17 = vadd.f32 %v2978_v23, %v6056_v61 }
0x10da   : > { %v3572_v16 = vmul.f32 -1.442695, %v2983_v30  ;;  %v2940_v60 = vpop.f32.mrb[27].mxu0  ;;  %v2981_v27 = vpop.f32.mrb[27].mxu1 }
0x10db   : > { %v3573_v26 = vmul.f32 -1.442695, %v2984_v32  ;;  %v3574_v34 = vmul.f32 -1.442695, %v2986_v17  ;;  %v3139_v33 = vpop.permute.xlu1 %3138 }
0x10dc   : > { %3933 = vpow2.f32 %v3572_v16  ;;  %vm3140_vm0 = vcmp.eq.s32.totalorder %v3139_v33, 1 }
0x10dd   : > { %3935 = vpow2.f32 %v3573_v26 }
0x10de   : > { %3937 = vpow2.f32 %v3574_v34 }
0x10df   : > { %3939 = vtanh.f32 %v2985_v43 }
0x10e6   : > { %v3934_v45 = vpop.eup %3933 }
0x10e7   : > { %v3936_v49 = vpop.eup %3935  ;;  %v2990_v20 = vadd.f32 1.0, %v3934_v45 }
0x10e8   : > { %v2996_v50 = vadd.f32 1.0, %v3936_v49  ;;  %v3938_v24 = vpop.eup %3937 }
0x10e9   : > { %3941 = vrcp.f32 %v2990_v20  ;;  %v3940_v6 = vpop.eup %3939  ;;  %v3003_v42 = vadd.f32 1.0, %v3938_v24 }
0x10ea   : > { %3943 = vrcp.f32 %v2996_v50 }
0x10eb   : > { %3945 = vrcp.f32 %v3003_v42 }
0x10f3   : > { %v3942_v55 = vpop.eup %3941 }
0x10f4   : > { %v3944_v10 = vpop.eup %3943  ;;  %v3007_v22 = vmul.f32 %v3942_v55, %v3940_v6 }
0x10f5   : > { %v3006_v58 = vmul.f32 %v3944_v10, %v5676_v29  ;;  %v3946_v56 = vpop.eup %3945 }
0x10f7   : > { %v3008_v11 = vadd.f32 %v3007_v22, %v3006_v58 }
0x10f9   : > { %3947 = vtanh.f32 %v3008_v11  ;;  %v3019_v54 = vsel %vm3018_vm15, %v3008_v11, %v5676_v29 }
0x1103   : > { %v3948_v57 = vpop.eup %3947 }
0x1104   : > { %v3010_v39 = vmul.f32 %v3948_v57, %v3946_v56 }
0x1106   : > { %v3020_v4 = vsel %vm3018_vm15, %v3010_v39, %v5679_v36 }
0x1107   : > { %3575 = vst [vmem:[%s4426_s9 + $0x8] sm:$0xff] %v3020_v4  ;;  %v3023_v21 = vpack.c.bf16 %v3020_v4, %v3020_v4 }
0x1109   : > { %3057 = vmatmul.mubr.bf16.vlgmr.msra.gmra.mrb[28].mxu0 %v3023_v21  ;;  %3098 = vmatmul.mubr.bf16.vlgmr.msra.gmra.mrb[28].mxu1 %v3023_v21 }
0x11dc   : > { %v3058_v25 = vpop.f32.mrb[28].mxu0  ;;  %v3099_v19 = vpop.f32.mrb[28].mxu1 }
0x11dd   : > { %v3106_v59 = vadd.f32 %v3058_v25, %v6058_v5  ;;  %v3060_v40 = vpop.f32.mrb[29].mxu0  ;;  %v3101_v44 = vpop.f32.mrb[29].mxu1  ;;  %v3108_v9 = vadd.f32 %v3099_v19, %v6061_v7 }
0x11de   : > { %v3107_v48 = vadd.f32 %v3060_v40, %v6059_v3  ;;  %v3062_v41 = vpop.f32.mrb[30].mxu0  ;;  %v3103_v37 = vpop.f32.mrb[30].mxu1  ;;  %v3109_v51 = vadd.f32 %v3101_v44, %v6060_v46 }
0x11df   : > { %v3576_v47 = vmul.f32 -1.442695, %v3106_v59  ;;  %v3063_v28 = vpop.f32.mrb[31].mxu0  ;;  %v3104_v52 = vpop.f32.mrb[31].mxu1 }
0x11e0   : > { %v3577_v1 = vmul.f32 -1.442695, %v3107_v48  ;;  %v3578_v38 = vmul.f32 -1.442695, %v3109_v51 }
0x11e1   : > { %3949 = vpow2.f32 %v3576_v47 }
0x11e2   : > { %3951 = vpow2.f32 %v3577_v1 }
0x11e3   : > { %3953 = vpow2.f32 %v3578_v38 }
0x11e4   : > { %3955 = vtanh.f32 %v3108_v9 }
0x11eb   : > { %v3950_v2 = vpop.eup %3949 }
0x11ec   : > { %v3952_v18 = vpop.eup %3951  ;;  %v3113_v15 = vadd.f32 1.0, %v3950_v2 }
0x11ed   : > { %v3119_v29 = vadd.f32 1.0, %v3952_v18  ;;  %v3954_v62 = vpop.eup %3953 }
0x11ee   : > { %3957 = vrcp.f32 %v3113_v15  ;;  %v3956_v31 = vpop.eup %3955  ;;  %v3126_v14 = vadd.f32 1.0, %v3954_v62 }
0x11ef   : > { %3959 = vrcp.f32 %v3119_v29 }
0x11f0   : > { %3961 = vrcp.f32 %v3126_v14 }
0x11f8   : > { %v3958_v53 = vpop.eup %3957 }
0x11f9   : > { %v3960_v36 = vpop.eup %3959  ;;  %v3130_v8 = vmul.f32 %v3958_v53, %v3956_v31 }
0x11fa   : > { %v3129_v30 = vmul.f32 %v3960_v36, %v3019_v54  ;;  %v3962_v32 = vpop.eup %3961 }
0x11fc   : > { %v3131_v0 = vadd.f32 %v3130_v8, %v3129_v30 }
0x11fe   : > { %3963 = vtanh.f32 %v3131_v0  ;;  %v3141_v23 = vsel %vm3140_vm0, %v3131_v0, %v3019_v54 }
0x11ff   : > { %3145 = vst [vmem:[%s4430_s15] sm:$0xff] %v3141_v23 }
0x1208   : > { %v3964_v63 = vpop.eup %3963 }
0x1209   : > { %v3133_v12 = vmul.f32 %v3964_v63, %v3962_v32 }
0x120b   : > { %v3142_v16 = vsel %vm3140_vm0, %v3133_v12, %v3020_v4 }
0x120c   : > { %3143 = vst [vmem:[%s4426_s9] sm:$0xff] %v3142_v16  ;;  %3144 = vst [vmem:[%s4428_s24] sm:$0xff] %v3142_v16 }
0x120d PF: > { %s3581_s30 = sshll.u32 %s4147_s28, 7  ;;  %s3188_s19 = sshll.u32 %s4428_s24, 4  ;;  %s3189_s19 = int_to_ptr.vmem [resolvable:$true] %s3188_s19 }
0x120e   : > { %s5738_s11 = scalar_lea.hbm %s5819_s6, %s3581_s30  ;;  %s3161_s14 = scalar_lea.sflag [#allocation4], %s4386_s1 }
0x120f   : > { %s4025_s20 = scalar_lea.vmem %s3189_s19, 128  ;;  %p6062_p10 = scmp.ne.s32.totalorder %s5915_s16, 0 }
0x1210   : > { %p4026_p8 = scmp.ne.s32.totalorder %s3189_s19, %s4025_s20  ;;  %s4169_s9 = smov [#allocation7]  }
0x1211   : > { %s4029_s13 = sshll.u32 %s4169_s9, 4  ;;  %s4030_s13 = int_to_ptr.vmem [resolvable:$false] %s4029_s13 }
0x1212   : > { %p4027_p11 = pnand %p4026_p8, %p6062_p10  ;;  %s4031_s17 = scalar_lea.vmem %s4030_s13, 256 }
0x1213   : > { %p4032_p12 = scmp.lt.s32.totalorder %s3189_s19, %s4030_s13  ;;  %p4033_p2 = scmp.lt.s32.totalorder %s4031_s17, %s4025_s20 }
0x1214   : > { %p4028_p6 = pneg %p4027_p11 }
0x1215   : > { %p4034_p5 = por %p4033_p2, %p4032_p12 }
0x1217   : > { %p4035_p3 = pnand %p4034_p5, %p4028_p6 }
0x1219   : > { %4038 = shalt.err (!%p4035_p3)
}
0x121a   : > { %s4039_s24 = scalar_lea.hbm %s5738_s11, 128  ;;  %s4043_s27 = scalar_lea.hbm %s5819_s6, 256 }
0x121b   : > { %p4040_p9 = scmp.ne.s32.totalorder %s5738_s11, %s4039_s24  ;;  %p4044_p1 = scmp.lt.u32.totalorder %s5738_s11, %s5819_s6 }
0x121c   : > { %p4045_p13 = scmp.lt.u32.totalorder %s4043_s27, %s4039_s24  ;;  %p4047_p8 = scmp.lt.u32.totalorder %s4039_s24, %s5738_s11 }
0x121d   : > { %p4041_p0 = pnand %p4040_p9, %p6062_p10 }
0x121e   : > { %p4046_p7 = por %p4045_p13, %p4044_p1 }
0x121f   : > { %p4042_p4 = pneg %p4041_p0 }
0x1220   : > { %p4048_p11 = por %p4047_p8, %p4046_p7 }
0x1222   : > { %p4049_p6 = pnand %p4048_p11, %p4042_p4 }
0x1224   : > { %4052 = shalt.err (!%p4049_p6)
}
0x1225   : > { %3591 = dma.vmem_to_hbm [thread:$0]  (%p6062_p10), %s3189_s19, 128, %s5738_s11, %s3161_s14  }
0x1226   : > { %s5764_s23 = scalar_lea.hbm %s5820_s7, %s3581_s30  ;;  %s3201_s25 = sshll.u32 %s4430_s15, 4  ;;  %s3202_s25 = int_to_ptr.vmem [resolvable:$true] %s3201_s25 }
0x1227   : > { %s3166_s2 = scalar_lea.sflag [#allocation9], %s4386_s1  ;;  %s4053_s18 = scalar_lea.vmem %s3202_s25, 128 }
0x1228   : > { %p4054_p12 = scmp.ne.s32.totalorder %s3202_s25, %s4053_s18  ;;  %s4170_s20 = smov [#allocation8]  }
0x1229   : > { %s4057_s9 = sshll.u32 %s4170_s20, 4  ;;  %s4058_s9 = int_to_ptr.vmem [resolvable:$false] %s4057_s9 }
0x122a   : > { %p4055_p2 = pnand %p4054_p12, %p6062_p10  ;;  %s4059_s13 = scalar_lea.vmem %s4058_s9, 256 }
0x122b   : > { %p4060_p3 = scmp.lt.s32.totalorder %s3202_s25, %s4058_s9  ;;  %p4061_p9 = scmp.lt.s32.totalorder %s4059_s13, %s4053_s18 }
0x122c   : > { %p4056_p5 = pneg %p4055_p2 }
0x122d   : > { %p4062_p0 = por %p4061_p9, %p4060_p3 }
0x122f   : > { %p4063_p4 = pnand %p4062_p0, %p4056_p5 }
0x1231   : > { %4066 = shalt.err (!%p4063_p4)
}
0x1232   : > { %s4067_s28 = scalar_lea.hbm %s5764_s23, 128  ;;  %s4071_s30 = scalar_lea.hbm %s5820_s7, 256 }
0x1233   : > { %p4068_p1 = scmp.ne.s32.totalorder %s5764_s23, %s4067_s28  ;;  %p4072_p8 = scmp.lt.u32.totalorder %s5764_s23, %s5820_s7 }
0x1234   : > { %p4073_p11 = scmp.lt.u32.totalorder %s4071_s30, %s4067_s28  ;;  %p4075_p12 = scmp.lt.u32.totalorder %s4067_s28, %s5764_s23 }
0x1235   : > { %p4069_p13 = pnand %p4068_p1, %p6062_p10 }
0x1236   : > { %p4074_p6 = por %p4073_p11, %p4072_p8 }
0x1237   : > { %p4070_p7 = pneg %p4069_p13 }
0x1238   : > { %p4076_p2 = por %p4075_p12, %p4074_p6 }
0x123a   : > { %p4077_p5 = pnand %p4076_p2, %p4070_p7 }
0x123c   : > { %4080 = shalt.err (!%p4077_p5)
}
0x123d   : > { %3592 = dma.vmem_to_hbm [thread:$0]  (%p6062_p10), %s3202_s25, 128, %s5764_s23, %s3166_s2  }
0x123e PF: > { %s6063_s14 = sld [smem:[#allocation14_spill]]  ;;  %s6064_s17 = sld [smem:[#allocation21_spill]] }
0x123f   : > { %p3610_p3 = scmp.ge.s32.totalorder %s4159_s8, 2 }
0x1244   : > { %s3230_s24 = sand.u32 1, %s6063_s14   ;;  %p6065_p9 = scmp.ne.s32.totalorder %s6064_s17, 0 }
0x1245   : > { %s3231_s12 = scalar_lea.sflag [#allocation4], %s3230_s24 }
0x1246   : > { %p3603_p0 = pnand %p3610_p3, %p6065_p9 }
0x1248   : > { %4122 = dma.done.wait (!%p3603_p0), %s3231_s12, 128  }
0x1249   : > { %4124 = vsyncadd (!%p3603_p0), %s3231_s12, 4294967168  ;;  %s3240_s22 = scalar_lea.sflag [#allocation9], %s3230_s24 }
0x124a   : > { %4126 = dma.done.wait (!%p3603_p0), %s3240_s22, 128  }
0x124b   : > { %4128 = vsyncadd (!%p3603_p0), %s3240_s22, 4294967168  ;;  %s30_s8 = sadd.s32 1, %s4159_s8   ;;  %s6066_s24 = sld [smem:[#allocation15_spill]] }
0x124c   : > { %p27_p4 = scmp.ge.s32.totalorder %s30_s8, 6   ;;  %s6067_s25 = sld [smem:[#allocation16_spill]] }
0x124d   : > { %s6068_s26 = sld [smem:[#allocation22_spill]]  ;;  %s6069_s27 = sld [smem:[#allocation17_spill]] }
0x124e   : > { %s6070_s28 = sld [smem:[#allocation18_spill]]  ;;  %s6071_s29 = sld [smem:[#allocation19_spill]] }
0x124f   : > { %s6072_s30 = sld [smem:[#allocation20_spill]]  ;;  %29 = sbr.rel (!%p27_p4) target bundleno = 14 (0xe), region = 159 }
0x1256   :  { %3245 = vsyncpa [#allocation3], 1 }
0x1257   :  { %3247 = vsyncpa [#allocation3 + $0x1], 1 }
0x1258   :  { %3248 = vsyncpa [#allocation6], 1 }
0x1259   :  { %3250 = vsyncpa [#allocation6 + $0x1], 1 }
0x125a   :  { %3251 = vsyncpa [#allocation4], 1 }
0x125b   :  { %3253 = vsyncpa [#allocation4 + $0x1], 1 }
0x125c   :  { %3254 = vsyncpa [#allocation9], 1 }
0x125d   :  { %3256 = vsyncpa [#allocation9 + $0x1], 1 }

// kernel: better_lstm_forward.4
= control target key start
LH: loop header
LB: loop body
LE: loop exit
PB: predicated region body
PF: predicated region fallthrough
CT: control target
= control target key end

     0   :  { %s6525_s0 = inlined_call_operand.vmem [shape: f32[2,16,8,128], index: 0, kind: input, shape index: {}]   ;;  %s6526_s1 = inlined_call_operand.vmem [shape: bf16[2,256,512], index: 1, kind: input, shape index: {}]   ;;  %s6527_s2 = inlined_call_operand.vmem [shape: bf16[2,128,512], index: 2, kind: input, shape index: {}]   ;;  %s6528_s3 = inlined_call_operand.vmem [shape: f32[2,1,512], index: 3, kind: input, shape index: {}]   ;;  %s6529_s4 = inlined_call_operand.vmem [shape: s32[8,1], index: 4, kind: input, shape index: {}]   ;;  %s6530_s5 = inlined_call_operand.hbm [shape: f32[2,16,8,128], index: 5, kind: output, shape index: {0}]   ;;  %s6531_s6 = inlined_call_operand.vmem [shape: f32[2,8,128], index: 6, kind: output, shape index: {1}]   ;;  %s6532_s7 = inlined_call_operand.hbm [shape: f32[2,8,128], index: 7, kind: output, shape index: {2}]  }
   0x1   :  { %6620 = sst [smem:[#allocation80_spill]] %s6525_s0 }
   0x2   :  { %6621 = sst [smem:[#allocation81_spill]] %s6529_s4 }
   0x3   :  { %6622 = sst [smem:[#allocation82_spill]] %s6530_s5 }
   0x4   :  { %6623 = sst [smem:[#allocation83_spill]] %s6532_s7 }
   0x5   :  { %13 = vsyncpa [#allocation4], 0 }
   0x6   :  { %15 = vsyncpa [#allocation4 + $0x1], 0 }
   0x7   :  { %16 = vsyncpa [#allocation6], 0 }
   0x8   :  { %18 = vsyncpa [#allocation6 + $0x1], 0  ;;  %s4842_s24 = smov 0   ;;  %s4844_s25 = smov 0  }
   0x9   :  { %s4846_s26 = smov 0   ;;  %s4848_s27 = smov 0  }
   0xa   :  { %s4850_s28 = smov 0   ;;  %s4852_s29 = smov 0  }
   0xb   :  { %s4854_s30 = smov 0   ;;  %s4856_s8 = smov 0  }
   0xc   :  { %s4858_s9 = smov 0   ;;  %s4860_s10 = smov 0  }
   0xd   :  { %s4862_s11 = smov 0   ;;  %s4864_s12 = smov 0  }
   0xe   :  { %s4866_s13 = smov 0  }
   0xf LB: > { %6624 = sst [smem:[#allocation9_spill]] %s4744_s24  ;;  %s3853_s14 = sadd.s32 4294967295, %s4792_s13   ;;  %s4792_s13 = sphi %s4866_s13, %s24_s13   ;;  %s4788_s12 = sphi %s4864_s12, %s6800_s12   ;;  %s4784_s11 = sphi %s4862_s11, %s6799_s11   ;;  %s4780_s10 = sphi %s4860_s10, %s6798_s10   ;;  %s4776_s9 = sphi %s4858_s9, %s6806_s9   ;;  %s4772_s8 = sphi %s4856_s8, %s6796_s8   ;;  %s4768_s30 = sphi %s4854_s30, %s6795_s30   ;;  %s4764_s29 = sphi %s4852_s29, %s6805_s29   ;;  %s4760_s28 = sphi %s4850_s28, %s6804_s28   ;;  %s4756_s27 = sphi %s4848_s27, %s6803_s27   ;;  %s4752_s26 = sphi %s4846_s26, %s6792_s26   ;;  %s4748_s25 = sphi %s4844_s25, %s6802_s25   ;;  %s4744_s24 = sphi %s4842_s24, %s6801_s24  }
  0x10   : > { %6625 = sst [smem:[#allocation10_spill]] %s4752_s26  ;;  %s33_s16 = sadd.s32 1, %s4784_s11 }
  0x11   : > { %6626 = sst [smem:[#allocation11_spill]] %s4756_s27  ;;  %s36_s17 = sadd.s32 1, %s4788_s12 }
  0x12   : > { %6627 = sst [smem:[#allocation12_spill]] %s4764_s29  ;;  %p34_p0 = scmp.ge.s32.totalorder %s33_s16, 2 }
  0x13   : > { %6628 = sst [smem:[#allocation13_spill]] %s4772_s8  ;;  %s40_s18 = ssub.s32 1, %s4788_s12 }
  0x14   : > { %6629 = sst [smem:[#allocation14_spill]] %s4784_s11  ;;  %s41_s19 = smul.u32 %s4784_s11, %s40_s18 }
  0x15   : > { %6630 = sst [smem:[#allocation15_spill]] %s4788_s12  ;;  %s42_s20 = ssub.s32 1, %s4784_s11 }
  0x16   : > { %s6808_s16 = smov (%p34_p0, %s33_s16), 0  ;;  %s6810_s17 = smov (!%p34_p0, %s36_s17), %s4788_s12 }
  0x17   : > { %6631 = sst [smem:[#allocation16_spill]] %s6808_s16  ;;  %s43_s21 = smul.u32 %s4788_s12, %s42_s20 }
  0x18   : > { %s47_s22 = ssub.s32 1, %s6808_s16  ;;  %p38_p1 = scmp.ge.s32.totalorder %s6810_s17, 2 }
  0x19   : > { %s53_s23 = sadd.s32 1, %s4772_s8  ;;  %s4920_s15 = sadd.s32 %s43_s21, %s41_s19 }
  0x1a   : > { %p60_p2 = scmp.ne.s32.totalorder %s4772_s8, %s4768_s30  ;;  %s6812_s17 = smov (%p38_p1, %s6810_s17), 0 }
  0x1b   : > { %6632 = sst [smem:[#allocation17_spill]] %s6812_s17  ;;  %p61_p3 = scmp.eq.s32.totalorder %s4792_s13, 0 }
  0x1c   : > { %s190_s18 = sadd.s32 1, %s4764_s29  ;;  %s45_s11 = ssub.s32 1, %s6812_s17 }
  0x1d   : > { %s48_s20 = smul.u32 %s47_s22, %s6812_s17  ;;  %p4931_p4 = por %p61_p3, %p60_p2 }
  0x1e   : > { %s46_s7 = smul.u32 %s45_s11, %s6808_s16  ;;  %s185_s19 = ssub.s32 %s4788_s12, %s6812_s17 }
  0x1f   : > { %p200_p5 = scmp.ne.s32.totalorder %s4764_s29, %s4760_s28  ;;  %p4939_p6 = scmp.eq.s32.totalorder %s3853_s14, 3 }
  0x20   : > { %s49_s21 = sadd.s32 %s48_s20, %s46_s7  ;;  %p206_p7 = scmp.ne.s32.totalorder %s4760_s28, %s4756_s27 }
  0x21   : > { %s50_s11 = ssub.s32 %s4920_s15, %s49_s21  ;;  %p4948_p10 = por %p4939_p6, %p200_p5 }
  0x22   : > { %p51_p8 = scmp.eq.s32.totalorder %s50_s11, 0  ;;  %s187_s22 = sor.u32 %s185_s19, %s50_s11 }
  0x23   : > { %p188_p9 = scmp.eq.s32.totalorder %s187_s22, 0  ;;  %s6638_s14 = sadd.s32 4294967294, %s4792_s13  }
  0x24   : > { %s4953_s17 = scalar_select %p51_p8, %s4772_s8, %s53_s23  }
  0x25   : > { %s4956_s7 = scalar_select %p188_p9, %s4764_s29, %s190_s18  }
  0x26   : > { %6636 = sst [smem:[#allocation18_spill]] %s4953_s17  ;;  %p207_p11 = scmp.eq.s32.totalorder %s6638_s14, 3 }
  0x27   : > { %6637 = sst [smem:[#allocation19_spill]] %s4956_s7  ;;  %p240_p12 = scmp.eq.s32.totalorder %s185_s19, 0 }
  0x28   : > { %s242_s20 = sadd.s32 1, %s4752_s26  ;;  %p252_p13 = scmp.ne.s32.totalorder %s4752_s26, %s4748_s25 }
  0x29   : > { %p4963_p0 = por %p207_p11, %p206_p7  ;;  %p258_p1 = scmp.ne.s32.totalorder %s4748_s25, %s4744_s24 }
  0x2a   : > { %s4970_s11 = scalar_select %p240_p12, %s4752_s26, %s242_s20  }
  0x2b   : > { %s6639_s21 = scalar_select %p4963_p0, 1, 0 }
  0x2c   : > { %6641 = sst [smem:[#allocation21_spill]] %s4970_s11  ;;  %p4974_p2 = por %p252_p13, %p4939_p6 }
  0x2d   : > { %6640 = sst [smem:[#allocation20_spill]] %s6639_s21  ;;  %p4978_p3 = por %p258_p1, %p207_p11 }
  0x2e   : > { %p3856_p5 = scmp.ge.s32.totalorder %s4792_s13, 4 }
  0x2f   : > { %s6643_s23 = scalar_select %p4978_p3, 1, 0 }
  0x30   : > { %278 = sbr.rel (%p3856_p5) target bundleno = 73 (0x49), region = 20 }
  0x31   : > { %6644 = sst [smem:[#allocation22_spill]] %s6643_s23 }
  0x37   : > { %281 = sbr.rel (!%p4931_p4) target bundleno = 73 (0x49), region = 24  ;;  %s283_s18 = sand.u32 (%p4931_p4), 1, %s4772_s8  }
  0x38   : > { %s4081_s19 = sshll.u32 (%p4931_p4), %s4920_s15, 6  ;;  %s3857_s14 = sshll.u32 (%p4931_p4), %s283_s18, 7 }
  0x39   : > { %s6645_s0 = sld [smem:[#allocation80_spill]] (%p4931_p4)  ;;  %s285_s5 = scalar_lea.vmem (%p4931_p4), [#allocation2], %s3857_s14 }
  0x3f   : > { %s4990_s12 = scalar_lea.vmem %s6645_s0, %s4081_s19 }
  0x40   : > { %v351_v0 = vld [vmem:[%s4990_s12] sm:$0xff]  ;;  %v353_v1 = vld [vmem:[%s4990_s12 + $0x8] sm:$0xff]  ;;  %v355_v2 = vld [vmem:[%s4990_s12 + $0x10] sm:$0xff] }
  0x41   : > { %352 = vst [vmem:[%s285_s5] sm:$0xff] %v351_v0  ;;  %354 = vst [vmem:[%s285_s5 + $0x8] sm:$0xff] %v353_v1  ;;  %v357_v3 = vld [vmem:[%s4990_s12 + $0x18] sm:$0xff]  ;;  %v359_v4 = vld [vmem:[%s4990_s12 + $0x20] sm:$0xff] }
  0x42   : > { %356 = vst [vmem:[%s285_s5 + $0x10] sm:$0xff] %v355_v2  ;;  %v361_v5 = vld [vmem:[%s4990_s12 + $0x28] sm:$0xff]  ;;  %358 = vst [vmem:[%s285_s5 + $0x18] sm:$0xff] %v357_v3  ;;  %v363_v6 = vld [vmem:[%s4990_s12 + $0x30] sm:$0xff] }
  0x43   : > { %360 = vst [vmem:[%s285_s5 + $0x20] sm:$0xff] %v359_v4  ;;  %362 = vst [vmem:[%s285_s5 + $0x28] sm:$0xff] %v361_v5  ;;  %v365_v7 = vld [vmem:[%s4990_s12 + $0x38] sm:$0xff]  ;;  %v367_v8 = vld [vmem:[%s4990_s12 + $0x80] sm:$0xff] }
  0x44   : > { %364 = vst [vmem:[%s285_s5 + $0x30] sm:$0xff] %v363_v6  ;;  %366 = vst [vmem:[%s285_s5 + $0x38] sm:$0xff] %v365_v7  ;;  %v369_v9 = vld [vmem:[%s4990_s12 + $0x88] sm:$0xff]  ;;  %v371_v10 = vld [vmem:[%s4990_s12 + $0x90] sm:$0xff] }
  0x45   : > { %368 = vst [vmem:[%s285_s5 + $0x40] sm:$0xff] %v367_v8  ;;  %v373_v11 = vld [vmem:[%s4990_s12 + $0x98] sm:$0xff]  ;;  %370 = vst [vmem:[%s285_s5 + $0x48] sm:$0xff] %v369_v9  ;;  %v375_v12 = vld [vmem:[%s4990_s12 + $0xa0] sm:$0xff] }
  0x46   : > { %372 = vst [vmem:[%s285_s5 + $0x50] sm:$0xff] %v371_v10  ;;  %374 = vst [vmem:[%s285_s5 + $0x58] sm:$0xff] %v373_v11  ;;  %v377_v13 = vld [vmem:[%s4990_s12 + $0xa8] sm:$0xff]  ;;  %v379_v14 = vld [vmem:[%s4990_s12 + $0xb0] sm:$0xff] }
  0x47   : > { %376 = vst [vmem:[%s285_s5 + $0x60] sm:$0xff] %v375_v12  ;;  %378 = vst [vmem:[%s285_s5 + $0x68] sm:$0xff] %v377_v13  ;;  %v381_v15 = vld [vmem:[%s4990_s12 + $0xb8] sm:$0xff] }
  0x48   : > { %380 = vst [vmem:[%s285_s5 + $0x70] sm:$0xff] %v379_v14  ;;  %382 = vst [vmem:[%s285_s5 + $0x78] sm:$0xff] %v381_v15 }
  0x49 PF: > { %p3860_p4 = scmp.ge.s32.totalorder %s4792_s13, 1  ;;  %p410_p6 = scmp.lt.s32.totalorder %s4792_s13, 5 }
  0x4b   : > { %p411_p7 = pnand %p3860_p4, %p410_p6 }
  0x4d   : > { %414 = sbr.rel (%p411_p7) target bundleno = 4704 (0x1260), region = 74 }
  0x54   : > { %s417_s15 = sand.u32 1, %s4768_s30   ;;  %s6542_s18 = sand.u32 1, %s4760_s28  }
  0x55   : > { %s3861_s19 = sshll.u32 %s417_s15, 7  ;;  %s3862_s12 = sshll.u32 %s6542_s18, 6 }
  0x56   : > { %s6545_s14 = sand.u32 1, %s4748_s25   ;;  %p477_p8 = scmp.lt.s32.totalorder %s4780_s10, 1 }
  0x57   : > { %s3863_s4 = sshll.u32 %s6545_s14, 3  ;;  %s5039_s8 = scalar_lea.vmem [#allocation2], %s3861_s19 }
  0x58   : > { %s478_s20 = scalar_select %p477_p8, %s4780_s10, 1 }
  0x59   : > { %s5041_s17 = scalar_lea.vmem [#allocation3], %s3862_s12  ;;  %p3870_p9 = scmp.ne.s32.totalorder %s4776_s9, 0 }
  0x5a   : > { %s4082_s5 = sshll.u32 %s478_s20, 9  ;;  %s4083_s0 = sshll.u32 %s478_s20, 8  ;;  %v4794_v16 = vmov (!%p3870_p9), 0.0  }
  0x5b   : > { %s5022_s7 = scalar_lea.vmem %s6526_s1, %s4082_s5  ;;  %s5027_s30 = scalar_lea.vmem %s6527_s2, %s4083_s0 }
  0x5c   : > { %s3868_s15 = sshll.u32 %s478_s20, 2  ;;  %s3869_s26 = sshll.u32 %s478_s20, 3 }
  0x5d   : > { %s5032_s24 = scalar_lea.vmem %s6528_s3, %s3868_s15  ;;  %s5037_s27 = scalar_lea.vmem %s6531_s6, %s3869_s26 }
  0x5e   : > { %s5043_s5 = scalar_lea.vmem [#allocation5], %s3863_s4  ;;  %505 = sbr.rel (%p3870_p9) target bundleno = 101 (0x65), region = 82  ;;  %506 = vst [vmem:[%s5037_s27] sm:$0xff] (!%p3870_p9), %v4794_v16 }
  0x5f   : > { %507 = vst [vmem:[%s5043_s5] sm:$0xff] (!%p3870_p9), %v4794_v16 }
  0x65 PF: > { %v4270_v17 = vld [vmem:[%s5022_s7 + $0x4] ss:$16 sps:$4 sm:$0xff]   ;;  %v4272_v18 = vld [vmem:[%s5022_s7 + $0xc] ss:$16 sps:$4 sm:$0xff]   ;;  %v4795_v19 = vmov 0   ;;  %s6678_s29 = sld [smem:[#allocation81_spill]] }
  0x66   : > { %777 = vmatprep.mubr.bf16.mxu0 %v4795_v19  ;;  %850 = vmatprep.mubr.bf16.mxu1 %v4795_v19  ;;  %v4274_v20 = vld [vmem:[%s5022_s7] ss:$16 sps:$4 sm:$0xff]   ;;  %v4275_v21 = vld [vmem:[%s5022_s7 + $0x8] ss:$16 sps:$4 sm:$0xff]   ;;  %v4276_v22 = vld [vmem:[%s5022_s7 + $0x24] ss:$16 sps:$4 sm:$0xff]  }
  0x67   : > { %745 = vmatprep.subr.bf16.mxu0 %v4270_v17  ;;  %818 = vmatprep.subr.bf16.mxu1 %v4272_v18  ;;  %v4278_v23 = vld [vmem:[%s5022_s7 + $0x2c] ss:$16 sps:$4 sm:$0xff]   ;;  %v4280_v24 = vld [vmem:[%s5022_s7 + $0x20] ss:$16 sps:$4 sm:$0xff]   ;;  %v4281_v25 = vld [vmem:[%s5022_s7 + $0x28] ss:$16 sps:$4 sm:$0xff]  }
  0x68   : > { %746 = vmatpush1.bf16.msra.mxu0 %v4274_v20  ;;  %819 = vmatpush1.bf16.msra.mxu1 %v4275_v21  ;;  %v4282_v26 = vld [vmem:[%s5022_s7 + $0x44] ss:$16 sps:$4 sm:$0xff]   ;;  %v4284_v27 = vld [vmem:[%s5022_s7 + $0x4c] ss:$16 sps:$4 sm:$0xff]   ;;  %v4286_v28 = vld [vmem:[%s5022_s7 + $0x40] ss:$16 sps:$4 sm:$0xff]  }
  0x69   : > { %747 = vmatprep.subr.bf16.mxu0 %v4276_v22  ;;  %820 = vmatprep.subr.bf16.mxu1 %v4278_v23  ;;  %v4287_v29 = vld [vmem:[%s5022_s7 + $0x48] ss:$16 sps:$4 sm:$0xff]   ;;  %v4288_v30 = vld [vmem:[%s5022_s7 + $0x64] ss:$16 sps:$4 sm:$0xff]   ;;  %v4290_v31 = vld [vmem:[%s5022_s7 + $0x6c] ss:$16 sps:$4 sm:$0xff]  }
  0x6a   : > { %v4292_v32 = vld [vmem:[%s5022_s7 + $0x60] ss:$16 sps:$4 sm:$0xff]   ;;  %v4293_v33 = vld [vmem:[%s5022_s7 + $0x68] ss:$16 sps:$4 sm:$0xff]   ;;  %v4294_v34 = vld [vmem:[%s5022_s7 + $0x84] ss:$16 sps:$4 sm:$0xff]  }
  0x6b   : > { %v4296_v35 = vld [vmem:[%s5022_s7 + $0x8c] ss:$16 sps:$4 sm:$0xff]   ;;  %v4298_v36 = vld [vmem:[%s5022_s7 + $0x80] ss:$16 sps:$4 sm:$0xff]   ;;  %v4299_v37 = vld [vmem:[%s5022_s7 + $0x88] ss:$16 sps:$4 sm:$0xff]  }
  0x6c   : > { %748 = vmatpush1.bf16.msra.mxu0 %v4280_v24  ;;  %821 = vmatpush1.bf16.msra.mxu1 %v4281_v25  ;;  %v4300_v38 = vld [vmem:[%s5022_s7 + $0xa4] ss:$16 sps:$4 sm:$0xff]   ;;  %v4302_v39 = vld [vmem:[%s5022_s7 + $0xac] ss:$16 sps:$4 sm:$0xff]   ;;  %v4304_v40 = vld [vmem:[%s5022_s7 + $0xa0] ss:$16 sps:$4 sm:$0xff]  }
  0x6d   : > { %749 = vmatprep.subr.bf16.mxu0 %v4282_v26  ;;  %822 = vmatprep.subr.bf16.mxu1 %v4284_v27  ;;  %v4305_v41 = vld [vmem:[%s5022_s7 + $0xa8] ss:$16 sps:$4 sm:$0xff]   ;;  %v4306_v42 = vld [vmem:[%s5022_s7 + $0xc4] ss:$16 sps:$4 sm:$0xff]   ;;  %v4308_v43 = vld [vmem:[%s5022_s7 + $0xcc] ss:$16 sps:$4 sm:$0xff]  }
  0x6e   : > { %v4310_v44 = vld [vmem:[%s5022_s7 + $0xc0] ss:$16 sps:$4 sm:$0xff]   ;;  %v4311_v45 = vld [vmem:[%s5022_s7 + $0xc8] ss:$16 sps:$4 sm:$0xff]   ;;  %v4312_v46 = vld [vmem:[%s5022_s7 + $0xe4] ss:$16 sps:$4 sm:$0xff]  }
  0x6f   : > { %v4314_v47 = vld [vmem:[%s5022_s7 + $0xec] ss:$16 sps:$4 sm:$0xff]   ;;  %v4316_v48 = vld [vmem:[%s5022_s7 + $0xe0] ss:$16 sps:$4 sm:$0xff]   ;;  %v4317_v49 = vld [vmem:[%s5022_s7 + $0xe8] ss:$16 sps:$4 sm:$0xff]  }
  0x70   : > { %750 = vmatpush1.bf16.msra.mxu0 %v4286_v28  ;;  %823 = vmatpush1.bf16.msra.mxu1 %v4287_v29  ;;  %v573_v50 = vld [vmem:[%s5039_s8] sm:$0xff]  ;;  %v574_v51 = vld [vmem:[%s5039_s8 + $0x8] sm:$0xff]  ;;  %v575_v61 = vld [vmem:[%s5039_s8 + $0x10] sm:$0xff]  ;;  %p3943_p11 = scmp.ne.s32.totalorder %s4780_s10, 0 }
  0x71   : > { %751 = vmatprep.subr.bf16.mxu0 %v4288_v30  ;;  %824 = vmatprep.subr.bf16.mxu1 %v4290_v31  ;;  %v4320_v52 = vld [vmem:[%s5022_s7 + $0x104] ss:$16 sps:$4 sm:$0xff]   ;;  %v4323_v53 = vld [vmem:[%s5022_s7 + $0x10c] ss:$16 sps:$4 sm:$0xff]   ;;  %v581_v54 = vpack.c.bf16 %v574_v51, %v573_v50  ;;  %v4318_v55 = vld [vmem:[%s5022_s7 + $0x100] ss:$16 sps:$4 sm:$0xff]  }
  0x72   : > { %v4321_v56 = vld [vmem:[%s5022_s7 + $0x108] ss:$16 sps:$4 sm:$0xff]   ;;  %v4326_v57 = vld [vmem:[%s5022_s7 + $0x124] ss:$16 sps:$4 sm:$0xff]   ;;  %v4329_v58 = vld [vmem:[%s5022_s7 + $0x12c] ss:$16 sps:$4 sm:$0xff]  }
  0x73   : > { %v4324_v59 = vld [vmem:[%s5022_s7 + $0x120] ss:$16 sps:$4 sm:$0xff]   ;;  %v4327_v60 = vld [vmem:[%s5022_s7 + $0x128] ss:$16 sps:$4 sm:$0xff]   ;;  %v4332_v63 = vld [vmem:[%s5022_s7 + $0x144] ss:$16 sps:$4 sm:$0xff]  }
  0x74   : > { %752 = vmatpush1.bf16.msra.mxu0 %v4292_v32  ;;  %825 = vmatpush1.bf16.msra.mxu1 %v4293_v33  ;;  %v576_v62 = vld [vmem:[%s5039_s8 + $0x18] sm:$0xff]  ;;  %v4330_v2 = vld [vmem:[%s5022_s7 + $0x140] ss:$16 sps:$4 sm:$0xff]   ;;  %v4338_v4 = vld [vmem:[%s5022_s7 + $0x164] ss:$16 sps:$4 sm:$0xff]  }
  0x75   : > { %753 = vmatprep.subr.bf16.mxu0 %v4294_v34  ;;  %826 = vmatprep.subr.bf16.mxu1 %v4296_v35  ;;  %v4335_v0 = vld [vmem:[%s5022_s7 + $0x14c] ss:$16 sps:$4 sm:$0xff]   ;;  %v582_v1 = vpack.c.bf16 %v576_v62, %v575_v61  ;;  %v4333_v3 = vld [vmem:[%s5022_s7 + $0x148] ss:$16 sps:$4 sm:$0xff]   ;;  %v4336_v6 = vld [vmem:[%s5022_s7 + $0x160] ss:$16 sps:$4 sm:$0xff]  }
  0x76   : > { %v4341_v5 = vld [vmem:[%s5022_s7 + $0x16c] ss:$16 sps:$4 sm:$0xff]   ;;  %v4339_v7 = vld [vmem:[%s5022_s7 + $0x168] ss:$16 sps:$4 sm:$0xff]   ;;  %v577_v8 = vld [vmem:[%s5039_s8 + $0x20] sm:$0xff] }
  0x77   : > { %v578_v9 = vld [vmem:[%s5039_s8 + $0x28] sm:$0xff]  ;;  %v4344_v10 = vld [vmem:[%s5022_s7 + $0x184] ss:$16 sps:$4 sm:$0xff]   ;;  %v4342_v13 = vld [vmem:[%s5022_s7 + $0x180] ss:$16 sps:$4 sm:$0xff]  }
  0x78   : > { %754 = vmatpush1.bf16.msra.mxu0 %v4298_v36  ;;  %827 = vmatpush1.bf16.msra.mxu1 %v4299_v37  ;;  %v4347_v11 = vld [vmem:[%s5022_s7 + $0x18c] ss:$16 sps:$4 sm:$0xff]   ;;  %v583_v12 = vpack.c.bf16 %v578_v9, %v577_v8  ;;  %v4345_v14 = vld [vmem:[%s5022_s7 + $0x188] ss:$16 sps:$4 sm:$0xff]   ;;  %v4350_v15 = vld [vmem:[%s5022_s7 + $0x1a4] ss:$16 sps:$4 sm:$0xff]  }
  0x79   : > { %755 = vmatprep.subr.bf16.mxu0 %v4300_v38  ;;  %828 = vmatprep.subr.bf16.mxu1 %v4302_v39  ;;  %v4353_v16 = vld [vmem:[%s5022_s7 + $0x1ac] ss:$16 sps:$4 sm:$0xff]   ;;  %v4348_v17 = vld [vmem:[%s5022_s7 + $0x1a0] ss:$16 sps:$4 sm:$0xff]   ;;  %v4351_v18 = vld [vmem:[%s5022_s7 + $0x1a8] ss:$16 sps:$4 sm:$0xff]  }
  0x7a   : > { %v579_v20 = vld [vmem:[%s5039_s8 + $0x30] sm:$0xff]  ;;  %v580_v21 = vld [vmem:[%s5039_s8 + $0x38] sm:$0xff]  ;;  %v3903_v31 = vld [vmem:[%s5039_s8 + $0x40] sm:$0xff] }
  0x7b   : > { %v4356_v22 = vld [vmem:[%s5022_s7 + $0x1c4] ss:$16 sps:$4 sm:$0xff]   ;;  %v4359_v23 = vld [vmem:[%s5022_s7 + $0x1cc] ss:$16 sps:$4 sm:$0xff]   ;;  %v584_v24 = vpack.c.bf16 %v580_v21, %v579_v20  ;;  %v4354_v25 = vld [vmem:[%s5022_s7 + $0x1c0] ss:$16 sps:$4 sm:$0xff]  }
  0x7c   : > { %756 = vmatpush1.bf16.msra.mxu0 %v4304_v40  ;;  %829 = vmatpush1.bf16.msra.mxu1 %v4305_v41  ;;  %v4357_v26 = vld [vmem:[%s5022_s7 + $0x1c8] ss:$16 sps:$4 sm:$0xff]   ;;  %v4362_v27 = vld [vmem:[%s5022_s7 + $0x1e4] ss:$16 sps:$4 sm:$0xff]   ;;  %v4365_v28 = vld [vmem:[%s5022_s7 + $0x1ec] ss:$16 sps:$4 sm:$0xff]  }
  0x7d   : > { %757 = vmatprep.subr.bf16.mxu0 %v4306_v42  ;;  %830 = vmatprep.subr.bf16.mxu1 %v4308_v43  ;;  %v4360_v29 = vld [vmem:[%s5022_s7 + $0x1e0] ss:$16 sps:$4 sm:$0xff]   ;;  %v4363_v30 = vld [vmem:[%s5022_s7 + $0x1e8] ss:$16 sps:$4 sm:$0xff]  }
  0x7e   : > { %v3904_v32 = vld [vmem:[%s5039_s8 + $0x48] sm:$0xff]  ;;  %v3905_v34 = vld [vmem:[%s5039_s8 + $0x50] sm:$0xff]  ;;  %v3906_v35 = vld [vmem:[%s5039_s8 + $0x58] sm:$0xff] }
  0x7f   : > { %v953_v33 = vpack.c.bf16 %v3904_v32, %v3903_v31  ;;  %v954_v36 = vpack.c.bf16 %v3906_v35, %v3905_v34  ;;  %v3907_v37 = vld [vmem:[%s5039_s8 + $0x60] sm:$0xff]  ;;  %v3908_v38 = vld [vmem:[%s5039_s8 + $0x68] sm:$0xff]  ;;  %v3909_v40 = vld [vmem:[%s5039_s8 + $0x70] sm:$0xff] }
  0x80   : > { %758 = vmatpush1.bf16.msra.mxu0 %v4310_v44  ;;  %831 = vmatpush1.bf16.msra.mxu1 %v4311_v45  ;;  %v955_v39 = vpack.c.bf16 %v3908_v38, %v3907_v37  ;;  %v3910_v41 = vld [vmem:[%s5039_s8 + $0x78] sm:$0xff]  ;;  %v5145_v43 = vld [vmem:[%s5027_s30] sm:$0xff]  ;;  %v5148_v44 = vld [vmem:[%s5027_s30 + $0x8] sm:$0xff] }
  0x81   : > { %759 = vmatprep.subr.bf16.mxu0 %v4312_v46  ;;  %832 = vmatprep.subr.bf16.mxu1 %v4314_v47  ;;  %v956_v42 = vpack.c.bf16 %v3910_v41, %v3909_v40  ;;  %6646 = vst [vmem:[#allocation23_spill] sm:$0xff] %v5145_v43  ;;  %6647 = vst [vmem:[#allocation24_spill] sm:$0xff] %v5148_v44  ;;  %v5151_v45 = vld [vmem:[%s5027_s30 + $0x10] sm:$0xff]  ;;  %v5157_v46 = vld [vmem:[%s5027_s30 + $0x20] sm:$0xff] }
  0x82   : > { %6648 = vst [vmem:[#allocation25_spill] sm:$0xff] %v5151_v45  ;;  %6650 = vst [vmem:[#allocation27_spill] sm:$0xff] %v5157_v46  ;;  %v5160_v47 = vld [vmem:[%s5027_s30 + $0x28] sm:$0xff]  ;;  %v5169_v50 = vld [vmem:[%s5027_s30 + $0x40] sm:$0xff] }
  0x83   : > { %6651 = vst [vmem:[#allocation28_spill] sm:$0xff] %v5160_v47  ;;  %6654 = vst [vmem:[#allocation31_spill] sm:$0xff] %v5169_v50  ;;  %v5172_v51 = vld [vmem:[%s5027_s30 + $0x48] sm:$0xff]  ;;  %v5202_v61 = vld [vmem:[%s5027_s30 + $0x98] sm:$0xff] }
  0x84   : > { %760 = vmatpush1.bf16.msra.mxu0 %v4316_v48  ;;  %833 = vmatpush1.bf16.msra.mxu1 %v4317_v49  ;;  %v5163_v48 = vld [vmem:[%s5027_s30 + $0x30] sm:$0xff]  ;;  %v5166_v49 = vld [vmem:[%s5027_s30 + $0x38] sm:$0xff]  ;;  %6655 = vst [vmem:[#allocation32_spill] sm:$0xff] %v5172_v51  ;;  %6665 = vst [vmem:[#allocation42_spill] sm:$0xff] %v5202_v61 }
  0x85   : > { %1117 = vmatprep.subr.bf16.mxu0 %v4320_v52  ;;  %1190 = vmatprep.subr.bf16.mxu1 %v4323_v53  ;;  %6652 = vst [vmem:[#allocation29_spill] sm:$0xff] %v5163_v48  ;;  %6653 = vst [vmem:[#allocation30_spill] sm:$0xff] %v5166_v49  ;;  %v5175_v52 = vld [vmem:[%s5027_s30 + $0x50] sm:$0xff]  ;;  %v5178_v53 = vld [vmem:[%s5027_s30 + $0x58] sm:$0xff] }
  0x86   : > { %6656 = vst [vmem:[#allocation33_spill] sm:$0xff] %v5175_v52  ;;  %6657 = vst [vmem:[#allocation34_spill] sm:$0xff] %v5178_v53  ;;  %v5205_v62 = vld [vmem:[%s5027_s30 + $0xa0] sm:$0xff]  ;;  %v5235_v8 = vld [vmem:[%s5027_s30 + $0xf0] sm:$0xff] }
  0x87   : > { %778 = vmatmul.mubr.bf16.vlgmr.msra.gmra.mrb[0].mxu0 %v581_v54  ;;  %851 = vmatmul.mubr.bf16.vlgmr.msra.gmra.mrb[0].mxu1 %v581_v54  ;;  %v5181_v54 = vld [vmem:[%s5027_s30 + $0x60] sm:$0xff]  ;;  %6666 = vst [vmem:[#allocation43_spill] sm:$0xff] %v5205_v62  ;;  %6676 = vst [vmem:[#allocation53_spill] sm:$0xff] %v5235_v8  ;;  %v5238_v9 = vld [vmem:[%s5027_s30 + $0xf8] sm:$0xff] }
  0x88   : > { %1118 = vmatpush1.bf16.msra.mxu0 %v4318_v55  ;;  %1191 = vmatpush1.bf16.msra.mxu1 %v4321_v56  ;;  %6658 = vst [vmem:[#allocation35_spill] sm:$0xff] %v5181_v54  ;;  %v5184_v55 = vld [vmem:[%s5027_s30 + $0x68] sm:$0xff]  ;;  %v5187_v56 = vld [vmem:[%s5027_s30 + $0x70] sm:$0xff]  ;;  %6677 = vst [vmem:[#allocation54_spill] sm:$0xff] %v5238_v9 }
  0x89   : > { %1119 = vmatprep.subr.bf16.mxu0 %v4326_v57  ;;  %1192 = vmatprep.subr.bf16.mxu1 %v4329_v58  ;;  %6659 = vst [vmem:[#allocation36_spill] sm:$0xff] %v5184_v55  ;;  %6660 = vst [vmem:[#allocation37_spill] sm:$0xff] %v5187_v56  ;;  %v5190_v57 = vld [vmem:[%s5027_s30 + $0x78] sm:$0xff]  ;;  %v5193_v58 = vld [vmem:[%s5027_s30 + $0x80] sm:$0xff] }
  0x8a   : > { %787 = vmatprep.mubr.bf16.mxu0 %v4795_v19  ;;  %860 = vmatprep.mubr.bf16.mxu1 %v4795_v19  ;;  %6661 = vst [vmem:[#allocation38_spill] sm:$0xff] %v5190_v57  ;;  %6662 = vst [vmem:[#allocation39_spill] sm:$0xff] %v5193_v58 }
  0x8c   : > { %1120 = vmatpush1.bf16.msra.mxu0 %v4324_v59  ;;  %1193 = vmatpush1.bf16.msra.mxu1 %v4327_v60  ;;  %v5196_v59 = vld [vmem:[%s5027_s30 + $0x88] sm:$0xff]  ;;  %v5199_v60 = vld [vmem:[%s5027_s30 + $0x90] sm:$0xff] }
  0x8d   : > { %1121 = vmatprep.subr.bf16.mxu0 %v4332_v63  ;;  %1194 = vmatprep.subr.bf16.mxu1 %v4335_v0  ;;  %6663 = vst [vmem:[#allocation40_spill] sm:$0xff] %v5196_v59  ;;  %6664 = vst [vmem:[#allocation41_spill] sm:$0xff] %v5199_v60  ;;  %v5208_v63 = vld [vmem:[%s5027_s30 + $0xa8] sm:$0xff]  ;;  %v5211_v0 = vld [vmem:[%s5027_s30 + $0xb0] sm:$0xff] }
  0x8e   : > { %6667 = vst [vmem:[#allocation44_spill] sm:$0xff] %v5208_v63  ;;  %6668 = vst [vmem:[#allocation45_spill] sm:$0xff] %v5211_v0 }
  0x8f   : > { %788 = vmatmul.mubr.bf16.gmra.mrb[4].mxu0 %v582_v1  ;;  %861 = vmatmul.mubr.bf16.gmra.mrb[4].mxu1 %v582_v1  ;;  %v5214_v1 = vld [vmem:[%s5027_s30 + $0xb8] sm:$0xff] }
  0x90   : > { %1122 = vmatpush1.bf16.msra.mxu0 %v4330_v2  ;;  %1195 = vmatpush1.bf16.msra.mxu1 %v4333_v3  ;;  %6669 = vst [vmem:[#allocation46_spill] sm:$0xff] %v5214_v1  ;;  %v5217_v2 = vld [vmem:[%s5027_s30 + $0xc0] sm:$0xff]  ;;  %v5220_v3 = vld [vmem:[%s5027_s30 + $0xc8] sm:$0xff] }
  0x91   : > { %1123 = vmatprep.subr.bf16.mxu0 %v4338_v4  ;;  %1196 = vmatprep.subr.bf16.mxu1 %v4341_v5  ;;  %6670 = vst [vmem:[#allocation47_spill] sm:$0xff] %v5217_v2  ;;  %6671 = vst [vmem:[#allocation48_spill] sm:$0xff] %v5220_v3  ;;  %v5223_v4 = vld [vmem:[%s5027_s30 + $0xd0] sm:$0xff]  ;;  %v5226_v5 = vld [vmem:[%s5027_s30 + $0xd8] sm:$0xff] }
  0x92   : > { %797 = vmatprep.mubr.bf16.mxu0 %v4795_v19  ;;  %870 = vmatprep.mubr.bf16.mxu1 %v4795_v19  ;;  %6672 = vst [vmem:[#allocation49_spill] sm:$0xff] %v5223_v4  ;;  %6673 = vst [vmem:[#allocation50_spill] sm:$0xff] %v5226_v5 }
  0x94   : > { %1124 = vmatpush1.bf16.msra.mxu0 %v4336_v6  ;;  %1197 = vmatpush1.bf16.msra.mxu1 %v4339_v7  ;;  %v5229_v6 = vld [vmem:[%s5027_s30 + $0xe0] sm:$0xff]  ;;  %v5232_v7 = vld [vmem:[%s5027_s30 + $0xe8] sm:$0xff] }
  0x95   : > { %1125 = vmatprep.subr.bf16.mxu0 %v4344_v10  ;;  %1198 = vmatprep.subr.bf16.mxu1 %v4347_v11  ;;  %6674 = vst [vmem:[#allocation51_spill] sm:$0xff] %v5229_v6  ;;  %6675 = vst [vmem:[#allocation52_spill] sm:$0xff] %v5232_v7  ;;  %v5243_v10 = vld [vmem:[%s6678_s29] sm:$0xff]  ;;  %v892_v11 = vlaneseq }
  0x97   : > { %798 = vmatmul.mubr.bf16.gmra.mrb[8].mxu0 %v583_v12  ;;  %871 = vmatmul.mubr.bf16.gmra.mrb[8].mxu1 %v583_v12  ;;  %v893_v12 = vshrl.u32 %v892_v11, 7 }
  0x98   : > { %1126 = vmatpush1.bf16.msra.mxu0 %v4342_v13  ;;  %1199 = vmatpush1.bf16.msra.mxu1 %v4345_v14 }
  0x99   : > { %1127 = vmatprep.subr.bf16.mxu0 %v4350_v15  ;;  %1200 = vmatprep.subr.bf16.mxu1 %v4353_v16  ;;  %v894_v13 = vsub.s32 0, %v893_v12  ;;  %v902_v14 = vsub.s32 2, %v893_v12  ;;  %v572_v15 = vld [vmem:[%s5032_s24] sm:$0xf]  ;;  %v898_v16 = vsub.s32 1, %v893_v12  ;;  %s5363_s24 = sshll.u32 (!%p3943_p11), %s4776_s9, 3 }
  0x9a   : > { %807 = vmatprep.mubr.bf16.mxu0 %v4795_v19  ;;  %880 = vmatprep.mubr.bf16.mxu1 %v4795_v19  ;;  %s1727_s7 = sadd.s32 (!%p3943_p11), 1, %s5363_s24  ;;  %s2096_s21 = sadd.s32 (!%p3943_p11), 4, %s5363_s24 }
  0x9b   : > { %v903_v20 = vrot.slane %v572_v15, %v902_v14  ;;  %v5246_v21 = vrot.slane %v572_v15, %v898_v16  ;;  %s2342_s11 = sadd.s32 (!%p3943_p11), 6, %s5363_s24  ;;  %s1850_s23 = sadd.s32 (!%p3943_p11), 2, %s5363_s24 }
  0x9c   : > { %1128 = vmatpush1.bf16.msra.mxu0 %v4348_v17  ;;  %1201 = vmatpush1.bf16.msra.mxu1 %v4351_v18  ;;  %v906_v17 = vsub.s32 3, %v893_v12  ;;  %v895_v18 = vrot.slane %v572_v15, %v894_v13  ;;  %s1973_s18 = sadd.s32 (!%p3943_p11), 3, %s5363_s24  ;;  %s2219_s19 = sadd.s32 (!%p3943_p11), 5, %s5363_s24 }
  0x9d   : > { %1129 = vmatprep.subr.bf16.mxu0 %v4356_v22  ;;  %1202 = vmatprep.subr.bf16.mxu1 %v4359_v23  ;;  %s2465_s12 = sadd.s32 (!%p3943_p11), 7, %s5363_s24 }
  0x9e   : > { %v5248_v22 = vrot.slane %v572_v15, %v906_v17 }
  0x9f   : > { %808 = vmatmul.mubr.bf16.gmra.mrb[12].mxu0 %v584_v24  ;;  %881 = vmatmul.mubr.bf16.gmra.mrb[12].mxu1 %v584_v24 }
  0xa0   : > { %1130 = vmatpush1.bf16.msra.mxu0 %v4354_v25  ;;  %1203 = vmatpush1.bf16.msra.mxu1 %v4357_v26 }
  0xa1   : > { %1131 = vmatprep.subr.bf16.mxu0 %v4362_v27  ;;  %1204 = vmatprep.subr.bf16.mxu1 %v4365_v28 }
  0xa2   : > { %1149 = vmatprep.mubr.bf16.mxu0 %v4795_v19  ;;  %1222 = vmatprep.mubr.bf16.mxu1 %v4795_v19 }
  0xa4   : > { %1132 = vmatpush1.bf16.msra.mxu0 %v4360_v29  ;;  %1205 = vmatpush1.bf16.msra.mxu1 %v4363_v30 }
  0xa7   : > { %1150 = vmatmul.mubr.bf16.vlgmr.msra.gmra.mrb[0].mxu0 %v953_v33  ;;  %1223 = vmatmul.mubr.bf16.vlgmr.msra.gmra.mrb[0].mxu1 %v953_v33 }
  0xa8   : > { %1159 = vmatprep.mubr.bf16.mxu0 %v4795_v19  ;;  %1232 = vmatprep.mubr.bf16.mxu1 %v4795_v19 }
  0xaf   : > { %1160 = vmatmul.mubr.bf16.gmra.mrb[4].mxu0 %v954_v36  ;;  %1233 = vmatmul.mubr.bf16.gmra.mrb[4].mxu1 %v954_v36 }
  0xb0   : > { %1169 = vmatprep.mubr.bf16.mxu0 %v4795_v19  ;;  %1242 = vmatprep.mubr.bf16.mxu1 %v4795_v19 }
  0xb7   : > { %1170 = vmatmul.mubr.bf16.gmra.mrb[8].mxu0 %v955_v39  ;;  %1243 = vmatmul.mubr.bf16.gmra.mrb[8].mxu1 %v955_v39 }
  0xb8   : > { %1179 = vmatprep.mubr.bf16.mxu0 %v4795_v19  ;;  %1252 = vmatprep.mubr.bf16.mxu1 %v4795_v19  ;;  %v5154_v19 = vld [vmem:[%s5027_s30 + $0x18] sm:$0xff] }
  0xb9   : > { %6649 = vst [vmem:[#allocation26_spill] sm:$0xff] %v5154_v19 }
  0xbf   : > { %1180 = vmatmul.mubr.bf16.gmra.mrb[12].mxu0 %v956_v42  ;;  %1253 = vmatmul.mubr.bf16.gmra.mrb[12].mxu1 %v956_v42 }
 0x17a   : > { %v1151_v23 = vpop.f32.mrb[0].mxu0  ;;  %v1224_v24 = vpop.f32.mrb[0].mxu1 }
 0x17b   : > { %v5250_v25 = vadd.f32 %v1151_v23, %v895_v18  ;;  %v5252_v26 = vadd.f32 %v1224_v24, %v903_v20  ;;  %v1153_v27 = vpop.f32.mrb[1].mxu0  ;;  %v1226_v28 = vpop.f32.mrb[1].mxu1 }
 0x17c   : > { %v5255_v29 = vadd.f32 %v1153_v27, %v5246_v21  ;;  %v5258_v30 = vadd.f32 %v1226_v28, %v5248_v22  ;;  %v1155_v31 = vpop.f32.mrb[2].mxu0  ;;  %v1228_v32 = vpop.f32.mrb[2].mxu1 }
 0x17d   : > { %6679 = vst [vmem:[#allocation55_spill] sm:$0xff] %v5250_v25  ;;  %6680 = vst [vmem:[#allocation56_spill] sm:$0xff] %v5252_v26  ;;  %v5260_v33 = vadd.f32 %v1155_v31, %v895_v18  ;;  %v5262_v34 = vadd.f32 %v1228_v32, %v903_v20  ;;  %v1157_v35 = vpop.f32.mrb[3].mxu0  ;;  %v1230_v36 = vpop.f32.mrb[3].mxu1 }
 0x17e   : > { %6681 = vst [vmem:[#allocation57_spill] sm:$0xff] %v5255_v29  ;;  %6682 = vst [vmem:[#allocation58_spill] sm:$0xff] %v5258_v30  ;;  %v5265_v37 = vadd.f32 %v1157_v35, %v5246_v21  ;;  %v5268_v38 = vadd.f32 %v1230_v36, %v5248_v22 }
 0x17f   : > { %6683 = vst [vmem:[#allocation59_spill] sm:$0xff] %v5262_v34 }
 0x180   : > { %6684 = vst [vmem:[#allocation60_spill] sm:$0xff] %v5268_v38 }
 0x182   : > { %v1161_v39 = vpop.f32.mrb[4].mxu0  ;;  %v1234_v40 = vpop.f32.mrb[4].mxu1 }
 0x183   : > { %v5270_v41 = vadd.f32 %v1161_v39, %v895_v18  ;;  %v5272_v42 = vadd.f32 %v1234_v40, %v903_v20  ;;  %v1163_v11 = vpop.f32.mrb[5].mxu0  ;;  %v1236_v12 = vpop.f32.mrb[5].mxu1 }
 0x184   : > { %v5275_v13 = vadd.f32 %v1163_v11, %v5246_v21  ;;  %v5278_v14 = vadd.f32 %v1236_v12, %v5248_v22  ;;  %v1165_v15 = vpop.f32.mrb[6].mxu0  ;;  %v1238_v16 = vpop.f32.mrb[6].mxu1 }
 0x185   : > { %v5280_v17 = vadd.f32 %v1165_v15, %v895_v18  ;;  %v5282_v23 = vadd.f32 %v1238_v16, %v903_v20  ;;  %v1167_v24 = vpop.f32.mrb[7].mxu0  ;;  %v1240_v27 = vpop.f32.mrb[7].mxu1 }
 0x186   : > { %v5285_v28 = vadd.f32 %v1167_v24, %v5246_v21  ;;  %v5288_v31 = vadd.f32 %v1240_v27, %v5248_v22 }
 0x187   : > { %6685 = vst [vmem:[#allocation61_spill] sm:$0xff] %v5282_v23 }
 0x188   : > { %6686 = vst [vmem:[#allocation62_spill] sm:$0xff] %v5285_v28  ;;  %6687 = vst [vmem:[#allocation63_spill] sm:$0xff] %v5288_v31 }
 0x18a   : > { %v1171_v32 = vpop.f32.mrb[8].mxu0  ;;  %v1244_v35 = vpop.f32.mrb[8].mxu1 }
 0x18b   : > { %v5290_v36 = vadd.f32 %v1171_v32, %v895_v18  ;;  %v5292_v39 = vadd.f32 %v1244_v35, %v903_v20  ;;  %v1173_v40 = vpop.f32.mrb[9].mxu0  ;;  %v1246_v11 = vpop.f32.mrb[9].mxu1 }
 0x18c   : > { %v5295_v12 = vadd.f32 %v1173_v40, %v5246_v21  ;;  %v5298_v15 = vadd.f32 %v1246_v11, %v5248_v22  ;;  %v1175_v16 = vpop.f32.mrb[10].mxu0  ;;  %v1248_v24 = vpop.f32.mrb[10].mxu1 }
 0x18d   : > { %6688 = vst [vmem:[#allocation64_spill] sm:$0xff] %v5290_v36  ;;  %6689 = vst [vmem:[#allocation65_spill] sm:$0xff] %v5292_v39  ;;  %v5300_v23 = vadd.f32 %v1175_v16, %v895_v18  ;;  %v5302_v27 = vadd.f32 %v1248_v24, %v903_v20  ;;  %v1177_v31 = vpop.f32.mrb[11].mxu0  ;;  %v1250_v28 = vpop.f32.mrb[11].mxu1 }
 0x18e   : > { %6690 = vst [vmem:[#allocation66_spill] sm:$0xff] %v5295_v12  ;;  %6691 = vst [vmem:[#allocation67_spill] sm:$0xff] %v5298_v15  ;;  %v5305_v32 = vadd.f32 %v1177_v31, %v5246_v21  ;;  %v5308_v35 = vadd.f32 %v1250_v28, %v5248_v22 }
 0x18f   : > { %6692 = vst [vmem:[#allocation68_spill] sm:$0xff] %v5300_v23  ;;  %6693 = vst [vmem:[#allocation69_spill] sm:$0xff] %v5302_v27 }
 0x190   : > { %6694 = vst [vmem:[#allocation70_spill] sm:$0xff] %v5305_v32  ;;  %6695 = vst [vmem:[#allocation71_spill] sm:$0xff] %v5308_v35 }
 0x192   : > { %v1181_v39 = vpop.f32.mrb[12].mxu0  ;;  %v1254_v40 = vpop.f32.mrb[12].mxu1  ;;  %1331 = sbr.rel (%p3943_p11) target bundleno = 2525 (0x9dd), region = 86 }
 0x193   : > { %v5310_v12 = vadd.f32 %v1181_v39, %v895_v18  ;;  %v5312_v11 = vadd.f32 %v1254_v40, %v903_v20  ;;  %v1183_v15 = vpop.f32.mrb[13].mxu0  ;;  %v1256_v36 = vpop.f32.mrb[13].mxu1 }
 0x194   : > { %v5315_v16 = vadd.f32 %v1183_v15, %v5246_v21  ;;  %v5318_v24 = vadd.f32 %v1256_v36, %v5248_v22  ;;  %v1185_v27 = vpop.f32.mrb[14].mxu0  ;;  %v1258_v31 = vpop.f32.mrb[14].mxu1  ;;  %v5333_v36 = vcombine.high (!%p3943_p11), %v5145_v43, %v5151_v45  ;;  %v5359_v15 = vcombine.low (!%p3943_p11), %v5157_v46, %v5163_v48 }
 0x195   : > { %6696 = vst [vmem:[#allocation72_spill] sm:$0xff] %v5310_v12  ;;  %6697 = vst [vmem:[#allocation73_spill] sm:$0xff] %v5312_v11  ;;  %v5320_v32 = vadd.f32 %v1185_v27, %v895_v18  ;;  %v5322_v28 = vadd.f32 %v1258_v31, %v903_v20  ;;  %v1187_v35 = vpop.f32.mrb[15].mxu0  ;;  %v1260_v23 = vpop.f32.mrb[15].mxu1  ;;  %v5337_v18 = vcombine.low (!%p3943_p11), %v5145_v43, %v5151_v45  ;;  %v2097_v43 = vstv (!%p3943_p11), %s2096_s21 }
 0x196   : > { %6698 = vst [vmem:[#allocation74_spill] sm:$0xff] %v5315_v16  ;;  %6699 = vst [vmem:[#allocation75_spill] sm:$0xff] %v5318_v24  ;;  %v5325_v39 = vadd.f32 %v1187_v35, %v5246_v21  ;;  %v5328_v40 = vadd.f32 %v1260_v23, %v5248_v22  ;;  %v5341_v20 = vcombine.high (!%p3943_p11), %v5157_v46, %v5163_v48  ;;  %1496 = vmatprep.subr.bf16.mxu0 (!%p3943_p11), %v5333_v36 }
 0x197   : > { %6700 = vst [vmem:[#allocation76_spill] sm:$0xff] %v5320_v32  ;;  %6701 = vst [vmem:[#allocation77_spill] sm:$0xff] %v5322_v28  ;;  %v5345_v21 = vcombine.high (!%p3943_p11), %v5148_v44, %v5154_v19  ;;  %v5350_v22 = vcombine.low (!%p3943_p11), %v5148_v44, %v5154_v19  ;;  %v5354_v23 = vcombine.high (!%p3943_p11), %v5160_v47, %v5166_v49  ;;  %1497 = vmatpush1.bf16.msra.mxu0 (!%p3943_p11), %v5337_v18  ;;  %v6556_v44 = vmov (!%p3943_p11), 0  }
 0x198   : > { %6702 = vst [vmem:[#allocation78_spill] sm:$0xff] %v5325_v39  ;;  %6703 = vst [vmem:[#allocation79_spill] sm:$0xff] %v5328_v40  ;;  %1498 = vmatprep.subr.bf16.mxu0 (!%p3943_p11), %v5341_v20  ;;  %v5368_v27 = vcombine.high (!%p3943_p11), %v5169_v50, %v5175_v52  ;;  %v5373_v35 = vcombine.low (!%p3943_p11), %v5160_v47, %v5166_v49  ;;  %v5378_v31 = vcombine.high (!%p3943_p11), %v5172_v51, %v5178_v53 }
 0x199   : > { %1537 = vmatprep.subr.bf16.mxu1 %v5345_v21  ;;  %1528 = vmatprep.mubr.bf16.mxu0 %v6556_v44  ;;  %v1606_v19 = vstv %s5363_s24  ;;  %v5386_v46 = vcombine.low %v5169_v50, %v5175_v52  ;;  %v5392_v47 = vcombine.high %v5181_v54, %v5187_v56  ;;  %v5397_v44 = vcombine.low %v5172_v51, %v5178_v53 }
 0x19a   : > { %1538 = vmatpush1.bf16.msra.mxu1 %v5350_v22  ;;  %v1728_v49 = vstv %s1727_s7  ;;  %v5402_v50 = vcombine.high %v5184_v55, %v5190_v57  ;;  %v6704_v52 = vmov 0   ;;  %vm1607_vm0 = vcmp.lt.s32.totalorder %v1606_v19, %v5243_v10 }
 0x19b   : > { %1539 = vmatprep.subr.bf16.mxu1 %v5354_v23  ;;  %1499 = vmatpush1.bf16.msra.mxu0 %v5359_v15  ;;  %vm1729_vm1 = vcmp.lt.s32.totalorder %v1728_v49, %v5243_v10  ;;  %v1608_v48 = vsel %vm1607_vm0, 1, %v6704_v52  ;;  %v5413_v51 = vcombine.low %v5181_v54, %v5187_v56  ;;  %v5419_v19 = vcombine.high %v5193_v58, %v5199_v60 }
 0x19c   : > { %1500 = vmatprep.subr.bf16.mxu0 %v5368_v27  ;;  %1569 = vmatprep.mubr.bf16.mxu1 %v6704_v52  ;;  %v5424_v49 = vcombine.low %v5184_v55, %v5190_v57  ;;  %v1730_v53 = vsel %vm1729_vm1, 1, %v6704_v52  ;;  %vm2098_vm2 = vcmp.lt.s32.totalorder %v2097_v43, %v5243_v10  ;;  %v2343_v54 = vstv %s2342_s11 }
 0x19d   : > { %4366 = vset.pattern.permute.xlu0 %v6704_v52  ;;  %4367 = vset.pattern.permute.xlu1 %v6704_v52  ;;  %v5436_v56 = vcombine.low %v5193_v58, %v5199_v60  ;;  %v5441_v55 = vcombine.high %v5205_v62, %v5211_v0  ;;  %v5446_v57 = vcombine.low %v5196_v59, %v5202_v61  ;;  %v2099_v43 = vsel %vm2098_vm2, 1, %v6704_v52 }
 0x19e   : > { %1540 = vmatpush1.bf16.msra.mxu1 %v5373_v35  ;;  %1610 = vperm.xlu0 %4366, %v1608_v48   ;;  %v5430_v48 = vcombine.high %v5196_v59, %v5202_v61  ;;  %v5452_v58 = vcombine.high %v5208_v63, %v5214_v1  ;;  %vm2344_vm3 = vcmp.lt.s32.totalorder %v2343_v54, %v5243_v10 }
 0x19f   : > { %1541 = vmatprep.subr.bf16.mxu1 %v5378_v31  ;;  %1501 = vmatpush1.bf16.msra.mxu0 %v5386_v46  ;;  %v5463_v59 = vcombine.high %v5217_v2, %v5223_v4  ;;  %v5468_v61 = vcombine.low %v5208_v63, %v5214_v1  ;;  %v2345_v54 = vsel %vm2344_vm3, 1, %v6704_v52  ;;  %v5484_v63 = vcombine.high %v5229_v6, %v5235_v8 }
 0x1a0   : > { %1502 = vmatprep.subr.bf16.mxu0 %v5392_v47  ;;  %v5489_v1 = vcombine.low %v5220_v3, %v5226_v5 }
 0x1a2   : > { %1542 = vmatpush1.bf16.msra.mxu1 %v5397_v44  ;;  %1732 = vperm.xlu0 %4366, %v1730_v53   ;;  %v5458_v53 = vcombine.low %v5205_v62, %v5211_v0  ;;  %v5479_v62 = vcombine.low %v5217_v2, %v5223_v4  ;;  %v5494_v0 = vcombine.high %v5232_v7, %v5238_v9  ;;  %v5502_v2 = vld [vmem:[%s5037_s27] sm:$0xff] }
 0x1a3   : > { %1543 = vmatprep.subr.bf16.mxu1 %v5402_v50  ;;  %1503 = vmatpush1.bf16.msra.mxu0 %v5413_v51 }
 0x1a4   : > { %1504 = vmatprep.subr.bf16.mxu0 %v5419_v19 }
 0x1a6   : > { %1544 = vmatpush1.bf16.msra.mxu1 %v5424_v49  ;;  %2101 = vperm.xlu0 %4366, %v2099_v43   ;;  %v5474_v43 = vcombine.high %v5220_v3, %v5226_v5  ;;  %v5508_v3 = vcombine.low %v5232_v7, %v5238_v9  ;;  %v1335_v5 = vpack.c.bf16 %v5502_v2, %v5502_v2 }
 0x1a7   : > { %1545 = vmatprep.subr.bf16.mxu1 %v5430_v48  ;;  %1505 = vmatpush1.bf16.msra.mxu0 %v5436_v56 }
 0x1a8   : > { %1506 = vmatprep.subr.bf16.mxu0 %v5441_v55 }
 0x1aa   : > { %1546 = vmatpush1.bf16.msra.mxu1 %v5446_v57  ;;  %2347 = vperm.xlu0 %4366, %v2345_v54   ;;  %v5499_v54 = vcombine.low %v5229_v6, %v5235_v8 }
 0x1ab   : > { %1547 = vmatprep.subr.bf16.mxu1 %v5452_v58  ;;  %1507 = vmatpush1.bf16.msra.mxu0 %v5458_v53 }
 0x1ac   : > { %1508 = vmatprep.subr.bf16.mxu0 %v5463_v59 }
 0x1ae   : > { %1548 = vmatpush1.bf16.msra.mxu1 %v5468_v61 }
 0x1af   : > { %1549 = vmatprep.subr.bf16.mxu1 %v5474_v43  ;;  %1509 = vmatpush1.bf16.msra.mxu0 %v5479_v62 }
 0x1b0   : > { %1510 = vmatprep.subr.bf16.mxu0 %v5484_v63 }
 0x1b2   : > { %1550 = vmatpush1.bf16.msra.mxu1 %v5489_v1 }
 0x1b3   : > { %1551 = vmatprep.subr.bf16.mxu1 %v5494_v0  ;;  %1511 = vmatpush1.bf16.msra.mxu0 %v5499_v54 }
 0x1b4   : > { %1617 = vmatprep.subr.bf16.mxu0 %v5333_v36 }
 0x1b6   : > { %1552 = vmatpush1.bf16.msra.mxu1 %v5508_v3  ;;  %1529 = vmatmul.mubr.bf16.vlgmr.msra.gmra.mrb[0].mxu0 %v1335_v5 }
 0x1b7   : > { %1658 = vmatprep.subr.bf16.mxu1 %v5345_v21  ;;  %1618 = vmatpush1.bf16.msra.mxu0 %v5337_v18 }
 0x1b8   : > { %1619 = vmatprep.subr.bf16.mxu0 %v5341_v20  ;;  %1649 = vmatprep.mubr.bf16.mxu0 %v6704_v52 }
 0x1b9   : > { %1570 = vmatmul.mubr.bf16.vlgmr.msra.gmra.mrb[0].mxu1 %v1335_v5 }
 0x1ba   : > { %1659 = vmatpush1.bf16.msra.mxu1 %v5350_v22  ;;  %1690 = vmatprep.mubr.bf16.mxu1 %v6704_v52 }
 0x1bb   : > { %1660 = vmatprep.subr.bf16.mxu1 %v5354_v23  ;;  %1620 = vmatpush1.bf16.msra.mxu0 %v5359_v15 }
 0x1bc   : > { %1621 = vmatprep.subr.bf16.mxu0 %v5368_v27 }
 0x1be   : > { %1661 = vmatpush1.bf16.msra.mxu1 %v5373_v35 }
 0x1bf   : > { %1662 = vmatprep.subr.bf16.mxu1 %v5378_v31  ;;  %1622 = vmatpush1.bf16.msra.mxu0 %v5386_v46 }
 0x1c0   : > { %1623 = vmatprep.subr.bf16.mxu0 %v5392_v47 }
 0x1c2   : > { %1663 = vmatpush1.bf16.msra.mxu1 %v5397_v44 }
 0x1c3   : > { %1664 = vmatprep.subr.bf16.mxu1 %v5402_v50  ;;  %1624 = vmatpush1.bf16.msra.mxu0 %v5413_v51 }
 0x1c4   : > { %1625 = vmatprep.subr.bf16.mxu0 %v5419_v19 }
 0x1c6   : > { %1665 = vmatpush1.bf16.msra.mxu1 %v5424_v49 }
 0x1c7   : > { %1666 = vmatprep.subr.bf16.mxu1 %v5430_v48  ;;  %1626 = vmatpush1.bf16.msra.mxu0 %v5436_v56 }
 0x1c8   : > { %1627 = vmatprep.subr.bf16.mxu0 %v5441_v55 }
 0x1ca   : > { %1667 = vmatpush1.bf16.msra.mxu1 %v5446_v57 }
 0x1cb   : > { %1668 = vmatprep.subr.bf16.mxu1 %v5452_v58  ;;  %1628 = vmatpush1.bf16.msra.mxu0 %v5458_v53 }
 0x1cc   : > { %1629 = vmatprep.subr.bf16.mxu0 %v5463_v59 }
 0x1ce   : > { %1669 = vmatpush1.bf16.msra.mxu1 %v5468_v61 }
 0x1cf   : > { %1670 = vmatprep.subr.bf16.mxu1 %v5474_v43  ;;  %1630 = vmatpush1.bf16.msra.mxu0 %v5479_v62 }
 0x1d0   : > { %1631 = vmatprep.subr.bf16.mxu0 %v5484_v63 }
 0x1d2   : > { %1671 = vmatpush1.bf16.msra.mxu1 %v5489_v1 }
 0x1d3   : > { %1672 = vmatprep.subr.bf16.mxu1 %v5494_v0  ;;  %1632 = vmatpush1.bf16.msra.mxu0 %v5499_v54 }
 0x1d4   : > { %1740 = vmatprep.subr.bf16.mxu0 %v5333_v36 }
 0x1d6   : > { %1673 = vmatpush1.bf16.msra.mxu1 %v5508_v3 }
 0x1d7   : > { %1781 = vmatprep.subr.bf16.mxu1 %v5345_v21 }
 0x289   : > { %v1530_v5 = vpop.f32.mrb[0].mxu0 }
 0x28a   : > { %v1578_v7 = vadd.f32 %v5250_v25, %v1530_v5  ;;  %v1532_v9 = vpop.f32.mrb[1].mxu0 }
 0x28b   : > { %v1579_v8 = vadd.f32 %v5255_v29, %v1532_v9  ;;  %v1534_v4 = vpop.f32.mrb[2].mxu0 }
 0x28c   : > { %v1571_v6 = vpop.f32.mrb[0].mxu1  ;;  %v3977_v45 = vmul.f32 -1.442695, %v1578_v7  ;;  %v1535_v28 = vpop.f32.mrb[3].mxu0 }
 0x28d   : > { %v1573_v60 = vpop.f32.mrb[1].mxu1  ;;  %v3978_v39 = vmul.f32 -1.442695, %v1579_v8  ;;  %v1580_v16 = vadd.f32 %v5252_v26, %v1571_v6  ;;  %v1334_v8 = vld [vmem:[%s5043_s5] sm:$0xff]  ;;  %v1611_v28 = vpop.permute.xlu0 %1610 }
 0x28e   : > { %v1575_v40 = vpop.f32.mrb[2].mxu1  ;;  %4368 = vpow2.f32 %v3977_v45  ;;  %v1581_v11 = vadd.f32 %v5258_v30, %v1573_v60  ;;  %vm1612_vm4 = vcmp.eq.s32.totalorder %v1611_v28, 1 }
 0x28f   : > { %v1576_v32 = vpop.f32.mrb[3].mxu1  ;;  %4370 = vpow2.f32 %v3978_v39 }
 0x290   : > { %v3979_v24 = vmul.f32 -1.442695, %v1581_v11 }
 0x292   : > { %4372 = vpow2.f32 %v3979_v24 }
 0x293   : > { %4374 = vtanh.f32 %v1580_v16 }
 0x298   : > { %v4369_v5 = vpop.eup %4368 }
 0x299   : > { %v4371_v25 = vpop.eup %4370  ;;  %v1585_v12 = vadd.f32 1.0, %v4369_v5 }
 0x29a   : > { %v1591_v4 = vadd.f32 1.0, %v4371_v25 }
 0x29b   : > { %4376 = vrcp.f32 %v1585_v12 }
 0x29c   : > { %4378 = vrcp.f32 %v1591_v4  ;;  %v4373_v7 = vpop.eup %4372  ;;  %v1974_v4 = vstv %s1973_s18 }
 0x29d   : > { %v4375_v9 = vpop.eup %4374  ;;  %v1598_v45 = vadd.f32 1.0, %v4373_v7  ;;  %vm1975_vm6 = vcmp.lt.s32.totalorder %v1974_v4, %v5243_v10 }
 0x29f   : > { %4380 = vrcp.f32 %v1598_v45 }
 0x2a5   : > { %v4377_v32 = vpop.eup %4376 }
 0x2a6   : > { %v4379_v39 = vpop.eup %4378  ;;  %v1602_v60 = vmul.f32 %v4377_v32, %v4375_v9  ;;  %v2220_v9 = vstv %s2219_s19  ;;  %v2466_v32 = vstv %s2465_s12 }
 0x2a7   : > { %v1601_v11 = vmul.f32 %v4379_v39, %v1334_v8  ;;  %vm2221_vm7 = vcmp.lt.s32.totalorder %v2220_v9, %v5243_v10  ;;  %vm2467_vm8 = vcmp.lt.s32.totalorder %v2466_v32, %v5243_v10 }
 0x2a8   : > { %v2222_v45 = vsel %vm2221_vm7, 1, %v6704_v52  ;;  %v2468_v28 = vsel %vm2467_vm8, 1, %v6704_v52 }
 0x2a9   : > { %v1603_v6 = vadd.f32 %v1602_v60, %v1601_v11  ;;  %v4381_v16 = vpop.eup %4380 }
 0x2ab   : > { %4382 = vtanh.f32 %v1603_v6  ;;  %v5556_v24 = vsel %vm1612_vm4, %v1603_v6, %v1334_v8  ;;  %v1976_v8 = vsel %vm1975_vm6, 1, %v6704_v52 }
 0x2b5   : > { %v4383_v25 = vpop.eup %4382 }
 0x2b6   : > { %v1605_v12 = vmul.f32 %v4383_v25, %v4381_v16 }
 0x2b8   : > { %v5559_v40 = vsel %vm1612_vm4, %v1605_v12, %v5502_v2  ;;  %v1851_v2 = vstv %s1850_s23 }
 0x2b9   : > { %1615 = vst [vmem:[%s5041_s17] sm:$0xff] %v5559_v40  ;;  %v1616_v5 = vpack.c.bf16 %v5559_v40, %v5559_v40  ;;  %vm1852_vm5 = vcmp.lt.s32.totalorder %v1851_v2, %v5243_v10 }
 0x2ba   : > { %v1853_v7 = vsel %vm1852_vm5, 1, %v6704_v52 }
 0x2bb   : > { %1650 = vmatmul.mubr.bf16.vlgmr.msra.gmra.mrb[4].mxu0 %v1616_v5  ;;  %1691 = vmatmul.mubr.bf16.vlgmr.msra.gmra.mrb[4].mxu1 %v1616_v5 }
 0x2bc   : > { %1741 = vmatpush1.bf16.msra.mxu0 %v5337_v18  ;;  %1782 = vmatpush1.bf16.msra.mxu1 %v5350_v22 }
 0x2bd   : > { %1742 = vmatprep.subr.bf16.mxu0 %v5341_v20  ;;  %1783 = vmatprep.subr.bf16.mxu1 %v5354_v23 }
 0x2be   : > { %1772 = vmatprep.mubr.bf16.mxu0 %v6704_v52  ;;  %1813 = vmatprep.mubr.bf16.mxu1 %v6704_v52 }
 0x2bf   : > { %1855 = vperm.xlu1 %4367, %v1853_v7  }
 0x2c0   : > { %1743 = vmatpush1.bf16.msra.mxu0 %v5359_v15  ;;  %1784 = vmatpush1.bf16.msra.mxu1 %v5373_v35 }
 0x2c1   : > { %1744 = vmatprep.subr.bf16.mxu0 %v5368_v27  ;;  %1785 = vmatprep.subr.bf16.mxu1 %v5378_v31 }
 0x2c3   : > { %1978 = vperm.xlu1 %4367, %v1976_v8  }
 0x2c4   : > { %1745 = vmatpush1.bf16.msra.mxu0 %v5386_v46  ;;  %1786 = vmatpush1.bf16.msra.mxu1 %v5397_v44 }
 0x2c5   : > { %1746 = vmatprep.subr.bf16.mxu0 %v5392_v47  ;;  %1787 = vmatprep.subr.bf16.mxu1 %v5402_v50 }
 0x2c7   : > { %2224 = vperm.xlu1 %4367, %v2222_v45  }
 0x2c8   : > { %1747 = vmatpush1.bf16.msra.mxu0 %v5413_v51  ;;  %1788 = vmatpush1.bf16.msra.mxu1 %v5424_v49 }
 0x2c9   : > { %1748 = vmatprep.subr.bf16.mxu0 %v5419_v19  ;;  %1789 = vmatprep.subr.bf16.mxu1 %v5430_v48 }
 0x2cb   : > { %2470 = vperm.xlu1 %4367, %v2468_v28  }
 0x2cc   : > { %1749 = vmatpush1.bf16.msra.mxu0 %v5436_v56  ;;  %1790 = vmatpush1.bf16.msra.mxu1 %v5446_v57 }
 0x2cd   : > { %1750 = vmatprep.subr.bf16.mxu0 %v5441_v55  ;;  %1791 = vmatprep.subr.bf16.mxu1 %v5452_v58 }
 0x2d0   : > { %1751 = vmatpush1.bf16.msra.mxu0 %v5458_v53  ;;  %1792 = vmatpush1.bf16.msra.mxu1 %v5468_v61 }
 0x2d1   : > { %1752 = vmatprep.subr.bf16.mxu0 %v5463_v59  ;;  %1793 = vmatprep.subr.bf16.mxu1 %v5474_v43 }
 0x2d4   : > { %1753 = vmatpush1.bf16.msra.mxu0 %v5479_v62  ;;  %1794 = vmatpush1.bf16.msra.mxu1 %v5489_v1 }
 0x2d5   : > { %1754 = vmatprep.subr.bf16.mxu0 %v5484_v63  ;;  %1795 = vmatprep.subr.bf16.mxu1 %v5494_v0 }
 0x2d8   : > { %1755 = vmatpush1.bf16.msra.mxu0 %v5499_v54  ;;  %1796 = vmatpush1.bf16.msra.mxu1 %v5508_v3 }
 0x2d9   : > { %1863 = vmatprep.subr.bf16.mxu0 %v5333_v36  ;;  %1904 = vmatprep.subr.bf16.mxu1 %v5345_v21 }
 0x38e   : > { %v1651_v39 = vpop.f32.mrb[4].mxu0  ;;  %v1692_v60 = vpop.f32.mrb[4].mxu1 }
 0x38f   : > { %v1699_v11 = vadd.f32 %v5260_v33, %v1651_v39  ;;  %v1653_v6 = vpop.f32.mrb[5].mxu0  ;;  %v1694_v16 = vpop.f32.mrb[5].mxu1  ;;  %v1701_v45 = vadd.f32 %v5262_v34, %v1692_v60 }
 0x390   : > { %v1700_v25 = vadd.f32 %v5265_v37, %v1653_v6  ;;  %v1655_v12 = vpop.f32.mrb[6].mxu0  ;;  %v1696_v5 = vpop.f32.mrb[6].mxu1  ;;  %v1702_v8 = vadd.f32 %v5268_v38, %v1694_v16 }
 0x391   : > { %v3980_v2 = vmul.f32 -1.442695, %v1699_v11  ;;  %v1656_v4 = vpop.f32.mrb[7].mxu0  ;;  %v1697_v7 = vpop.f32.mrb[7].mxu1 }
 0x392   : > { %v3981_v9 = vmul.f32 -1.442695, %v1700_v25  ;;  %v3982_v32 = vmul.f32 -1.442695, %v1702_v8  ;;  %v1733_v4 = vpop.permute.xlu0 %1732 }
 0x393   : > { %4384 = vpow2.f32 %v3980_v2  ;;  %vm1734_vm9 = vcmp.eq.s32.totalorder %v1733_v4, 1 }
 0x394   : > { %4386 = vpow2.f32 %v3981_v9 }
 0x395   : > { %4388 = vpow2.f32 %v3982_v32 }
 0x396   : > { %4390 = vtanh.f32 %v1701_v45 }
 0x39d   : > { %v4385_v28 = vpop.eup %4384 }
 0x39e   : > { %v4387_v26 = vpop.eup %4386  ;;  %v1706_v39 = vadd.f32 1.0, %v4385_v28 }
 0x39f   : > { %v1712_v30 = vadd.f32 1.0, %v4387_v26  ;;  %v4389_v6 = vpop.eup %4388 }
 0x3a0   : > { %4392 = vrcp.f32 %v1706_v39  ;;  %v4391_v11 = vpop.eup %4390  ;;  %v1719_v2 = vadd.f32 1.0, %v4389_v6 }
 0x3a1   : > { %4394 = vrcp.f32 %v1712_v30 }
 0x3a2   : > { %4396 = vrcp.f32 %v1719_v2 }
 0x3aa   : > { %v4393_v12 = vpop.eup %4392 }
 0x3ab   : > { %v4395_v25 = vpop.eup %4394  ;;  %v1723_v5 = vmul.f32 %v4393_v12, %v4391_v11 }
 0x3ac   : > { %v1722_v16 = vmul.f32 %v4395_v25, %v5556_v24  ;;  %v4397_v26 = vpop.eup %4396 }
 0x3ae   : > { %v1724_v7 = vadd.f32 %v1723_v5, %v1722_v16 }
 0x3b0   : > { %4398 = vtanh.f32 %v1724_v7  ;;  %v5617_v60 = vsel %vm1734_vm9, %v1724_v7, %v5556_v24 }
 0x3ba   : > { %v4399_v9 = vpop.eup %4398 }
 0x3bb   : > { %v1726_v30 = vmul.f32 %v4399_v9, %v4397_v26 }
 0x3bd   : > { %v5620_v8 = vsel %vm1734_vm9, %v1726_v30, %v5559_v40 }
 0x3be   : > { %3983 = vst [vmem:[%s5041_s17 + $0x8] sm:$0xff] %v5620_v8  ;;  %v1739_v32 = vpack.c.bf16 %v5620_v8, %v5620_v8 }
 0x3c0   : > { %1773 = vmatmul.mubr.bf16.vlgmr.msra.gmra.mrb[8].mxu0 %v1739_v32  ;;  %1814 = vmatmul.mubr.bf16.vlgmr.msra.gmra.mrb[8].mxu1 %v1739_v32 }
 0x3c1   : > { %1864 = vmatpush1.bf16.msra.mxu0 %v5337_v18  ;;  %1905 = vmatpush1.bf16.msra.mxu1 %v5350_v22 }
 0x3c2   : > { %1865 = vmatprep.subr.bf16.mxu0 %v5341_v20  ;;  %1906 = vmatprep.subr.bf16.mxu1 %v5354_v23 }
 0x3c3   : > { %1895 = vmatprep.mubr.bf16.mxu0 %v6704_v52  ;;  %1936 = vmatprep.mubr.bf16.mxu1 %v6704_v52 }
 0x3c5   : > { %1866 = vmatpush1.bf16.msra.mxu0 %v5359_v15  ;;  %1907 = vmatpush1.bf16.msra.mxu1 %v5373_v35 }
 0x3c6   : > { %1867 = vmatprep.subr.bf16.mxu0 %v5368_v27  ;;  %1908 = vmatprep.subr.bf16.mxu1 %v5378_v31 }
 0x3c9   : > { %1868 = vmatpush1.bf16.msra.mxu0 %v5386_v46  ;;  %1909 = vmatpush1.bf16.msra.mxu1 %v5397_v44 }
 0x3ca   : > { %1869 = vmatprep.subr.bf16.mxu0 %v5392_v47  ;;  %1910 = vmatprep.subr.bf16.mxu1 %v5402_v50 }
 0x3cd   : > { %1870 = vmatpush1.bf16.msra.mxu0 %v5413_v51  ;;  %1911 = vmatpush1.bf16.msra.mxu1 %v5424_v49 }
 0x3ce   : > { %1871 = vmatprep.subr.bf16.mxu0 %v5419_v19  ;;  %1912 = vmatprep.subr.bf16.mxu1 %v5430_v48 }
 0x3d1   : > { %1872 = vmatpush1.bf16.msra.mxu0 %v5436_v56  ;;  %1913 = vmatpush1.bf16.msra.mxu1 %v5446_v57 }
 0x3d2   : > { %1873 = vmatprep.subr.bf16.mxu0 %v5441_v55  ;;  %1914 = vmatprep.subr.bf16.mxu1 %v5452_v58 }
 0x3d5   : > { %1874 = vmatpush1.bf16.msra.mxu0 %v5458_v53  ;;  %1915 = vmatpush1.bf16.msra.mxu1 %v5468_v61 }
 0x3d6   : > { %1875 = vmatprep.subr.bf16.mxu0 %v5463_v59  ;;  %1916 = vmatprep.subr.bf16.mxu1 %v5474_v43 }
 0x3d9   : > { %1876 = vmatpush1.bf16.msra.mxu0 %v5479_v62  ;;  %1917 = vmatpush1.bf16.msra.mxu1 %v5489_v1 }
 0x3da   : > { %1877 = vmatprep.subr.bf16.mxu0 %v5484_v63  ;;  %1918 = vmatprep.subr.bf16.mxu1 %v5494_v0 }
 0x3dd   : > { %1878 = vmatpush1.bf16.msra.mxu0 %v5499_v54  ;;  %1919 = vmatpush1.bf16.msra.mxu1 %v5508_v3 }
 0x3de   : > { %1986 = vmatprep.subr.bf16.mxu0 %v5333_v36  ;;  %2027 = vmatprep.subr.bf16.mxu1 %v5345_v21 }
 0x493   : > { %v1774_v24 = vpop.f32.mrb[8].mxu0  ;;  %v1815_v40 = vpop.f32.mrb[8].mxu1 }
 0x494   : > { %v1822_v45 = vadd.f32 %v5270_v41, %v1774_v24  ;;  %v1776_v28 = vpop.f32.mrb[9].mxu0  ;;  %v1817_v39 = vpop.f32.mrb[9].mxu1  ;;  %v1824_v26 = vadd.f32 %v5272_v42, %v1815_v40 }
 0x495   : > { %v1823_v6 = vadd.f32 %v5275_v13, %v1776_v28  ;;  %v1778_v11 = vpop.f32.mrb[10].mxu0  ;;  %v1819_v12 = vpop.f32.mrb[10].mxu1  ;;  %v1825_v4 = vadd.f32 %v5278_v14, %v1817_v39 }
 0x496   : > { %v3984_v25 = vmul.f32 -1.442695, %v1822_v45  ;;  %v1779_v5 = vpop.f32.mrb[11].mxu0  ;;  %v1820_v2 = vpop.f32.mrb[11].mxu1 }
 0x497   : > { %v3985_v16 = vmul.f32 -1.442695, %v1823_v6  ;;  %v3986_v7 = vmul.f32 -1.442695, %v1825_v4  ;;  %v1856_v6 = vpop.permute.xlu1 %1855 }
 0x498   : > { %4400 = vpow2.f32 %v3984_v25  ;;  %vm1857_vm10 = vcmp.eq.s32.totalorder %v1856_v6, 1 }
 0x499   : > { %4402 = vpow2.f32 %v3985_v16 }
 0x49a   : > { %4404 = vpow2.f32 %v3986_v7 }
 0x49b   : > { %4406 = vtanh.f32 %v1824_v26 }
 0x4a2   : > { %v4401_v9 = vpop.eup %4400 }
 0x4a3   : > { %v4403_v30 = vpop.eup %4402  ;;  %v1829_v32 = vadd.f32 1.0, %v4401_v9 }
 0x4a4   : > { %v1835_v24 = vadd.f32 1.0, %v4403_v30  ;;  %v4405_v28 = vpop.eup %4404 }
 0x4a5   : > { %4408 = vrcp.f32 %v1829_v32  ;;  %v4407_v45 = vpop.eup %4406  ;;  %v1842_v25 = vadd.f32 1.0, %v4405_v28  ;;  %v6705_v28 = vld [vmem:[#allocation62_spill] sm:$0xff] }
 0x4a6   : > { %4410 = vrcp.f32 %v1835_v24 }
 0x4a7   : > { %4412 = vrcp.f32 %v1842_v25 }
 0x4af   : > { %v4409_v11 = vpop.eup %4408 }
 0x4b0   : > { %v4411_v12 = vpop.eup %4410  ;;  %v1846_v5 = vmul.f32 %v4409_v11, %v4407_v45 }
 0x4b1   : > { %v1845_v39 = vmul.f32 %v4411_v12, %v5617_v60  ;;  %v4413_v16 = vpop.eup %4412 }
 0x4b3   : > { %v1847_v40 = vadd.f32 %v1846_v5, %v1845_v39 }
 0x4b5   : > { %4414 = vtanh.f32 %v1847_v40  ;;  %v5666_v2 = vsel %vm1857_vm10, %v1847_v40, %v5617_v60  ;;  %v6706_v40 = vld [vmem:[#allocation63_spill] sm:$0xff] }
 0x4bf   : > { %v4415_v4 = vpop.eup %4414 }
 0x4c0   : > { %v1849_v7 = vmul.f32 %v4415_v4, %v4413_v16 }
 0x4c2   : > { %v5669_v26 = vsel %vm1857_vm10, %v1849_v7, %v5620_v8  ;;  %v6707_v7 = vld [vmem:[#allocation61_spill] sm:$0xff] }
 0x4c3   : > { %3987 = vst [vmem:[%s5041_s17 + $0x10] sm:$0xff] %v5669_v26  ;;  %v1862_v9 = vpack.c.bf16 %v5669_v26, %v5669_v26 }
 0x4c5   : > { %1896 = vmatmul.mubr.bf16.vlgmr.msra.gmra.mrb[12].mxu0 %v1862_v9  ;;  %1937 = vmatmul.mubr.bf16.vlgmr.msra.gmra.mrb[12].mxu1 %v1862_v9 }
 0x4c6   : > { %1987 = vmatpush1.bf16.msra.mxu0 %v5337_v18  ;;  %2028 = vmatpush1.bf16.msra.mxu1 %v5350_v22 }
 0x4c7   : > { %1988 = vmatprep.subr.bf16.mxu0 %v5341_v20  ;;  %2029 = vmatprep.subr.bf16.mxu1 %v5354_v23 }
 0x4c8   : > { %2018 = vmatprep.mubr.bf16.mxu0 %v6704_v52  ;;  %2059 = vmatprep.mubr.bf16.mxu1 %v6704_v52 }
 0x4ca   : > { %1989 = vmatpush1.bf16.msra.mxu0 %v5359_v15  ;;  %2030 = vmatpush1.bf16.msra.mxu1 %v5373_v35 }
 0x4cb   : > { %1990 = vmatprep.subr.bf16.mxu0 %v5368_v27  ;;  %2031 = vmatprep.subr.bf16.mxu1 %v5378_v31 }
 0x4ce   : > { %1991 = vmatpush1.bf16.msra.mxu0 %v5386_v46  ;;  %2032 = vmatpush1.bf16.msra.mxu1 %v5397_v44 }
 0x4cf   : > { %1992 = vmatprep.subr.bf16.mxu0 %v5392_v47  ;;  %2033 = vmatprep.subr.bf16.mxu1 %v5402_v50 }
 0x4d2   : > { %1993 = vmatpush1.bf16.msra.mxu0 %v5413_v51  ;;  %2034 = vmatpush1.bf16.msra.mxu1 %v5424_v49 }
 0x4d3   : > { %1994 = vmatprep.subr.bf16.mxu0 %v5419_v19  ;;  %2035 = vmatprep.subr.bf16.mxu1 %v5430_v48 }
 0x4d6   : > { %1995 = vmatpush1.bf16.msra.mxu0 %v5436_v56  ;;  %2036 = vmatpush1.bf16.msra.mxu1 %v5446_v57 }
 0x4d7   : > { %1996 = vmatprep.subr.bf16.mxu0 %v5441_v55  ;;  %2037 = vmatprep.subr.bf16.mxu1 %v5452_v58 }
 0x4da   : > { %1997 = vmatpush1.bf16.msra.mxu0 %v5458_v53  ;;  %2038 = vmatpush1.bf16.msra.mxu1 %v5468_v61 }
 0x4db   : > { %1998 = vmatprep.subr.bf16.mxu0 %v5463_v59  ;;  %2039 = vmatprep.subr.bf16.mxu1 %v5474_v43 }
 0x4de   : > { %1999 = vmatpush1.bf16.msra.mxu0 %v5479_v62  ;;  %2040 = vmatpush1.bf16.msra.mxu1 %v5489_v1 }
 0x4df   : > { %2000 = vmatprep.subr.bf16.mxu0 %v5484_v63  ;;  %2041 = vmatprep.subr.bf16.mxu1 %v5494_v0 }
 0x4e2   : > { %2001 = vmatpush1.bf16.msra.mxu0 %v5499_v54  ;;  %2042 = vmatpush1.bf16.msra.mxu1 %v5508_v3 }
 0x4e3   : > { %2109 = vmatprep.subr.bf16.mxu0 %v5333_v36  ;;  %2150 = vmatprep.subr.bf16.mxu1 %v5345_v21 }
 0x598   : > { %v1897_v60 = vpop.f32.mrb[12].mxu0  ;;  %v1938_v8 = vpop.f32.mrb[12].mxu1 }
 0x599   : > { %v1945_v30 = vadd.f32 %v5280_v17, %v1897_v60  ;;  %v1899_v32 = vpop.f32.mrb[13].mxu0  ;;  %v1940_v24 = vpop.f32.mrb[13].mxu1  ;;  %v1947_v9 = vadd.f32 %v6707_v7, %v1938_v8 }
 0x59a   : > { %v1946_v45 = vadd.f32 %v6705_v28, %v1899_v32  ;;  %v1901_v11 = vpop.f32.mrb[14].mxu0  ;;  %v1942_v6 = vpop.f32.mrb[14].mxu1  ;;  %v1948_v16 = vadd.f32 %v6706_v40, %v1940_v24  ;;  %v6708_v40 = vld [vmem:[#allocation64_spill] sm:$0xff] }
 0x59b   : > { %v3988_v12 = vmul.f32 -1.442695, %v1945_v30  ;;  %v1902_v25 = vpop.f32.mrb[15].mxu0  ;;  %v1943_v5 = vpop.f32.mrb[15].mxu1 }
 0x59c   : > { %v3989_v39 = vmul.f32 -1.442695, %v1946_v45  ;;  %v3990_v4 = vmul.f32 -1.442695, %v1948_v16 }
 0x59d   : > { %4416 = vpow2.f32 %v3988_v12  ;;  %v1979_v12 = vpop.permute.xlu1 %1978 }
 0x59e   : > { %4418 = vpow2.f32 %v3989_v39  ;;  %vm1980_vm11 = vcmp.eq.s32.totalorder %v1979_v12, 1 }
 0x59f   : > { %4420 = vpow2.f32 %v3990_v4 }
 0x5a0   : > { %4422 = vtanh.f32 %v1947_v9  ;;  %v6709_v9 = vld [vmem:[#allocation66_spill] sm:$0xff] }
 0x5a7   : > { %v4417_v29 = vpop.eup %4416 }
 0x5a8   : > { %v4419_v34 = vpop.eup %4418  ;;  %v1952_v60 = vadd.f32 1.0, %v4417_v29 }
 0x5a9   : > { %v1958_v38 = vadd.f32 1.0, %v4419_v34  ;;  %v4421_v32 = vpop.eup %4420 }
 0x5aa   : > { %4424 = vrcp.f32 %v1952_v60  ;;  %v4423_v30 = vpop.eup %4422  ;;  %v1965_v6 = vadd.f32 1.0, %v4421_v32 }
 0x5ab   : > { %4426 = vrcp.f32 %v1958_v38 }
 0x5ac   : > { %4428 = vrcp.f32 %v1965_v6 }
 0x5b4   : > { %v4425_v28 = vpop.eup %4424 }
 0x5b5   : > { %v4427_v45 = vpop.eup %4426  ;;  %v1969_v11 = vmul.f32 %v4425_v28, %v4423_v30 }
 0x5b6   : > { %v1968_v24 = vmul.f32 %v4427_v45, %v5666_v2  ;;  %v4429_v34 = vpop.eup %4428 }
 0x5b8   : > { %v1970_v25 = vadd.f32 %v1969_v11, %v1968_v24  ;;  %v6710_v24 = vld [vmem:[#allocation67_spill] sm:$0xff] }
 0x5ba   : > { %4430 = vtanh.f32 %v1970_v25  ;;  %v5715_v29 = vsel %vm1980_vm11, %v1970_v25, %v5666_v2 }
 0x5c4   : > { %v4431_v8 = vpop.eup %4430 }
 0x5c5   : > { %v1972_v38 = vmul.f32 %v4431_v8, %v4429_v34  ;;  %v6711_v34 = vld [vmem:[#allocation65_spill] sm:$0xff] }
 0x5c7   : > { %v5718_v5 = vsel %vm1980_vm11, %v1972_v38, %v5669_v26 }
 0x5c8   : > { %3991 = vst [vmem:[%s5041_s17 + $0x18] sm:$0xff] %v5718_v5  ;;  %v1985_v39 = vpack.c.bf16 %v5718_v5, %v5718_v5 }
 0x5ca   : > { %2019 = vmatmul.mubr.bf16.vlgmr.msra.gmra.mrb[16].mxu0 %v1985_v39  ;;  %2060 = vmatmul.mubr.bf16.vlgmr.msra.gmra.mrb[16].mxu1 %v1985_v39 }
 0x5cb   : > { %2110 = vmatpush1.bf16.msra.mxu0 %v5337_v18  ;;  %2151 = vmatpush1.bf16.msra.mxu1 %v5350_v22 }
 0x5cc   : > { %2111 = vmatprep.subr.bf16.mxu0 %v5341_v20  ;;  %2152 = vmatprep.subr.bf16.mxu1 %v5354_v23 }
 0x5cd   : > { %2141 = vmatprep.mubr.bf16.mxu0 %v6704_v52  ;;  %2182 = vmatprep.mubr.bf16.mxu1 %v6704_v52 }
 0x5cf   : > { %2112 = vmatpush1.bf16.msra.mxu0 %v5359_v15  ;;  %2153 = vmatpush1.bf16.msra.mxu1 %v5373_v35 }
 0x5d0   : > { %2113 = vmatprep.subr.bf16.mxu0 %v5368_v27  ;;  %2154 = vmatprep.subr.bf16.mxu1 %v5378_v31 }
 0x5d3   : > { %2114 = vmatpush1.bf16.msra.mxu0 %v5386_v46  ;;  %2155 = vmatpush1.bf16.msra.mxu1 %v5397_v44 }
 0x5d4   : > { %2115 = vmatprep.subr.bf16.mxu0 %v5392_v47  ;;  %2156 = vmatprep.subr.bf16.mxu1 %v5402_v50 }
 0x5d7   : > { %2116 = vmatpush1.bf16.msra.mxu0 %v5413_v51  ;;  %2157 = vmatpush1.bf16.msra.mxu1 %v5424_v49 }
 0x5d8   : > { %2117 = vmatprep.subr.bf16.mxu0 %v5419_v19  ;;  %2158 = vmatprep.subr.bf16.mxu1 %v5430_v48 }
 0x5db   : > { %2118 = vmatpush1.bf16.msra.mxu0 %v5436_v56  ;;  %2159 = vmatpush1.bf16.msra.mxu1 %v5446_v57 }
 0x5dc   : > { %2119 = vmatprep.subr.bf16.mxu0 %v5441_v55  ;;  %2160 = vmatprep.subr.bf16.mxu1 %v5452_v58 }
 0x5df   : > { %2120 = vmatpush1.bf16.msra.mxu0 %v5458_v53  ;;  %2161 = vmatpush1.bf16.msra.mxu1 %v5468_v61 }
 0x5e0   : > { %2121 = vmatprep.subr.bf16.mxu0 %v5463_v59  ;;  %2162 = vmatprep.subr.bf16.mxu1 %v5474_v43 }
 0x5e3   : > { %2122 = vmatpush1.bf16.msra.mxu0 %v5479_v62  ;;  %2163 = vmatpush1.bf16.msra.mxu1 %v5489_v1 }
 0x5e4   : > { %2123 = vmatprep.subr.bf16.mxu0 %v5484_v63  ;;  %2164 = vmatprep.subr.bf16.mxu1 %v5494_v0 }
 0x5e7   : > { %2124 = vmatpush1.bf16.msra.mxu0 %v5499_v54  ;;  %2165 = vmatpush1.bf16.msra.mxu1 %v5508_v3 }
 0x5e8   : > { %2232 = vmatprep.subr.bf16.mxu0 %v5333_v36  ;;  %2273 = vmatprep.subr.bf16.mxu1 %v5345_v21 }
 0x69d   : > { %v2020_v2 = vpop.f32.mrb[16].mxu0  ;;  %v2061_v26 = vpop.f32.mrb[16].mxu1 }
 0x69e   : > { %v2068_v16 = vadd.f32 %v6708_v40, %v2020_v2  ;;  %v2022_v4 = vpop.f32.mrb[17].mxu0  ;;  %v2063_v7 = vpop.f32.mrb[17].mxu1  ;;  %v2070_v8 = vadd.f32 %v6711_v34, %v2061_v26  ;;  %v6712_v34 = vld [vmem:[#allocation68_spill] sm:$0xff] }
 0x69f   : > { %v2069_v60 = vadd.f32 %v6709_v9, %v2022_v4  ;;  %v2024_v32 = vpop.f32.mrb[18].mxu0  ;;  %v2065_v30 = vpop.f32.mrb[18].mxu1  ;;  %v2071_v12 = vadd.f32 %v6710_v24, %v2063_v7 }
 0x6a0   : > { %v3992_v28 = vmul.f32 -1.442695, %v2068_v16  ;;  %v2025_v45 = vpop.f32.mrb[19].mxu0  ;;  %v2066_v11 = vpop.f32.mrb[19].mxu1 }
 0x6a1   : > { %v3993_v6 = vmul.f32 -1.442695, %v2069_v60  ;;  %v3994_v25 = vmul.f32 -1.442695, %v2071_v12 }
 0x6a2   : > { %4432 = vpow2.f32 %v3992_v28  ;;  %v2102_v28 = vpop.permute.xlu0 %2101 }
 0x6a3   : > { %4434 = vpow2.f32 %v3993_v6  ;;  %vm2103_vm12 = vcmp.eq.s32.totalorder %v2102_v28, 1 }
 0x6a4   : > { %4436 = vpow2.f32 %v3994_v25 }
 0x6a5   : > { %4438 = vtanh.f32 %v2070_v8 }
 0x6ac   : > { %v4433_v38 = vpop.eup %4432 }
 0x6ad   : > { %v4435_v39 = vpop.eup %4434  ;;  %v2075_v2 = vadd.f32 1.0, %v4433_v38 }
 0x6ae   : > { %v2081_v40 = vadd.f32 1.0, %v4435_v39  ;;  %v4437_v4 = vpop.eup %4436 }
 0x6af   : > { %4440 = vrcp.f32 %v2075_v2  ;;  %v4439_v16 = vpop.eup %4438  ;;  %v2088_v30 = vadd.f32 1.0, %v4437_v4  ;;  %v6713_v2 = vld [vmem:[#allocation70_spill] sm:$0xff] }
 0x6b0   : > { %4442 = vrcp.f32 %v2081_v40 }
 0x6b1   : > { %4444 = vrcp.f32 %v2088_v30 }
 0x6b9   : > { %v4441_v9 = vpop.eup %4440 }
 0x6ba   : > { %v4443_v60 = vpop.eup %4442  ;;  %v2092_v32 = vmul.f32 %v4441_v9, %v4439_v16 }
 0x6bb   : > { %v2091_v7 = vmul.f32 %v4443_v60, %v5715_v29  ;;  %v4445_v11 = vpop.eup %4444 }
 0x6bd   : > { %v2093_v45 = vadd.f32 %v2092_v32, %v2091_v7  ;;  %v6714_v7 = vld [vmem:[#allocation71_spill] sm:$0xff] }
 0x6bf   : > { %4446 = vtanh.f32 %v2093_v45  ;;  %v5764_v26 = vsel %vm2103_vm12, %v2093_v45, %v5715_v29 }
 0x6c9   : > { %v4447_v6 = vpop.eup %4446 }
 0x6ca   : > { %v2095_v24 = vmul.f32 %v4447_v6, %v4445_v11 }
 0x6cc   : > { %v5767_v12 = vsel %vm2103_vm12, %v2095_v24, %v5718_v5 }
 0x6cd   : > { %3995 = vst [vmem:[%s5041_s17 + $0x20] sm:$0xff] %v5767_v12  ;;  %v2108_v25 = vpack.c.bf16 %v5767_v12, %v5767_v12 }
 0x6cf   : > { %2142 = vmatmul.mubr.bf16.vlgmr.msra.gmra.mrb[20].mxu0 %v2108_v25  ;;  %2183 = vmatmul.mubr.bf16.vlgmr.msra.gmra.mrb[20].mxu1 %v2108_v25 }
 0x6d0   : > { %2233 = vmatpush1.bf16.msra.mxu0 %v5337_v18  ;;  %2274 = vmatpush1.bf16.msra.mxu1 %v5350_v22 }
 0x6d1   : > { %2234 = vmatprep.subr.bf16.mxu0 %v5341_v20  ;;  %2275 = vmatprep.subr.bf16.mxu1 %v5354_v23 }
 0x6d2   : > { %2264 = vmatprep.mubr.bf16.mxu0 %v6704_v52  ;;  %2305 = vmatprep.mubr.bf16.mxu1 %v6704_v52 }
 0x6d4   : > { %2235 = vmatpush1.bf16.msra.mxu0 %v5359_v15  ;;  %2276 = vmatpush1.bf16.msra.mxu1 %v5373_v35 }
 0x6d5   : > { %2236 = vmatprep.subr.bf16.mxu0 %v5368_v27  ;;  %2277 = vmatprep.subr.bf16.mxu1 %v5378_v31 }
 0x6d8   : > { %2237 = vmatpush1.bf16.msra.mxu0 %v5386_v46  ;;  %2278 = vmatpush1.bf16.msra.mxu1 %v5397_v44 }
 0x6d9   : > { %2238 = vmatprep.subr.bf16.mxu0 %v5392_v47  ;;  %2279 = vmatprep.subr.bf16.mxu1 %v5402_v50 }
 0x6dc   : > { %2239 = vmatpush1.bf16.msra.mxu0 %v5413_v51  ;;  %2280 = vmatpush1.bf16.msra.mxu1 %v5424_v49 }
 0x6dd   : > { %2240 = vmatprep.subr.bf16.mxu0 %v5419_v19  ;;  %2281 = vmatprep.subr.bf16.mxu1 %v5430_v48 }
 0x6e0   : > { %2241 = vmatpush1.bf16.msra.mxu0 %v5436_v56  ;;  %2282 = vmatpush1.bf16.msra.mxu1 %v5446_v57 }
 0x6e1   : > { %2242 = vmatprep.subr.bf16.mxu0 %v5441_v55  ;;  %2283 = vmatprep.subr.bf16.mxu1 %v5452_v58 }
 0x6e4   : > { %2243 = vmatpush1.bf16.msra.mxu0 %v5458_v53  ;;  %2284 = vmatpush1.bf16.msra.mxu1 %v5468_v61 }
 0x6e5   : > { %2244 = vmatprep.subr.bf16.mxu0 %v5463_v59  ;;  %2285 = vmatprep.subr.bf16.mxu1 %v5474_v43 }
 0x6e8   : > { %2245 = vmatpush1.bf16.msra.mxu0 %v5479_v62  ;;  %2286 = vmatpush1.bf16.msra.mxu1 %v5489_v1 }
 0x6e9   : > { %2246 = vmatprep.subr.bf16.mxu0 %v5484_v63  ;;  %2287 = vmatprep.subr.bf16.mxu1 %v5494_v0 }
 0x6ec   : > { %2247 = vmatpush1.bf16.msra.mxu0 %v5499_v54  ;;  %2288 = vmatpush1.bf16.msra.mxu1 %v5508_v3 }
 0x6ed   : > { %2355 = vmatprep.subr.bf16.mxu0 %v5333_v36  ;;  %2396 = vmatprep.subr.bf16.mxu1 %v5345_v21  ;;  %v6715_v21 = vld [vmem:[#allocation69_spill] sm:$0xff] }
 0x7a2   : > { %v2143_v29 = vpop.f32.mrb[20].mxu0  ;;  %v2184_v5 = vpop.f32.mrb[20].mxu1 }
 0x7a3   : > { %v2191_v8 = vadd.f32 %v6712_v34, %v2143_v29  ;;  %v2145_v38 = vpop.f32.mrb[21].mxu0  ;;  %v2186_v39 = vpop.f32.mrb[21].mxu1  ;;  %v2193_v45 = vadd.f32 %v6715_v21, %v2184_v5 }
 0x7a4   : > { %v2192_v40 = vadd.f32 %v6713_v2, %v2145_v38  ;;  %v2147_v4 = vpop.f32.mrb[22].mxu0  ;;  %v2188_v16 = vpop.f32.mrb[22].mxu1  ;;  %v2194_v36 = vadd.f32 %v6714_v7, %v2186_v39 }
 0x7a5   : > { %v3996_v9 = vmul.f32 -1.442695, %v2191_v8  ;;  %v2148_v60 = vpop.f32.mrb[23].mxu0  ;;  %v2189_v32 = vpop.f32.mrb[23].mxu1 }
 0x7a6   : > { %v3997_v30 = vmul.f32 -1.442695, %v2192_v40  ;;  %v3998_v28 = vmul.f32 -1.442695, %v2194_v36  ;;  %v2225_v4 = vpop.permute.xlu1 %2224 }
 0x7a7   : > { %4448 = vpow2.f32 %v3996_v9  ;;  %vm2226_vm13 = vcmp.eq.s32.totalorder %v2225_v4, 1 }
 0x7a8   : > { %4450 = vpow2.f32 %v3997_v30 }
 0x7a9   : > { %4452 = vpow2.f32 %v3998_v28 }
 0x7aa   : > { %4454 = vtanh.f32 %v2193_v45 }
 0x7b1   : > { %v4449_v11 = vpop.eup %4448 }
 0x7b2   : > { %v4451_v6 = vpop.eup %4450  ;;  %v2198_v24 = vadd.f32 1.0, %v4449_v11 }
 0x7b3   : > { %v2204_v25 = vadd.f32 1.0, %v4451_v6  ;;  %v4453_v29 = vpop.eup %4452 }
 0x7b4   : > { %4456 = vrcp.f32 %v2198_v24  ;;  %v4455_v34 = vpop.eup %4454  ;;  %v2211_v40 = vadd.f32 1.0, %v4453_v29 }
 0x7b5   : > { %4458 = vrcp.f32 %v2204_v25  ;;  %v6720_v25 = vld [vmem:[#allocation76_spill] sm:$0xff] }
 0x7b6   : > { %4460 = vrcp.f32 %v2211_v40 }
 0x7be   : > { %v4457_v8 = vpop.eup %4456 }
 0x7bf   : > { %v4459_v38 = vpop.eup %4458  ;;  %v2215_v2 = vmul.f32 %v4457_v8, %v4455_v34 }
 0x7c0   : > { %v2214_v39 = vmul.f32 %v4459_v38, %v5764_v26  ;;  %v4461_v9 = vpop.eup %4460  ;;  %v6721_v38 = vld [vmem:[#allocation78_spill] sm:$0xff] }
 0x7c2   : > { %v2216_v16 = vadd.f32 %v2215_v2, %v2214_v39 }
 0x7c4   : > { %4462 = vtanh.f32 %v2216_v16  ;;  %v5813_v5 = vsel %vm2226_vm13, %v2216_v16, %v5764_v26 }
 0x7ce   : > { %v4463_v60 = vpop.eup %4462 }
 0x7cf   : > { %v2218_v32 = vmul.f32 %v4463_v60, %v4461_v9  ;;  %v6722_v60 = vld [vmem:[#allocation79_spill] sm:$0xff] }
 0x7d1   : > { %v5816_v30 = vsel %vm2226_vm13, %v2218_v32, %v5767_v12 }
 0x7d2   : > { %3999 = vst [vmem:[%s5041_s17 + $0x28] sm:$0xff] %v5816_v30  ;;  %v2231_v7 = vpack.c.bf16 %v5816_v30, %v5816_v30 }
 0x7d4   : > { %2265 = vmatmul.mubr.bf16.vlgmr.msra.gmra.mrb[24].mxu0 %v2231_v7  ;;  %2306 = vmatmul.mubr.bf16.vlgmr.msra.gmra.mrb[24].mxu1 %v2231_v7  ;;  %v6723_v7 = vld [vmem:[#allocation77_spill] sm:$0xff] }
 0x7d5   : > { %2356 = vmatpush1.bf16.msra.mxu0 %v5337_v18  ;;  %2397 = vmatpush1.bf16.msra.mxu1 %v5350_v22 }
 0x7d6   : > { %2357 = vmatprep.subr.bf16.mxu0 %v5341_v20  ;;  %2398 = vmatprep.subr.bf16.mxu1 %v5354_v23 }
 0x7d7   : > { %2387 = vmatprep.mubr.bf16.mxu0 %v6704_v52  ;;  %2428 = vmatprep.mubr.bf16.mxu1 %v6704_v52 }
 0x7d9   : > { %2358 = vmatpush1.bf16.msra.mxu0 %v5359_v15  ;;  %2399 = vmatpush1.bf16.msra.mxu1 %v5373_v35 }
 0x7da   : > { %2359 = vmatprep.subr.bf16.mxu0 %v5368_v27  ;;  %2400 = vmatprep.subr.bf16.mxu1 %v5378_v31 }
 0x7dd   : > { %2360 = vmatpush1.bf16.msra.mxu0 %v5386_v46  ;;  %2401 = vmatpush1.bf16.msra.mxu1 %v5397_v44 }
 0x7de   : > { %2361 = vmatprep.subr.bf16.mxu0 %v5392_v47  ;;  %2402 = vmatprep.subr.bf16.mxu1 %v5402_v50  ;;  %v6716_v47 = vld [vmem:[#allocation72_spill] sm:$0xff] }
 0x7e1   : > { %2362 = vmatpush1.bf16.msra.mxu0 %v5413_v51  ;;  %2403 = vmatpush1.bf16.msra.mxu1 %v5424_v49 }
 0x7e2   : > { %2363 = vmatprep.subr.bf16.mxu0 %v5419_v19  ;;  %2404 = vmatprep.subr.bf16.mxu1 %v5430_v48 }
 0x7e5   : > { %2364 = vmatpush1.bf16.msra.mxu0 %v5436_v56  ;;  %2405 = vmatpush1.bf16.msra.mxu1 %v5446_v57 }
 0x7e6   : > { %2365 = vmatprep.subr.bf16.mxu0 %v5441_v55  ;;  %2406 = vmatprep.subr.bf16.mxu1 %v5452_v58  ;;  %v6717_v55 = vld [vmem:[#allocation74_spill] sm:$0xff] }
 0x7e9   : > { %2366 = vmatpush1.bf16.msra.mxu0 %v5458_v53  ;;  %2407 = vmatpush1.bf16.msra.mxu1 %v5468_v61 }
 0x7ea   : > { %2367 = vmatprep.subr.bf16.mxu0 %v5463_v59  ;;  %2408 = vmatprep.subr.bf16.mxu1 %v5474_v43  ;;  %v2348_v43 = vpop.permute.xlu0 %2347 }
 0x7eb   : > { %vm2349_vm14 = vcmp.eq.s32.totalorder %v2348_v43, 1 }
 0x7ed   : > { %2368 = vmatpush1.bf16.msra.mxu0 %v5479_v62  ;;  %2409 = vmatpush1.bf16.msra.mxu1 %v5489_v1 }
 0x7ee   : > { %2369 = vmatprep.subr.bf16.mxu0 %v5484_v63  ;;  %2410 = vmatprep.subr.bf16.mxu1 %v5494_v0  ;;  %v6718_v0 = vld [vmem:[#allocation75_spill] sm:$0xff] }
 0x7f1   : > { %2370 = vmatpush1.bf16.msra.mxu0 %v5499_v54  ;;  %2411 = vmatpush1.bf16.msra.mxu1 %v5508_v3  ;;  %v6719_v3 = vld [vmem:[#allocation73_spill] sm:$0xff] }
 0x8a7   : > { %v2266_v44 = vpop.f32.mrb[24].mxu0  ;;  %v2307_v46 = vpop.f32.mrb[24].mxu1 }
 0x8a8   : > { %v2314_v50 = vadd.f32 %v6716_v47, %v2266_v44  ;;  %v2268_v51 = vpop.f32.mrb[25].mxu0  ;;  %v2309_v52 = vpop.f32.mrb[25].mxu1  ;;  %v2316_v20 = vadd.f32 %v6719_v3, %v2307_v46 }
 0x8a9   : > { %v2315_v56 = vadd.f32 %v6717_v55, %v2268_v51  ;;  %v2270_v57 = vpop.f32.mrb[26].mxu0  ;;  %v2311_v58 = vpop.f32.mrb[26].mxu1  ;;  %v2317_v1 = vadd.f32 %v6718_v0, %v2309_v52 }
 0x8aa   : > { %v4000_v59 = vmul.f32 -1.442695, %v2314_v50  ;;  %v2271_v61 = vpop.f32.mrb[27].mxu0  ;;  %v2312_v62 = vpop.f32.mrb[27].mxu1 }
 0x8ab   : > { %v4001_v63 = vmul.f32 -1.442695, %v2315_v56  ;;  %v4002_v18 = vmul.f32 -1.442695, %v2317_v1  ;;  %v2471_v61 = vpop.permute.xlu1 %2470 }
 0x8ac   : > { %4464 = vpow2.f32 %v4000_v59  ;;  %vm2472_vm15 = vcmp.eq.s32.totalorder %v2471_v61, 1 }
 0x8ad   : > { %4466 = vpow2.f32 %v4001_v63 }
 0x8ae   : > { %4468 = vpow2.f32 %v4002_v18 }
 0x8af   : > { %4470 = vtanh.f32 %v2316_v20 }
 0x8b6   : > { %v4465_v22 = vpop.eup %4464 }
 0x8b7   : > { %v4467_v23 = vpop.eup %4466  ;;  %v2321_v15 = vadd.f32 1.0, %v4465_v22 }
 0x8b8   : > { %v2327_v27 = vadd.f32 1.0, %v4467_v23  ;;  %v4469_v35 = vpop.eup %4468 }
 0x8b9   : > { %4472 = vrcp.f32 %v2321_v15  ;;  %v4471_v31 = vpop.eup %4470  ;;  %v2334_v53 = vadd.f32 1.0, %v4469_v35 }
 0x8ba   : > { %4474 = vrcp.f32 %v2327_v27 }
 0x8bb   : > { %4476 = vrcp.f32 %v2334_v53 }
 0x8c3   : > { %v4473_v19 = vpop.eup %4472 }
 0x8c4   : > { %v4475_v49 = vpop.eup %4474  ;;  %v2338_v48 = vmul.f32 %v4473_v19, %v4471_v31 }
 0x8c5   : > { %v2337_v54 = vmul.f32 %v4475_v49, %v5813_v5  ;;  %v4477_v36 = vpop.eup %4476 }
 0x8c7   : > { %v2339_v26 = vadd.f32 %v2338_v48, %v2337_v54 }
 0x8c9   : > { %4478 = vtanh.f32 %v2339_v26  ;;  %v2350_v12 = vsel %vm2349_vm14, %v2339_v26, %v5813_v5 }
 0x8d3   : > { %v4479_v28 = vpop.eup %4478 }
 0x8d4   : > { %v2341_v21 = vmul.f32 %v4479_v28, %v4477_v36 }
 0x8d6   : > { %v2351_v45 = vsel %vm2349_vm14, %v2341_v21, %v5816_v30 }
 0x8d7   : > { %4003 = vst [vmem:[%s5041_s17 + $0x30] sm:$0xff] %v2351_v45  ;;  %v2354_v11 = vpack.c.bf16 %v2351_v45, %v2351_v45 }
 0x8d9   : > { %2388 = vmatmul.mubr.bf16.vlgmr.msra.gmra.mrb[28].mxu0 %v2354_v11  ;;  %2429 = vmatmul.mubr.bf16.vlgmr.msra.gmra.mrb[28].mxu1 %v2354_v11 }
 0x9ac   : > { %v2389_v6 = vpop.f32.mrb[28].mxu0  ;;  %v2430_v24 = vpop.f32.mrb[28].mxu1 }
 0x9ad   : > { %v2437_v29 = vadd.f32 %v6720_v25, %v2389_v6  ;;  %v2391_v34 = vpop.f32.mrb[29].mxu0  ;;  %v2432_v8 = vpop.f32.mrb[29].mxu1  ;;  %v2439_v44 = vadd.f32 %v6723_v7, %v2430_v24 }
 0x9ae   : > { %v2438_v2 = vadd.f32 %v6721_v38, %v2391_v34  ;;  %v2393_v40 = vpop.f32.mrb[30].mxu0  ;;  %v2434_v39 = vpop.f32.mrb[30].mxu1  ;;  %v2440_v32 = vadd.f32 %v6722_v60, %v2432_v8 }
 0x9af   : > { %v4004_v4 = vmul.f32 -1.442695, %v2437_v29  ;;  %v2394_v16 = vpop.f32.mrb[31].mxu0  ;;  %v2435_v5 = vpop.f32.mrb[31].mxu1 }
 0x9b0   : > { %v4005_v9 = vmul.f32 -1.442695, %v2438_v2  ;;  %v4006_v30 = vmul.f32 -1.442695, %v2440_v32 }
 0x9b1   : > { %4480 = vpow2.f32 %v4004_v4 }
 0x9b2   : > { %4482 = vpow2.f32 %v4005_v9 }
 0x9b3   : > { %4484 = vpow2.f32 %v4006_v30 }
 0x9b4   : > { %4486 = vtanh.f32 %v2439_v44 }
 0x9bb   : > { %v4481_v46 = vpop.eup %4480 }
 0x9bc   : > { %v4483_v47 = vpop.eup %4482  ;;  %v2444_v50 = vadd.f32 1.0, %v4481_v46 }
 0x9bd   : > { %v2450_v51 = vadd.f32 1.0, %v4483_v47  ;;  %v4485_v52 = vpop.eup %4484 }
 0x9be   : > { %4488 = vrcp.f32 %v2444_v50  ;;  %v4487_v55 = vpop.eup %4486  ;;  %v2457_v59 = vadd.f32 1.0, %v4485_v52 }
 0x9bf   : > { %4490 = vrcp.f32 %v2450_v51 }
 0x9c0   : > { %4492 = vrcp.f32 %v2457_v59 }
 0x9c8   : > { %v4489_v56 = vpop.eup %4488 }
 0x9c9   : > { %v4491_v57 = vpop.eup %4490  ;;  %v2461_v58 = vmul.f32 %v4489_v56, %v4487_v55 }
 0x9ca   : > { %v2460_v62 = vmul.f32 %v4491_v57, %v2350_v12  ;;  %v4493_v1 = vpop.eup %4492 }
 0x9cc   : > { %v2462_v63 = vadd.f32 %v2461_v58, %v2460_v62 }
 0x9ce   : > { %4494 = vtanh.f32 %v2462_v63  ;;  %v2473_v0 = vsel %vm2472_vm15, %v2462_v63, %v2350_v12 }
 0x9cf   : > { %2478 = vst [vmem:[%s5043_s5] sm:$0xff] %v2473_v0 }
 0x9d8   : > { %v4495_v18 = vpop.eup %4494 }
 0x9d9   : > { %v2464_v3 = vmul.f32 %v4495_v18, %v4493_v1 }
 0x9db   : > { %v2474_v20 = vsel %vm2472_vm15, %v2464_v3, %v2351_v45 }
 0x9dc   : > { %4007 = vst [vmem:[%s5041_s17 + $0x38] sm:$0xff] %v2474_v20  ;;  %2477 = vst [vmem:[%s5037_s27] sm:$0xff] %v2474_v20 }
 0x9dd PF: > { %p4008_p12 = scmp.ne.s32.totalorder %s4780_s10, 1 }
 0x9de   : > { %v6724_v22 = vld [vmem:[#allocation25_spill] sm:$0xff] (!%p4008_p12)  ;;  %v6725_v23 = vld [vmem:[#allocation23_spill] sm:$0xff] (!%p4008_p12)  ;;  %s2483_s14 = ssub.s32 (!%p4008_p12), 1, %s4776_s9  ;;  %v6728_v49 = vld [vmem:[#allocation26_spill] sm:$0xff] (!%p4008_p12)  ;;  %v4797_v29 = vmov (!%p4008_p12), 0  }
 0x9df   : > { %2482 = sbr.rel (%p4008_p12) target bundleno = 4648 (0x1228), region = 90  ;;  %v5872_v15 = vcombine.high (!%p4008_p12), %v6725_v23, %v6724_v22  ;;  %v5876_v27 = vcombine.low (!%p4008_p12), %v6725_v23, %v6724_v22  ;;  %v6726_v35 = vld [vmem:[#allocation29_spill] sm:$0xff] (!%p4008_p12)  ;;  %v6727_v31 = vld [vmem:[#allocation27_spill] sm:$0xff] (!%p4008_p12)  ;;  %v6729_v48 = vld [vmem:[#allocation24_spill] sm:$0xff] (!%p4008_p12)  ;;  %s5887_s4 = sshll.u32 (!%p4008_p12), %s2483_s14, 3  ;;  %2680 = vmatprep.mubr.bf16.mxu0 (!%p4008_p12), %v4797_v29  ;;  %2721 = vmatprep.mubr.bf16.mxu1 (!%p4008_p12), %v4797_v29 }
 0x9e0   : > { %v5880_v19 = vcombine.high (!%p4008_p12), %v6727_v31, %v6726_v35  ;;  %v5885_v53 = vcombine.high (!%p4008_p12), %v6729_v48, %v6728_v49  ;;  %v5892_v43 = vcombine.low (!%p4008_p12), %v6729_v48, %v6728_v49  ;;  %v6730_v54 = vld [vmem:[#allocation30_spill] sm:$0xff] (!%p4008_p12)  ;;  %v6731_v26 = vld [vmem:[#allocation28_spill] sm:$0xff] (!%p4008_p12)  ;;  %v5901_v36 = vcombine.low (!%p4008_p12), %v6727_v31, %v6726_v35  ;;  %s2758_s20 = sadd.s32 (!%p4008_p12), 7, %s5887_s4  ;;  %v6732_v28 = vld [vmem:[#allocation33_spill] sm:$0xff] (!%p4008_p12)  ;;  %s2881_s30 = sadd.s32 (!%p4008_p12), 6, %s5887_s4  ;;  %4496 = vset.pattern.permute.xlu0 (!%p4008_p12), %v4797_v29 }
 0x9e1   : > { %2648 = vmatprep.subr.bf16.mxu0 (!%p4008_p12), %v5872_v15  ;;  %v5896_v12 = vcombine.high (!%p4008_p12), %v6731_v26, %v6730_v54  ;;  %v6733_v21 = vld [vmem:[#allocation31_spill] sm:$0xff] (!%p4008_p12)  ;;  %v5913_v11 = vcombine.low (!%p4008_p12), %v6731_v26, %v6730_v54  ;;  %v6734_v6 = vld [vmem:[#allocation34_spill] sm:$0xff] (!%p4008_p12)  ;;  %v6735_v24 = vld [vmem:[#allocation32_spill] sm:$0xff] (!%p4008_p12)  ;;  %v2759_v34 = vstv (!%p4008_p12), %s2758_s20  ;;  %s3250_s15 = sadd.s32 (!%p4008_p12), 3, %s5887_s4  ;;  %v2882_v4 = vstv (!%p4008_p12), %s2881_s30  ;;  %4497 = vset.pattern.permute.xlu1 (!%p4008_p12), %v4797_v29  ;;  %s3496_s8 = sadd.s32 (!%p4008_p12), 1, %s5887_s4 }
 0x9e2   : > { %2649 = vmatpush1.bf16.msra.mxu0 (!%p4008_p12), %v5876_v27  ;;  %2689 = vmatprep.subr.bf16.mxu1 (!%p4008_p12), %v5885_v53  ;;  %v5908_v45 = vcombine.high (!%p4008_p12), %v6733_v21, %v6732_v28  ;;  %v5918_v25 = vcombine.high (!%p4008_p12), %v6735_v24, %v6734_v6  ;;  %v5925_v8 = vcombine.low (!%p4008_p12), %v6733_v21, %v6732_v28  ;;  %v6736_v38 = vld [vmem:[#allocation37_spill] sm:$0xff] (!%p4008_p12)  ;;  %v6737_v2 = vld [vmem:[#allocation35_spill] sm:$0xff] (!%p4008_p12)  ;;  %v6738_v16 = vld [vmem:[#allocation38_spill] sm:$0xff] (!%p4008_p12)  ;;  %v3251_v32 = vstv (!%p4008_p12), %s3250_s15  ;;  %s3004_s0 = sadd.s32 (!%p4008_p12), 5, %s5887_s4  ;;  %s3127_s26 = sadd.s32 (!%p4008_p12), 4, %s5887_s4 }
 0x9e3   : > { %2650 = vmatprep.subr.bf16.mxu0 (!%p4008_p12), %v5880_v19  ;;  %2690 = vmatpush1.bf16.msra.mxu1 (!%p4008_p12), %v5892_v43  ;;  %v5931_v40 = vcombine.high (!%p4008_p12), %v6737_v2, %v6736_v38  ;;  %v5936_v39 = vcombine.low (!%p4008_p12), %v6735_v24, %v6734_v6  ;;  %v6739_v5 = vld [vmem:[#allocation36_spill] sm:$0xff] (!%p4008_p12)  ;;  %vm2760_vm0 = vcmp.lt.s32.totalorder (!%p4008_p12), %v2759_v34, %v5243_v10  ;;  %v6740_v7 = vld [vmem:[#allocation41_spill] sm:$0xff] (!%p4008_p12)  ;;  %v6741_v44 = vld [vmem:[#allocation39_spill] sm:$0xff] (!%p4008_p12)  ;;  %v3497_v56 = vstv (!%p4008_p12), %s3496_s8  ;;  %s3373_s29 = sadd.s32 (!%p4008_p12), 2, %s5887_s4 }
 0x9e4   : > { %2691 = vmatprep.subr.bf16.mxu1 (!%p4008_p12), %v5896_v12  ;;  %v5941_v9 = vcombine.high (!%p4008_p12), %v6739_v5, %v6738_v16  ;;  %vm2883_vm1 = vcmp.lt.s32.totalorder (!%p4008_p12), %v2882_v4, %v5243_v10  ;;  %v2761_v60 = vsel (!%p4008_p12), %vm2760_vm0, 1, %v4797_v29  ;;  %v5952_v30 = vcombine.low (!%p4008_p12), %v6737_v2, %v6736_v38  ;;  %v6742_v51 = vld [vmem:[#allocation42_spill] sm:$0xff] (!%p4008_p12)  ;;  %v6743_v52 = vld [vmem:[#allocation40_spill] sm:$0xff] (!%p4008_p12)  ;;  %v6744_v58 = vld [vmem:[#allocation45_spill] sm:$0xff] (!%p4008_p12) }
 0x9e5   : > { %2763 = vperm.xlu0 (!%p4008_p12), %4496, %v2761_v60   ;;  %v5958_v46 = vcombine.high (!%p4008_p12), %v6741_v44, %v6740_v7  ;;  %v5963_v47 = vcombine.low (!%p4008_p12), %v6739_v5, %v6738_v16  ;;  %v2884_v50 = vsel (!%p4008_p12), %vm2883_vm1, 1, %v4797_v29  ;;  %v5969_v55 = vcombine.high (!%p4008_p12), %v6743_v52, %v6742_v51  ;;  %v6745_v59 = vld [vmem:[#allocation43_spill] sm:$0xff] (!%p4008_p12)  ;;  %v6746_v0 = vld [vmem:[#allocation46_spill] sm:$0xff] (!%p4008_p12)  ;;  %v6747_v1 = vld [vmem:[#allocation44_spill] sm:$0xff] (!%p4008_p12) }
 0x9e6   : > { %2651 = vmatpush1.bf16.msra.mxu0 %v5901_v36  ;;  %vm3252_vm2 = vcmp.lt.s32.totalorder %v3251_v32, %v5243_v10  ;;  %v5975_v57 = vcombine.low %v6741_v44, %v6740_v7  ;;  %v5980_v61 = vcombine.high %v6745_v59, %v6744_v58  ;;  %v5985_v62 = vcombine.low %v6743_v52, %v6742_v51  ;;  %v6748_v20 = vld [vmem:[#allocation49_spill] sm:$0xff]  ;;  %v6749_v22 = vld [vmem:[#allocation47_spill] sm:$0xff]  ;;  %v6750_v49 = vld [vmem:[#allocation50_spill] sm:$0xff] }
 0x9e7   : > { %2652 = vmatprep.subr.bf16.mxu0 %v5908_v45  ;;  %2692 = vmatpush1.bf16.msra.mxu1 %v5913_v11  ;;  %v3253_v63 = vsel %vm3252_vm2, 1, %v4797_v29  ;;  %v5991_v18 = vcombine.high %v6747_v1, %v6746_v0  ;;  %vm3498_vm3 = vcmp.lt.s32.totalorder %v3497_v56, %v5243_v10  ;;  %v5997_v3 = vcombine.low %v6745_v59, %v6744_v58  ;;  %v6751_v48 = vld [vmem:[#allocation48_spill] sm:$0xff]  ;;  %v6752_v28 = vld [vmem:[#allocation53_spill] sm:$0xff]  ;;  %v6753_v21 = vld [vmem:[#allocation51_spill] sm:$0xff] }
 0x9e8   : > { %2693 = vmatprep.subr.bf16.mxu1 %v5918_v25  ;;  %v6002_v23 = vcombine.high %v6749_v22, %v6748_v20  ;;  %v6007_v35 = vcombine.low %v6747_v1, %v6746_v0  ;;  %v3499_v31 = vsel %vm3498_vm3, 1, %v4797_v29  ;;  %v6013_v54 = vcombine.high %v6751_v48, %v6750_v49  ;;  %v6754_v34 = vld [vmem:[#allocation54_spill] sm:$0xff]  ;;  %v6755_v38 = vld [vmem:[#allocation52_spill] sm:$0xff]  ;;  %v6041_v16 = vld [vmem:[%s5037_s27] sm:$0xff] }
 0x9e9   : > { %2886 = vperm.xlu0 %4496, %v2884_v50   ;;  %v6018_v26 = vcombine.low %v6749_v22, %v6748_v20  ;;  %v6023_v6 = vcombine.high %v6753_v21, %v6752_v28  ;;  %v6028_v24 = vcombine.low %v6751_v48, %v6750_v49  ;;  %v6033_v2 = vcombine.high %v6755_v38, %v6754_v34  ;;  %v6756_v7 = vld [vmem:[#allocation76_spill] sm:$0xff]  ;;  %v6757_v52 = vld [vmem:[#allocation78_spill] sm:$0xff] }
 0x9ea   : > { %2653 = vmatpush1.bf16.msra.mxu0 %v5925_v8  ;;  %v6038_v4 = vcombine.low %v6753_v21, %v6752_v28  ;;  %v6047_v5 = vcombine.low %v6755_v38, %v6754_v34  ;;  %v2487_v60 = vpack.c.bf16 %v6041_v16, %v6041_v16  ;;  %v6759_v28 = vld [vmem:[#allocation77_spill] sm:$0xff] }
 0x9eb   : > { %2654 = vmatprep.subr.bf16.mxu0 %v5931_v40  ;;  %2694 = vmatpush1.bf16.msra.mxu1 %v5936_v39 }
 0x9ec   : > { %2695 = vmatprep.subr.bf16.mxu1 %v5941_v9 }
 0x9ed   : > { %3255 = vperm.xlu0 %4496, %v3253_v63  }
 0x9ee   : > { %2655 = vmatpush1.bf16.msra.mxu0 %v5952_v30 }
 0x9ef   : > { %2656 = vmatprep.subr.bf16.mxu0 %v5958_v46  ;;  %2696 = vmatpush1.bf16.msra.mxu1 %v5963_v47 }
 0x9f0   : > { %2697 = vmatprep.subr.bf16.mxu1 %v5969_v55 }
 0x9f1   : > { %3501 = vperm.xlu0 %4496, %v3499_v31   ;;  %v6758_v31 = vld [vmem:[#allocation79_spill] sm:$0xff] }
 0x9f2   : > { %2657 = vmatpush1.bf16.msra.mxu0 %v5975_v57 }
 0x9f3   : > { %2658 = vmatprep.subr.bf16.mxu0 %v5980_v61  ;;  %2698 = vmatpush1.bf16.msra.mxu1 %v5985_v62 }
 0x9f4   : > { %2699 = vmatprep.subr.bf16.mxu1 %v5991_v18 }
 0x9f6   : > { %2659 = vmatpush1.bf16.msra.mxu0 %v5997_v3 }
 0x9f7   : > { %2660 = vmatprep.subr.bf16.mxu0 %v6002_v23  ;;  %2700 = vmatpush1.bf16.msra.mxu1 %v6007_v35 }
 0x9f8   : > { %2701 = vmatprep.subr.bf16.mxu1 %v6013_v54 }
 0x9fa   : > { %2661 = vmatpush1.bf16.msra.mxu0 %v6018_v26 }
 0x9fb   : > { %2662 = vmatprep.subr.bf16.mxu0 %v6023_v6  ;;  %2702 = vmatpush1.bf16.msra.mxu1 %v6028_v24 }
 0x9fc   : > { %2703 = vmatprep.subr.bf16.mxu1 %v6033_v2 }
 0x9fe   : > { %2663 = vmatpush1.bf16.msra.mxu0 %v6038_v4 }
 0x9ff   : > { %2704 = vmatpush1.bf16.msra.mxu1 %v6047_v5  ;;  %2771 = vmatprep.subr.bf16.mxu0 %v5872_v15 }
 0xa00   : > { %2812 = vmatprep.subr.bf16.mxu1 %v5885_v53 }
 0xa01   : > { %2681 = vmatmul.mubr.bf16.vlgmr.msra.gmra.mrb[0].mxu0 %v2487_v60 }
 0xa02   : > { %2722 = vmatmul.mubr.bf16.vlgmr.msra.gmra.mrb[0].mxu1 %v2487_v60  ;;  %2772 = vmatpush1.bf16.msra.mxu0 %v5876_v27 }
 0xa03   : > { %2813 = vmatpush1.bf16.msra.mxu1 %v5892_v43  ;;  %2773 = vmatprep.subr.bf16.mxu0 %v5880_v19 }
 0xa04   : > { %2814 = vmatprep.subr.bf16.mxu1 %v5896_v12  ;;  %2803 = vmatprep.mubr.bf16.mxu0 %v4797_v29 }
 0xa05   : > { %2844 = vmatprep.mubr.bf16.mxu1 %v4797_v29 }
 0xa06   : > { %2774 = vmatpush1.bf16.msra.mxu0 %v5901_v36 }
 0xa07   : > { %2815 = vmatpush1.bf16.msra.mxu1 %v5913_v11  ;;  %2775 = vmatprep.subr.bf16.mxu0 %v5908_v45 }
 0xa08   : > { %2816 = vmatprep.subr.bf16.mxu1 %v5918_v25 }
 0xa0a   : > { %2776 = vmatpush1.bf16.msra.mxu0 %v5925_v8 }
 0xa0b   : > { %2817 = vmatpush1.bf16.msra.mxu1 %v5936_v39  ;;  %2777 = vmatprep.subr.bf16.mxu0 %v5931_v40 }
 0xa0c   : > { %2818 = vmatprep.subr.bf16.mxu1 %v5941_v9 }
 0xa0e   : > { %2778 = vmatpush1.bf16.msra.mxu0 %v5952_v30 }
 0xa0f   : > { %2819 = vmatpush1.bf16.msra.mxu1 %v5963_v47  ;;  %2779 = vmatprep.subr.bf16.mxu0 %v5958_v46 }
 0xa10   : > { %2820 = vmatprep.subr.bf16.mxu1 %v5969_v55 }
 0xa12   : > { %2780 = vmatpush1.bf16.msra.mxu0 %v5975_v57 }
 0xa13   : > { %2821 = vmatpush1.bf16.msra.mxu1 %v5985_v62  ;;  %2781 = vmatprep.subr.bf16.mxu0 %v5980_v61 }
 0xa14   : > { %2822 = vmatprep.subr.bf16.mxu1 %v5991_v18 }
 0xa16   : > { %2782 = vmatpush1.bf16.msra.mxu0 %v5997_v3 }
 0xa17   : > { %2823 = vmatpush1.bf16.msra.mxu1 %v6007_v35  ;;  %2783 = vmatprep.subr.bf16.mxu0 %v6002_v23 }
 0xa18   : > { %2824 = vmatprep.subr.bf16.mxu1 %v6013_v54 }
 0xa1a   : > { %2784 = vmatpush1.bf16.msra.mxu0 %v6018_v26 }
 0xa1b   : > { %2825 = vmatpush1.bf16.msra.mxu1 %v6028_v24  ;;  %2785 = vmatprep.subr.bf16.mxu0 %v6023_v6 }
 0xa1c   : > { %2826 = vmatprep.subr.bf16.mxu1 %v6033_v2 }
 0xa1e   : > { %2786 = vmatpush1.bf16.msra.mxu0 %v6038_v4 }
 0xa1f   : > { %2827 = vmatpush1.bf16.msra.mxu1 %v6047_v5  ;;  %2894 = vmatprep.subr.bf16.mxu0 %v5872_v15 }
 0xa20   : > { %2935 = vmatprep.subr.bf16.mxu1 %v5885_v53 }
 0xad4   : > { %v2682_v32 = vpop.f32.mrb[0].mxu0 }
 0xad5   : > { %v2730_v44 = vadd.f32 %v6756_v7, %v2682_v32  ;;  %v2684_v50 = vpop.f32.mrb[1].mxu0  ;;  %v2723_v51 = vpop.f32.mrb[0].mxu1 }
 0xad6   : > { %v2731_v56 = vadd.f32 %v6757_v52, %v2684_v50  ;;  %v2686_v58 = vpop.f32.mrb[2].mxu0  ;;  %v2725_v59 = vpop.f32.mrb[1].mxu1  ;;  %v2732_v21 = vadd.f32 %v6759_v28, %v2723_v51  ;;  %v2486_v50 = vld [vmem:[%s5043_s5] sm:$0xff]  ;;  %v3128_v28 = vstv %s3127_s26 }
 0xad7   : > { %v4042_v63 = vmul.f32 -1.442695, %v2730_v44  ;;  %v2687_v0 = vpop.f32.mrb[3].mxu0  ;;  %v2727_v1 = vpop.f32.mrb[2].mxu1  ;;  %v2733_v49 = vadd.f32 %v6758_v31, %v2725_v59  ;;  %vm3129_vm6 = vcmp.lt.s32.totalorder %v3128_v28, %v5243_v10 }
 0xad8   : > { %v4043_v20 = vmul.f32 -1.442695, %v2731_v56  ;;  %v2728_v22 = vpop.f32.mrb[3].mxu1  ;;  %v2764_v58 = vpop.permute.xlu0 %2763 }
 0xad9   : > { %4498 = vpow2.f32 %v4042_v63  ;;  %v4044_v48 = vmul.f32 -1.442695, %v2733_v49  ;;  %vm2765_vm4 = vcmp.eq.s32.totalorder %v2764_v58, 1 }
 0xada   : > { %4500 = vpow2.f32 %v4043_v20 }
 0xadb   : > { %4502 = vpow2.f32 %v4044_v48 }
 0xadc   : > { %4504 = vtanh.f32 %v2732_v21 }
 0xae3   : > { %v4499_v34 = vpop.eup %4498 }
 0xae4   : > { %v4501_v38 = vpop.eup %4500  ;;  %v2737_v60 = vadd.f32 1.0, %v4499_v34  ;;  %v3374_v34 = vstv %s3373_s29 }
 0xae5   : > { %v2743_v32 = vadd.f32 1.0, %v4501_v38  ;;  %v4503_v7 = vpop.eup %4502  ;;  %v3130_v38 = vsel %vm3129_vm6, 1, %v4797_v29  ;;  %vm3375_vm7 = vcmp.lt.s32.totalorder %v3374_v34, %v5243_v10  ;;  %v6763_v34 = vld [vmem:[#allocation73_spill] sm:$0xff] }
 0xae6   : > { %4506 = vrcp.f32 %v2737_v60  ;;  %v4505_v44 = vpop.eup %4504  ;;  %v2750_v56 = vadd.f32 1.0, %v4503_v7  ;;  %v3619_v60 = vstv %s5887_s4 }
 0xae7   : > { %4508 = vrcp.f32 %v2743_v32  ;;  %v3376_v32 = vsel %vm3375_vm7, 1, %v4797_v29  ;;  %vm3620_vm8 = vcmp.lt.s32.totalorder %v3619_v60, %v5243_v10 }
 0xae8   : > { %4510 = vrcp.f32 %v2750_v56  ;;  %v3621_v7 = vsel %vm3620_vm8, 1, %v4797_v29 }
 0xaf0   : > { %v4507_v52 = vpop.eup %4506 }
 0xaf1   : > { %v4509_v63 = vpop.eup %4508  ;;  %v2754_v59 = vmul.f32 %v4507_v52, %v4505_v44  ;;  %v6760_v52 = vld [vmem:[#allocation72_spill] sm:$0xff] }
 0xaf2   : > { %v2753_v0 = vmul.f32 %v4509_v63, %v2486_v50  ;;  %v4511_v20 = vpop.eup %4510 }
 0xaf4   : > { %v2755_v51 = vadd.f32 %v2754_v59, %v2753_v0  ;;  %v6761_v59 = vld [vmem:[#allocation74_spill] sm:$0xff] }
 0xaf6   : > { %4512 = vtanh.f32 %v2755_v51  ;;  %v6095_v1 = vsel %vm2765_vm4, %v2755_v51, %v2486_v50 }
 0xb00   : > { %v4513_v22 = vpop.eup %4512 }
 0xb01   : > { %v2757_v31 = vmul.f32 %v4513_v22, %v4511_v20 }
 0xb03   : > { %v6098_v49 = vsel %vm2765_vm4, %v2757_v31, %v6041_v16  ;;  %v3005_v16 = vstv %s3004_s0 }
 0xb04   : > { %4045 = vst [vmem:[%s5041_s17 + $0x38] sm:$0xff] %v6098_v49  ;;  %v2770_v48 = vpack.c.bf16 %v6098_v49, %v6098_v49  ;;  %vm3006_vm5 = vcmp.lt.s32.totalorder %v3005_v16, %v5243_v10  ;;  %v6762_v10 = vld [vmem:[#allocation75_spill] sm:$0xff] }
 0xb05   : > { %v3007_v21 = vsel %vm3006_vm5, 1, %v4797_v29 }
 0xb06   : > { %2804 = vmatmul.mubr.bf16.vlgmr.msra.gmra.mrb[4].mxu0 %v2770_v48  ;;  %2845 = vmatmul.mubr.bf16.vlgmr.msra.gmra.mrb[4].mxu1 %v2770_v48 }
 0xb07   : > { %2895 = vmatpush1.bf16.msra.mxu0 %v5876_v27  ;;  %2936 = vmatpush1.bf16.msra.mxu1 %v5892_v43 }
 0xb08   : > { %2896 = vmatprep.subr.bf16.mxu0 %v5880_v19  ;;  %2937 = vmatprep.subr.bf16.mxu1 %v5896_v12 }
 0xb09   : > { %2926 = vmatprep.mubr.bf16.mxu0 %v4797_v29  ;;  %2967 = vmatprep.mubr.bf16.mxu1 %v4797_v29 }
 0xb0a   : > { %3009 = vperm.xlu1 %4497, %v3007_v21  }
 0xb0b   : > { %2897 = vmatpush1.bf16.msra.mxu0 %v5901_v36  ;;  %2938 = vmatpush1.bf16.msra.mxu1 %v5913_v11 }
 0xb0c   : > { %2898 = vmatprep.subr.bf16.mxu0 %v5908_v45  ;;  %2939 = vmatprep.subr.bf16.mxu1 %v5918_v25 }
 0xb0e   : > { %3132 = vperm.xlu1 %4497, %v3130_v38  }
 0xb0f   : > { %2899 = vmatpush1.bf16.msra.mxu0 %v5925_v8  ;;  %2940 = vmatpush1.bf16.msra.mxu1 %v5936_v39 }
 0xb10   : > { %2900 = vmatprep.subr.bf16.mxu0 %v5931_v40  ;;  %2941 = vmatprep.subr.bf16.mxu1 %v5941_v9 }
 0xb12   : > { %3378 = vperm.xlu1 %4497, %v3376_v32  }
 0xb13   : > { %2901 = vmatpush1.bf16.msra.mxu0 %v5952_v30  ;;  %2942 = vmatpush1.bf16.msra.mxu1 %v5963_v47 }
 0xb14   : > { %2902 = vmatprep.subr.bf16.mxu0 %v5958_v46  ;;  %2943 = vmatprep.subr.bf16.mxu1 %v5969_v55 }
 0xb16   : > { %3623 = vperm.xlu1 %4497, %v3621_v7  }
 0xb17   : > { %2903 = vmatpush1.bf16.msra.mxu0 %v5975_v57  ;;  %2944 = vmatpush1.bf16.msra.mxu1 %v5985_v62 }
 0xb18   : > { %2904 = vmatprep.subr.bf16.mxu0 %v5980_v61  ;;  %2945 = vmatprep.subr.bf16.mxu1 %v5991_v18 }
 0xb1b   : > { %2905 = vmatpush1.bf16.msra.mxu0 %v5997_v3  ;;  %2946 = vmatpush1.bf16.msra.mxu1 %v6007_v35 }
 0xb1c   : > { %2906 = vmatprep.subr.bf16.mxu0 %v6002_v23  ;;  %2947 = vmatprep.subr.bf16.mxu1 %v6013_v54 }
 0xb1f   : > { %2907 = vmatpush1.bf16.msra.mxu0 %v6018_v26  ;;  %2948 = vmatpush1.bf16.msra.mxu1 %v6028_v24 }
 0xb20   : > { %2908 = vmatprep.subr.bf16.mxu0 %v6023_v6  ;;  %2949 = vmatprep.subr.bf16.mxu1 %v6033_v2 }
 0xb23   : > { %2909 = vmatpush1.bf16.msra.mxu0 %v6038_v4  ;;  %2950 = vmatpush1.bf16.msra.mxu1 %v6047_v5 }
 0xb24   : > { %3017 = vmatprep.subr.bf16.mxu0 %v5872_v15  ;;  %3058 = vmatprep.subr.bf16.mxu1 %v5885_v53 }
 0xbd9   : > { %v2805_v44 = vpop.f32.mrb[4].mxu0  ;;  %v2846_v50 = vpop.f32.mrb[4].mxu1 }
 0xbda   : > { %v2853_v56 = vadd.f32 %v6760_v52, %v2805_v44  ;;  %v2807_v58 = vpop.f32.mrb[5].mxu0  ;;  %v2848_v63 = vpop.f32.mrb[5].mxu1  ;;  %v2855_v38 = vadd.f32 %v6763_v34, %v2846_v50 }
 0xbdb   : > { %v2854_v0 = vadd.f32 %v6761_v59, %v2807_v58  ;;  %v2809_v51 = vpop.f32.mrb[6].mxu0  ;;  %v2850_v20 = vpop.f32.mrb[6].mxu1  ;;  %v2856_v28 = vadd.f32 %v6762_v10, %v2848_v63 }
 0xbdc   : > { %v4046_v22 = vmul.f32 -1.442695, %v2853_v56  ;;  %v2810_v31 = vpop.f32.mrb[7].mxu0  ;;  %v2851_v48 = vpop.f32.mrb[7].mxu1 }
 0xbdd   : > { %v4047_v16 = vmul.f32 -1.442695, %v2854_v0  ;;  %v4048_v21 = vmul.f32 -1.442695, %v2856_v28  ;;  %v2887_v20 = vpop.permute.xlu0 %2886 }
 0xbde   : > { %4514 = vpow2.f32 %v4046_v22  ;;  %vm2888_vm9 = vcmp.eq.s32.totalorder %v2887_v20, 1 }
 0xbdf   : > { %4516 = vpow2.f32 %v4047_v16 }
 0xbe0   : > { %4518 = vpow2.f32 %v4048_v21  ;;  %v6764_v21 = vld [vmem:[#allocation68_spill] sm:$0xff] }
 0xbe1   : > { %4520 = vtanh.f32 %v2855_v38 }
 0xbe8   : > { %v4515_v60 = vpop.eup %4514 }
 0xbe9   : > { %v4517_v32 = vpop.eup %4516  ;;  %v2860_v7 = vadd.f32 1.0, %v4515_v60 }
 0xbea   : > { %v2866_v44 = vadd.f32 1.0, %v4517_v32  ;;  %v4519_v52 = vpop.eup %4518  ;;  %v6765_v32 = vld [vmem:[#allocation70_spill] sm:$0xff] }
 0xbeb   : > { %4522 = vrcp.f32 %v2860_v7  ;;  %v4521_v56 = vpop.eup %4520  ;;  %v2873_v51 = vadd.f32 1.0, %v4519_v52 }
 0xbec   : > { %4524 = vrcp.f32 %v2866_v44 }
 0xbed   : > { %4526 = vrcp.f32 %v2873_v51  ;;  %v6766_v51 = vld [vmem:[#allocation71_spill] sm:$0xff] }
 0xbf5   : > { %v4523_v58 = vpop.eup %4522 }
 0xbf6   : > { %v4525_v59 = vpop.eup %4524  ;;  %v2877_v0 = vmul.f32 %v4523_v58, %v4521_v56 }
 0xbf7   : > { %v2876_v63 = vmul.f32 %v4525_v59, %v6095_v1  ;;  %v4527_v31 = vpop.eup %4526 }
 0xbf9   : > { %v2878_v22 = vadd.f32 %v2877_v0, %v2876_v63 }
 0xbfb   : > { %4528 = vtanh.f32 %v2878_v22  ;;  %v6156_v50 = vsel %vm2888_vm9, %v2878_v22, %v6095_v1  ;;  %v6767_v22 = vld [vmem:[#allocation69_spill] sm:$0xff] }
 0xc05   : > { %v4529_v48 = vpop.eup %4528 }
 0xc06   : > { %v2880_v16 = vmul.f32 %v4529_v48, %v4527_v31 }
 0xc08   : > { %v6159_v10 = vsel %vm2888_vm9, %v2880_v16, %v6098_v49 }
 0xc09   : > { %4049 = vst [vmem:[%s5041_s17 + $0x30] sm:$0xff] %v6159_v10  ;;  %v2893_v28 = vpack.c.bf16 %v6159_v10, %v6159_v10 }
 0xc0b   : > { %2927 = vmatmul.mubr.bf16.vlgmr.msra.gmra.mrb[8].mxu0 %v2893_v28  ;;  %2968 = vmatmul.mubr.bf16.vlgmr.msra.gmra.mrb[8].mxu1 %v2893_v28 }
 0xc0c   : > { %3018 = vmatpush1.bf16.msra.mxu0 %v5876_v27  ;;  %3059 = vmatpush1.bf16.msra.mxu1 %v5892_v43 }
 0xc0d   : > { %3019 = vmatprep.subr.bf16.mxu0 %v5880_v19  ;;  %3060 = vmatprep.subr.bf16.mxu1 %v5896_v12 }
 0xc0e   : > { %3049 = vmatprep.mubr.bf16.mxu0 %v4797_v29  ;;  %3090 = vmatprep.mubr.bf16.mxu1 %v4797_v29 }
 0xc10   : > { %3020 = vmatpush1.bf16.msra.mxu0 %v5901_v36  ;;  %3061 = vmatpush1.bf16.msra.mxu1 %v5913_v11 }
 0xc11   : > { %3021 = vmatprep.subr.bf16.mxu0 %v5908_v45  ;;  %3062 = vmatprep.subr.bf16.mxu1 %v5918_v25 }
 0xc14   : > { %3022 = vmatpush1.bf16.msra.mxu0 %v5925_v8  ;;  %3063 = vmatpush1.bf16.msra.mxu1 %v5936_v39 }
 0xc15   : > { %3023 = vmatprep.subr.bf16.mxu0 %v5931_v40  ;;  %3064 = vmatprep.subr.bf16.mxu1 %v5941_v9 }
 0xc18   : > { %3024 = vmatpush1.bf16.msra.mxu0 %v5952_v30  ;;  %3065 = vmatpush1.bf16.msra.mxu1 %v5963_v47 }
 0xc19   : > { %3025 = vmatprep.subr.bf16.mxu0 %v5958_v46  ;;  %3066 = vmatprep.subr.bf16.mxu1 %v5969_v55 }
 0xc1c   : > { %3026 = vmatpush1.bf16.msra.mxu0 %v5975_v57  ;;  %3067 = vmatpush1.bf16.msra.mxu1 %v5985_v62 }
 0xc1d   : > { %3027 = vmatprep.subr.bf16.mxu0 %v5980_v61  ;;  %3068 = vmatprep.subr.bf16.mxu1 %v5991_v18 }
 0xc20   : > { %3028 = vmatpush1.bf16.msra.mxu0 %v5997_v3  ;;  %3069 = vmatpush1.bf16.msra.mxu1 %v6007_v35 }
 0xc21   : > { %3029 = vmatprep.subr.bf16.mxu0 %v6002_v23  ;;  %3070 = vmatprep.subr.bf16.mxu1 %v6013_v54 }
 0xc24   : > { %3030 = vmatpush1.bf16.msra.mxu0 %v6018_v26  ;;  %3071 = vmatpush1.bf16.msra.mxu1 %v6028_v24 }
 0xc25   : > { %3031 = vmatprep.subr.bf16.mxu0 %v6023_v6  ;;  %3072 = vmatprep.subr.bf16.mxu1 %v6033_v2 }
 0xc28   : > { %3032 = vmatpush1.bf16.msra.mxu0 %v6038_v4  ;;  %3073 = vmatpush1.bf16.msra.mxu1 %v6047_v5 }
 0xc29   : > { %3140 = vmatprep.subr.bf16.mxu0 %v5872_v15  ;;  %3181 = vmatprep.subr.bf16.mxu1 %v5885_v53 }
 0xcde   : > { %v2928_v1 = vpop.f32.mrb[8].mxu0  ;;  %v2969_v49 = vpop.f32.mrb[8].mxu1 }
 0xcdf   : > { %v2976_v34 = vadd.f32 %v6764_v21, %v2928_v1  ;;  %v2930_v38 = vpop.f32.mrb[9].mxu0  ;;  %v2971_v60 = vpop.f32.mrb[9].mxu1  ;;  %v2978_v31 = vadd.f32 %v6767_v22, %v2969_v49 }
 0xce0   : > { %v2977_v7 = vadd.f32 %v6765_v32, %v2930_v38  ;;  %v2932_v44 = vpop.f32.mrb[10].mxu0  ;;  %v2973_v52 = vpop.f32.mrb[10].mxu1  ;;  %v2979_v63 = vadd.f32 %v6766_v51, %v2971_v60 }
 0xce1   : > { %v4050_v56 = vmul.f32 -1.442695, %v2976_v34  ;;  %v2933_v58 = vpop.f32.mrb[11].mxu0  ;;  %v2974_v59 = vpop.f32.mrb[11].mxu1 }
 0xce2   : > { %v4051_v0 = vmul.f32 -1.442695, %v2977_v7  ;;  %v4052_v20 = vmul.f32 -1.442695, %v2979_v63  ;;  %v3010_v32 = vpop.permute.xlu1 %3009 }
 0xce3   : > { %4530 = vpow2.f32 %v4050_v56  ;;  %vm3011_vm10 = vcmp.eq.s32.totalorder %v3010_v32, 1 }
 0xce4   : > { %4532 = vpow2.f32 %v4051_v0 }
 0xce5   : > { %4534 = vpow2.f32 %v4052_v20  ;;  %v6768_v20 = vld [vmem:[#allocation64_spill] sm:$0xff] }
 0xce6   : > { %4536 = vtanh.f32 %v2978_v31 }
 0xced   : > { %v4531_v48 = vpop.eup %4530 }
 0xcee   : > { %v4533_v16 = vpop.eup %4532  ;;  %v2983_v28 = vadd.f32 1.0, %v4531_v48 }
 0xcef   : > { %v2989_v1 = vadd.f32 1.0, %v4533_v16  ;;  %v4535_v21 = vpop.eup %4534  ;;  %v6769_v16 = vld [vmem:[#allocation66_spill] sm:$0xff] }
 0xcf0   : > { %4538 = vrcp.f32 %v2983_v28  ;;  %v4537_v34 = vpop.eup %4536  ;;  %v2996_v44 = vadd.f32 1.0, %v4535_v21 }
 0xcf1   : > { %4540 = vrcp.f32 %v2989_v1 }
 0xcf2   : > { %4542 = vrcp.f32 %v2996_v44  ;;  %v6770_v44 = vld [vmem:[#allocation67_spill] sm:$0xff] }
 0xcfa   : > { %v4539_v38 = vpop.eup %4538 }
 0xcfb   : > { %v4541_v7 = vpop.eup %4540  ;;  %v3000_v52 = vmul.f32 %v4539_v38, %v4537_v34 }
 0xcfc   : > { %v2999_v60 = vmul.f32 %v4541_v7, %v6156_v50  ;;  %v4543_v58 = vpop.eup %4542 }
 0xcfe   : > { %v3001_v49 = vadd.f32 %v3000_v52, %v2999_v60 }
 0xd00   : > { %4544 = vtanh.f32 %v3001_v49  ;;  %v6205_v56 = vsel %vm3011_vm10, %v3001_v49, %v6156_v50  ;;  %v6771_v49 = vld [vmem:[#allocation65_spill] sm:$0xff] }
 0xd0a   : > { %v4545_v59 = vpop.eup %4544 }
 0xd0b   : > { %v3003_v0 = vmul.f32 %v4545_v59, %v4543_v58 }
 0xd0d   : > { %v6208_v51 = vsel %vm3011_vm10, %v3003_v0, %v6159_v10 }
 0xd0e   : > { %4053 = vst [vmem:[%s5041_s17 + $0x28] sm:$0xff] %v6208_v51  ;;  %v3016_v63 = vpack.c.bf16 %v6208_v51, %v6208_v51 }
 0xd10   : > { %3050 = vmatmul.mubr.bf16.vlgmr.msra.gmra.mrb[12].mxu0 %v3016_v63  ;;  %3091 = vmatmul.mubr.bf16.vlgmr.msra.gmra.mrb[12].mxu1 %v3016_v63 }
 0xd11   : > { %3141 = vmatpush1.bf16.msra.mxu0 %v5876_v27  ;;  %3182 = vmatpush1.bf16.msra.mxu1 %v5892_v43 }
 0xd12   : > { %3142 = vmatprep.subr.bf16.mxu0 %v5880_v19  ;;  %3183 = vmatprep.subr.bf16.mxu1 %v5896_v12 }
 0xd13   : > { %3172 = vmatprep.mubr.bf16.mxu0 %v4797_v29  ;;  %3213 = vmatprep.mubr.bf16.mxu1 %v4797_v29 }
 0xd15   : > { %3143 = vmatpush1.bf16.msra.mxu0 %v5901_v36  ;;  %3184 = vmatpush1.bf16.msra.mxu1 %v5913_v11 }
 0xd16   : > { %3144 = vmatprep.subr.bf16.mxu0 %v5908_v45  ;;  %3185 = vmatprep.subr.bf16.mxu1 %v5918_v25 }
 0xd19   : > { %3145 = vmatpush1.bf16.msra.mxu0 %v5925_v8  ;;  %3186 = vmatpush1.bf16.msra.mxu1 %v5936_v39 }
 0xd1a   : > { %3146 = vmatprep.subr.bf16.mxu0 %v5931_v40  ;;  %3187 = vmatprep.subr.bf16.mxu1 %v5941_v9 }
 0xd1d   : > { %3147 = vmatpush1.bf16.msra.mxu0 %v5952_v30  ;;  %3188 = vmatpush1.bf16.msra.mxu1 %v5963_v47 }
 0xd1e   : > { %3148 = vmatprep.subr.bf16.mxu0 %v5958_v46  ;;  %3189 = vmatprep.subr.bf16.mxu1 %v5969_v55 }
 0xd21   : > { %3149 = vmatpush1.bf16.msra.mxu0 %v5975_v57  ;;  %3190 = vmatpush1.bf16.msra.mxu1 %v5985_v62 }
 0xd22   : > { %3150 = vmatprep.subr.bf16.mxu0 %v5980_v61  ;;  %3191 = vmatprep.subr.bf16.mxu1 %v5991_v18 }
 0xd25   : > { %3151 = vmatpush1.bf16.msra.mxu0 %v5997_v3  ;;  %3192 = vmatpush1.bf16.msra.mxu1 %v6007_v35 }
 0xd26   : > { %3152 = vmatprep.subr.bf16.mxu0 %v6002_v23  ;;  %3193 = vmatprep.subr.bf16.mxu1 %v6013_v54 }
 0xd29   : > { %3153 = vmatpush1.bf16.msra.mxu0 %v6018_v26  ;;  %3194 = vmatpush1.bf16.msra.mxu1 %v6028_v24 }
 0xd2a   : > { %3154 = vmatprep.subr.bf16.mxu0 %v6023_v6  ;;  %3195 = vmatprep.subr.bf16.mxu1 %v6033_v2 }
 0xd2d   : > { %3155 = vmatpush1.bf16.msra.mxu0 %v6038_v4  ;;  %3196 = vmatpush1.bf16.msra.mxu1 %v6047_v5 }
 0xd2e   : > { %3263 = vmatprep.subr.bf16.mxu0 %v5872_v15  ;;  %3304 = vmatprep.subr.bf16.mxu1 %v5885_v53 }
 0xde3   : > { %v3051_v50 = vpop.f32.mrb[12].mxu0  ;;  %v3092_v10 = vpop.f32.mrb[12].mxu1 }
 0xde4   : > { %v3099_v22 = vadd.f32 %v6768_v20, %v3051_v50  ;;  %v3053_v31 = vpop.f32.mrb[13].mxu0  ;;  %v3094_v48 = vpop.f32.mrb[13].mxu1  ;;  %v3101_v58 = vadd.f32 %v6771_v49, %v3092_v10 }
 0xde5   : > { %v3100_v28 = vadd.f32 %v6769_v16, %v3053_v31  ;;  %v3055_v1 = vpop.f32.mrb[14].mxu0  ;;  %v3096_v21 = vpop.f32.mrb[14].mxu1  ;;  %v3102_v52 = vadd.f32 %v6770_v44, %v3094_v48 }
 0xde6   : > { %v4054_v34 = vmul.f32 -1.442695, %v3099_v22  ;;  %v3056_v38 = vpop.f32.mrb[15].mxu0  ;;  %v3097_v32 = vpop.f32.mrb[15].mxu1 }
 0xde7   : > { %v4055_v7 = vmul.f32 -1.442695, %v3100_v28  ;;  %v4056_v60 = vmul.f32 -1.442695, %v3102_v52  ;;  %v3133_v21 = vpop.permute.xlu1 %3132 }
 0xde8   : > { %4546 = vpow2.f32 %v4054_v34  ;;  %vm3134_vm11 = vcmp.eq.s32.totalorder %v3133_v21, 1  ;;  %v6774_v21 = vld [vmem:[#allocation61_spill] sm:$0xff] }
 0xde9   : > { %4548 = vpow2.f32 %v4055_v7 }
 0xdea   : > { %4550 = vpow2.f32 %v4056_v60 }
 0xdeb   : > { %4552 = vtanh.f32 %v3101_v58 }
 0xdf2   : > { %v4547_v59 = vpop.eup %4546 }
 0xdf3   : > { %v4549_v0 = vpop.eup %4548  ;;  %v3106_v63 = vadd.f32 1.0, %v4547_v59  ;;  %v6772_v59 = vld [vmem:[#allocation62_spill] sm:$0xff] }
 0xdf4   : > { %v3112_v50 = vadd.f32 1.0, %v4549_v0  ;;  %v4551_v20 = vpop.eup %4550 }
 0xdf5   : > { %4554 = vrcp.f32 %v3106_v63  ;;  %v4553_v22 = vpop.eup %4552  ;;  %v3119_v1 = vadd.f32 1.0, %v4551_v20 }
 0xdf6   : > { %4556 = vrcp.f32 %v3112_v50 }
 0xdf7   : > { %4558 = vrcp.f32 %v3119_v1 }
 0xdff   : > { %v4555_v31 = vpop.eup %4554 }
 0xe00   : > { %v4557_v16 = vpop.eup %4556  ;;  %v3123_v28 = vmul.f32 %v4555_v31, %v4553_v22 }
 0xe01   : > { %v3122_v48 = vmul.f32 %v4557_v16, %v6205_v56  ;;  %v4559_v38 = vpop.eup %4558 }
 0xe03   : > { %v3124_v34 = vadd.f32 %v3123_v28, %v3122_v48  ;;  %v6773_v28 = vld [vmem:[#allocation63_spill] sm:$0xff] }
 0xe05   : > { %4560 = vtanh.f32 %v3124_v34  ;;  %v6254_v10 = vsel %vm3134_vm11, %v3124_v34, %v6205_v56 }
 0xe0f   : > { %v4561_v32 = vpop.eup %4560 }
 0xe10   : > { %v3126_v7 = vmul.f32 %v4561_v32, %v4559_v38 }
 0xe12   : > { %v6257_v44 = vsel %vm3134_vm11, %v3126_v7, %v6208_v51 }
 0xe13   : > { %4057 = vst [vmem:[%s5041_s17 + $0x20] sm:$0xff] %v6257_v44  ;;  %v3139_v52 = vpack.c.bf16 %v6257_v44, %v6257_v44 }
 0xe15   : > { %3173 = vmatmul.mubr.bf16.vlgmr.msra.gmra.mrb[16].mxu0 %v3139_v52  ;;  %3214 = vmatmul.mubr.bf16.vlgmr.msra.gmra.mrb[16].mxu1 %v3139_v52 }
 0xe16   : > { %3264 = vmatpush1.bf16.msra.mxu0 %v5876_v27  ;;  %3305 = vmatpush1.bf16.msra.mxu1 %v5892_v43 }
 0xe17   : > { %3265 = vmatprep.subr.bf16.mxu0 %v5880_v19  ;;  %3306 = vmatprep.subr.bf16.mxu1 %v5896_v12 }
 0xe18   : > { %3295 = vmatprep.mubr.bf16.mxu0 %v4797_v29  ;;  %3336 = vmatprep.mubr.bf16.mxu1 %v4797_v29 }
 0xe1a   : > { %3266 = vmatpush1.bf16.msra.mxu0 %v5901_v36  ;;  %3307 = vmatpush1.bf16.msra.mxu1 %v5913_v11 }
 0xe1b   : > { %3267 = vmatprep.subr.bf16.mxu0 %v5908_v45  ;;  %3308 = vmatprep.subr.bf16.mxu1 %v5918_v25 }
 0xe1e   : > { %3268 = vmatpush1.bf16.msra.mxu0 %v5925_v8  ;;  %3309 = vmatpush1.bf16.msra.mxu1 %v5936_v39 }
 0xe1f   : > { %3269 = vmatprep.subr.bf16.mxu0 %v5931_v40  ;;  %3310 = vmatprep.subr.bf16.mxu1 %v5941_v9 }
 0xe22   : > { %3270 = vmatpush1.bf16.msra.mxu0 %v5952_v30  ;;  %3311 = vmatpush1.bf16.msra.mxu1 %v5963_v47 }
 0xe23   : > { %3271 = vmatprep.subr.bf16.mxu0 %v5958_v46  ;;  %3312 = vmatprep.subr.bf16.mxu1 %v5969_v55 }
 0xe26   : > { %3272 = vmatpush1.bf16.msra.mxu0 %v5975_v57  ;;  %3313 = vmatpush1.bf16.msra.mxu1 %v5985_v62 }
 0xe27   : > { %3273 = vmatprep.subr.bf16.mxu0 %v5980_v61  ;;  %3314 = vmatprep.subr.bf16.mxu1 %v5991_v18 }
 0xe2a   : > { %3274 = vmatpush1.bf16.msra.mxu0 %v5997_v3  ;;  %3315 = vmatpush1.bf16.msra.mxu1 %v6007_v35 }
 0xe2b   : > { %3275 = vmatprep.subr.bf16.mxu0 %v6002_v23  ;;  %3316 = vmatprep.subr.bf16.mxu1 %v6013_v54 }
 0xe2e   : > { %3276 = vmatpush1.bf16.msra.mxu0 %v6018_v26  ;;  %3317 = vmatpush1.bf16.msra.mxu1 %v6028_v24 }
 0xe2f   : > { %3277 = vmatprep.subr.bf16.mxu0 %v6023_v6  ;;  %3318 = vmatprep.subr.bf16.mxu1 %v6033_v2 }
 0xe32   : > { %3278 = vmatpush1.bf16.msra.mxu0 %v6038_v4  ;;  %3319 = vmatpush1.bf16.msra.mxu1 %v6047_v5 }
 0xe33   : > { %3386 = vmatprep.subr.bf16.mxu0 %v5872_v15  ;;  %3427 = vmatprep.subr.bf16.mxu1 %v5885_v53 }
 0xee8   : > { %v3174_v56 = vpop.f32.mrb[16].mxu0  ;;  %v3215_v51 = vpop.f32.mrb[16].mxu1 }
 0xee9   : > { %v3222_v60 = vadd.f32 %v5280_v17, %v3174_v56  ;;  %v3176_v49 = vpop.f32.mrb[17].mxu0  ;;  %v3217_v58 = vpop.f32.mrb[17].mxu1  ;;  %v3224_v34 = vadd.f32 %v6774_v21, %v3215_v51 }
 0xeea   : > { %v3223_v0 = vadd.f32 %v6772_v59, %v3176_v49  ;;  %v3178_v63 = vpop.f32.mrb[18].mxu0  ;;  %v3219_v50 = vpop.f32.mrb[18].mxu1  ;;  %v3225_v1 = vadd.f32 %v6773_v28, %v3217_v58 }
 0xeeb   : > { %v4058_v20 = vmul.f32 -1.442695, %v3222_v60  ;;  %v3179_v22 = vpop.f32.mrb[19].mxu0  ;;  %v3220_v31 = vpop.f32.mrb[19].mxu1 }
 0xeec   : > { %v4059_v16 = vmul.f32 -1.442695, %v3223_v0  ;;  %v4060_v48 = vmul.f32 -1.442695, %v3225_v1  ;;  %v3256_v63 = vpop.permute.xlu0 %3255 }
 0xeed   : > { %4562 = vpow2.f32 %v4058_v20  ;;  %vm3257_vm12 = vcmp.eq.s32.totalorder %v3256_v63, 1 }
 0xeee   : > { %4564 = vpow2.f32 %v4059_v16 }
 0xeef   : > { %4566 = vpow2.f32 %v4060_v48 }
 0xef0   : > { %4568 = vtanh.f32 %v3224_v34 }
 0xef7   : > { %v4563_v38 = vpop.eup %4562 }
 0xef8   : > { %v4565_v32 = vpop.eup %4564  ;;  %v3229_v17 = vadd.f32 1.0, %v4563_v38 }
 0xef9   : > { %v3235_v7 = vadd.f32 1.0, %v4565_v32  ;;  %v4567_v52 = vpop.eup %4566 }
 0xefa   : > { %4570 = vrcp.f32 %v3229_v17  ;;  %v4569_v56 = vpop.eup %4568  ;;  %v3242_v0 = vadd.f32 1.0, %v4567_v52 }
 0xefb   : > { %4572 = vrcp.f32 %v3235_v7 }
 0xefc   : > { %4574 = vrcp.f32 %v3242_v0 }
 0xf04   : > { %v4571_v60 = vpop.eup %4570 }
 0xf05   : > { %v4573_v49 = vpop.eup %4572  ;;  %v3246_v59 = vmul.f32 %v4571_v60, %v4569_v56 }
 0xf06   : > { %v3245_v58 = vmul.f32 %v4573_v49, %v6254_v10  ;;  %v4575_v20 = vpop.eup %4574 }
 0xf08   : > { %v3247_v50 = vadd.f32 %v3246_v59, %v3245_v58 }
 0xf0a   : > { %4576 = vtanh.f32 %v3247_v50  ;;  %v6303_v51 = vsel %vm3257_vm12, %v3247_v50, %v6254_v10 }
 0xf14   : > { %v4577_v22 = vpop.eup %4576 }
 0xf15   : > { %v3249_v31 = vmul.f32 %v4577_v22, %v4575_v20 }
 0xf17   : > { %v6306_v16 = vsel %vm3257_vm12, %v3249_v31, %v6257_v44  ;;  %v3379_v31 = vpop.permute.xlu1 %3378 }
 0xf18   : > { %4061 = vst [vmem:[%s5041_s17 + $0x18] sm:$0xff] %v6306_v16  ;;  %v3262_v28 = vpack.c.bf16 %v6306_v16, %v6306_v16  ;;  %vm3380_vm13 = vcmp.eq.s32.totalorder %v3379_v31, 1 }
 0xf1a   : > { %3296 = vmatmul.mubr.bf16.vlgmr.msra.gmra.mrb[20].mxu0 %v3262_v28  ;;  %3337 = vmatmul.mubr.bf16.vlgmr.msra.gmra.mrb[20].mxu1 %v3262_v28 }
 0xf1b   : > { %3387 = vmatpush1.bf16.msra.mxu0 %v5876_v27  ;;  %3428 = vmatpush1.bf16.msra.mxu1 %v5892_v43 }
 0xf1c   : > { %3388 = vmatprep.subr.bf16.mxu0 %v5880_v19  ;;  %3429 = vmatprep.subr.bf16.mxu1 %v5896_v12 }
 0xf1d   : > { %3418 = vmatprep.mubr.bf16.mxu0 %v4797_v29  ;;  %3459 = vmatprep.mubr.bf16.mxu1 %v4797_v29 }
 0xf1f   : > { %3389 = vmatpush1.bf16.msra.mxu0 %v5901_v36  ;;  %3430 = vmatpush1.bf16.msra.mxu1 %v5913_v11 }
 0xf20   : > { %3390 = vmatprep.subr.bf16.mxu0 %v5908_v45  ;;  %3431 = vmatprep.subr.bf16.mxu1 %v5918_v25 }
 0xf23   : > { %3391 = vmatpush1.bf16.msra.mxu0 %v5925_v8  ;;  %3432 = vmatpush1.bf16.msra.mxu1 %v5936_v39 }
 0xf24   : > { %3392 = vmatprep.subr.bf16.mxu0 %v5931_v40  ;;  %3433 = vmatprep.subr.bf16.mxu1 %v5941_v9 }
 0xf27   : > { %3393 = vmatpush1.bf16.msra.mxu0 %v5952_v30  ;;  %3434 = vmatpush1.bf16.msra.mxu1 %v5963_v47 }
 0xf28   : > { %3394 = vmatprep.subr.bf16.mxu0 %v5958_v46  ;;  %3435 = vmatprep.subr.bf16.mxu1 %v5969_v55 }
 0xf2b   : > { %3395 = vmatpush1.bf16.msra.mxu0 %v5975_v57  ;;  %3436 = vmatpush1.bf16.msra.mxu1 %v5985_v62 }
 0xf2c   : > { %3396 = vmatprep.subr.bf16.mxu0 %v5980_v61  ;;  %3437 = vmatprep.subr.bf16.mxu1 %v5991_v18 }
 0xf2f   : > { %3397 = vmatpush1.bf16.msra.mxu0 %v5997_v3  ;;  %3438 = vmatpush1.bf16.msra.mxu1 %v6007_v35 }
 0xf30   : > { %3398 = vmatprep.subr.bf16.mxu0 %v6002_v23  ;;  %3439 = vmatprep.subr.bf16.mxu1 %v6013_v54 }
 0xf33   : > { %3399 = vmatpush1.bf16.msra.mxu0 %v6018_v26  ;;  %3440 = vmatpush1.bf16.msra.mxu1 %v6028_v24 }
 0xf34   : > { %3400 = vmatprep.subr.bf16.mxu0 %v6023_v6  ;;  %3441 = vmatprep.subr.bf16.mxu1 %v6033_v2 }
 0xf37   : > { %3401 = vmatpush1.bf16.msra.mxu0 %v6038_v4  ;;  %3442 = vmatpush1.bf16.msra.mxu1 %v6047_v5 }
 0xf38   : > { %3509 = vmatprep.subr.bf16.mxu0 %v5872_v15  ;;  %3550 = vmatprep.subr.bf16.mxu1 %v5885_v53 }
 0xfed   : > { %v3297_v10 = vpop.f32.mrb[20].mxu0  ;;  %v3338_v44 = vpop.f32.mrb[20].mxu1 }
 0xfee   : > { %v3345_v1 = vadd.f32 %v5270_v41, %v3297_v10  ;;  %v3299_v48 = vpop.f32.mrb[21].mxu0  ;;  %v3340_v21 = vpop.f32.mrb[21].mxu1  ;;  %v3347_v53 = vadd.f32 %v5272_v42, %v3338_v44 }
 0xfef   : > { %v3346_v34 = vadd.f32 %v5275_v13, %v3299_v48  ;;  %v3301_v38 = vpop.f32.mrb[22].mxu0  ;;  %v3342_v32 = vpop.f32.mrb[22].mxu1  ;;  %v3348_v15 = vadd.f32 %v5278_v14, %v3340_v21 }
 0xff0   : > { %v4062_v17 = vmul.f32 -1.442695, %v3345_v1  ;;  %v3302_v7 = vpop.f32.mrb[23].mxu0  ;;  %v3343_v52 = vpop.f32.mrb[23].mxu1 }
 0xff1   : > { %v4063_v56 = vmul.f32 -1.442695, %v3346_v34  ;;  %v4064_v60 = vmul.f32 -1.442695, %v3348_v15  ;;  %v6778_v15 = vld [vmem:[#allocation57_spill] sm:$0xff] }
 0xff2   : > { %4578 = vpow2.f32 %v4062_v17  ;;  %v6777_v17 = vld [vmem:[#allocation55_spill] sm:$0xff] }
 0xff3   : > { %4580 = vpow2.f32 %v4063_v56 }
 0xff4   : > { %4582 = vpow2.f32 %v4064_v60 }
 0xff5   : > { %4584 = vtanh.f32 %v3347_v53 }
 0xffc   : > { %v4579_v49 = vpop.eup %4578 }
 0xffd   : > { %v4581_v59 = vpop.eup %4580  ;;  %v3352_v41 = vadd.f32 1.0, %v4579_v49 }
 0xffe   : > { %v3358_v0 = vadd.f32 1.0, %v4581_v59  ;;  %v4583_v13 = vpop.eup %4582 }
 0xfff   : > { %4586 = vrcp.f32 %v3352_v41  ;;  %v4585_v58 = vpop.eup %4584  ;;  %v3365_v22 = vadd.f32 1.0, %v4583_v13 }
0x1000   : > { %4588 = vrcp.f32 %v3358_v0 }
0x1001   : > { %4590 = vrcp.f32 %v3365_v22 }
0x1009   : > { %v4587_v63 = vpop.eup %4586 }
0x100a   : > { %v4589_v50 = vpop.eup %4588  ;;  %v3369_v20 = vmul.f32 %v4587_v63, %v4585_v58  ;;  %v6779_v58 = vld [vmem:[#allocation58_spill] sm:$0xff] }
0x100b   : > { %v3368_v14 = vmul.f32 %v4589_v50, %v6303_v51  ;;  %v4591_v10 = vpop.eup %4590 }
0x100d   : > { %v3370_v28 = vadd.f32 %v3369_v20, %v3368_v14  ;;  %v6780_v20 = vld [vmem:[#allocation56_spill] sm:$0xff] }
0x100f   : > { %4592 = vtanh.f32 %v3370_v28  ;;  %v6352_v42 = vsel %vm3380_vm13, %v3370_v28, %v6303_v51 }
0x1019   : > { %v4593_v44 = vpop.eup %4592 }
0x101a   : > { %v3372_v1 = vmul.f32 %v4593_v44, %v4591_v10 }
0x101c   : > { %v6355_v48 = vsel %vm3380_vm13, %v3372_v1, %v6306_v16 }
0x101d   : > { %4065 = vst [vmem:[%s5041_s17 + $0x10] sm:$0xff] %v6355_v48  ;;  %v3385_v21 = vpack.c.bf16 %v6355_v48, %v6355_v48 }
0x101f   : > { %3419 = vmatmul.mubr.bf16.vlgmr.msra.gmra.mrb[24].mxu0 %v3385_v21  ;;  %3460 = vmatmul.mubr.bf16.vlgmr.msra.gmra.mrb[24].mxu1 %v3385_v21 }
0x1020   : > { %3510 = vmatpush1.bf16.msra.mxu0 %v5876_v27  ;;  %3551 = vmatpush1.bf16.msra.mxu1 %v5892_v43 }
0x1021   : > { %3511 = vmatprep.subr.bf16.mxu0 %v5880_v19  ;;  %3552 = vmatprep.subr.bf16.mxu1 %v5896_v12 }
0x1022   : > { %3541 = vmatprep.mubr.bf16.mxu0 %v4797_v29  ;;  %3582 = vmatprep.mubr.bf16.mxu1 %v4797_v29 }
0x1024   : > { %3512 = vmatpush1.bf16.msra.mxu0 %v5901_v36  ;;  %3553 = vmatpush1.bf16.msra.mxu1 %v5913_v11 }
0x1025   : > { %3513 = vmatprep.subr.bf16.mxu0 %v5908_v45  ;;  %3554 = vmatprep.subr.bf16.mxu1 %v5918_v25 }
0x1028   : > { %3514 = vmatpush1.bf16.msra.mxu0 %v5925_v8  ;;  %3555 = vmatpush1.bf16.msra.mxu1 %v5936_v39 }
0x1029   : > { %3515 = vmatprep.subr.bf16.mxu0 %v5931_v40  ;;  %3556 = vmatprep.subr.bf16.mxu1 %v5941_v9  ;;  %v6775_v9 = vld [vmem:[#allocation60_spill] sm:$0xff] }
0x102c   : > { %3516 = vmatpush1.bf16.msra.mxu0 %v5952_v30  ;;  %3557 = vmatpush1.bf16.msra.mxu1 %v5963_v47  ;;  %v6776_v47 = vld [vmem:[#allocation59_spill] sm:$0xff] }
0x102d   : > { %3517 = vmatprep.subr.bf16.mxu0 %v5958_v46  ;;  %3558 = vmatprep.subr.bf16.mxu1 %v5969_v55 }
0x1030   : > { %3518 = vmatpush1.bf16.msra.mxu0 %v5975_v57  ;;  %3559 = vmatpush1.bf16.msra.mxu1 %v5985_v62 }
0x1031   : > { %3519 = vmatprep.subr.bf16.mxu0 %v5980_v61  ;;  %3560 = vmatprep.subr.bf16.mxu1 %v5991_v18 }
0x1034   : > { %3520 = vmatpush1.bf16.msra.mxu0 %v5997_v3  ;;  %3561 = vmatpush1.bf16.msra.mxu1 %v6007_v35 }
0x1035   : > { %3521 = vmatprep.subr.bf16.mxu0 %v6002_v23  ;;  %3562 = vmatprep.subr.bf16.mxu1 %v6013_v54 }
0x1038   : > { %3522 = vmatpush1.bf16.msra.mxu0 %v6018_v26  ;;  %3563 = vmatpush1.bf16.msra.mxu1 %v6028_v24  ;;  %v3502_v26 = vpop.permute.xlu0 %3501 }
0x1039   : > { %3523 = vmatprep.subr.bf16.mxu0 %v6023_v6  ;;  %3564 = vmatprep.subr.bf16.mxu1 %v6033_v2  ;;  %vm3503_vm14 = vcmp.eq.s32.totalorder %v3502_v26, 1 }
0x103c   : > { %3524 = vmatpush1.bf16.msra.mxu0 %v6038_v4  ;;  %3565 = vmatpush1.bf16.msra.mxu1 %v6047_v5 }
0x10f2   : > { %v3420_v27 = vpop.f32.mrb[24].mxu0  ;;  %v3461_v19 = vpop.f32.mrb[24].mxu1 }
0x10f3   : > { %v3468_v43 = vadd.f32 %v5260_v33, %v3420_v27  ;;  %v3422_v12 = vpop.f32.mrb[25].mxu0  ;;  %v3463_v36 = vpop.f32.mrb[25].mxu1  ;;  %v3470_v55 = vadd.f32 %v6776_v47, %v3461_v19 }
0x10f4   : > { %v3469_v45 = vadd.f32 %v5265_v37, %v3422_v12  ;;  %v3424_v11 = vpop.f32.mrb[26].mxu0  ;;  %v3465_v25 = vpop.f32.mrb[26].mxu1  ;;  %v3471_v30 = vadd.f32 %v6775_v9, %v3463_v36 }
0x10f5   : > { %v4066_v29 = vmul.f32 -1.442695, %v3468_v43  ;;  %v3425_v8 = vpop.f32.mrb[27].mxu0  ;;  %v3466_v40 = vpop.f32.mrb[27].mxu1 }
0x10f6   : > { %v4067_v39 = vmul.f32 -1.442695, %v3469_v45  ;;  %v4068_v46 = vmul.f32 -1.442695, %v3471_v30  ;;  %v3624_v19 = vpop.permute.xlu1 %3623 }
0x10f7   : > { %4594 = vpow2.f32 %v4066_v29  ;;  %vm3625_vm15 = vcmp.eq.s32.totalorder %v3624_v19, 1 }
0x10f8   : > { %4596 = vpow2.f32 %v4067_v39 }
0x10f9   : > { %4598 = vpow2.f32 %v4068_v46 }
0x10fa   : > { %4600 = vtanh.f32 %v3470_v55 }
0x1101   : > { %v4595_v57 = vpop.eup %4594 }
0x1102   : > { %v4597_v61 = vpop.eup %4596  ;;  %v3475_v33 = vadd.f32 1.0, %v4595_v57 }
0x1103   : > { %v3481_v62 = vadd.f32 1.0, %v4597_v61  ;;  %v4599_v37 = vpop.eup %4598 }
0x1104   : > { %4602 = vrcp.f32 %v3475_v33  ;;  %v4601_v18 = vpop.eup %4600  ;;  %v3488_v54 = vadd.f32 1.0, %v4599_v37 }
0x1105   : > { %4604 = vrcp.f32 %v3481_v62 }
0x1106   : > { %4606 = vrcp.f32 %v3488_v54 }
0x110e   : > { %v4603_v3 = vpop.eup %4602 }
0x110f   : > { %v4605_v23 = vpop.eup %4604  ;;  %v3492_v35 = vmul.f32 %v4603_v3, %v4601_v18 }
0x1110   : > { %v3491_v6 = vmul.f32 %v4605_v23, %v6352_v42  ;;  %v4607_v4 = vpop.eup %4606 }
0x1112   : > { %v3493_v24 = vadd.f32 %v3492_v35, %v3491_v6 }
0x1114   : > { %4608 = vtanh.f32 %v3493_v24  ;;  %v3504_v2 = vsel %vm3503_vm14, %v3493_v24, %v6352_v42 }
0x111e   : > { %v4609_v5 = vpop.eup %4608 }
0x111f   : > { %v3495_v51 = vmul.f32 %v4609_v5, %v4607_v4 }
0x1121   : > { %v3505_v16 = vsel %vm3503_vm14, %v3495_v51, %v6355_v48 }
0x1122   : > { %4069 = vst [vmem:[%s5041_s17 + $0x8] sm:$0xff] %v3505_v16  ;;  %v3508_v34 = vpack.c.bf16 %v3505_v16, %v3505_v16 }
0x1124   : > { %3542 = vmatmul.mubr.bf16.vlgmr.msra.gmra.mrb[28].mxu0 %v3508_v34  ;;  %3583 = vmatmul.mubr.bf16.vlgmr.msra.gmra.mrb[28].mxu1 %v3508_v34 }
0x11f7   : > { %v3543_v38 = vpop.f32.mrb[28].mxu0  ;;  %v3584_v32 = vpop.f32.mrb[28].mxu1 }
0x11f8   : > { %v3591_v7 = vadd.f32 %v6777_v17, %v3543_v38  ;;  %v3545_v52 = vpop.f32.mrb[29].mxu0  ;;  %v3586_v56 = vpop.f32.mrb[29].mxu1  ;;  %v3593_v22 = vadd.f32 %v6780_v20, %v3584_v32 }
0x11f9   : > { %v3592_v60 = vadd.f32 %v6778_v15, %v3545_v52  ;;  %v3547_v53 = vpop.f32.mrb[30].mxu0  ;;  %v3588_v49 = vpop.f32.mrb[30].mxu1  ;;  %v3594_v63 = vadd.f32 %v6779_v58, %v3586_v56 }
0x11fa   : > { %v4070_v59 = vmul.f32 -1.442695, %v3591_v7  ;;  %v3548_v41 = vpop.f32.mrb[31].mxu0  ;;  %v3589_v0 = vpop.f32.mrb[31].mxu1 }
0x11fb   : > { %v4071_v13 = vmul.f32 -1.442695, %v3592_v60  ;;  %v4072_v50 = vmul.f32 -1.442695, %v3594_v63 }
0x11fc   : > { %4610 = vpow2.f32 %v4070_v59 }
0x11fd   : > { %4612 = vpow2.f32 %v4071_v13 }
0x11fe   : > { %4614 = vpow2.f32 %v4072_v50 }
0x11ff   : > { %4616 = vtanh.f32 %v3593_v22 }
0x1206   : > { %v4611_v14 = vpop.eup %4610 }
0x1207   : > { %v4613_v31 = vpop.eup %4612  ;;  %v3598_v28 = vadd.f32 1.0, %v4611_v14 }
0x1208   : > { %v3604_v42 = vadd.f32 1.0, %v4613_v31  ;;  %v4615_v10 = vpop.eup %4614 }
0x1209   : > { %4618 = vrcp.f32 %v3598_v28  ;;  %v4617_v44 = vpop.eup %4616  ;;  %v3611_v27 = vadd.f32 1.0, %v4615_v10 }
0x120a   : > { %4620 = vrcp.f32 %v3604_v42 }
0x120b   : > { %4622 = vrcp.f32 %v3611_v27 }
0x1213   : > { %v4619_v1 = vpop.eup %4618 }
0x1214   : > { %v4621_v48 = vpop.eup %4620  ;;  %v3615_v21 = vmul.f32 %v4619_v1, %v4617_v44 }
0x1215   : > { %v3614_v43 = vmul.f32 %v4621_v48, %v3504_v2  ;;  %v4623_v45 = vpop.eup %4622 }
0x1217   : > { %v3616_v12 = vadd.f32 %v3615_v21, %v3614_v43 }
0x1219   : > { %4624 = vtanh.f32 %v3616_v12  ;;  %v3626_v36 = vsel %vm3625_vm15, %v3616_v12, %v3504_v2 }
0x121a   : > { %3630 = vst [vmem:[%s5043_s5] sm:$0xff] %v3626_v36 }
0x1223   : > { %v4625_v11 = vpop.eup %4624 }
0x1224   : > { %v3618_v25 = vmul.f32 %v4625_v11, %v4623_v45 }
0x1226   : > { %v3627_v29 = vsel %vm3625_vm15, %v3618_v25, %v3505_v16 }
0x1227   : > { %3628 = vst [vmem:[%s5041_s17] sm:$0xff] %v3627_v29  ;;  %3629 = vst [vmem:[%s5037_s27] sm:$0xff] %v3627_v29 }
0x1228 PF: > { %s3648_s24 = ssub.s32 1, %s4780_s10  ;;  %s3650_s21 = ssub.s32 1, %s4776_s9 }
0x1229   : > { %s3649_s7 = smul.u32 %s4776_s9, %s3648_s24  ;;  %s4076_s23 = sshll.u32 %s4780_s10, 4 }
0x122a   : > { %s3651_s11 = smul.u32 %s4780_s10, %s3650_s21  ;;  %s3661_s18 = sshll.u32 %s5041_s17, 4  ;;  %s6414_s18 = int_to_ptr.vmem [resolvable:$true] %s3661_s18 }
0x122b   : > { %s4078_s4 = sshll.u32 %s4780_s10, 7  ;;  %s6781_s15 = sld [smem:[#allocation82_spill]] }
0x122c   : > { %s3652_s19 = sadd.s32 %s3651_s11, %s3649_s7  ;;  %s6782_s26 = sld [smem:[#allocation83_spill]] }
0x122d   : > { %s4075_s27 = sshll.u32 %s3652_s19, 3  ;;  %s6784_s17 = sand.u32 1, %s4760_s28  }
0x122e   : > { %s3658_s12 = sadd.s32 %s4076_s23, %s4075_s27  ;;  %s6429_s24 = scalar_lea.sflag [#allocation4], %s6784_s17 }
0x122f   : > { %s4077_s14 = sshll.u32 %s3658_s12, 7  ;;  %s4626_s7 = scalar_lea.vmem %s6414_s18, 1024 }
0x1230   : > { %p4627_p13 = scmp.ne.s32.totalorder %s6414_s18, %s4626_s7  ;;  %s4798_s11 = smov [#allocation3]  }
0x1231   : > { %s6420_s8 = scalar_lea.hbm %s6781_s15, %s4077_s14  ;;  %s4630_s10 = sshll.u32 %s4798_s11, 4  ;;  %s4631_s10 = int_to_ptr.vmem [resolvable:$false] %s4630_s10 }
0x1232   : > { %s6783_s21 = smov %s6782_s26  ;;  %s6425_s29 = scalar_lea.hbm %s6782_s26, %s4078_s4 }
0x1233   : > { %p4628_p1 = pnand %p4627_p13, %p4948_p10  ;;  %s4632_s23 = scalar_lea.vmem %s4631_s10, 2048 }
0x1234   : > { %p4633_p4 = scmp.lt.s32.totalorder %s6414_s18, %s4631_s10  ;;  %p4634_p6 = scmp.lt.s32.totalorder %s4632_s23, %s4626_s7 }
0x1235   : > { %p4629_p5 = pneg %p4628_p1 }
0x1236   : > { %p4635_p7 = por %p4634_p6, %p4633_p4 }
0x1238   : > { %p4636_p8 = pnand %p4635_p7, %p4629_p5 }
0x123a   : > { %4639 = shalt.err (!%p4636_p8)
}
0x123b   : > { %s4640_s19 = scalar_lea.hbm %s6420_s8, 1024  ;;  %s4644_s14 = scalar_lea.hbm %s6781_s15, 4096 }
0x123c   : > { %p4641_p9 = scmp.ne.s32.totalorder %s6420_s8, %s4640_s19  ;;  %p4645_p13 = scmp.lt.u32.totalorder %s6420_s8, %s6781_s15 }
0x123d   : > { %p4646_p1 = scmp.lt.u32.totalorder %s4644_s14, %s4640_s19  ;;  %p4648_p4 = scmp.lt.u32.totalorder %s4640_s19, %s6420_s8 }
0x123e   : > { %p4642_p11 = pnand %p4641_p9, %p4948_p10 }
0x123f   : > { %p4647_p5 = por %p4646_p1, %p4645_p13 }
0x1240   : > { %p4643_p12 = pneg %p4642_p11 }
0x1241   : > { %p4649_p6 = por %p4648_p4, %p4647_p5 }
0x1243   : > { %p4650_p7 = pnand %p4649_p6, %p4643_p12 }
0x1245   : > { %4653 = shalt.err (!%p4650_p7)
}
0x1246   : > { %s4799_s30 = smov 128   ;;  %s4800_s0 = smov 8  }
0x1247   : > { %4148 = dma.vmem_to_hbm [thread:$0]  (%p4948_p10), %s6414_s18, 1024, %s6420_s8, %s6429_s24, %s4799_s30, %s4799_s30, %s4800_s0  }
0x1248   : > { %s3680_s9 = sshll.u32 %s5043_s5, 4  ;;  %s6785_s26 = sand.u32 1, %s4748_s25   ;;  %s3681_s9 = int_to_ptr.vmem [resolvable:$true] %s3680_s9 }
0x1249   : > { %s3641_s17 = scalar_lea.sflag [#allocation6], %s6785_s26  ;;  %s4654_s7 = scalar_lea.vmem %s3681_s9, 128 }
0x124a   : > { %p4655_p8 = scmp.ne.s32.totalorder %s3681_s9, %s4654_s7  ;;  %s4801_s11 = smov [#allocation5]  }
0x124b   : > { %s4658_s10 = sshll.u32 %s4801_s11, 4  ;;  %s4659_s10 = int_to_ptr.vmem [resolvable:$false] %s4658_s10 }
0x124c   : > { %p4656_p9 = pnand %p4655_p8, %p4974_p2  ;;  %s4660_s23 = scalar_lea.vmem %s4659_s10, 256 }
0x124d   : > { %p4661_p12 = scmp.lt.s32.totalorder %s3681_s9, %s4659_s10  ;;  %p4662_p13 = scmp.lt.s32.totalorder %s4660_s23, %s4654_s7 }
0x124e   : > { %p4657_p11 = pneg %p4656_p9 }
0x124f   : > { %p4663_p1 = por %p4662_p13, %p4661_p12 }
0x1251   : > { %p4664_p5 = pnand %p4663_p1, %p4657_p11 }
0x1253   : > { %4667 = shalt.err (!%p4664_p5)
}
0x1254   : > { %s4668_s16 = scalar_lea.hbm %s6425_s29, 128  ;;  %s4672_s8 = scalar_lea.hbm %s6783_s21, 256 }
0x1255   : > { %p4669_p10 = scmp.ne.s32.totalorder %s6425_s29, %s4668_s16  ;;  %p4673_p7 = scmp.lt.u32.totalorder %s6425_s29, %s6783_s21 }
0x1256   : > { %p4674_p8 = scmp.lt.u32.totalorder %s4672_s8, %s4668_s16  ;;  %p4676_p11 = scmp.lt.u32.totalorder %s4668_s16, %s6425_s29 }
0x1257   : > { %p4670_p4 = pnand %p4669_p10, %p4974_p2 }
0x1258   : > { %p4675_p9 = por %p4674_p8, %p4673_p7 }
0x1259   : > { %p4671_p6 = pneg %p4670_p4 }
0x125a   : > { %p4677_p12 = por %p4676_p11, %p4675_p9 }
0x125c   : > { %p4678_p13 = pnand %p4677_p12, %p4671_p6 }
0x125e   : > { %4681 = shalt.err (!%p4678_p13)
}
0x125f   : > { %4149 = dma.vmem_to_hbm [thread:$0]  (%p4974_p2), %s3681_s9, 128, %s6425_s29, %s3641_s17  }
0x1260 PF: > { %s6786_s27 = sld [smem:[#allocation11_spill]]  ;;  %p4159_p1 = scmp.ge.s32.totalorder %s4792_s13, 2 }
0x1262   : > { %p4153_p5 = pnand %p4159_p1, %p4963_p0 }
0x1266   : > { %s3692_s14 = sand.u32 1, %s6786_s27  }
0x1267   : > { %s3693_s4 = scalar_lea.sflag [#allocation4], %s3692_s14 }
0x1268   : > { %4735 = dma.done.wait (!%p4153_p5), %s3693_s4, 1024  }
0x1269   : > { %4737 = vsyncadd (!%p4153_p5), %s3693_s4, 4294966272  ;;  %s6788_s20 = sld [smem:[#allocation9_spill]]  ;;  %p4156_p10 = pnand %p4159_p1, %p4978_p3 }
0x126f   : > { %s3708_s0 = sand.u32 1, %s6788_s20  }
0x1270   : > { %s3709_s26 = scalar_lea.sflag [#allocation6], %s3708_s0 }
0x1271   : > { %4739 = dma.done.wait (!%p4156_p10), %s3709_s26, 128  }
0x1272   : > { %4741 = vsyncadd (!%p4156_p10), %s3709_s26, 4294967168  ;;  %s24_s13 = sadd.s32 1, %s4792_s13   ;;  %s6791_s29 = sld [smem:[#allocation10_spill]] }
0x1273   : > { %p6481_p2 = scmp.ge.s32.totalorder %s24_s13, 6   ;;  %s6792_s26 = sld [smem:[#allocation21_spill]] }
0x1274   : > { %s6793_s9 = sld [smem:[#allocation12_spill]]  ;;  %s6794_s17 = sld [smem:[#allocation19_spill]] }
0x1275   : > { %s6795_s30 = sld [smem:[#allocation13_spill]]  ;;  %s6796_s8 = sld [smem:[#allocation18_spill]] }
0x1276   : > { %s6797_s7 = sld [smem:[#allocation14_spill]]  ;;  %s6798_s10 = sld [smem:[#allocation15_spill]] }
0x1277   : > { %s6799_s11 = sld [smem:[#allocation16_spill]]  ;;  %s6800_s12 = sld [smem:[#allocation17_spill]] }
0x1278   : > { %s6801_s24 = smov %s4748_s25  ;;  %s6802_s25 = smov %s6791_s29 }
0x1279   : > { %s6803_s27 = smov %s4760_s28  ;;  %23 = sbr.rel (!%p6481_p2) target bundleno = 15 (0xf), region = 183 }
0x127a   : > { %s6804_s28 = smov %s6793_s9  ;;  %s6805_s29 = smov %s6794_s17 }
0x127c   : > { %s6806_s9 = smov %s6797_s7 }
0x1280   :  { %3714 = vsyncpa [#allocation4], 1 }
0x1281   :  { %3716 = vsyncpa [#allocation4 + $0x1], 1 }
0x1282   :  { %3717 = vsyncpa [#allocation6], 1 }
0x1283   :  { %3719 = vsyncpa [#allocation6 + $0x1], 1 }

</bundles_post_ra>
